<compile_context>
chip_gen: v7x
topology: tpu7x:2x2x1
jax: 0.10.0
libtpu: 0.0.40
codegen_flags: <defaults>
</compile_context>

<pallas_src>
import functools

import jax
import jax.numpy as jnp
import numpy as np
from jax.experimental import pallas as pl
from jax.experimental.pallas import tpu as pltpu


# -----------------------------------------------------------------------------
# One-time layout helpers (run once in prepare_params / on the tiny input).
# -----------------------------------------------------------------------------
def _stack_phases(x):
    """(N, C, H, W) -> (N, 8*C, (Ho+1)*Wo) phase-plane stack for a 4x4/s2/p1 conv.

    Plane p = kw*2 + ph holds plane[n, ci, r, c] = x_pad[n, ci, 2*r + ph, 2*c + kw]
    flattened over (r, c) with row length Wo, so the in-kernel row shift
    dh in {0, 1} is the contiguous slice [dh*Wo : dh*Wo + Ho*Wo].
    """
    n, c, h, w = x.shape
    ho, wo = h // 2, w // 2
    xp = jnp.pad(x, ((0, 0), (0, 0), (1, 1), (1, 1)))
    planes = []
    for kw in range(4):
        for ph in range(2):
            planes.append(xp[:, :, ph::2, kw::2][:, :, : ho + 1, :wo])
    xs = jnp.stack(planes, axis=1)                     # (N, 8, C, Ho+1, Wo)
    return xs.reshape(n, 8 * c, (ho + 1) * wo)


def _pack_weights(w):
    """(Cout, Cin, 4, 4) OIHW -> (2, Cout, 8*Cin) matching the phase-plane K order."""
    cout, cin, kh_sz, kw_sz = w.shape
    w_ = w.transpose(3, 2, 0, 1)                       # (kw, kh, co, ci)
    w_ = w_.reshape(kw_sz, 2, 2, cout, cin)            # kh = 2*dh + ph
    w_ = w_.transpose(1, 3, 0, 2, 4)                   # (dh, co, kw, ph, ci)
    return w_.reshape(2, cout, kw_sz * 2 * cin)


def _make_selectors(h, w):
    """0/1 matrices (8, H*W, (Ho+1)*Wo): plane_p = activation(C, H*W) @ sel[p].

    sel[p, m, l] = 1  iff flattened source pixel m = hh*W + ww is the padded
    input pixel used at plane position l = r*Wo + c of phase p = kw*2 + ph,
    i.e. hh = 2r+ph-1 and ww = 2c+kw-1 (rows are all-zero for pad positions,
    which reproduces the zero padding exactly).
    """
    ho, wo = h // 2, w // 2
    lp = (ho + 1) * wo
    sel = np.zeros((8, h * w, lp), np.float32)
    for kw in range(4):
        for ph in range(2):
            p = kw * 2 + ph
            for r in range(ho + 1):
                hh = 2 * r + ph - 1
                if hh < 0 or hh >= h:
                    continue
                for c in range(wo):
                    ww = 2 * c + kw - 1
                    if ww < 0 or ww >= w:
                        continue
                    sel[p, hh * w + ww, r * wo + c] = 1.0
    return sel


def prepare_params(blocks, w5, b5, h, w):
    """One-time packing of all parameters (hoisted out of the per-step forward)."""
    params = {"w": [], "gb": [], "sel": []}
    hh, ww = h, w
    for i, (wt, g, b) in enumerate(blocks):
        params["w"].append(jnp.asarray(_pack_weights(wt), jnp.bfloat16))
        gb = jnp.stack([g.reshape(-1, 1), b.reshape(-1, 1)]).astype(jnp.float32)
        params["gb"].append(gb)                        # (2, Cout, 1)
        if i > 0:                                      # gathers FROM layer i-1's output
            params["sel"].append(jnp.asarray(_make_selectors(hh, ww), jnp.bfloat16))
        hh, ww = hh // 2, ww // 2
    params["w5"] = jnp.asarray(w5.reshape(w5.shape[1], -1), jnp.float32)   # (C4, 16)
    params["b5"] = jnp.asarray(b5.reshape(1, 1), jnp.float32)
    return params


# -----------------------------------------------------------------------------
# Fused whole-network Pallas kernel (one batch element per grid step).
# -----------------------------------------------------------------------------
def _conv_in_lrelu(stack_bf16, w_ref, gb_ref, *, wo, l, eps, slope):
    """4x4/s2/p1 conv (2 MXU matmuls on the phase stack) + InstanceNorm + LeakyReLU.

    Returns the activation as (Cout, Ho*Wo) in f32 (spatial on the lane axis).
    """
    acc = jnp.dot(w_ref[0], stack_bf16[:, :l], preferred_element_type=jnp.float32)
    acc = acc + jnp.dot(w_ref[1], stack_bf16[:, wo:wo + l],
                        preferred_element_type=jnp.float32)
    inv_l = 1.0 / l
    mean = jnp.sum(acc, axis=1, keepdims=True) * inv_l
    ex2 = jnp.sum(acc * acc, axis=1, keepdims=True) * inv_l
    var = jnp.maximum(ex2 - mean * mean, 0.0)
    rstd = jax.lax.rsqrt(var + eps)                    # EUP slot
    y = (acc - mean) * (rstd * gb_ref[0]) + gb_ref[1]  # gamma / beta
    return jnp.where(y > 0, y, slope * y)              # LeakyReLU(0.2)


def _critic_kernel(x_ref, w1_ref, gb1_ref, sel2_ref, w2_ref, gb2_ref,
                   sel3_ref, w3_ref, gb3_ref, sel4_ref, w4_ref, gb4_ref,
                   w5_ref, b5_ref, o_ref, stk2_ref, stk3_ref, stk4_ref,
                   *, dims, eps, slope):
    (wo1, l1), (wo2, l2), (wo3, l3), (wo4, l4) = dims

    # Layer 1: phase planes were pre-stacked in JAX (tiny input).
    y = _conv_in_lrelu(x_ref[0], w1_ref, gb1_ref, wo=wo1, l=l1, eps=eps, slope=slope)

    # Layers 2-4: build the 8 phase planes in-kernel with tiny gather matmuls
    # against the resident 0/1 selection matrices, stack them in VMEM scratch,
    # then run the 2-matmul conv + fused InstanceNorm/LeakyReLU epilogue.
    for sel_ref, w_ref, gb_ref, stk_ref, (wo, l) in (
            (sel2_ref, w2_ref, gb2_ref, stk2_ref, (wo2, l2)),
            (sel3_ref, w3_ref, gb3_ref, stk3_ref, (wo3, l3)),
            (sel4_ref, w4_ref, gb4_ref, stk4_ref, (wo4, l4))):
        yb = y.astype(jnp.bfloat16)                    # single bf16 cast per layer
        c_prev = yb.shape[0]
        for p in range(8):                             # exact gather (0/1 weights)
            stk_ref[p * c_prev:(p + 1) * c_prev, :] = jnp.dot(
                yb, sel_ref[p], preferred_element_type=jnp.float32)
        stack = stk_ref[...].astype(jnp.bfloat16)      # values are bf16-exact
        y = _conv_in_lrelu(stack, w_ref, gb_ref, wo=wo, l=l, eps=eps, slope=slope)

    # Final Conv2d(C4 -> 1, 4x4, stride 2, VALID) on the 4x4 map == full dot.
    s = jnp.sum(y * w5_ref[...], keepdims=True)        # (1, 1) f32
    o_ref[0] = (s + b5_ref[...]).astype(o_ref.dtype)


def critic_forward(x, params, *, eps=1e-5, slope=0.2):
    """Full Critic forward in one pallas_call (grid over the batch)."""
    n, c_in, h, w = x.shape
    dims = []
    hh, ww = h, w
    for _ in range(4):
        hh, ww = hh // 2, ww // 2
        dims.append((ww, hh * ww))                     # (Wo, Ho*Wo) per layer
    assert dims[-1] == (4, 16), "fused final conv expects a 4x4 pre-final map (64x64 input)"

    xs = _stack_phases(x.astype(jnp.bfloat16))         # (N, 8*C_in, Lp1)
    k8, lp1 = xs.shape[1], xs.shape[2]

    w1, w2, w3, w4 = params["w"]
    gb1, gb2, gb3, gb4 = params["gb"]
    sel2, sel3, sel4 = params["sel"]
    w5, b5 = params["w5"], params["b5"]
    c1, c2, c3 = w1.shape[1], w2.shape[1], w3.shape[1]

    kern = functools.partial(_critic_kernel, dims=tuple(dims), eps=eps, slope=slope)

    const3 = lambda i: (0, 0, 0)
    const2 = lambda i: (0, 0)
    in_specs = [
        pl.BlockSpec((1, k8, lp1), lambda i: (i, 0, 0)),   # per-image layer-1 planes
        pl.BlockSpec(w1.shape, const3), pl.BlockSpec(gb1.shape, const3),
        pl.BlockSpec(sel2.shape, const3),
        pl.BlockSpec(w2.shape, const3), pl.BlockSpec(gb2.shape, const3),
        pl.BlockSpec(sel3.shape, const3),
        pl.BlockSpec(w3.shape, const3), pl.BlockSpec(gb3.shape, const3),
        pl.BlockSpec(sel4.shape, const3),
        pl.BlockSpec(w4.shape, const3), pl.BlockSpec(gb4.shape, const3),
        pl.BlockSpec(w5.shape, const2), pl.BlockSpec(b5.shape, const2),
    ]
    scratch_shapes = [
        pltpu.VMEM((8 * c1, dims[1][1] + dims[1][0]), jnp.float32),   # (64, 272)
        pltpu.VMEM((8 * c2, dims[2][1] + dims[2][0]), jnp.float32),   # (128, 72)
        pltpu.VMEM((8 * c3, dims[3][1] + dims[3][0]), jnp.float32),   # (256, 20)
    ]

    out = pl.pallas_call(
        kern,
        out_shape=jax.ShapeDtypeStruct((n, 1, 1), jnp.float32),
        grid_spec=pltpu.PrefetchScalarGridSpec(
            num_scalar_prefetch=0,
            grid=(n,),
            in_specs=in_specs,
            out_specs=pl.BlockSpec((1, 1, 1), lambda i: (i, 0, 0)),
            scratch_shapes=scratch_shapes,
        ),
        compiler_params=pltpu.CompilerParams(
            dimension_semantics=("parallel",),          # batch over TCs (v7x megacore)
            vmem_limit_bytes=40 * 1024 * 1024,          # ~12 MiB resident; <64 MiB (v7x)
        ),
    )(xs, w1, gb1, sel2, w2, gb2, sel3, w3, gb3, sel4, w4, gb4, w5, b5)
    return out.reshape(n, 1, 1, 1)


# -----------------------------------------------------------------------------
# Pure-JAX reference (same bf16 input casts) used as a correctness check.
# -----------------------------------------------------------------------------
def reference_forward(x, blocks, w5, b5, eps=1e-5, slope=0.2):
    h = x.astype(jnp.bfloat16)
    y = None
    for (w, g, b) in blocks:
        conv = jax.lax.conv_general_dilated(
            h, w.astype(jnp.bfloat16), window_strides=(2, 2),
            padding=((1, 1), (1, 1)),
            dimension_numbers=("NCHW", "OIHW", "NCHW"),
            preferred_element_type=jnp.float32)
        mean = jnp.mean(conv, axis=(2, 3), keepdims=True)
        var = jnp.maximum(
            jnp.mean(conv * conv, axis=(2, 3), keepdims=True) - mean * mean, 0.0)
        y = (conv - mean) * jax.lax.rsqrt(var + eps)
        y = y * g.reshape(1, -1, 1, 1) + b.reshape(1, -1, 1, 1)
        y = jnp.where(y > 0, y, slope * y)
        h = y.astype(jnp.bfloat16)
    out = jnp.sum(y * w5[0][None, ...], axis=(1, 2, 3)) + b5[0]
    return out.reshape(-1, 1, 1, 1)


# -----------------------------------------------------------------------------
# Driver.
# -----------------------------------------------------------------------------
if __name__ == "__main__":
    key = jax.random.PRNGKey(0)
    ks = jax.random.split(key, 16)

    N, C_IN, H, W = 2, 3, 64, 64      # 64x64 input as the module's final conv implies
    FEATURES_D = 8
    chans = [C_IN, FEATURES_D, FEATURES_D * 2, FEATURES_D * 4, FEATURES_D * 8]

    x = jax.random.normal(ks[0], (N, C_IN, H, W), jnp.float32)

    blocks = []
    ki = 1
    for i in range(4):
        cin, cout = chans[i], chans[i + 1]
        w = 0.05 * jax.random.normal(ks[ki], (cout, cin, 4, 4), jnp.float32); ki += 1
        g = 1.0 + 0.1 * jax.random.normal(ks[ki], (cout,), jnp.float32); ki += 1
        b = 0.1 * jax.random.normal(ks[ki], (cout,), jnp.float32); ki += 1
        blocks.append((w, g, b))
    w5 = 0.05 * jax.random.normal(ks[ki], (1, FEATURES_D * 8, 4, 4), jnp.float32); ki += 1
    b5 = 0.05 * jax.random.normal(ks[ki], (1,), jnp.float32); ki += 1

    # One-time parameter packing (hoisted out of the per-step forward).
    params = prepare_params(blocks, w5, b5, H, W)

    fwd = jax.jit(critic_forward)
    out = jax.block_until_ready(fwd(x, params))

    ref = jax.block_until_ready(reference_forward(x, blocks, w5, b5))
    np.testing.assert_allclose(np.asarray(out), np.asarray(ref), rtol=2e-2, atol=2e-2)

    print("KERNEL_OK")
</pallas_src>

<mosaic_0001>
module attributes {stable_mosaic.version = 11 : i64} {
  func.func @_critic_kernel(%arg0: i32, %arg1: memref<1x24x1056xbf16, #tpu.memory_space<vmem>>, %arg2: memref<2x8x24xbf16, #tpu.memory_space<vmem>>, %arg3: memref<2x8x1xf32, #tpu.memory_space<vmem>>, %arg4: memref<8x1024x272xbf16, #tpu.memory_space<vmem>>, %arg5: memref<2x16x64xbf16, #tpu.memory_space<vmem>>, %arg6: memref<2x16x1xf32, #tpu.memory_space<vmem>>, %arg7: memref<8x256x72xbf16, #tpu.memory_space<vmem>>, %arg8: memref<2x32x128xbf16, #tpu.memory_space<vmem>>, %arg9: memref<2x32x1xf32, #tpu.memory_space<vmem>>, %arg10: memref<8x64x20xbf16, #tpu.memory_space<vmem>>, %arg11: memref<2x64x256xbf16, #tpu.memory_space<vmem>>, %arg12: memref<2x64x1xf32, #tpu.memory_space<vmem>>, %arg13: memref<64x16xf32, #tpu.memory_space<vmem>>, %arg14: memref<1x1xf32, #tpu.memory_space<vmem>>, %arg15: memref<1x1x1xf32, #tpu.memory_space<vmem>>, %arg16: memref<64x272xf32, #tpu.memory_space<vmem>>, %arg17: memref<128x72xf32, #tpu.memory_space<vmem>>, %arg18: memref<256x20xf32, #tpu.memory_space<vmem>>) attributes {dimension_semantics = [#tpu.dimension_semantics<parallel>], iteration_bounds = array<i64: 2>, scalar_prefetch = 0 : i64, scratch_operands = 3 : i64, tpu.core_type = #tpu.core_type<tc>, window_params = [{transform_indices = @transform_0, window_bounds = array<i64: 1, 24, 1056>}, {pipeline_mode = #tpu.pipeline_mode<synchronous>, transform_indices = @transform_1, window_bounds = array<i64: 2, 8, 24>}, {pipeline_mode = #tpu.pipeline_mode<synchronous>, transform_indices = @transform_2, window_bounds = array<i64: 2, 8, 1>}, {pipeline_mode = #tpu.pipeline_mode<synchronous>, transform_indices = @transform_3, window_bounds = array<i64: 8, 1024, 272>}, {pipeline_mode = #tpu.pipeline_mode<synchronous>, transform_indices = @transform_4, window_bounds = array<i64: 2, 16, 64>}, {pipeline_mode = #tpu.pipeline_mode<synchronous>, transform_indices = @transform_5, window_bounds = array<i64: 2, 16, 1>}, {pipeline_mode = #tpu.pipeline_mode<synchronous>, transform_indices = @transform_6, window_bounds = array<i64: 8, 256, 72>}, {pipeline_mode = #tpu.pipeline_mode<synchronous>, transform_indices = @transform_7, window_bounds = array<i64: 2, 32, 128>}, {pipeline_mode = #tpu.pipeline_mode<synchronous>, transform_indices = @transform_8, window_bounds = array<i64: 2, 32, 1>}, {pipeline_mode = #tpu.pipeline_mode<synchronous>, transform_indices = @transform_9, window_bounds = array<i64: 8, 64, 20>}, {pipeline_mode = #tpu.pipeline_mode<synchronous>, transform_indices = @transform_10, window_bounds = array<i64: 2, 64, 256>}, {pipeline_mode = #tpu.pipeline_mode<synchronous>, transform_indices = @transform_11, window_bounds = array<i64: 2, 64, 1>}, {pipeline_mode = #tpu.pipeline_mode<synchronous>, transform_indices = @transform_12, window_bounds = array<i64: 64, 16>}, {pipeline_mode = #tpu.pipeline_mode<synchronous>, transform_indices = @transform_13, window_bounds = array<i64: 1, 1>}, {transform_indices = @transform_14, window_bounds = array<i64: 1, 1, 1>}]} {
    %c0 = arith.constant 0 : index
    %c0_0 = arith.constant 0 : index
    %c0_1 = arith.constant 0 : index
    %0 = vector.load %arg1[%c0, %c0_0, %c0_1] : memref<1x24x1056xbf16, #tpu.memory_space<vmem>>, vector<1x24x1056xbf16>
    %1 = vector.shape_cast %0 : vector<1x24x1056xbf16> to vector<24x1056xbf16>
    %c0_2 = arith.constant 0 : index
    %c0_3 = arith.constant 0 : index
    %c0_4 = arith.constant 0 : index
    %2 = vector.load %arg2[%c0_2, %c0_3, %c0_4] : memref<2x8x24xbf16, #tpu.memory_space<vmem>>, vector<1x8x24xbf16>
    %3 = vector.shape_cast %2 : vector<1x8x24xbf16> to vector<8x24xbf16>
    %4 = vector.extract_strided_slice %1 {offsets = [0, 0], sizes = [24, 1024], strides = [1, 1]} : vector<24x1056xbf16> to vector<24x1024xbf16>
    %cst = arith.constant dense<0.000000e+00> : vector<8x1024xf32>
    %5 = tpu.matmul %3, %4, %cst {dimension_numbers = #tpu.dot_dimension_numbers<[1], [0], [0], [1], [0, 0, 1, 1], [], []>} : vector<8x24xbf16>, vector<24x1024xbf16>, vector<8x1024xf32> -> vector<8x1024xf32>
    %c1 = arith.constant 1 : index
    %c0_5 = arith.constant 0 : index
    %c0_6 = arith.constant 0 : index
    %6 = vector.load %arg2[%c1, %c0_5, %c0_6] : memref<2x8x24xbf16, #tpu.memory_space<vmem>>, vector<1x8x24xbf16>
    %7 = vector.shape_cast %6 : vector<1x8x24xbf16> to vector<8x24xbf16>
    %8 = vector.extract_strided_slice %1 {offsets = [0, 32], sizes = [24, 1024], strides = [1, 1]} : vector<24x1056xbf16> to vector<24x1024xbf16>
    %cst_7 = arith.constant dense<0.000000e+00> : vector<8x1024xf32>
    %9 = tpu.matmul %7, %8, %cst_7 {dimension_numbers = #tpu.dot_dimension_numbers<[1], [0], [0], [1], [0, 0, 1, 1], [], []>} : vector<8x24xbf16>, vector<24x1024xbf16>, vector<8x1024xf32> -> vector<8x1024xf32>
    %10 = arith.addf %5, %9 : vector<8x1024xf32>
    %cst_8 = arith.constant dense<0.000000e+00> : vector<8xf32>
    %11 = vector.multi_reduction <add>, %10, %cst_8 [1] : vector<8x1024xf32> to vector<8xf32>
    %12 = vector.shape_cast %11 : vector<8xf32> to vector<8x1xf32>
    %cst_9 = arith.constant 9.765625E-4 : f32
    %13 = vector.broadcast %cst_9 : f32 to vector<8x1xf32>
    %14 = arith.mulf %12, %13 : vector<8x1xf32>
    %15 = arith.mulf %10, %10 : vector<8x1024xf32>
    %cst_10 = arith.constant dense<0.000000e+00> : vector<8xf32>
    %16 = vector.multi_reduction <add>, %15, %cst_10 [1] : vector<8x1024xf32> to vector<8xf32>
    %17 = vector.shape_cast %16 : vector<8xf32> to vector<8x1xf32>
    %cst_11 = arith.constant 9.765625E-4 : f32
    %18 = vector.broadcast %cst_11 : f32 to vector<8x1xf32>
    %19 = arith.mulf %17, %18 : vector<8x1xf32>
    %20 = arith.mulf %14, %14 : vector<8x1xf32>
    %21 = arith.subf %19, %20 : vector<8x1xf32>
    %cst_12 = arith.constant 0.000000e+00 : f32
    %22 = vector.broadcast %cst_12 : f32 to vector<8x1xf32>
    %23 = arith.maximumf %21, %22 : vector<8x1xf32>
    %cst_13 = arith.constant 9.99999974E-6 : f32
    %24 = vector.broadcast %cst_13 : f32 to vector<8x1xf32>
    %25 = arith.addf %23, %24 : vector<8x1xf32>
    %26 = math.rsqrt %25 : vector<8x1xf32>
    %27 = vector.broadcast %14 : vector<8x1xf32> to vector<8x1024xf32>
    %28 = arith.subf %10, %27 : vector<8x1024xf32>
    %c0_14 = arith.constant 0 : index
    %c0_15 = arith.constant 0 : index
    %c0_16 = arith.constant 0 : index
    %29 = vector.load %arg3[%c0_14, %c0_15, %c0_16] : memref<2x8x1xf32, #tpu.memory_space<vmem>>, vector<1x8x1xf32>
    %30 = vector.shape_cast %29 : vector<1x8x1xf32> to vector<8x1xf32>
    %31 = arith.mulf %26, %30 : vector<8x1xf32>
    %32 = vector.broadcast %31 : vector<8x1xf32> to vector<8x1024xf32>
    %33 = arith.mulf %28, %32 : vector<8x1024xf32>
    %c1_17 = arith.constant 1 : index
    %c0_18 = arith.constant 0 : index
    %c0_19 = arith.constant 0 : index
    %34 = vector.load %arg3[%c1_17, %c0_18, %c0_19] : memref<2x8x1xf32, #tpu.memory_space<vmem>>, vector<1x8x1xf32>
    %35 = vector.shape_cast %34 : vector<1x8x1xf32> to vector<8x1xf32>
    %36 = vector.broadcast %35 : vector<8x1xf32> to vector<8x1024xf32>
    %37 = arith.addf %33, %36 : vector<8x1024xf32>
    %cst_20 = arith.constant 0.000000e+00 : f32
    %38 = vector.broadcast %cst_20 : f32 to vector<8x1024xf32>
    %39 = arith.cmpf ogt, %37, %38 : vector<8x1024xf32>
    %cst_21 = arith.constant 2.000000e-01 : f32
    %40 = vector.broadcast %cst_21 : f32 to vector<8x1024xf32>
    %41 = arith.mulf %40, %37 : vector<8x1024xf32>
    %42 = arith.select %39, %37, %41 : vector<8x1024xi1>, vector<8x1024xf32>
    %43 = arith.truncf %42 : vector<8x1024xf32> to vector<8x1024xbf16>
    %c0_22 = arith.constant 0 : index
    %c0_23 = arith.constant 0 : index
    %c0_24 = arith.constant 0 : index
    %44 = vector.load %arg4[%c0_22, %c0_23, %c0_24] : memref<8x1024x272xbf16, #tpu.memory_space<vmem>>, vector<1x1024x272xbf16>
    %45 = vector.shape_cast %44 : vector<1x1024x272xbf16> to vector<1024x272xbf16>
    %cst_25 = arith.constant dense<0.000000e+00> : vector<8x272xf32>
    %46 = tpu.matmul %43, %45, %cst_25 {dimension_numbers = #tpu.dot_dimension_numbers<[1], [0], [0], [1], [0, 0, 1, 1], [], []>} : vector<8x1024xbf16>, vector<1024x272xbf16>, vector<8x272xf32> -> vector<8x272xf32>
    %c0_26 = arith.constant 0 : index
    %c0_27 = arith.constant 0 : index
    %47 = vector.load %arg16[%c0_26, %c0_27] : memref<64x272xf32, #tpu.memory_space<vmem>>, vector<8x272xf32>
    tpu.vector_store %arg16[%c0_26, %c0_27], %46 {strides = array<i32>} : memref<64x272xf32, #tpu.memory_space<vmem>>, vector<8x272xf32>,
    %c1_28 = arith.constant 1 : index
    %c0_29 = arith.constant 0 : index
    %c0_30 = arith.constant 0 : index
    %48 = vector.load %arg4[%c1_28, %c0_29, %c0_30] : memref<8x1024x272xbf16, #tpu.memory_space<vmem>>, vector<1x1024x272xbf16>
    %49 = vector.shape_cast %48 : vector<1x1024x272xbf16> to vector<1024x272xbf16>
    %cst_31 = arith.constant dense<0.000000e+00> : vector<8x272xf32>
    %50 = tpu.matmul %43, %49, %cst_31 {dimension_numbers = #tpu.dot_dimension_numbers<[1], [0], [0], [1], [0, 0, 1, 1], [], []>} : vector<8x1024xbf16>, vector<1024x272xbf16>, vector<8x272xf32> -> vector<8x272xf32>
    %c8 = arith.constant 8 : index
    %c0_32 = arith.constant 0 : index
    %51 = vector.load %arg16[%c8, %c0_32] : memref<64x272xf32, #tpu.memory_space<vmem>>, vector<8x272xf32>
    tpu.vector_store %arg16[%c8, %c0_32], %50 {strides = array<i32>} : memref<64x272xf32, #tpu.memory_space<vmem>>, vector<8x272xf32>,
    %c2 = arith.constant 2 : index
    %c0_33 = arith.constant 0 : index
    %c0_34 = arith.constant 0 : index
    %52 = vector.load %arg4[%c2, %c0_33, %c0_34] : memref<8x1024x272xbf16, #tpu.memory_space<vmem>>, vector<1x1024x272xbf16>
    %53 = vector.shape_cast %52 : vector<1x1024x272xbf16> to vector<1024x272xbf16>
    %cst_35 = arith.constant dense<0.000000e+00> : vector<8x272xf32>
    %54 = tpu.matmul %43, %53, %cst_35 {dimension_numbers = #tpu.dot_dimension_numbers<[1], [0], [0], [1], [0, 0, 1, 1], [], []>} : vector<8x1024xbf16>, vector<1024x272xbf16>, vector<8x272xf32> -> vector<8x272xf32>
    %c16 = arith.constant 16 : index
    %c0_36 = arith.constant 0 : index
    %55 = vector.load %arg16[%c16, %c0_36] : memref<64x272xf32, #tpu.memory_space<vmem>>, vector<8x272xf32>
    tpu.vector_store %arg16[%c16, %c0_36], %54 {strides = array<i32>} : memref<64x272xf32, #tpu.memory_space<vmem>>, vector<8x272xf32>,
    %c3 = arith.constant 3 : index
    %c0_37 = arith.constant 0 : index
    %c0_38 = arith.constant 0 : index
    %56 = vector.load %arg4[%c3, %c0_37, %c0_38] : memref<8x1024x272xbf16, #tpu.memory_space<vmem>>, vector<1x1024x272xbf16>
    %57 = vector.shape_cast %56 : vector<1x1024x272xbf16> to vector<1024x272xbf16>
    %cst_39 = arith.constant dense<0.000000e+00> : vector<8x272xf32>
    %58 = tpu.matmul %43, %57, %cst_39 {dimension_numbers = #tpu.dot_dimension_numbers<[1], [0], [0], [1], [0, 0, 1, 1], [], []>} : vector<8x1024xbf16>, vector<1024x272xbf16>, vector<8x272xf32> -> vector<8x272xf32>
    %c24 = arith.constant 24 : index
    %c0_40 = arith.constant 0 : index
    %59 = vector.load %arg16[%c24, %c0_40] : memref<64x272xf32, #tpu.memory_space<vmem>>, vector<8x272xf32>
    tpu.vector_store %arg16[%c24, %c0_40], %58 {strides = array<i32>} : memref<64x272xf32, #tpu.memory_space<vmem>>, vector<8x272xf32>,
    %c4 = arith.constant 4 : index
    %c0_41 = arith.constant 0 : index
    %c0_42 = arith.constant 0 : index
    %60 = vector.load %arg4[%c4, %c0_41, %c0_42] : memref<8x1024x272xbf16, #tpu.memory_space<vmem>>, vector<1x1024x272xbf16>
    %61 = vector.shape_cast %60 : vector<1x1024x272xbf16> to vector<1024x272xbf16>
    %cst_43 = arith.constant dense<0.000000e+00> : vector<8x272xf32>
    %62 = tpu.matmul %43, %61, %cst_43 {dimension_numbers = #tpu.dot_dimension_numbers<[1], [0], [0], [1], [0, 0, 1, 1], [], []>} : vector<8x1024xbf16>, vector<1024x272xbf16>, vector<8x272xf32> -> vector<8x272xf32>
    %c32 = arith.constant 32 : index
    %c0_44 = arith.constant 0 : index
    %63 = vector.load %arg16[%c32, %c0_44] : memref<64x272xf32, #tpu.memory_space<vmem>>, vector<8x272xf32>
    tpu.vector_store %arg16[%c32, %c0_44], %62 {strides = array<i32>} : memref<64x272xf32, #tpu.memory_space<vmem>>, vector<8x272xf32>,
    %c5 = arith.constant 5 : index
    %c0_45 = arith.constant 0 : index
    %c0_46 = arith.constant 0 : index
    %64 = vector.load %arg4[%c5, %c0_45, %c0_46] : memref<8x1024x272xbf16, #tpu.memory_space<vmem>>, vector<1x1024x272xbf16>
    %65 = vector.shape_cast %64 : vector<1x1024x272xbf16> to vector<1024x272xbf16>
    %cst_47 = arith.constant dense<0.000000e+00> : vector<8x272xf32>
    %66 = tpu.matmul %43, %65, %cst_47 {dimension_numbers = #tpu.dot_dimension_numbers<[1], [0], [0], [1], [0, 0, 1, 1], [], []>} : vector<8x1024xbf16>, vector<1024x272xbf16>, vector<8x272xf32> -> vector<8x272xf32>
    %c40 = arith.constant 40 : index
    %c0_48 = arith.constant 0 : index
    %67 = vector.load %arg16[%c40, %c0_48] : memref<64x272xf32, #tpu.memory_space<vmem>>, vector<8x272xf32>
    tpu.vector_store %arg16[%c40, %c0_48], %66 {strides = array<i32>} : memref<64x272xf32, #tpu.memory_space<vmem>>, vector<8x272xf32>,
    %c6 = arith.constant 6 : index
    %c0_49 = arith.constant 0 : index
    %c0_50 = arith.constant 0 : index
    %68 = vector.load %arg4[%c6, %c0_49, %c0_50] : memref<8x1024x272xbf16, #tpu.memory_space<vmem>>, vector<1x1024x272xbf16>
    %69 = vector.shape_cast %68 : vector<1x1024x272xbf16> to vector<1024x272xbf16>
    %cst_51 = arith.constant dense<0.000000e+00> : vector<8x272xf32>
    %70 = tpu.matmul %43, %69, %cst_51 {dimension_numbers = #tpu.dot_dimension_numbers<[1], [0], [0], [1], [0, 0, 1, 1], [], []>} : vector<8x1024xbf16>, vector<1024x272xbf16>, vector<8x272xf32> -> vector<8x272xf32>
    %c48 = arith.constant 48 : index
    %c0_52 = arith.constant 0 : index
    %71 = vector.load %arg16[%c48, %c0_52] : memref<64x272xf32, #tpu.memory_space<vmem>>, vector<8x272xf32>
    tpu.vector_store %arg16[%c48, %c0_52], %70 {strides = array<i32>} : memref<64x272xf32, #tpu.memory_space<vmem>>, vector<8x272xf32>,
    %c7 = arith.constant 7 : index
    %c0_53 = arith.constant 0 : index
    %c0_54 = arith.constant 0 : index
    %72 = vector.load %arg4[%c7, %c0_53, %c0_54] : memref<8x1024x272xbf16, #tpu.memory_space<vmem>>, vector<1x1024x272xbf16>
    %73 = vector.shape_cast %72 : vector<1x1024x272xbf16> to vector<1024x272xbf16>
    %cst_55 = arith.constant dense<0.000000e+00> : vector<8x272xf32>
    %74 = tpu.matmul %43, %73, %cst_55 {dimension_numbers = #tpu.dot_dimension_numbers<[1], [0], [0], [1], [0, 0, 1, 1], [], []>} : vector<8x1024xbf16>, vector<1024x272xbf16>, vector<8x272xf32> -> vector<8x272xf32>
    %c56 = arith.constant 56 : index
    %c0_56 = arith.constant 0 : index
    %75 = vector.load %arg16[%c56, %c0_56] : memref<64x272xf32, #tpu.memory_space<vmem>>, vector<8x272xf32>
    tpu.vector_store %arg16[%c56, %c0_56], %74 {strides = array<i32>} : memref<64x272xf32, #tpu.memory_space<vmem>>, vector<8x272xf32>,
    %c0_57 = arith.constant 0 : index
    %c0_58 = arith.constant 0 : index
    %76 = vector.load %arg16[%c0_57, %c0_58] : memref<64x272xf32, #tpu.memory_space<vmem>>, vector<64x272xf32>
    %77 = arith.truncf %76 : vector<64x272xf32> to vector<64x272xbf16>
    %c0_59 = arith.constant 0 : index
    %c0_60 = arith.constant 0 : index
    %c0_61 = arith.constant 0 : index
    %78 = vector.load %arg5[%c0_59, %c0_60, %c0_61] : memref<2x16x64xbf16, #tpu.memory_space<vmem>>, vector<1x16x64xbf16>
    %79 = vector.shape_cast %78 : vector<1x16x64xbf16> to vector<16x64xbf16>
    %80 = vector.extract_strided_slice %77 {offsets = [0, 0], sizes = [64, 256], strides = [1, 1]} : vector<64x272xbf16> to vector<64x256xbf16>
    %cst_62 = arith.constant dense<0.000000e+00> : vector<16x256xf32>
    %81 = tpu.matmul %79, %80, %cst_62 {dimension_numbers = #tpu.dot_dimension_numbers<[1], [0], [0], [1], [0, 0, 1, 1], [], []>} : vector<16x64xbf16>, vector<64x256xbf16>, vector<16x256xf32> -> vector<16x256xf32>
    %c1_63 = arith.constant 1 : index
    %c0_64 = arith.constant 0 : index
    %c0_65 = arith.constant 0 : index
    %82 = vector.load %arg5[%c1_63, %c0_64, %c0_65] : memref<2x16x64xbf16, #tpu.memory_space<vmem>>, vector<1x16x64xbf16>
    %83 = vector.shape_cast %82 : vector<1x16x64xbf16> to vector<16x64xbf16>
    %84 = vector.extract_strided_slice %77 {offsets = [0, 16], sizes = [64, 256], strides = [1, 1]} : vector<64x272xbf16> to vector<64x256xbf16>
    %cst_66 = arith.constant dense<0.000000e+00> : vector<16x256xf32>
    %85 = tpu.matmul %83, %84, %cst_66 {dimension_numbers = #tpu.dot_dimension_numbers<[1], [0], [0], [1], [0, 0, 1, 1], [], []>} : vector<16x64xbf16>, vector<64x256xbf16>, vector<16x256xf32> -> vector<16x256xf32>
    %86 = arith.addf %81, %85 : vector<16x256xf32>
    %cst_67 = arith.constant dense<0.000000e+00> : vector<16xf32>
    %87 = vector.multi_reduction <add>, %86, %cst_67 [1] : vector<16x256xf32> to vector<16xf32>
    %88 = vector.shape_cast %87 : vector<16xf32> to vector<16x1xf32>
    %cst_68 = arith.constant 3.906250e-03 : f32
    %89 = vector.broadcast %cst_68 : f32 to vector<16x1xf32>
    %90 = arith.mulf %88, %89 : vector<16x1xf32>
    %91 = arith.mulf %86, %86 : vector<16x256xf32>
    %cst_69 = arith.constant dense<0.000000e+00> : vector<16xf32>
    %92 = vector.multi_reduction <add>, %91, %cst_69 [1] : vector<16x256xf32> to vector<16xf32>
    %93 = vector.shape_cast %92 : vector<16xf32> to vector<16x1xf32>
    %cst_70 = arith.constant 3.906250e-03 : f32
    %94 = vector.broadcast %cst_70 : f32 to vector<16x1xf32>
    %95 = arith.mulf %93, %94 : vector<16x1xf32>
    %96 = arith.mulf %90, %90 : vector<16x1xf32>
    %97 = arith.subf %95, %96 : vector<16x1xf32>
    %cst_71 = arith.constant 0.000000e+00 : f32
    %98 = vector.broadcast %cst_71 : f32 to vector<16x1xf32>
    %99 = arith.maximumf %97, %98 : vector<16x1xf32>
    %cst_72 = arith.constant 9.99999974E-6 : f32
    %100 = vector.broadcast %cst_72 : f32 to vector<16x1xf32>
    %101 = arith.addf %99, %100 : vector<16x1xf32>
    %102 = math.rsqrt %101 : vector<16x1xf32>
    %103 = vector.broadcast %90 : vector<16x1xf32> to vector<16x256xf32>
    %104 = arith.subf %86, %103 : vector<16x256xf32>
    %c0_73 = arith.constant 0 : index
    %c0_74 = arith.constant 0 : index
    %c0_75 = arith.constant 0 : index
    %105 = vector.load %arg6[%c0_73, %c0_74, %c0_75] : memref<2x16x1xf32, #tpu.memory_space<vmem>>, vector<1x16x1xf32>
    %106 = vector.shape_cast %105 : vector<1x16x1xf32> to vector<16x1xf32>
    %107 = arith.mulf %102, %106 : vector<16x1xf32>
    %108 = vector.broadcast %107 : vector<16x1xf32> to vector<16x256xf32>
    %109 = arith.mulf %104, %108 : vector<16x256xf32>
    %c1_76 = arith.constant 1 : index
    %c0_77 = arith.constant 0 : index
    %c0_78 = arith.constant 0 : index
    %110 = vector.load %arg6[%c1_76, %c0_77, %c0_78] : memref<2x16x1xf32, #tpu.memory_space<vmem>>, vector<1x16x1xf32>
    %111 = vector.shape_cast %110 : vector<1x16x1xf32> to vector<16x1xf32>
    %112 = vector.broadcast %111 : vector<16x1xf32> to vector<16x256xf32>
    %113 = arith.addf %109, %112 : vector<16x256xf32>
    %cst_79 = arith.constant 0.000000e+00 : f32
    %114 = vector.broadcast %cst_79 : f32 to vector<16x256xf32>
    %115 = arith.cmpf ogt, %113, %114 : vector<16x256xf32>
    %cst_80 = arith.constant 2.000000e-01 : f32
    %116 = vector.broadcast %cst_80 : f32 to vector<16x256xf32>
    %117 = arith.mulf %116, %113 : vector<16x256xf32>
    %118 = arith.select %115, %113, %117 : vector<16x256xi1>, vector<16x256xf32>
    %119 = arith.truncf %118 : vector<16x256xf32> to vector<16x256xbf16>
    %c0_81 = arith.constant 0 : index
    %c0_82 = arith.constant 0 : index
    %c0_83 = arith.constant 0 : index
    %120 = vector.load %arg7[%c0_81, %c0_82, %c0_83] : memref<8x256x72xbf16, #tpu.memory_space<vmem>>, vector<1x256x72xbf16>
    %121 = vector.shape_cast %120 : vector<1x256x72xbf16> to vector<256x72xbf16>
    %cst_84 = arith.constant dense<0.000000e+00> : vector<16x72xf32>
    %122 = tpu.matmul %119, %121, %cst_84 {dimension_numbers = #tpu.dot_dimension_numbers<[1], [0], [0], [1], [0, 0, 1, 1], [], []>} : vector<16x256xbf16>, vector<256x72xbf16>, vector<16x72xf32> -> vector<16x72xf32>
    %c0_85 = arith.constant 0 : index
    %c0_86 = arith.constant 0 : index
    %123 = vector.load %arg17[%c0_85, %c0_86] : memref<128x72xf32, #tpu.memory_space<vmem>>, vector<16x72xf32>
    tpu.vector_store %arg17[%c0_85, %c0_86], %122 {strides = array<i32>} : memref<128x72xf32, #tpu.memory_space<vmem>>, vector<16x72xf32>,
    %c1_87 = arith.constant 1 : index
    %c0_88 = arith.constant 0 : index
    %c0_89 = arith.constant 0 : index
    %124 = vector.load %arg7[%c1_87, %c0_88, %c0_89] : memref<8x256x72xbf16, #tpu.memory_space<vmem>>, vector<1x256x72xbf16>
    %125 = vector.shape_cast %124 : vector<1x256x72xbf16> to vector<256x72xbf16>
    %cst_90 = arith.constant dense<0.000000e+00> : vector<16x72xf32>
    %126 = tpu.matmul %119, %125, %cst_90 {dimension_numbers = #tpu.dot_dimension_numbers<[1], [0], [0], [1], [0, 0, 1, 1], [], []>} : vector<16x256xbf16>, vector<256x72xbf16>, vector<16x72xf32> -> vector<16x72xf32>
    %c16_91 = arith.constant 16 : index
    %c0_92 = arith.constant 0 : index
    %127 = vector.load %arg17[%c16_91, %c0_92] : memref<128x72xf32, #tpu.memory_space<vmem>>, vector<16x72xf32>
    tpu.vector_store %arg17[%c16_91, %c0_92], %126 {strides = array<i32>} : memref<128x72xf32, #tpu.memory_space<vmem>>, vector<16x72xf32>,
    %c2_93 = arith.constant 2 : index
    %c0_94 = arith.constant 0 : index
    %c0_95 = arith.constant 0 : index
    %128 = vector.load %arg7[%c2_93, %c0_94, %c0_95] : memref<8x256x72xbf16, #tpu.memory_space<vmem>>, vector<1x256x72xbf16>
    %129 = vector.shape_cast %128 : vector<1x256x72xbf16> to vector<256x72xbf16>
    %cst_96 = arith.constant dense<0.000000e+00> : vector<16x72xf32>
    %130 = tpu.matmul %119, %129, %cst_96 {dimension_numbers = #tpu.dot_dimension_numbers<[1], [0], [0], [1], [0, 0, 1, 1], [], []>} : vector<16x256xbf16>, vector<256x72xbf16>, vector<16x72xf32> -> vector<16x72xf32>
    %c32_97 = arith.constant 32 : index
    %c0_98 = arith.constant 0 : index
    %131 = vector.load %arg17[%c32_97, %c0_98] : memref<128x72xf32, #tpu.memory_space<vmem>>, vector<16x72xf32>
    tpu.vector_store %arg17[%c32_97, %c0_98], %130 {strides = array<i32>} : memref<128x72xf32, #tpu.memory_space<vmem>>, vector<16x72xf32>,
    %c3_99 = arith.constant 3 : index
    %c0_100 = arith.constant 0 : index
    %c0_101 = arith.constant 0 : index
    %132 = vector.load %arg7[%c3_99, %c0_100, %c0_101] : memref<8x256x72xbf16, #tpu.memory_space<vmem>>, vector<1x256x72xbf16>
    %133 = vector.shape_cast %132 : vector<1x256x72xbf16> to vector<256x72xbf16>
    %cst_102 = arith.constant dense<0.000000e+00> : vector<16x72xf32>
    %134 = tpu.matmul %119, %133, %cst_102 {dimension_numbers = #tpu.dot_dimension_numbers<[1], [0], [0], [1], [0, 0, 1, 1], [], []>} : vector<16x256xbf16>, vector<256x72xbf16>, vector<16x72xf32> -> vector<16x72xf32>
    %c48_103 = arith.constant 48 : index
    %c0_104 = arith.constant 0 : index
    %135 = vector.load %arg17[%c48_103, %c0_104] : memref<128x72xf32, #tpu.memory_space<vmem>>, vector<16x72xf32>
    tpu.vector_store %arg17[%c48_103, %c0_104], %134 {strides = array<i32>} : memref<128x72xf32, #tpu.memory_space<vmem>>, vector<16x72xf32>,
    %c4_105 = arith.constant 4 : index
    %c0_106 = arith.constant 0 : index
    %c0_107 = arith.constant 0 : index
    %136 = vector.load %arg7[%c4_105, %c0_106, %c0_107] : memref<8x256x72xbf16, #tpu.memory_space<vmem>>, vector<1x256x72xbf16>
    %137 = vector.shape_cast %136 : vector<1x256x72xbf16> to vector<256x72xbf16>
    %cst_108 = arith.constant dense<0.000000e+00> : vector<16x72xf32>
    %138 = tpu.matmul %119, %137, %cst_108 {dimension_numbers = #tpu.dot_dimension_numbers<[1], [0], [0], [1], [0, 0, 1, 1], [], []>} : vector<16x256xbf16>, vector<256x72xbf16>, vector<16x72xf32> -> vector<16x72xf32>
    %c64 = arith.constant 64 : index
    %c0_109 = arith.constant 0 : index
    %139 = vector.load %arg17[%c64, %c0_109] : memref<128x72xf32, #tpu.memory_space<vmem>>, vector<16x72xf32>
    tpu.vector_store %arg17[%c64, %c0_109], %138 {strides = array<i32>} : memref<128x72xf32, #tpu.memory_space<vmem>>, vector<16x72xf32>,
    %c5_110 = arith.constant 5 : index
    %c0_111 = arith.constant 0 : index
    %c0_112 = arith.constant 0 : index
    %140 = vector.load %arg7[%c5_110, %c0_111, %c0_112] : memref<8x256x72xbf16, #tpu.memory_space<vmem>>, vector<1x256x72xbf16>
    %141 = vector.shape_cast %140 : vector<1x256x72xbf16> to vector<256x72xbf16>
    %cst_113 = arith.constant dense<0.000000e+00> : vector<16x72xf32>
    %142 = tpu.matmul %119, %141, %cst_113 {dimension_numbers = #tpu.dot_dimension_numbers<[1], [0], [0], [1], [0, 0, 1, 1], [], []>} : vector<16x256xbf16>, vector<256x72xbf16>, vector<16x72xf32> -> vector<16x72xf32>
    %c80 = arith.constant 80 : index
    %c0_114 = arith.constant 0 : index
    %143 = vector.load %arg17[%c80, %c0_114] : memref<128x72xf32, #tpu.memory_space<vmem>>, vector<16x72xf32>
    tpu.vector_store %arg17[%c80, %c0_114], %142 {strides = array<i32>} : memref<128x72xf32, #tpu.memory_space<vmem>>, vector<16x72xf32>,
    %c6_115 = arith.constant 6 : index
    %c0_116 = arith.constant 0 : index
    %c0_117 = arith.constant 0 : index
    %144 = vector.load %arg7[%c6_115, %c0_116, %c0_117] : memref<8x256x72xbf16, #tpu.memory_space<vmem>>, vector<1x256x72xbf16>
    %145 = vector.shape_cast %144 : vector<1x256x72xbf16> to vector<256x72xbf16>
    %cst_118 = arith.constant dense<0.000000e+00> : vector<16x72xf32>
    %146 = tpu.matmul %119, %145, %cst_118 {dimension_numbers = #tpu.dot_dimension_numbers<[1], [0], [0], [1], [0, 0, 1, 1], [], []>} : vector<16x256xbf16>, vector<256x72xbf16>, vector<16x72xf32> -> vector<16x72xf32>
    %c96 = arith.constant 96 : index
    %c0_119 = arith.constant 0 : index
    %147 = vector.load %arg17[%c96, %c0_119] : memref<128x72xf32, #tpu.memory_space<vmem>>, vector<16x72xf32>
    tpu.vector_store %arg17[%c96, %c0_119], %146 {strides = array<i32>} : memref<128x72xf32, #tpu.memory_space<vmem>>, vector<16x72xf32>,
    %c7_120 = arith.constant 7 : index
    %c0_121 = arith.constant 0 : index
    %c0_122 = arith.constant 0 : index
    %148 = vector.load %arg7[%c7_120, %c0_121, %c0_122] : memref<8x256x72xbf16, #tpu.memory_space<vmem>>, vector<1x256x72xbf16>
    %149 = vector.shape_cast %148 : vector<1x256x72xbf16> to vector<256x72xbf16>
    %cst_123 = arith.constant dense<0.000000e+00> : vector<16x72xf32>
    %150 = tpu.matmul %119, %149, %cst_123 {dimension_numbers = #tpu.dot_dimension_numbers<[1], [0], [0], [1], [0, 0, 1, 1], [], []>} : vector<16x256xbf16>, vector<256x72xbf16>, vector<16x72xf32> -> vector<16x72xf32>
    %c112 = arith.constant 112 : index
    %c0_124 = arith.constant 0 : index
    %151 = vector.load %arg17[%c112, %c0_124] : memref<128x72xf32, #tpu.memory_space<vmem>>, vector<16x72xf32>
    tpu.vector_store %arg17[%c112, %c0_124], %150 {strides = array<i32>} : memref<128x72xf32, #tpu.memory_space<vmem>>, vector<16x72xf32>,
    %c0_125 = arith.constant 0 : index
    %c0_126 = arith.constant 0 : index
    %152 = vector.load %arg17[%c0_125, %c0_126] : memref<128x72xf32, #tpu.memory_space<vmem>>, vector<128x72xf32>
    %153 = arith.truncf %152 : vector<128x72xf32> to vector<128x72xbf16>
    %c0_127 = arith.constant 0 : index
    %c0_128 = arith.constant 0 : index
    %c0_129 = arith.constant 0 : index
    %154 = vector.load %arg8[%c0_127, %c0_128, %c0_129] : memref<2x32x128xbf16, #tpu.memory_space<vmem>>, vector<1x32x128xbf16>
    %155 = vector.shape_cast %154 : vector<1x32x128xbf16> to vector<32x128xbf16>
    %156 = vector.extract_strided_slice %153 {offsets = [0, 0], sizes = [128, 64], strides = [1, 1]} : vector<128x72xbf16> to vector<128x64xbf16>
    %cst_130 = arith.constant dense<0.000000e+00> : vector<32x64xf32>
    %157 = tpu.matmul %155, %156, %cst_130 {dimension_numbers = #tpu.dot_dimension_numbers<[1], [0], [0], [1], [0, 0, 1, 1], [], []>} : vector<32x128xbf16>, vector<128x64xbf16>, vector<32x64xf32> -> vector<32x64xf32>
    %c1_131 = arith.constant 1 : index
    %c0_132 = arith.constant 0 : index
    %c0_133 = arith.constant 0 : index
    %158 = vector.load %arg8[%c1_131, %c0_132, %c0_133] : memref<2x32x128xbf16, #tpu.memory_space<vmem>>, vector<1x32x128xbf16>
    %159 = vector.shape_cast %158 : vector<1x32x128xbf16> to vector<32x128xbf16>
    %160 = vector.extract_strided_slice %153 {offsets = [0, 8], sizes = [128, 64], strides = [1, 1]} : vector<128x72xbf16> to vector<128x64xbf16>
    %cst_134 = arith.constant dense<0.000000e+00> : vector<32x64xf32>
    %161 = tpu.matmul %159, %160, %cst_134 {dimension_numbers = #tpu.dot_dimension_numbers<[1], [0], [0], [1], [0, 0, 1, 1], [], []>} : vector<32x128xbf16>, vector<128x64xbf16>, vector<32x64xf32> -> vector<32x64xf32>
    %162 = arith.addf %157, %161 : vector<32x64xf32>
    %cst_135 = arith.constant dense<0.000000e+00> : vector<32xf32>
    %163 = vector.multi_reduction <add>, %162, %cst_135 [1] : vector<32x64xf32> to vector<32xf32>
    %164 = vector.shape_cast %163 : vector<32xf32> to vector<32x1xf32>
    %cst_136 = arith.constant 1.562500e-02 : f32
    %165 = vector.broadcast %cst_136 : f32 to vector<32x1xf32>
    %166 = arith.mulf %164, %165 : vector<32x1xf32>
    %167 = arith.mulf %162, %162 : vector<32x64xf32>
    %cst_137 = arith.constant dense<0.000000e+00> : vector<32xf32>
    %168 = vector.multi_reduction <add>, %167, %cst_137 [1] : vector<32x64xf32> to vector<32xf32>
    %169 = vector.shape_cast %168 : vector<32xf32> to vector<32x1xf32>
    %cst_138 = arith.constant 1.562500e-02 : f32
    %170 = vector.broadcast %cst_138 : f32 to vector<32x1xf32>
    %171 = arith.mulf %169, %170 : vector<32x1xf32>
    %172 = arith.mulf %166, %166 : vector<32x1xf32>
    %173 = arith.subf %171, %172 : vector<32x1xf32>
    %cst_139 = arith.constant 0.000000e+00 : f32
    %174 = vector.broadcast %cst_139 : f32 to vector<32x1xf32>
    %175 = arith.maximumf %173, %174 : vector<32x1xf32>
    %cst_140 = arith.constant 9.99999974E-6 : f32
    %176 = vector.broadcast %cst_140 : f32 to vector<32x1xf32>
    %177 = arith.addf %175, %176 : vector<32x1xf32>
    %178 = math.rsqrt %177 : vector<32x1xf32>
    %179 = vector.broadcast %166 : vector<32x1xf32> to vector<32x64xf32>
    %180 = arith.subf %162, %179 : vector<32x64xf32>
    %c0_141 = arith.constant 0 : index
    %c0_142 = arith.constant 0 : index
    %c0_143 = arith.constant 0 : index
    %181 = vector.load %arg9[%c0_141, %c0_142, %c0_143] : memref<2x32x1xf32, #tpu.memory_space<vmem>>, vector<1x32x1xf32>
    %182 = vector.shape_cast %181 : vector<1x32x1xf32> to vector<32x1xf32>
    %183 = arith.mulf %178, %182 : vector<32x1xf32>
    %184 = vector.broadcast %183 : vector<32x1xf32> to vector<32x64xf32>
    %185 = arith.mulf %180, %184 : vector<32x64xf32>
    %c1_144 = arith.constant 1 : index
    %c0_145 = arith.constant 0 : index
    %c0_146 = arith.constant 0 : index
    %186 = vector.load %arg9[%c1_144, %c0_145, %c0_146] : memref<2x32x1xf32, #tpu.memory_space<vmem>>, vector<1x32x1xf32>
    %187 = vector.shape_cast %186 : vector<1x32x1xf32> to vector<32x1xf32>
    %188 = vector.broadcast %187 : vector<32x1xf32> to vector<32x64xf32>
    %189 = arith.addf %185, %188 : vector<32x64xf32>
    %cst_147 = arith.constant 0.000000e+00 : f32
    %190 = vector.broadcast %cst_147 : f32 to vector<32x64xf32>
    %191 = arith.cmpf ogt, %189, %190 : vector<32x64xf32>
    %cst_148 = arith.constant 2.000000e-01 : f32
    %192 = vector.broadcast %cst_148 : f32 to vector<32x64xf32>
    %193 = arith.mulf %192, %189 : vector<32x64xf32>
    %194 = arith.select %191, %189, %193 : vector<32x64xi1>, vector<32x64xf32>
    %195 = arith.truncf %194 : vector<32x64xf32> to vector<32x64xbf16>
    %c0_149 = arith.constant 0 : index
    %c0_150 = arith.constant 0 : index
    %c0_151 = arith.constant 0 : index
    %196 = vector.load %arg10[%c0_149, %c0_150, %c0_151] : memref<8x64x20xbf16, #tpu.memory_space<vmem>>, vector<1x64x20xbf16>
    %197 = vector.shape_cast %196 : vector<1x64x20xbf16> to vector<64x20xbf16>
    %cst_152 = arith.constant dense<0.000000e+00> : vector<32x20xf32>
    %198 = tpu.matmul %195, %197, %cst_152 {dimension_numbers = #tpu.dot_dimension_numbers<[1], [0], [0], [1], [0, 0, 1, 1], [], []>} : vector<32x64xbf16>, vector<64x20xbf16>, vector<32x20xf32> -> vector<32x20xf32>
    %c0_153 = arith.constant 0 : index
    %c0_154 = arith.constant 0 : index
    %199 = vector.load %arg18[%c0_153, %c0_154] : memref<256x20xf32, #tpu.memory_space<vmem>>, vector<32x20xf32>
    tpu.vector_store %arg18[%c0_153, %c0_154], %198 {strides = array<i32>} : memref<256x20xf32, #tpu.memory_space<vmem>>, vector<32x20xf32>,
    %c1_155 = arith.constant 1 : index
    %c0_156 = arith.constant 0 : index
    %c0_157 = arith.constant 0 : index
    %200 = vector.load %arg10[%c1_155, %c0_156, %c0_157] : memref<8x64x20xbf16, #tpu.memory_space<vmem>>, vector<1x64x20xbf16>
    %201 = vector.shape_cast %200 : vector<1x64x20xbf16> to vector<64x20xbf16>
    %cst_158 = arith.constant dense<0.000000e+00> : vector<32x20xf32>
    %202 = tpu.matmul %195, %201, %cst_158 {dimension_numbers = #tpu.dot_dimension_numbers<[1], [0], [0], [1], [0, 0, 1, 1], [], []>} : vector<32x64xbf16>, vector<64x20xbf16>, vector<32x20xf32> -> vector<32x20xf32>
    %c32_159 = arith.constant 32 : index
    %c0_160 = arith.constant 0 : index
    %203 = vector.load %arg18[%c32_159, %c0_160] : memref<256x20xf32, #tpu.memory_space<vmem>>, vector<32x20xf32>
    tpu.vector_store %arg18[%c32_159, %c0_160], %202 {strides = array<i32>} : memref<256x20xf32, #tpu.memory_space<vmem>>, vector<32x20xf32>,
    %c2_161 = arith.constant 2 : index
    %c0_162 = arith.constant 0 : index
    %c0_163 = arith.constant 0 : index
    %204 = vector.load %arg10[%c2_161, %c0_162, %c0_163] : memref<8x64x20xbf16, #tpu.memory_space<vmem>>, vector<1x64x20xbf16>
    %205 = vector.shape_cast %204 : vector<1x64x20xbf16> to vector<64x20xbf16>
    %cst_164 = arith.constant dense<0.000000e+00> : vector<32x20xf32>
    %206 = tpu.matmul %195, %205, %cst_164 {dimension_numbers = #tpu.dot_dimension_numbers<[1], [0], [0], [1], [0, 0, 1, 1], [], []>} : vector<32x64xbf16>, vector<64x20xbf16>, vector<32x20xf32> -> vector<32x20xf32>
    %c64_165 = arith.constant 64 : index
    %c0_166 = arith.constant 0 : index
    %207 = vector.load %arg18[%c64_165, %c0_166] : memref<256x20xf32, #tpu.memory_space<vmem>>, vector<32x20xf32>
    tpu.vector_store %arg18[%c64_165, %c0_166], %206 {strides = array<i32>} : memref<256x20xf32, #tpu.memory_space<vmem>>, vector<32x20xf32>,
    %c3_167 = arith.constant 3 : index
    %c0_168 = arith.constant 0 : index
    %c0_169 = arith.constant 0 : index
    %208 = vector.load %arg10[%c3_167, %c0_168, %c0_169] : memref<8x64x20xbf16, #tpu.memory_space<vmem>>, vector<1x64x20xbf16>
    %209 = vector.shape_cast %208 : vector<1x64x20xbf16> to vector<64x20xbf16>
    %cst_170 = arith.constant dense<0.000000e+00> : vector<32x20xf32>
    %210 = tpu.matmul %195, %209, %cst_170 {dimension_numbers = #tpu.dot_dimension_numbers<[1], [0], [0], [1], [0, 0, 1, 1], [], []>} : vector<32x64xbf16>, vector<64x20xbf16>, vector<32x20xf32> -> vector<32x20xf32>
    %c96_171 = arith.constant 96 : index
    %c0_172 = arith.constant 0 : index
    %211 = vector.load %arg18[%c96_171, %c0_172] : memref<256x20xf32, #tpu.memory_space<vmem>>, vector<32x20xf32>
    tpu.vector_store %arg18[%c96_171, %c0_172], %210 {strides = array<i32>} : memref<256x20xf32, #tpu.memory_space<vmem>>, vector<32x20xf32>,
    %c4_173 = arith.constant 4 : index
    %c0_174 = arith.constant 0 : index
    %c0_175 = arith.constant 0 : index
    %212 = vector.load %arg10[%c4_173, %c0_174, %c0_175] : memref<8x64x20xbf16, #tpu.memory_space<vmem>>, vector<1x64x20xbf16>
    %213 = vector.shape_cast %212 : vector<1x64x20xbf16> to vector<64x20xbf16>
    %cst_176 = arith.constant dense<0.000000e+00> : vector<32x20xf32>
    %214 = tpu.matmul %195, %213, %cst_176 {dimension_numbers = #tpu.dot_dimension_numbers<[1], [0], [0], [1], [0, 0, 1, 1], [], []>} : vector<32x64xbf16>, vector<64x20xbf16>, vector<32x20xf32> -> vector<32x20xf32>
    %c128 = arith.constant 128 : index
    %c0_177 = arith.constant 0 : index
    %215 = vector.load %arg18[%c128, %c0_177] : memref<256x20xf32, #tpu.memory_space<vmem>>, vector<32x20xf32>
    tpu.vector_store %arg18[%c128, %c0_177], %214 {strides = array<i32>} : memref<256x20xf32, #tpu.memory_space<vmem>>, vector<32x20xf32>,
    %c5_178 = arith.constant 5 : index
    %c0_179 = arith.constant 0 : index
    %c0_180 = arith.constant 0 : index
    %216 = vector.load %arg10[%c5_178, %c0_179, %c0_180] : memref<8x64x20xbf16, #tpu.memory_space<vmem>>, vector<1x64x20xbf16>
    %217 = vector.shape_cast %216 : vector<1x64x20xbf16> to vector<64x20xbf16>
    %cst_181 = arith.constant dense<0.000000e+00> : vector<32x20xf32>
    %218 = tpu.matmul %195, %217, %cst_181 {dimension_numbers = #tpu.dot_dimension_numbers<[1], [0], [0], [1], [0, 0, 1, 1], [], []>} : vector<32x64xbf16>, vector<64x20xbf16>, vector<32x20xf32> -> vector<32x20xf32>
    %c160 = arith.constant 160 : index
    %c0_182 = arith.constant 0 : index
    %219 = vector.load %arg18[%c160, %c0_182] : memref<256x20xf32, #tpu.memory_space<vmem>>, vector<32x20xf32>
    tpu.vector_store %arg18[%c160, %c0_182], %218 {strides = array<i32>} : memref<256x20xf32, #tpu.memory_space<vmem>>, vector<32x20xf32>,
    %c6_183 = arith.constant 6 : index
    %c0_184 = arith.constant 0 : index
    %c0_185 = arith.constant 0 : index
    %220 = vector.load %arg10[%c6_183, %c0_184, %c0_185] : memref<8x64x20xbf16, #tpu.memory_space<vmem>>, vector<1x64x20xbf16>
    %221 = vector.shape_cast %220 : vector<1x64x20xbf16> to vector<64x20xbf16>
    %cst_186 = arith.constant dense<0.000000e+00> : vector<32x20xf32>
    %222 = tpu.matmul %195, %221, %cst_186 {dimension_numbers = #tpu.dot_dimension_numbers<[1], [0], [0], [1], [0, 0, 1, 1], [], []>} : vector<32x64xbf16>, vector<64x20xbf16>, vector<32x20xf32> -> vector<32x20xf32>
    %c192 = arith.constant 192 : index
    %c0_187 = arith.constant 0 : index
    %223 = vector.load %arg18[%c192, %c0_187] : memref<256x20xf32, #tpu.memory_space<vmem>>, vector<32x20xf32>
    tpu.vector_store %arg18[%c192, %c0_187], %222 {strides = array<i32>} : memref<256x20xf32, #tpu.memory_space<vmem>>, vector<32x20xf32>,
    %c7_188 = arith.constant 7 : index
    %c0_189 = arith.constant 0 : index
    %c0_190 = arith.constant 0 : index
    %224 = vector.load %arg10[%c7_188, %c0_189, %c0_190] : memref<8x64x20xbf16, #tpu.memory_space<vmem>>, vector<1x64x20xbf16>
    %225 = vector.shape_cast %224 : vector<1x64x20xbf16> to vector<64x20xbf16>
    %cst_191 = arith.constant dense<0.000000e+00> : vector<32x20xf32>
    %226 = tpu.matmul %195, %225, %cst_191 {dimension_numbers = #tpu.dot_dimension_numbers<[1], [0], [0], [1], [0, 0, 1, 1], [], []>} : vector<32x64xbf16>, vector<64x20xbf16>, vector<32x20xf32> -> vector<32x20xf32>
    %c224 = arith.constant 224 : index
    %c0_192 = arith.constant 0 : index
    %227 = vector.load %arg18[%c224, %c0_192] : memref<256x20xf32, #tpu.memory_space<vmem>>, vector<32x20xf32>
    tpu.vector_store %arg18[%c224, %c0_192], %226 {strides = array<i32>} : memref<256x20xf32, #tpu.memory_space<vmem>>, vector<32x20xf32>,
    %c0_193 = arith.constant 0 : index
    %c0_194 = arith.constant 0 : index
    %228 = vector.load %arg18[%c0_193, %c0_194] : memref<256x20xf32, #tpu.memory_space<vmem>>, vector<256x20xf32>
    %229 = arith.truncf %228 : vector<256x20xf32> to vector<256x20xbf16>
    %c0_195 = arith.constant 0 : index
    %c0_196 = arith.constant 0 : index
    %c0_197 = arith.constant 0 : index
    %230 = vector.load %arg11[%c0_195, %c0_196, %c0_197] : memref<2x64x256xbf16, #tpu.memory_space<vmem>>, vector<1x64x256xbf16>
    %231 = vector.shape_cast %230 : vector<1x64x256xbf16> to vector<64x256xbf16>
    %232 = vector.extract_strided_slice %229 {offsets = [0, 0], sizes = [256, 16], strides = [1, 1]} : vector<256x20xbf16> to vector<256x16xbf16>
    %cst_198 = arith.constant dense<0.000000e+00> : vector<64x16xf32>
    %233 = tpu.matmul %231, %232, %cst_198 {dimension_numbers = #tpu.dot_dimension_numbers<[1], [0], [0], [1], [0, 0, 1, 1], [], []>} : vector<64x256xbf16>, vector<256x16xbf16>, vector<64x16xf32> -> vector<64x16xf32>
    %c1_199 = arith.constant 1 : index
    %c0_200 = arith.constant 0 : index
    %c0_201 = arith.constant 0 : index
    %234 = vector.load %arg11[%c1_199, %c0_200, %c0_201] : memref<2x64x256xbf16, #tpu.memory_space<vmem>>, vector<1x64x256xbf16>
    %235 = vector.shape_cast %234 : vector<1x64x256xbf16> to vector<64x256xbf16>
    %236 = vector.extract_strided_slice %229 {offsets = [0, 4], sizes = [256, 16], strides = [1, 1]} : vector<256x20xbf16> to vector<256x16xbf16>
    %cst_202 = arith.constant dense<0.000000e+00> : vector<64x16xf32>
    %237 = tpu.matmul %235, %236, %cst_202 {dimension_numbers = #tpu.dot_dimension_numbers<[1], [0], [0], [1], [0, 0, 1, 1], [], []>} : vector<64x256xbf16>, vector<256x16xbf16>, vector<64x16xf32> -> vector<64x16xf32>
    %238 = arith.addf %233, %237 : vector<64x16xf32>
    %cst_203 = arith.constant dense<0.000000e+00> : vector<64xf32>
    %239 = vector.multi_reduction <add>, %238, %cst_203 [1] : vector<64x16xf32> to vector<64xf32>
    %240 = vector.shape_cast %239 : vector<64xf32> to vector<64x1xf32>
    %cst_204 = arith.constant 6.250000e-02 : f32
    %241 = vector.broadcast %cst_204 : f32 to vector<64x1xf32>
    %242 = arith.mulf %240, %241 : vector<64x1xf32>
    %243 = arith.mulf %238, %238 : vector<64x16xf32>
    %cst_205 = arith.constant dense<0.000000e+00> : vector<64xf32>
    %244 = vector.multi_reduction <add>, %243, %cst_205 [1] : vector<64x16xf32> to vector<64xf32>
    %245 = vector.shape_cast %244 : vector<64xf32> to vector<64x1xf32>
    %cst_206 = arith.constant 6.250000e-02 : f32
    %246 = vector.broadcast %cst_206 : f32 to vector<64x1xf32>
    %247 = arith.mulf %245, %246 : vector<64x1xf32>
    %248 = arith.mulf %242, %242 : vector<64x1xf32>
    %249 = arith.subf %247, %248 : vector<64x1xf32>
    %cst_207 = arith.constant 0.000000e+00 : f32
    %250 = vector.broadcast %cst_207 : f32 to vector<64x1xf32>
    %251 = arith.maximumf %249, %250 : vector<64x1xf32>
    %cst_208 = arith.constant 9.99999974E-6 : f32
    %252 = vector.broadcast %cst_208 : f32 to vector<64x1xf32>
    %253 = arith.addf %251, %252 : vector<64x1xf32>
    %254 = math.rsqrt %253 : vector<64x1xf32>
    %255 = vector.broadcast %242 : vector<64x1xf32> to vector<64x16xf32>
    %256 = arith.subf %238, %255 : vector<64x16xf32>
    %c0_209 = arith.constant 0 : index
    %c0_210 = arith.constant 0 : index
    %c0_211 = arith.constant 0 : index
    %257 = vector.load %arg12[%c0_209, %c0_210, %c0_211] : memref<2x64x1xf32, #tpu.memory_space<vmem>>, vector<1x64x1xf32>
    %258 = vector.shape_cast %257 : vector<1x64x1xf32> to vector<64x1xf32>
    %259 = arith.mulf %254, %258 : vector<64x1xf32>
    %260 = vector.broadcast %259 : vector<64x1xf32> to vector<64x16xf32>
    %261 = arith.mulf %256, %260 : vector<64x16xf32>
    %c1_212 = arith.constant 1 : index
    %c0_213 = arith.constant 0 : index
    %c0_214 = arith.constant 0 : index
    %262 = vector.load %arg12[%c1_212, %c0_213, %c0_214] : memref<2x64x1xf32, #tpu.memory_space<vmem>>, vector<1x64x1xf32>
    %263 = vector.shape_cast %262 : vector<1x64x1xf32> to vector<64x1xf32>
    %264 = vector.broadcast %263 : vector<64x1xf32> to vector<64x16xf32>
    %265 = arith.addf %261, %264 : vector<64x16xf32>
    %cst_215 = arith.constant 0.000000e+00 : f32
    %266 = vector.broadcast %cst_215 : f32 to vector<64x16xf32>
    %267 = arith.cmpf ogt, %265, %266 : vector<64x16xf32>
    %cst_216 = arith.constant 2.000000e-01 : f32
    %268 = vector.broadcast %cst_216 : f32 to vector<64x16xf32>
    %269 = arith.mulf %268, %265 : vector<64x16xf32>
    %270 = arith.select %267, %265, %269 : vector<64x16xi1>, vector<64x16xf32>
    %c0_217 = arith.constant 0 : index
    %c0_218 = arith.constant 0 : index
    %271 = vector.load %arg13[%c0_217, %c0_218] : memref<64x16xf32, #tpu.memory_space<vmem>>, vector<64x16xf32>
    %272 = arith.mulf %270, %271 : vector<64x16xf32>
    %273 = vector.shape_cast %272 : vector<64x16xf32> to vector<1x64x16xf32>
    %cst_219 = arith.constant dense<0.000000e+00> : vector<1xf32>
    %274 = vector.multi_reduction <add>, %273, %cst_219 [1, 2] : vector<1x64x16xf32> to vector<1xf32>
    %275 = vector.shape_cast %274 : vector<1xf32> to vector<1x1x1xf32>
    %276 = vector.extract %275[0, 0, 0] : f32 from vector<1x1x1xf32>
    %277 = vector.broadcast %276 : f32 to vector<1x1xf32>
    %c0_220 = arith.constant 0 : index
    %c0_221 = arith.constant 0 : index
    %278 = vector.load %arg14[%c0_220, %c0_221] : memref<1x1xf32, #tpu.memory_space<vmem>>, vector<1x1xf32>
    %279 = arith.addf %277, %278 : vector<1x1xf32>
    %c0_222 = arith.constant 0 : index
    %c0_223 = arith.constant 0 : index
    %c0_224 = arith.constant 0 : index
    %280 = vector.load %arg15[%c0_222, %c0_223, %c0_224] : memref<1x1x1xf32, #tpu.memory_space<vmem>>, vector<1x1x1xf32>
    %281 = vector.shape_cast %280 : vector<1x1x1xf32> to vector<1x1xf32>
    %282 = vector.shape_cast %279 : vector<1x1xf32> to vector<1x1x1xf32>
    tpu.vector_store %arg15[%c0_222, %c0_223, %c0_224], %282 {strides = array<i32>} : memref<1x1x1xf32, #tpu.memory_space<vmem>>, vector<1x1x1xf32>,
    return
  }
  func.func @transform_0(%arg0: i32) -> (i32, i32, i32) {
    %c0_i32 = arith.constant 0 : i32
    %c0_i32_0 = arith.constant 0 : i32
    %c0_i32_1 = arith.constant 0 : i32
    return %arg0, %c0_i32, %c0_i32_0 : i32, i32, i32
  }
  func.func @transform_1(%arg0: i32) -> (i32, i32, i32) {
    %c0_i32 = arith.constant 0 : i32
    %c0_i32_0 = arith.constant 0 : i32
    %c0_i32_1 = arith.constant 0 : i32
    %c0_i32_2 = arith.constant 0 : i32
    return %c0_i32, %c0_i32_0, %c0_i32_1 : i32, i32, i32
  }
  func.func @transform_2(%arg0: i32) -> (i32, i32, i32) {
    %c0_i32 = arith.constant 0 : i32
    %c0_i32_0 = arith.constant 0 : i32
    %c0_i32_1 = arith.constant 0 : i32
    %c0_i32_2 = arith.constant 0 : i32
    return %c0_i32, %c0_i32_0, %c0_i32_1 : i32, i32, i32
  }
  func.func @transform_3(%arg0: i32) -> (i32, i32, i32) {
    %c0_i32 = arith.constant 0 : i32
    %c0_i32_0 = arith.constant 0 : i32
    %c0_i32_1 = arith.constant 0 : i32
    %c0_i32_2 = arith.constant 0 : i32
    return %c0_i32, %c0_i32_0, %c0_i32_1 : i32, i32, i32
  }
  func.func @transform_4(%arg0: i32) -> (i32, i32, i32) {
    %c0_i32 = arith.constant 0 : i32
    %c0_i32_0 = arith.constant 0 : i32
    %c0_i32_1 = arith.constant 0 : i32
    %c0_i32_2 = arith.constant 0 : i32
    return %c0_i32, %c0_i32_0, %c0_i32_1 : i32, i32, i32
  }
  func.func @transform_5(%arg0: i32) -> (i32, i32, i32) {
    %c0_i32 = arith.constant 0 : i32
    %c0_i32_0 = arith.constant 0 : i32
    %c0_i32_1 = arith.constant 0 : i32
    %c0_i32_2 = arith.constant 0 : i32
    return %c0_i32, %c0_i32_0, %c0_i32_1 : i32, i32, i32
  }
  func.func @transform_6(%arg0: i32) -> (i32, i32, i32) {
    %c0_i32 = arith.constant 0 : i32
    %c0_i32_0 = arith.constant 0 : i32
    %c0_i32_1 = arith.constant 0 : i32
    %c0_i32_2 = arith.constant 0 : i32
    return %c0_i32, %c0_i32_0, %c0_i32_1 : i32, i32, i32
  }
  func.func @transform_7(%arg0: i32) -> (i32, i32, i32) {
    %c0_i32 = arith.constant 0 : i32
    %c0_i32_0 = arith.constant 0 : i32
    %c0_i32_1 = arith.constant 0 : i32
    %c0_i32_2 = arith.constant 0 : i32
    return %c0_i32, %c0_i32_0, %c0_i32_1 : i32, i32, i32
  }
  func.func @transform_8(%arg0: i32) -> (i32, i32, i32) {
    %c0_i32 = arith.constant 0 : i32
    %c0_i32_0 = arith.constant 0 : i32
    %c0_i32_1 = arith.constant 0 : i32
    %c0_i32_2 = arith.constant 0 : i32
    return %c0_i32, %c0_i32_0, %c0_i32_1 : i32, i32, i32
  }
  func.func @transform_9(%arg0: i32) -> (i32, i32, i32) {
    %c0_i32 = arith.constant 0 : i32
    %c0_i32_0 = arith.constant 0 : i32
    %c0_i32_1 = arith.constant 0 : i32
    %c0_i32_2 = arith.constant 0 : i32
    return %c0_i32, %c0_i32_0, %c0_i32_1 : i32, i32, i32
  }
  func.func @transform_10(%arg0: i32) -> (i32, i32, i32) {
    %c0_i32 = arith.constant 0 : i32
    %c0_i32_0 = arith.constant 0 : i32
    %c0_i32_1 = arith.constant 0 : i32
    %c0_i32_2 = arith.constant 0 : i32
    return %c0_i32, %c0_i32_0, %c0_i32_1 : i32, i32, i32
  }
  func.func @transform_11(%arg0: i32) -> (i32, i32, i32) {
    %c0_i32 = arith.constant 0 : i32
    %c0_i32_0 = arith.constant 0 : i32
    %c0_i32_1 = arith.constant 0 : i32
    %c0_i32_2 = arith.constant 0 : i32
    return %c0_i32, %c0_i32_0, %c0_i32_1 : i32, i32, i32
  }
  func.func @transform_12(%arg0: i32) -> (i32, i32) {
    %c0_i32 = arith.constant 0 : i32
    %c0_i32_0 = arith.constant 0 : i32
    %c0_i32_1 = arith.constant 0 : i32
    return %c0_i32, %c0_i32_0 : i32, i32
  }
  func.func @transform_13(%arg0: i32) -> (i32, i32) {
    %c0_i32 = arith.constant 0 : i32
    %c0_i32_0 = arith.constant 0 : i32
    %c0_i32_1 = arith.constant 0 : i32
    return %c0_i32, %c0_i32_0 : i32, i32
  }
  func.func @transform_14(%arg0: i32) -> (i32, i32, i32) {
    %c0_i32 = arith.constant 0 : i32
    %c0_i32_0 = arith.constant 0 : i32
    %c0_i32_1 = arith.constant 0 : i32
    return %arg0, %c0_i32, %c0_i32_0 : i32, i32, i32
  }
}

</mosaic_0001>

<bundles_post_ra>
// kernel: critic_forward.1
= control target key start
LH: loop header
LB: loop body
LE: loop exit
PB: predicated region body
PF: predicated region fallthrough
CT: control target
= control target key end

     0   :  { %s24904_s15 = smov 0   ;;  %s31087_s0 = inlined_call_operand.vmem [shape: bf16[2,24,1056], index: 0, kind: input, shape index: {}]   ;;  %s31088_s1 = inlined_call_operand.vmem [shape: bf16[2,8,24], index: 1, kind: input, shape index: {}]   ;;  %s31089_s2 = inlined_call_operand.vmem [shape: f32[2,8,1], index: 2, kind: input, shape index: {}]   ;;  %s31090_s3 = inlined_call_operand.vmem [shape: bf16[8,1024,272], index: 3, kind: input, shape index: {}]   ;;  %s31091_s4 = inlined_call_operand.vmem [shape: bf16[2,16,64], index: 4, kind: input, shape index: {}]   ;;  %s31092_s5 = inlined_call_operand.vmem [shape: f32[2,16,1], index: 5, kind: input, shape index: {}]   ;;  %s31093_s6 = inlined_call_operand.vmem [shape: bf16[8,256,72], index: 6, kind: input, shape index: {}]   ;;  %s31094_s7 = inlined_call_operand.vmem [shape: bf16[2,32,128], index: 7, kind: input, shape index: {}]   ;;  %s31095_s8 = inlined_call_operand.vmem [shape: f32[2,32,1], index: 8, kind: input, shape index: {}]   ;;  %s31096_s9 = inlined_call_operand.vmem [shape: bf16[8,64,20], index: 9, kind: input, shape index: {}]   ;;  %s31097_s10 = inlined_call_operand.vmem [shape: bf16[2,64,256], index: 10, kind: input, shape index: {}]   ;;  %s31098_s11 = inlined_call_operand.vmem [shape: f32[2,64,1], index: 11, kind: input, shape index: {}]   ;;  %s31099_s12 = inlined_call_operand.vmem [shape: f32[64,16], index: 12, kind: input, shape index: {}]   ;;  %s31100_s13 = inlined_call_operand.<no memory space> [shape: f32[1,1], index: 13, kind: input, shape index: {}]   ;;  %s31101_s14 = inlined_call_operand.vmem [shape: f32[2,1,1], index: 14, kind: output, shape index: {}]  }
   0x1   :  { %v19_v0 = vstv %s31100_s13 }
   0x2   :  { %20 = vst [vmem:[#allocation5] sm:$0x1] %v19_v0 }
   0x3 LB: > { %s17333_s16 = sadd.s32 4294967295, %s24819_s15   ;;  %p17337_p0 = scmp.ge.s32.totalorder %s24819_s15, 1  ;;  %s24819_s15 = sphi %s24904_s15, %s26_s15  }
   0x4   : > { %p414_p1 = scmp.lt.s32.totalorder %s24819_s15, 3 }
   0x6   : > { %p415_p2 = pnand %p17337_p0, %p414_p1 }
   0x7   : > { %p458_p3 = scmp.lt.s32.totalorder (!%p415_p2), %s17333_s16, 1  ;;  %s24821_s20 = smov (!%p415_p2), 96   ;;  %v24822_v7 = vmov (!%p415_p2), 0   ;;  %vm581_vm0 = vcmask (!%p415_p2), 785408   ;;  %vm610_vm1 = vcmask (!%p415_p2), 1043456   ;;  %vm606_vm2 = vcmask (!%p415_p2), 195584  }
   0x8   : > { %418 = sbr.rel (%p415_p2) target bundleno = 5288 (0x14a8), region = 76  ;;  %667 = vmatprep.mubr.bf16.mxu0 (!%p415_p2), %v24822_v7  ;;  %708 = vmatprep.mubr.bf16.mxu1 (!%p415_p2), %v24822_v7  ;;  %v17339_v39 = vld [vmem:[%s31088_s1 + $0x4] sm:$0xf] (!%p415_p2)  ;;  %vm2707_vm11 = vcmask (!%p415_p2), 130048   ;;  %vm14047_vm12 = vcmask (!%p415_p2), 916480   ;;  %vm14064_vm13 = vcmask (!%p415_p2), 523264  }
   0x9   : > { %22513 = vset.pattern.permute.xlu0 (!%p415_p2), %v24822_v7  ;;  %22514 = vset.pattern.permute.xlu1 (!%p415_p2), %v24822_v7  ;;  %s24824_s23 = smov (!%p415_p2), 120   ;;  %s24825_s22 = smov (!%p415_p2), 124  }
   0xf   : > { %s31103_s16 = smov (!%p458_p3, %s17333_s16), 1 }
  0x10   : > { %s22497_s13 = smul.u32 108, %s31103_s16  ;;  %s465_s30 = scalar_lea.vmem %s31101_s14, %s31103_s16 }
  0x12   : > { %s24918_s19 = scalar_lea.vmem %s31087_s0, %s22497_s13  ;;  %s24823_s13 = smov 112  }
  0x13   : > { %v22515_v1 = vld [vmem:[%s24918_s19 + $0x4] ss:$36 sps:$4 sm:$0xff]   ;;  %v22520_v4 = vld [vmem:[%s24918_s19 + $0xc] ss:$36 sps:$4 sm:$0xff]   ;;  %v22526_v12 = vld [vmem:[%s24918_s19 + $0x14] ss:$36 sps:$4 sm:$0xff]  }
  0x14   : > { %v22517_v2 = vld [vmem:[%s24918_s19] ss:$36 sps:$4 sm:$0xff]   ;;  %547 = vrot.lane.b32.xlu0 %v22515_v1, %s24821_s20  ;;  %v22518_v3 = vld [vmem:[%s24918_s19 + $0x8] ss:$36 sps:$4 sm:$0xff]   ;;  %v22521_v6 = vld [vmem:[%s24918_s19 + $0x10] ss:$36 sps:$4 sm:$0xff]  }
  0x15   : > { %545 = vrot.lane.b32.xlu1 %v22517_v2, %s24821_s20  ;;  %v477_v5 = vld [vmem:[%s24918_s19 + $0x48] sm:$0xff]  ;;  %v478_v9 = vld [vmem:[%s24918_s19 + $0x50] sm:$0xff]  ;;  %v22527_v13 = vld [vmem:[%s24918_s19 + $0x18] ss:$36 sps:$4 sm:$0xff]  }
  0x16   : > { %v24931_v8 = vcombine.low %v477_v5, %v477_v5  ;;  %v24938_v10 = vcombine.high %v477_v5, %v477_v5  ;;  %v24942_v11 = vcombine.low %v478_v9, %v478_v9  ;;  %v479_v14 = vld [vmem:[%s24918_s19 + $0x58] sm:$0xff]  ;;  %v24952_v15 = vcombine.high %v478_v9, %v478_v9  ;;  %v22532_v18 = vld [vmem:[%s24918_s19 + $0x20] ss:$36 sps:$4 sm:$0xff]   ;;  %v22536_v22 = vld [vmem:[%s24918_s19 + $0x68] ss:$0 sps:$4 sm:$0xff]  }
  0x17   : > { %v24955_v16 = vcombine.low %v479_v14, %v479_v14  ;;  %v22531_v17 = vld [vmem:[%s24918_s19 + $0x1c] ss:$36 sps:$4 sm:$0xff]   ;;  %v24965_v20 = vcombine.high %v479_v14, %v479_v14  ;;  %v24805_v61 = vld [vmem:[%s24918_s19 + $0x4] ss:$36 sps:$4 sm:$0xff]   ;;  %v24807_v1 = vld [vmem:[%s24918_s19 + $0xc] ss:$36 sps:$4 sm:$0xff]  }
  0x18   : > { %549 = vrot.lane.b32.xlu0 %v22518_v3, %s24821_s20  ;;  %v480_v19 = vld [vmem:[%s24918_s19 + $0x60] sm:$0xff]  ;;  %v811_v2 = vsel %vm610_vm1, %v24931_v8, 0  ;;  %v24809_v5 = vld [vmem:[%s24918_s19 + $0x14] ss:$36 sps:$4 sm:$0xff]  }
  0x19   : > { %551 = vrot.lane.b32.xlu1 %v22520_v4, %s24821_s20  ;;  %v24968_v21 = vcombine.low %v480_v19, %v480_v19  ;;  %v24973_v23 = vcombine.high %v480_v19, %v480_v19  ;;  %v24806_v0 = vld [vmem:[%s24918_s19] ss:$36 sps:$4 sm:$0xff]   ;;  %v24808_v4 = vld [vmem:[%s24918_s19 + $0x8] ss:$36 sps:$4 sm:$0xff]  }
  0x1a   : > { %v482_v3 = vld [vmem:[%s31088_s1] sm:$0xf] }
  0x1b   : > { %v24811_v9 = vld [vmem:[%s24918_s19 + $0x1c] ss:$36 sps:$4 sm:$0xff]  }
  0x1c   : > { %553 = vrot.lane.b32.xlu0 %v22521_v6, %s24821_s20  ;;  %v817_v6 = vsel %vm610_vm1, %v24942_v11, 0 }
  0x1d   : > { %563 = vrot.lane.b32.xlu1 %v24931_v8, %s24821_s20  ;;  %v24810_v8 = vld [vmem:[%s24918_s19 + $0x10] ss:$36 sps:$4 sm:$0xff]  }
  0x20   : > { %565 = vrot.lane.b32.xlu0 %v24938_v10, %s24821_s20 }
  0x21   : > { %567 = vrot.lane.b32.xlu1 %v24942_v11, %s24821_s20  ;;  %v24812_v11 = vld [vmem:[%s24918_s19 + $0x18] ss:$36 sps:$4 sm:$0xff]  }
  0x24   : > { %555 = vrot.lane.b32.xlu0 %v22526_v12, %s24821_s20  ;;  %v829_v12 = vsel %vm610_vm1, %v24968_v21, 0 }
  0x25   : > { %557 = vrot.lane.b32.xlu1 %v22527_v13, %s24821_s20 }
  0x28   : > { %569 = vrot.lane.b32.xlu0 %v24952_v15, %s24821_s20 }
  0x29   : > { %571 = vrot.lane.b32.xlu1 %v24955_v16, %s24821_s20 }
  0x2c   : > { %559 = vrot.lane.b32.xlu0 %v22531_v17, %s24821_s20 }
  0x2d   : > { %561 = vrot.lane.b32.xlu1 %v22532_v18, %s24821_s20 }
  0x30   : > { %573 = vrot.lane.b32.xlu0 %v24965_v20, %s24821_s20 }
  0x31   : > { %575 = vrot.lane.b32.xlu1 %v24968_v21, %s24821_s20 }
  0x34   : > { %577 = vrot.lane.b32.xlu0 %v24973_v23, %s24821_s20 }
  0x35   : > { %579 = vrot.lane.b32.xlu1 %v22536_v22, %s24821_s20 }
  0x86   : > { %v548_v24 = vpop.permute.xlu0 %547 }
  0x87   : > { %v546_v25 = vpop.permute.xlu1 %545 }
  0x88   : > { %v582_v29 = vsel %vm581_vm0, %v546_v25, %v548_v24 }
  0x8a   : > { %v550_v26 = vpop.permute.xlu0 %549 }
  0x8b   : > { %v552_v27 = vpop.permute.xlu1 %551  ;;  %v583_v28 = vsel %vm581_vm0, %v548_v24, %v550_v26 }
  0x8c   : > { %635 = vmatprep.subr.bf16.mxu0 %v583_v28  ;;  %v584_v33 = vsel %vm581_vm0, %v550_v26, %v552_v27 }
  0x8d   : > { %636 = vmatpush1.bf16.msra.mxu0 %v582_v29 }
  0x8e   : > { %v554_v30 = vpop.permute.xlu0 %553 }
  0x8f   : > { %v564_v31 = vpop.permute.xlu1 %563  ;;  %v585_v32 = vsel %vm581_vm0, %v552_v27, %v554_v30 }
  0x90   : > { %676 = vmatprep.subr.bf16.mxu1 %v585_v32 }
  0x91   : > { %677 = vmatpush1.bf16.msra.mxu1 %v584_v33 }
  0x92   : > { %v566_v34 = vpop.permute.xlu0 %565 }
  0x93   : > { %v568_v35 = vpop.permute.xlu1 %567  ;;  %v590_v36 = vsel %vm581_vm0, %v564_v31, %v566_v34 }
  0x94   : > { %v591_v37 = vsel %vm581_vm0, %v566_v34, %v568_v35  ;;  %v612_v38 = vsel %vm610_vm1, %v590_v36, 0 }
  0x95   : > { %17358 = vmatprep.subr.msk.bf16.mxu0 %vm610_vm1, %v591_v37 }
  0x96   : > { %638 = vmatpush1.bf16.msra.mxu0 %v612_v38  ;;  %v556_v40 = vpop.permute.xlu0 %555 }
  0x97   : > { %v558_v41 = vpop.permute.xlu1 %557  ;;  %v586_v42 = vsel %vm581_vm0, %v554_v30, %v556_v40 }
  0x98   : > { %v587_v43 = vsel %vm581_vm0, %v556_v40, %v558_v41 }
  0x99   : > { %717 = vmatprep.subr.bf16.mxu0 %v587_v43  ;;  %17359 = vmatmul.mubr.msk.bf16.vlgmr.msra.gmra.mrb[0].mxu0 %vm606_vm2, %v17339_v39 }
  0x9a   : > { %718 = vmatpush1.bf16.msra.mxu0 %v586_v42  ;;  %v570_v44 = vpop.permute.xlu0 %569  ;;  %749 = vmatprep.mubr.bf16.mxu0 %v24822_v7 }
  0x9b   : > { %v572_v45 = vpop.permute.xlu1 %571  ;;  %v592_v46 = vsel %vm581_vm0, %v568_v35, %v570_v44 }
  0x9c   : > { %v593_v47 = vsel %vm581_vm0, %v570_v44, %v572_v45  ;;  %v618_v48 = vsel %vm610_vm1, %v592_v46, 0 }
  0x9d   : > { %17360 = vmatprep.subr.msk.bf16.mxu1 %vm610_vm1, %v593_v47 }
  0x9e   : > { %679 = vmatpush1.bf16.msra.mxu1 %v618_v48  ;;  %v560_v49 = vpop.permute.xlu0 %559 }
  0x9f   : > { %v588_v50 = vsel %vm581_vm0, %v558_v41, %v560_v49  ;;  %v562_v51 = vpop.permute.xlu1 %561 }
  0xa0   : > { %v589_v52 = vsel %vm581_vm0, %v560_v49, %v562_v51  ;;  %v17374_v51 = vld [vmem:[%s31089_s2 + $0x8] sm:$0xff] }
  0xa1   : > { %758 = vmatprep.subr.bf16.mxu1 %v589_v52  ;;  %17361 = vmatmul.mubr.msk.bf16.vlgmr.msra.gmra.mrb[0].mxu1 %vm606_vm2, %v17339_v39  ;;  %v22537_v52 = vld [vmem:[%s31090_s3] ss:$12 sps:$4 sm:$0xff]  }
  0xa2   : > { %759 = vmatpush1.bf16.msra.mxu1 %v588_v50  ;;  %v574_v53 = vpop.permute.xlu0 %573  ;;  %790 = vmatprep.mubr.bf16.mxu1 %v24822_v7 }
  0xa3   : > { %v594_v54 = vsel %vm581_vm0, %v572_v45, %v574_v53  ;;  %v576_v55 = vpop.permute.xlu1 %575 }
  0xa4   : > { %v624_v56 = vsel %vm610_vm1, %v594_v54, 0  ;;  %v595_v57 = vsel %vm581_vm0, %v574_v53, %v576_v55  ;;  %v22539_v53 = vld [vmem:[%s31090_s3 + $0x4] ss:$12 sps:$4 sm:$0xff]   ;;  %v22542_v54 = vld [vmem:[%s31090_s3 + $0x1c] ss:$12 sps:$4 sm:$0xff]  }
  0xa5   : > { %17362 = vmatprep.subr.msk.bf16.mxu0 %vm610_vm1, %v595_v57  ;;  %v22564_v57 = vld [vmem:[%s31090_s3 + $0xc8] ss:$12 sps:$4 sm:$0xff]  }
  0xa6   : > { %720 = vmatpush1.bf16.msra.mxu0 %v624_v56  ;;  %v578_v58 = vpop.permute.xlu0 %577  ;;  %v22545_v56 = vld [vmem:[%s31090_s3 + $0x34] ss:$12 sps:$4 sm:$0xff]  }
  0xa7   : > { %v596_v59 = vsel %vm581_vm0, %v576_v55, %v578_v58  ;;  %v580_v60 = vpop.permute.xlu1 %579  ;;  %834 = vmatprep.subr.bf16.mxu0 %v24805_v61  ;;  %v22540_v55 = vld [vmem:[%s31090_s3 + $0x18] ss:$12 sps:$4 sm:$0xff]  }
  0xa8   : > { %v630_v62 = vsel %vm610_vm1, %v596_v59, 0  ;;  %v597_v63 = vsel %vm581_vm0, %v578_v58, %v580_v60  ;;  %v22565_v58 = vld [vmem:[%s31090_s3 + $0x8] ss:$12 sps:$4 sm:$0xff]   ;;  %v22543_v59 = vld [vmem:[%s31090_s3 + $0x30] ss:$12 sps:$4 sm:$0xff]  }
  0xa9   : > { %17363 = vmatmul.mubr.msk.bf16.vlgmr.msra.gmra.mrb[4].mxu0 %vm606_vm2, %v17339_v39  ;;  %17364 = vmatprep.subr.msk.bf16.mxu1 %vm610_vm1, %v597_v63  ;;  %v22569_v60 = vld [vmem:[%s31090_s3 + $0xe0] ss:$12 sps:$4 sm:$0xff]   ;;  %v22574_v63 = vld [vmem:[%s31090_s3 + $0xf8] ss:$12 sps:$4 sm:$0xff]  }
  0xaa   : > { %761 = vmatpush1.bf16.msra.mxu1 %v630_v62  ;;  %835 = vmatpush1.bf16.msra.mxu0 %v24806_v0  ;;  %v22548_v61 = vld [vmem:[%s31090_s3 + $0x4c] ss:$12 sps:$4 sm:$0xff]   ;;  %v22546_v0 = vld [vmem:[%s31090_s3 + $0x48] ss:$12 sps:$4 sm:$0xff]  }
  0xab   : > { %17366 = vmatprep.subr.msk.bf16.mxu0 %vm610_vm1, %v24938_v10  ;;  %875 = vmatprep.subr.bf16.mxu1 %v24807_v1  ;;  %v823_v10 = vsel %vm610_vm1, %v24955_v16, 0  ;;  %v22570_v62 = vld [vmem:[%s31090_s3 + $0x20] ss:$12 sps:$4 sm:$0xff]   ;;  %v22551_v1 = vld [vmem:[%s31090_s3 + $0x64] ss:$12 sps:$4 sm:$0xff]  }
  0xac   : > { %866 = vmatprep.mubr.bf16.mxu0 %v24822_v7 }
  0xad   : > { %17365 = vmatmul.mubr.msk.bf16.vlgmr.msra.gmra.mrb[4].mxu1 %vm606_vm2, %v17339_v39 }
  0xae   : > { %837 = vmatpush1.bf16.msra.mxu0 %v811_v2  ;;  %876 = vmatpush1.bf16.msra.mxu1 %v24808_v4  ;;  %v22549_v2 = vld [vmem:[%s31090_s3 + $0x60] ss:$12 sps:$4 sm:$0xff]   ;;  %v22579_v4 = vld [vmem:[%s31090_s3 + $0x110] ss:$12 sps:$4 sm:$0xff]  }
  0xaf   : > { %17368 = vmatprep.subr.msk.bf16.mxu1 %vm610_vm1, %v24952_v15  ;;  %916 = vmatprep.subr.bf16.mxu0 %v24809_v5  ;;  %v22554_v5 = vld [vmem:[%s31090_s3 + $0x7c] ss:$12 sps:$4 sm:$0xff]  }
  0xb0   : > { %907 = vmatprep.mubr.bf16.mxu1 %v24822_v7 }
  0xb1   : > { %17367 = vmatmul.mubr.msk.bf16.vlgmr.msra.gmra.mrb[0].mxu0 %vm606_vm2, %v482_v3 }
  0xb2   : > { %878 = vmatpush1.bf16.msra.mxu1 %v817_v6  ;;  %917 = vmatpush1.bf16.msra.mxu0 %v24810_v8  ;;  %v22580_v6 = vld [vmem:[%s31090_s3 + $0x50] ss:$12 sps:$4 sm:$0xff]   ;;  %v22584_v8 = vld [vmem:[%s31090_s3 + $0x128] ss:$12 sps:$4 sm:$0xff]  }
  0xb3   : > { %17370 = vmatprep.subr.msk.bf16.mxu0 %vm610_vm1, %v24965_v20  ;;  %957 = vmatprep.subr.bf16.mxu1 %v24811_v9  ;;  %v22552_v9 = vld [vmem:[%s31090_s3 + $0x78] ss:$12 sps:$4 sm:$0xff]  }
  0xb4   : > { %948 = vmatprep.mubr.bf16.mxu0 %v24822_v7 }
  0xb5   : > { %17369 = vmatmul.mubr.msk.bf16.vlgmr.msra.gmra.mrb[0].mxu1 %vm606_vm2, %v482_v3 }
  0xb6   : > { %919 = vmatpush1.bf16.msra.mxu0 %v823_v10  ;;  %958 = vmatpush1.bf16.msra.mxu1 %v24812_v11  ;;  %v22557_v10 = vld [vmem:[%s31090_s3 + $0x94] ss:$12 sps:$4 sm:$0xff]  }
  0xb7   : > { %17372 = vmatprep.subr.msk.bf16.mxu1 %vm610_vm1, %v24973_v23  ;;  %989 = vmatprep.mubr.bf16.mxu1 %v24822_v7  ;;  %v22585_v11 = vld [vmem:[%s31090_s3 + $0x68] ss:$12 sps:$4 sm:$0xff]  }
  0xb8   : > { %2381 = vmatprep.subr.bf16.mxu0 %v22539_v53  ;;  %v22591_v53 = vld [vmem:[%s31090_s3 + $0x150] ss:$12 sps:$4 sm:$0xff]  }
  0xb9   : > { %17371 = vmatmul.mubr.msk.bf16.vlgmr.msra.gmra.mrb[4].mxu0 %vm606_vm2, %v482_v3 }
  0xba   : > { %960 = vmatpush1.bf16.msra.mxu1 %v829_v12  ;;  %2382 = vmatpush1.bf16.msra.mxu0 %v22537_v52  ;;  %v22589_v12 = vld [vmem:[%s31090_s3 + $0x140] ss:$12 sps:$4 sm:$0xff]  }
  0xbb   : > { %2383 = vmatprep.subr.bf16.mxu0 %v22542_v54  ;;  %21213 = vmatprep.subr.bf16.mxu1 %v22564_v57  ;;  %v22593_v54 = vld [vmem:[%s31090_s3 + $0x154] ss:$12 sps:$4 sm:$0xff]   ;;  %v22598_v57 = vld [vmem:[%s31090_s3 + $0x16c] ss:$12 sps:$4 sm:$0xff]  }
  0xbd   : > { %17373 = vmatmul.mubr.msk.bf16.vlgmr.msra.gmra.mrb[4].mxu1 %vm606_vm2, %v482_v3  ;;  %v22575_v3 = vld [vmem:[%s31090_s3 + $0x38] ss:$12 sps:$4 sm:$0xff]   ;;  %vm14414_vm2 = vcmask 588800  }
  0xbe   : > { %2384 = vmatpush1.bf16.msra.mxu0 %v22540_v55  ;;  %21214 = vmatpush3.bf16.msra.mxu1 %v22565_v58  ;;  %v22594_v55 = vld [vmem:[%s31090_s3 + $0x158] ss:$12 sps:$4 sm:$0xff]   ;;  %v22599_v58 = vld [vmem:[%s31090_s3 + $0x170] ss:$12 sps:$4 sm:$0xff]  }
  0xbf   : > { %2385 = vmatprep.subr.bf16.mxu0 %v22545_v56  ;;  %21215 = vmatprep.subr.bf16.mxu1 %v22569_v60  ;;  %v22595_v56 = vld [vmem:[%s31090_s3 + $0x98] ss:$12 sps:$4 sm:$0xff]   ;;  %v22600_v60 = vld [vmem:[%s31090_s3 + $0xb0] ss:$12 sps:$4 sm:$0xff]  }
  0xc2   : > { %2386 = vmatpush1.bf16.msra.mxu0 %v22543_v59  ;;  %21216 = vmatpush3.bf16.msra.mxu1 %v22570_v62  ;;  %v22596_v59 = vld [vmem:[%s31090_s3 + $0x168] ss:$12 sps:$4 sm:$0xff]  }
  0xc3   : > { %2387 = vmatprep.subr.bf16.mxu0 %v22548_v61  ;;  %21217 = vmatprep.subr.bf16.mxu1 %v22574_v63  ;;  %v22603_v61 = vld [vmem:[%s31090_s3 + $0x184] ss:$12 sps:$4 sm:$0xff]   ;;  %v22604_v62 = vld [vmem:[%s31090_s3 + $0x248] ss:$12 sps:$4 sm:$0xff]  }
  0xc6   : > { %2388 = vmatpush1.bf16.msra.mxu0 %v22546_v0  ;;  %21218 = vmatpush3.bf16.msra.mxu1 %v22575_v3 }
  0xc7   : > { %2389 = vmatprep.subr.bf16.mxu0 %v22551_v1  ;;  %21219 = vmatprep.subr.bf16.mxu1 %v22579_v4 }
  0xca   : > { %2390 = vmatpush1.bf16.msra.mxu0 %v22549_v2  ;;  %21220 = vmatpush3.bf16.msra.mxu1 %v22580_v6 }
  0xcb   : > { %2391 = vmatprep.subr.bf16.mxu0 %v22554_v5  ;;  %21221 = vmatprep.subr.bf16.mxu1 %v22584_v8 }
  0xce   : > { %2392 = vmatpush1.bf16.msra.mxu0 %v22552_v9  ;;  %21222 = vmatpush3.bf16.msra.mxu1 %v22585_v11 }
  0xcf   : > { %2393 = vmatprep.subr.bf16.mxu0 %v22557_v10  ;;  %21223 = vmatprep.subr.bf16.mxu1 %v22589_v12 }
 0x184   : > { %v25048_v13 = vpop.f32.mrb[0].mxu0 }
 0x185   : > { %v1008_v14 = vmul.f32 %v25048_v13, %v25048_v13  ;;  %v25052_v15 = vpop.f32.mrb[1].mxu0 }
 0x186   : > { %v998_v16 = vadd.f32 %v25052_v15, %v25048_v13  ;;  %v1009_v17 = vmul.f32 %v25052_v15, %v25052_v15  ;;  %v872_v18 = vpop.f32.mrb[2].mxu0 }
 0x187   : > { %v873_v19 = vpop.f32.mrb[3].mxu0  ;;  %v22558_v18 = vld [vmem:[%s31090_s3 + $0xa8] ss:$12 sps:$4 sm:$0xff]  }
 0x188   : > { %v1016_v20 = vadd.f32 %v1009_v17, %v1008_v14  ;;  %v25058_v21 = vpop.f32.mrb[0].mxu1  ;;  %v22555_v14 = vld [vmem:[%s31090_s3 + $0x90] ss:$12 sps:$4 sm:$0xff]   ;;  %v22590_v17 = vld [vmem:[%s31090_s3 + $0x80] ss:$12 sps:$4 sm:$0xff]  }
 0x189   : > { %v999_v22 = vadd.f32 %v998_v16, %v25058_v21  ;;  %v1010_v23 = vmul.f32 %v25058_v21, %v25058_v21  ;;  %v25063_v24 = vpop.f32.mrb[1].mxu1  ;;  %v22560_v16 = vld [vmem:[%s31090_s3 + $0xac] ss:$12 sps:$4 sm:$0xff]   ;;  %v22563_v19 = vld [vmem:[%s31090_s3 + $0xc4] ss:$12 sps:$4 sm:$0xff]   ;;  %2394 = vmatpush1.bf16.msra.mxu0 %v22555_v14  ;;  %21224 = vmatpush3.bf16.msra.mxu1 %v22590_v17 }
 0x18a   : > { %v1011_v25 = vmul.f32 %v25063_v24, %v25063_v24  ;;  %v913_v26 = vpop.f32.mrb[2].mxu1  ;;  %2395 = vmatprep.subr.bf16.mxu0 %v22560_v16  ;;  %21225 = vmatprep.subr.bf16.mxu1 %v22594_v55  ;;  %v22601_v14 = vld [vmem:[%s31090_s3 + $0x180] ss:$12 sps:$4 sm:$0xff]   ;;  %v22605_v16 = vld [vmem:[%s31090_s3 + $0x188] ss:$12 sps:$4 sm:$0xff]  }
 0x18b   : > { %v1017_v27 = vadd.f32 %v1016_v20, %v1010_v23  ;;  %v1000_v28 = vadd.f32 %v999_v22, %v25063_v24  ;;  %v914_v29 = vpop.f32.mrb[3].mxu1  ;;  %v22561_v20 = vld [vmem:[%s31090_s3 + $0xc0] ss:$12 sps:$4 sm:$0xff]   ;;  %v22568_v22 = vld [vmem:[%s31090_s3 + $0xdc] ss:$12 sps:$4 sm:$0xff]  }
 0x18c   : > { %v25068_v30 = vpop.f32.mrb[4].mxu0  ;;  %v22566_v23 = vld [vmem:[%s31090_s3 + $0xd8] ss:$12 sps:$4 sm:$0xff]   ;;  %v22571_v26 = vld [vmem:[%s31090_s3 + $0xf0] ss:$12 sps:$4 sm:$0xff]  }
 0x18d   : > { %v1018_v31 = vadd.f32 %v1017_v27, %v1011_v25  ;;  %v1001_v32 = vadd.f32 %v1000_v28, %v25068_v30  ;;  %v1012_v33 = vmul.f32 %v25068_v30, %v25068_v30  ;;  %v25073_v34 = vpop.f32.mrb[5].mxu0  ;;  %2396 = vmatpush1.bf16.msra.mxu0 %v22558_v18  ;;  %v22573_v25 = vld [vmem:[%s31090_s3 + $0xf4] ss:$12 sps:$4 sm:$0xff]   ;;  %v22578_v27 = vld [vmem:[%s31090_s3 + $0x10c] ss:$12 sps:$4 sm:$0xff]   ;;  %21226 = vmatpush3.bf16.msra.mxu1 %v22595_v56 }
 0x18e   : > { %v1013_v35 = vmul.f32 %v25073_v34, %v25073_v34  ;;  %v954_v36 = vpop.f32.mrb[6].mxu0  ;;  %2397 = vmatprep.subr.bf16.mxu0 %v22563_v19  ;;  %v22576_v28 = vld [vmem:[%s31090_s3 + $0x108] ss:$12 sps:$4 sm:$0xff]   ;;  %v22583_v29 = vld [vmem:[%s31090_s3 + $0x124] ss:$12 sps:$4 sm:$0xff]   ;;  %21227 = vmatprep.subr.bf16.mxu1 %v22599_v58 }
 0x18f   : > { %v1019_v37 = vadd.f32 %v1018_v31, %v1012_v33  ;;  %v1002_v38 = vadd.f32 %v1001_v32, %v25073_v34  ;;  %v955_v39 = vpop.f32.mrb[7].mxu0  ;;  %v22581_v31 = vld [vmem:[%s31090_s3 + $0x120] ss:$12 sps:$4 sm:$0xff]   ;;  %v22588_v32 = vld [vmem:[%s31090_s3 + $0x13c] ss:$12 sps:$4 sm:$0xff]  }
 0x190   : > { %v25078_v40 = vpop.f32.mrb[4].mxu1  ;;  %v22586_v33 = vld [vmem:[%s31090_s3 + $0x138] ss:$12 sps:$4 sm:$0xff]   ;;  %v22639_v55 = vld [vmem:[%s31090_s3 + $0x2f0] ss:$12 sps:$4 sm:$0xff]  }
 0x191   : > { %v1014_v41 = vmul.f32 %v25078_v40, %v25078_v40  ;;  %v25082_v42 = vpop.f32.mrb[5].mxu1  ;;  %v1003_v43 = vadd.f32 %v1002_v38, %v25078_v40  ;;  %v1020_v44 = vadd.f32 %v1019_v37, %v1013_v35  ;;  %2398 = vmatpush1.bf16.msra.mxu0 %v22561_v20  ;;  %21228 = vmatpush3.bf16.msra.mxu1 %v22600_v60  ;;  %v22608_v20 = vld [vmem:[%s31090_s3 + $0x19c] ss:$12 sps:$4 sm:$0xff]   ;;  %v22643_v60 = vld [vmem:[%s31090_s3 + $0x244] ss:$12 sps:$4 sm:$0xff]  }
 0x192   : > { %v995_v45 = vpop.f32.mrb[6].mxu1  ;;  %v1015_v46 = vmul.f32 %v25082_v42, %v25082_v42  ;;  %2399 = vmatprep.subr.bf16.mxu0 %v22568_v22  ;;  %21235 = vmatprep.subr.bf16.mxu1 %v22604_v62  ;;  %v22609_v22 = vld [vmem:[%s31090_s3 + $0x260] ss:$12 sps:$4 sm:$0xff]   ;;  %v22640_v58 = vld [vmem:[%s31090_s3 + $0x230] ss:$12 sps:$4 sm:$0xff]  }
 0x193   : > { %v996_v47 = vpop.f32.mrb[7].mxu1  ;;  %v1004_v48 = vadd.f32 %v1003_v43, %v25082_v42  ;;  %v1021_v49 = vadd.f32 %v1020_v44, %v1014_v41 }
 0x195   : > { %1005 = vadd.xlane.f32.xlu0 %v1004_v48  ;;  %v1022_v50 = vadd.f32 %v1021_v49, %v1015_v46  ;;  %2400 = vmatpush1.bf16.msra.mxu0 %v22566_v23 }
 0x196   : > { %2401 = vmatprep.subr.bf16.mxu0 %v22573_v25  ;;  %v22606_v25 = vld [vmem:[%s31090_s3 + $0x198] ss:$12 sps:$4 sm:$0xff]  }
 0x197   : > { %1023 = vadd.xlane.f32.xlu1 %v1022_v50 }
 0x199   : > { %2402 = vmatpush1.bf16.msra.mxu0 %v22571_v26  ;;  %v22610_v26 = vld [vmem:[%s31090_s3 + $0x1a0] ss:$12 sps:$4 sm:$0xff]  }
 0x19a   : > { %2403 = vmatprep.subr.bf16.mxu0 %v22578_v27  ;;  %v22613_v27 = vld [vmem:[%s31090_s3 + $0x1b4] ss:$12 sps:$4 sm:$0xff]  }
 0x19d   : > { %2404 = vmatpush1.bf16.msra.mxu0 %v22576_v28  ;;  %v22614_v28 = vld [vmem:[%s31090_s3 + $0x278] ss:$12 sps:$4 sm:$0xff]  }
 0x19e   : > { %2405 = vmatprep.subr.bf16.mxu0 %v22583_v29  ;;  %v22611_v29 = vld [vmem:[%s31090_s3 + $0x1b0] ss:$12 sps:$4 sm:$0xff]  }
 0x1a1   : > { %2406 = vmatpush1.bf16.msra.mxu0 %v22581_v31  ;;  %v22615_v31 = vld [vmem:[%s31090_s3 + $0x1b8] ss:$12 sps:$4 sm:$0xff]  }
 0x1a2   : > { %2407 = vmatprep.subr.bf16.mxu0 %v22588_v32  ;;  %v22618_v32 = vld [vmem:[%s31090_s3 + $0x1cc] ss:$12 sps:$4 sm:$0xff]  }
 0x1a5   : > { %2408 = vmatpush1.bf16.msra.mxu0 %v22586_v33  ;;  %v22619_v33 = vld [vmem:[%s31090_s3 + $0x290] ss:$12 sps:$4 sm:$0xff]  }
 0x1a6   : > { %2409 = vmatprep.subr.bf16.mxu0 %v22593_v54  ;;  %v22638_v54 = vld [vmem:[%s31090_s3 + $0x22c] ss:$12 sps:$4 sm:$0xff]  }
 0x1a8   : > { %1058 = vperm.xlu1 %22514, %v17374_v51  }
 0x1a9   : > { %2410 = vmatpush1.bf16.msra.mxu0 %v22591_v53 }
 0x1aa   : > { %2411 = vmatprep.subr.bf16.mxu0 %v22598_v57  ;;  %v22636_v57 = vld [vmem:[%s31090_s3 + $0x228] ss:$12 sps:$4 sm:$0xff]  }
 0x1ad   : > { %2412 = vmatpush1.bf16.msra.mxu0 %v22596_v59 }
 0x1ae   : > { %2422 = vmatprep.subr.bf16.mxu0 %v22603_v61  ;;  %v22644_v61 = vld [vmem:[%s31090_s3 + $0x3c8] ss:$12 sps:$4 sm:$0xff]  }
 0x222   : > { %v1006_v35 = vpop.xlane.xlu0 %1005 }
 0x223   : > { %v25211_v36 = vmul.f32 0.0009765625, %v1006_v35  ;;  %v22616_v35 = vld [vmem:[%s31090_s3 + $0x1c8] ss:$12 sps:$4 sm:$0xff]  }
 0x224   : > { %v1024_v37 = vpop.xlane.xlu1 %1023 }
 0x225   : > { %v1025_v38 = vmul.f32 0.0009765625, %v1024_v37  ;;  %v1026_v39 = vmul.f32 %v25211_v36, %v25211_v36  ;;  %v1031_v41 = vsub.f32 %v25048_v13, %v25211_v36  ;;  %v1032_v43 = vsub.f32 %v25052_v15, %v25211_v36  ;;  %v22620_v37 = vld [vmem:[%s31090_s3 + $0x1d0] ss:$12 sps:$4 sm:$0xff]  }
 0x226   : > { %v1033_v44 = vsub.f32 %v25058_v21, %v25211_v36  ;;  %v1034_v45 = vsub.f32 %v25063_v24, %v25211_v36  ;;  %v1035_v46 = vsub.f32 %v25068_v30, %v25211_v36  ;;  %v1036_v47 = vsub.f32 %v25073_v34, %v25211_v36  ;;  %v1039_v24 = vld [vmem:[%s31089_s2] sm:$0xff]  ;;  %v22631_v34 = vld [vmem:[%s31090_s3 + $0x210] ss:$12 sps:$4 sm:$0xff]  }
 0x227   : > { %v1027_v48 = vsub.f32 %v1025_v38, %v1026_v39  ;;  %v1037_v49 = vsub.f32 %v25078_v40, %v25211_v36  ;;  %v1038_v13 = vsub.f32 %v25082_v42, %v25211_v36  ;;  %v22623_v38 = vld [vmem:[%s31090_s3 + $0x1e4] ss:$12 sps:$4 sm:$0xff]   ;;  %v22624_v39 = vld [vmem:[%s31090_s3 + $0x2a8] ss:$12 sps:$4 sm:$0xff]  }
 0x228   : > { %v25266_v0 = vpop.permute.xlu1 %1058  ;;  %v22633_v21 = vld [vmem:[%s31090_s3 + $0x214] ss:$12 sps:$4 sm:$0xff]   ;;  %v22666_v30 = vld [vmem:[%s31090_s3 + $0x2b8] ss:$12 sps:$4 sm:$0xff]   ;;  %v22711_v36 = vld [vmem:[%s31090_s3 + $0x390] ss:$12 sps:$4 sm:$0xff]  }
 0x229   : > { %v1028_v15 = vmax.f32 %v1027_v48, 0.0  ;;  %v22629_v48 = vld [vmem:[%s31090_s3 + $0x2c0] ss:$12 sps:$4 sm:$0xff]  }
 0x22a   : > { %v22673_v42 = vld [vmem:[%s31090_s3 + $0x2d4] ss:$12 sps:$4 sm:$0xff]  }
 0x22b   : > { %v1029_v50 = vadd.f32 1e-05, %v1028_v15 }
 0x22d   : > { %24775 = vrsqrt.f32 %v1029_v50  ;;  %v22626_v50 = vld [vmem:[%s31090_s3 + $0x1f8] ss:$12 sps:$4 sm:$0xff]  }
 0x237   : > { %v24776_v51 = vpop.eup %24775 }
 0x238   : > { %v1040_v52 = vmul.f32 %v24776_v51, %v1039_v24  ;;  %v22630_v24 = vld [vmem:[%s31090_s3 + $0x200] ss:$12 sps:$4 sm:$0xff]  }
 0x23a   : > { %1043 = vperm.xlu0 %22513, %v1040_v52  }
 0x2b9   : > { %v25264_v63 = vpop.permute.xlu0 %1043 }
 0x2ba   : > { %v1046_v1 = vmul.f32 %v25264_v63, %v1031_v41  ;;  %v1047_v2 = vmul.f32 %v25264_v63, %v1032_v43  ;;  %v1049_v3 = vmul.f32 %v25264_v63, %v1034_v45  ;;  %v22621_v41 = vld [vmem:[%s31090_s3 + $0x1e0] ss:$12 sps:$4 sm:$0xff]   ;;  %v22625_v43 = vld [vmem:[%s31090_s3 + $0x1e8] ss:$12 sps:$4 sm:$0xff]   ;;  %v1048_v15 = vmul.f32 %v25264_v63, %v1033_v44  ;;  %v22634_v44 = vld [vmem:[%s31090_s3 + $0x2d8] ss:$12 sps:$4 sm:$0xff]  }
 0x2bb   : > { %v22628_v45 = vld [vmem:[%s31090_s3 + $0x1fc] ss:$12 sps:$4 sm:$0xff]   ;;  %v1051_v51 = vmul.f32 %v25264_v63, %v1036_v47  ;;  %v22635_v47 = vld [vmem:[%s31090_s3 + $0x218] ss:$12 sps:$4 sm:$0xff]  }
 0x2bc   : > { %v1061_v4 = vadd.f32 %v25266_v0, %v1046_v1  ;;  %v1062_v5 = vadd.f32 %v25266_v0, %v1047_v2  ;;  %v1064_v6 = vadd.f32 %v25266_v0, %v1049_v3  ;;  %v1063_v52 = vadd.f32 %v25266_v0, %v1048_v15  ;;  %v22641_v1 = vld [vmem:[%s31090_s3 + $0x240] ss:$12 sps:$4 sm:$0xff]   ;;  %v22645_v2 = vld [vmem:[%s31090_s3 + $0x308] ss:$12 sps:$4 sm:$0xff]  }
 0x2bd   : > { %v1066_v53 = vadd.f32 %v25266_v0, %v1051_v51  ;;  %v22683_v51 = vld [vmem:[%s31090_s3 + $0x304] ss:$12 sps:$4 sm:$0xff]  }
 0x2be   : > { %vm1069_vm3 = vcmp.gt.f32.partialorder %v1061_v4, 0.0  ;;  %vm1070_vm4 = vcmp.gt.f32.partialorder %v1062_v5, 0.0  ;;  %v1077_v8 = vmul.f32 0.2, %v1061_v4  ;;  %v1078_v9 = vmul.f32 0.2, %v1062_v5 }
 0x2bf   : > { %vm1072_vm5 = vcmp.gt.f32.partialorder %v1064_v6, 0.0  ;;  %v1080_v10 = vmul.f32 0.2, %v1064_v6  ;;  %vm1071_vm6 = vcmp.gt.f32.partialorder %v1063_v52, 0.0  ;;  %v1079_v56 = vmul.f32 0.2, %v1063_v52 }
 0x2c0   : > { %v1085_v11 = vsel %vm1069_vm3, %v1061_v4, %v1077_v8  ;;  %v1086_v12 = vsel %vm1070_vm4, %v1062_v5, %v1078_v9  ;;  %v1082_v59 = vmul.f32 0.2, %v1066_v53  ;;  %vm1074_vm7 = vcmp.gt.f32.partialorder %v1066_v53, 0.0  ;;  %v22648_v5 = vld [vmem:[%s31090_s3 + $0x25c] ss:$12 sps:$4 sm:$0xff]  }
 0x2c1   : > { %v1088_v17 = vsel %vm1072_vm5, %v1064_v6, %v1080_v10  ;;  %v25280_v18 = vpack.c.bf16 %v1085_v11, %v1085_v11  ;;  %v25282_v19 = vpack.c.bf16 %v1086_v12, %v1086_v12  ;;  %v1087_v62 = vsel %vm1071_vm6, %v1063_v52, %v1079_v56  ;;  %v22646_v6 = vld [vmem:[%s31090_s3 + $0x258] ss:$12 sps:$4 sm:$0xff]   ;;  %v22649_v8 = vld [vmem:[%s31090_s3 + $0x3e0] ss:$12 sps:$4 sm:$0xff]  }
 0x2c2   : > { %v25292_v23 = vpack.c.bf16 %v1088_v17, %v1088_v17  ;;  %v1090_v3 = vsel %vm1074_vm7, %v1066_v53, %v1082_v59  ;;  %v25398_v4 = vpack.c.bf16 %v1087_v62, %v1087_v62  ;;  %v22650_v10 = vld [vmem:[%s31090_s3 + $0x320] ss:$12 sps:$4 sm:$0xff]   ;;  %v22654_v12 = vld [vmem:[%s31090_s3 + $0x3f8] ss:$12 sps:$4 sm:$0xff]   ;;  %vm16030_vm7 = vcmask 162816  }
 0x2c3   : > { %2413 = vmatprep.mubr.bf16.mxu0 %v25282_v19  ;;  %2577 = vmatprep.mubr.bf16.mxu1 %v25282_v19  ;;  %v25409_v9 = vpack.c.bf16 %v1090_v3, %v1090_v3  ;;  %v22653_v11 = vld [vmem:[%s31090_s3 + $0x274] ss:$12 sps:$4 sm:$0xff]   ;;  %v22658_v17 = vld [vmem:[%s31090_s3 + $0x28c] ss:$12 sps:$4 sm:$0xff]  }
 0x2c4   : > { %2414 = vmatmul.mubr.bf16.vlgmr.msra.gmra.mrb[8].mxu0 %v25280_v18  ;;  %2578 = vmatmul.mubr.bf16.vlgmr.msra.gmra.mrb[8].mxu1 %v25280_v18  ;;  %v22681_v52 = vld [vmem:[%s31090_s3 + $0x300] ss:$12 sps:$4 sm:$0xff]   ;;  %v22695_v62 = vld [vmem:[%s31090_s3 + $0x4b8] ss:$12 sps:$4 sm:$0xff]   ;;  %v22696_v3 = vld [vmem:[%s31090_s3 + $0x348] ss:$12 sps:$4 sm:$0xff]  }
 0x2c5   : > { %2423 = vmatpush1.bf16.msra.mxu0 %v22601_v14  ;;  %21236 = vmatpush3.bf16.msra.mxu1 %v22605_v16  ;;  %v22651_v14 = vld [vmem:[%s31090_s3 + $0x270] ss:$12 sps:$4 sm:$0xff]   ;;  %v22655_v16 = vld [vmem:[%s31090_s3 + $0x338] ss:$12 sps:$4 sm:$0xff]   ;;  %v22693_v59 = vld [vmem:[%s31090_s3 + $0x334] ss:$12 sps:$4 sm:$0xff]  }
 0x2c6   : > { %2454 = vmatprep.mubr.bf16.mxu0 %v25292_v23  ;;  %2617 = vmatprep.mubr.bf16.mxu1 %v25292_v23 }
 0x2c7   : > { %2424 = vmatprep.subr.bf16.mxu0 %v22608_v20  ;;  %21237 = vmatprep.subr.bf16.mxu1 %v22609_v22  ;;  %v22659_v20 = vld [vmem:[%s31090_s3 + $0x410] ss:$12 sps:$4 sm:$0xff]   ;;  %v22656_v22 = vld [vmem:[%s31090_s3 + $0x288] ss:$12 sps:$4 sm:$0xff]  }
 0x2c9   : > { %2425 = vmatpush1.bf16.msra.mxu0 %v22606_v25  ;;  %21238 = vmatpush3.bf16.msra.mxu1 %v22610_v26  ;;  %v22660_v25 = vld [vmem:[%s31090_s3 + $0x350] ss:$12 sps:$4 sm:$0xff]  }
 0x2ca   : > { %2426 = vmatprep.subr.bf16.mxu0 %v22613_v27  ;;  %21239 = vmatprep.subr.bf16.mxu1 %v22614_v28  ;;  %v22663_v26 = vld [vmem:[%s31090_s3 + $0x2a4] ss:$12 sps:$4 sm:$0xff]   ;;  %v22664_v27 = vld [vmem:[%s31090_s3 + $0x428] ss:$12 sps:$4 sm:$0xff]   ;;  %v22661_v28 = vld [vmem:[%s31090_s3 + $0x2a0] ss:$12 sps:$4 sm:$0xff]  }
 0x2cd   : > { %2427 = vmatpush1.bf16.msra.mxu0 %v22611_v29  ;;  %21240 = vmatpush3.bf16.msra.mxu1 %v22615_v31  ;;  %v22665_v29 = vld [vmem:[%s31090_s3 + $0x368] ss:$12 sps:$4 sm:$0xff]   ;;  %v1050_v31 = vmul.f32 %v25264_v63, %v1035_v46  ;;  %v22670_v46 = vld [vmem:[%s31090_s3 + $0x380] ss:$12 sps:$4 sm:$0xff]  }
 0x2ce   : > { %2428 = vmatprep.subr.bf16.mxu0 %v22618_v32  ;;  %21241 = vmatprep.subr.bf16.mxu1 %v22619_v33  ;;  %v22668_v32 = vld [vmem:[%s31090_s3 + $0x2bc] ss:$12 sps:$4 sm:$0xff]   ;;  %v22669_v33 = vld [vmem:[%s31090_s3 + $0x440] ss:$12 sps:$4 sm:$0xff]  }
 0x2d1   : > { %2429 = vmatpush1.bf16.msra.mxu0 %v22616_v35  ;;  %21242 = vmatpush3.bf16.msra.mxu1 %v22620_v37  ;;  %v1053_v35 = vmul.f32 %v25264_v63, %v1038_v13  ;;  %v1065_v37 = vadd.f32 %v25266_v0, %v1050_v31  ;;  %v22674_v13 = vld [vmem:[%s31090_s3 + $0x458] ss:$12 sps:$4 sm:$0xff]   ;;  %v22721_v31 = vld [vmem:[%s31090_s3 + $0x3c0] ss:$12 sps:$4 sm:$0xff]  }
 0x2d2   : > { %2430 = vmatprep.subr.bf16.mxu0 %v22623_v38  ;;  %21243 = vmatprep.subr.bf16.mxu1 %v22624_v39  ;;  %v22671_v39 = vld [vmem:[%s31090_s3 + $0x2d0] ss:$12 sps:$4 sm:$0xff]  }
 0x2d3   : > { %v1068_v38 = vadd.f32 %v25266_v0, %v1053_v35  ;;  %vm1073_vm8 = vcmp.gt.f32.partialorder %v1065_v37, 0.0  ;;  %v22724_v35 = vld [vmem:[%s31090_s3 + $0x600] ss:$12 sps:$4 sm:$0xff]  }
 0x2d5   : > { %2431 = vmatpush1.bf16.msra.mxu0 %v22621_v41  ;;  %21244 = vmatpush3.bf16.msra.mxu1 %v22625_v43  ;;  %v22675_v41 = vld [vmem:[%s31090_s3 + $0x398] ss:$12 sps:$4 sm:$0xff]   ;;  %v1081_v43 = vmul.f32 0.2, %v1065_v37  ;;  %v1084_v15 = vmul.f32 0.2, %v1068_v38 }
 0x2d6   : > { %2432 = vmatprep.subr.bf16.mxu0 %v22628_v45  ;;  %21245 = vmatprep.subr.bf16.mxu1 %v22629_v48  ;;  %v22678_v45 = vld [vmem:[%s31090_s3 + $0x2ec] ss:$12 sps:$4 sm:$0xff]   ;;  %v22679_v48 = vld [vmem:[%s31090_s3 + $0x470] ss:$12 sps:$4 sm:$0xff]   ;;  %vm1076_vm9 = vcmp.gt.f32.partialorder %v1068_v38, 0.0 }
 0x2d9   : > { %2433 = vmatpush1.bf16.msra.mxu0 %v22626_v50  ;;  %21246 = vmatpush3.bf16.msra.mxu1 %v22630_v24  ;;  %v22676_v50 = vld [vmem:[%s31090_s3 + $0x2e8] ss:$12 sps:$4 sm:$0xff]   ;;  %v22680_v24 = vld [vmem:[%s31090_s3 + $0x3b0] ss:$12 sps:$4 sm:$0xff]  }
 0x2da   : > { %2434 = vmatprep.subr.bf16.mxu0 %v22633_v21  ;;  %21247 = vmatprep.subr.bf16.mxu1 %v22634_v44  ;;  %v22684_v21 = vld [vmem:[%s31090_s3 + $0x548] ss:$12 sps:$4 sm:$0xff]   ;;  %v1089_v44 = vsel %vm1073_vm8, %v1065_v37, %v1081_v43  ;;  %v22736_v43 = vld [vmem:[%s31090_s3 + $0x630] ss:$12 sps:$4 sm:$0xff]  }
 0x2db   : > { %v25510_v53 = vpack.c.bf16 %v1089_v44, %v1089_v44  ;;  %v22729_v37 = vld [vmem:[%s31090_s3 + $0x3dc] ss:$12 sps:$4 sm:$0xff]   ;;  %v22748_v44 = vld [vmem:[%s31090_s3 + $0x660] ss:$12 sps:$4 sm:$0xff]  }
 0x2dd   : > { %2435 = vmatpush1.bf16.msra.mxu0 %v22631_v34  ;;  %21248 = vmatpush3.bf16.msra.mxu1 %v22635_v47  ;;  %v22685_v34 = vld [vmem:[%s31090_s3 + $0x488] ss:$12 sps:$4 sm:$0xff]   ;;  %v1092_v47 = vsel %vm1076_vm9, %v1068_v38, %v1084_v15 }
 0x2de   : > { %2436 = vmatprep.subr.bf16.mxu0 %v22638_v54  ;;  %21249 = vmatprep.subr.bf16.mxu1 %v22639_v55  ;;  %v22688_v54 = vld [vmem:[%s31090_s3 + $0x31c] ss:$12 sps:$4 sm:$0xff]   ;;  %v22689_v55 = vld [vmem:[%s31090_s3 + $0x560] ss:$12 sps:$4 sm:$0xff]   ;;  %v25518_v56 = vpack.c.bf16 %v1092_v47, %v1092_v47 }
 0x2df   : > { %v22735_v38 = vld [vmem:[%s31090_s3 + $0x3f4] ss:$12 sps:$4 sm:$0xff]   ;;  %v22756_v47 = vld [vmem:[%s31090_s3 + $0x67c] ss:$12 sps:$4 sm:$0xff]  }
 0x2e0   : > { %v22739_v15 = vld [vmem:[%s31090_s3 + $0x408] ss:$12 sps:$4 sm:$0xff]  }
 0x2e1   : > { %2437 = vmatpush1.bf16.msra.mxu0 %v22636_v57  ;;  %21250 = vmatpush3.bf16.msra.mxu1 %v22640_v58  ;;  %v22686_v57 = vld [vmem:[%s31090_s3 + $0x318] ss:$12 sps:$4 sm:$0xff]   ;;  %v22690_v58 = vld [vmem:[%s31090_s3 + $0x4a0] ss:$12 sps:$4 sm:$0xff]  }
 0x2e2   : > { %2438 = vmatprep.subr.bf16.mxu0 %v22643_v60  ;;  %21257 = vmatprep.subr.bf16.mxu1 %v22644_v61  ;;  %v22694_v60 = vld [vmem:[%s31090_s3 + $0x578] ss:$12 sps:$4 sm:$0xff]   ;;  %v22691_v61 = vld [vmem:[%s31090_s3 + $0x330] ss:$12 sps:$4 sm:$0xff]  }
 0x2e4   : > { %2618 = vmatmul.mubr.bf16.vlgmr.msra.gmra.mrb[12].mxu1 %v25398_v4 }
 0x2e5   : > { %2439 = vmatpush1.bf16.msra.mxu0 %v22641_v1  ;;  %21258 = vmatpush3.bf16.msra.mxu1 %v22645_v2  ;;  %v22698_v1 = vld [vmem:[%s31090_s3 + $0x34c] ss:$12 sps:$4 sm:$0xff]   ;;  %v22699_v2 = vld [vmem:[%s31090_s3 + $0x590] ss:$12 sps:$4 sm:$0xff]  }
 0x2e6   : > { %2657 = vmatprep.mubr.bf16.mxu1 %v25409_v9  ;;  %2440 = vmatprep.subr.bf16.mxu0 %v22648_v5  ;;  %v22700_v5 = vld [vmem:[%s31090_s3 + $0x4d0] ss:$12 sps:$4 sm:$0xff]  }
 0x2e7   : > { %21259 = vmatprep.subr.bf16.mxu1 %v22649_v8  ;;  %v22704_v8 = vld [vmem:[%s31090_s3 + $0x5a8] ss:$12 sps:$4 sm:$0xff]  }
 0x2e9   : > { %2441 = vmatpush1.bf16.msra.mxu0 %v22646_v6  ;;  %21260 = vmatpush3.bf16.msra.mxu1 %v22650_v10  ;;  %v22703_v6 = vld [vmem:[%s31090_s3 + $0x364] ss:$12 sps:$4 sm:$0xff]   ;;  %v22701_v10 = vld [vmem:[%s31090_s3 + $0x360] ss:$12 sps:$4 sm:$0xff]  }
 0x2ea   : > { %2442 = vmatprep.subr.bf16.mxu0 %v22653_v11  ;;  %21261 = vmatprep.subr.bf16.mxu1 %v22654_v12  ;;  %v22705_v11 = vld [vmem:[%s31090_s3 + $0x4e8] ss:$12 sps:$4 sm:$0xff]  }
 0x2eb   : > { %v22708_v12 = vld [vmem:[%s31090_s3 + $0x37c] ss:$12 sps:$4 sm:$0xff]  }
 0x2ed   : > { %2443 = vmatpush1.bf16.msra.mxu0 %v22651_v14  ;;  %21262 = vmatpush3.bf16.msra.mxu1 %v22655_v16  ;;  %v1052_v14 = vmul.f32 %v25264_v63, %v1037_v49  ;;  %v22706_v16 = vld [vmem:[%s31090_s3 + $0x378] ss:$12 sps:$4 sm:$0xff]  }
 0x2ee   : > { %2444 = vmatprep.subr.bf16.mxu0 %v22658_v17  ;;  %21263 = vmatprep.subr.bf16.mxu1 %v22659_v20  ;;  %v22709_v17 = vld [vmem:[%s31090_s3 + $0x5c0] ss:$12 sps:$4 sm:$0xff]   ;;  %v22714_v49 = vld [vmem:[%s31090_s3 + $0x5d8] ss:$12 sps:$4 sm:$0xff]  }
 0x2ef   : > { %v22710_v20 = vld [vmem:[%s31090_s3 + $0x500] ss:$12 sps:$4 sm:$0xff]   ;;  %v1067_v40 = vadd.f32 %v25266_v0, %v1052_v14  ;;  %v22715_v63 = vld [vmem:[%s31090_s3 + $0x518] ss:$12 sps:$4 sm:$0xff]  }
 0x2f0   : > { %v22718_v0 = vld [vmem:[%s31090_s3 + $0x3ac] ss:$12 sps:$4 sm:$0xff]   ;;  %v22783_v14 = vld [vmem:[%s31090_s3 + $0x4b4] ss:$12 sps:$4 sm:$0xff]  }
 0x2f1   : > { %2445 = vmatpush1.bf16.msra.mxu0 %v22656_v22  ;;  %21264 = vmatpush3.bf16.msra.mxu1 %v22660_v25  ;;  %v22713_v22 = vld [vmem:[%s31090_s3 + $0x394] ss:$12 sps:$4 sm:$0xff]   ;;  %v22719_v25 = vld [vmem:[%s31090_s3 + $0x5f0] ss:$12 sps:$4 sm:$0xff]   ;;  %vm1075_vm10 = vcmp.gt.f32.partialorder %v1067_v40, 0.0 }
 0x2f2   : > { %2446 = vmatprep.subr.bf16.mxu0 %v22663_v26  ;;  %21265 = vmatprep.subr.bf16.mxu1 %v22664_v27  ;;  %v22716_v26 = vld [vmem:[%s31090_s3 + $0x3a8] ss:$12 sps:$4 sm:$0xff]   ;;  %v1083_v27 = vmul.f32 0.2, %v1067_v40 }
 0x2f5   : > { %2447 = vmatpush1.bf16.msra.mxu0 %v22661_v28  ;;  %21266 = vmatpush3.bf16.msra.mxu1 %v22665_v29  ;;  %v22720_v28 = vld [vmem:[%s31090_s3 + $0x530] ss:$12 sps:$4 sm:$0xff]  }
 0x2f6   : > { %2448 = vmatprep.subr.bf16.mxu0 %v22668_v32  ;;  %21267 = vmatprep.subr.bf16.mxu1 %v22669_v33  ;;  %v22723_v29 = vld [vmem:[%s31090_s3 + $0x3c4] ss:$12 sps:$4 sm:$0xff]   ;;  %v1091_v33 = vsel %vm1075_vm10, %v1067_v40, %v1083_v27  ;;  %v22792_v40 = vld [vmem:[%s31090_s3 + $0x70c] ss:$12 sps:$4 sm:$0xff]   ;;  %v22801_v27 = vld [vmem:[%s31090_s3 + $0x4fc] ss:$12 sps:$4 sm:$0xff]  }
 0x2f7   : > { %v22726_v32 = vld [vmem:[%s31090_s3 + $0x604] ss:$12 sps:$4 sm:$0xff]  }
 0x2f9   : > { %2449 = vmatpush1.bf16.msra.mxu0 %v22666_v30  ;;  %21268 = vmatpush3.bf16.msra.mxu1 %v22670_v46  ;;  %v25619_v30 = vpack.c.bf16 %v1091_v33, %v1091_v33  ;;  %v22727_v46 = vld [vmem:[%s31090_s3 + $0x3d8] ss:$12 sps:$4 sm:$0xff]   ;;  %v22810_v33 = vld [vmem:[%s31090_s3 + $0x754] ss:$12 sps:$4 sm:$0xff]  }
 0x2fa   : > { %2450 = vmatprep.subr.bf16.mxu0 %v22673_v42  ;;  %21269 = vmatprep.subr.bf16.mxu1 %v22674_v13  ;;  %v22732_v42 = vld [vmem:[%s31090_s3 + $0x61c] ss:$12 sps:$4 sm:$0xff]   ;;  %v22730_v13 = vld [vmem:[%s31090_s3 + $0x618] ss:$12 sps:$4 sm:$0xff]  }
 0x2fd   : > { %2451 = vmatpush1.bf16.msra.mxu0 %v22671_v39  ;;  %21270 = vmatpush3.bf16.msra.mxu1 %v22675_v41  ;;  %v22738_v39 = vld [vmem:[%s31090_s3 + $0x634] ss:$12 sps:$4 sm:$0xff]   ;;  %v22733_v41 = vld [vmem:[%s31090_s3 + $0x3f0] ss:$12 sps:$4 sm:$0xff]  }
 0x2fe   : > { %2452 = vmatprep.subr.bf16.mxu0 %v22678_v45  ;;  %21271 = vmatprep.subr.bf16.mxu1 %v22679_v48  ;;  %v22741_v45 = vld [vmem:[%s31090_s3 + $0x40c] ss:$12 sps:$4 sm:$0xff]  }
 0x2ff   : > { %v22744_v48 = vld [vmem:[%s31090_s3 + $0x64c] ss:$12 sps:$4 sm:$0xff]  }
 0x301   : > { %2453 = vmatpush1.bf16.msra.mxu0 %v22676_v50  ;;  %21272 = vmatpush3.bf16.msra.mxu1 %v22680_v24  ;;  %v22742_v50 = vld [vmem:[%s31090_s3 + $0x648] ss:$12 sps:$4 sm:$0xff]   ;;  %v22747_v24 = vld [vmem:[%s31090_s3 + $0x424] ss:$12 sps:$4 sm:$0xff]  }
 0x302   : > { %2463 = vmatprep.subr.bf16.mxu0 %v22683_v51  ;;  %21279 = vmatprep.subr.bf16.mxu1 %v22684_v21  ;;  %v22750_v51 = vld [vmem:[%s31090_s3 + $0x664] ss:$12 sps:$4 sm:$0xff]   ;;  %v22745_v21 = vld [vmem:[%s31090_s3 + $0x420] ss:$12 sps:$4 sm:$0xff]  }
 0x304   : > { %2455 = vmatmul.mubr.bf16.vlgmr.msra.gmra.mrb[8].mxu0 %v25398_v4  ;;  %2658 = vmatmul.mubr.bf16.vlgmr.msra.gmra.mrb[16].mxu1 %v25510_v53 }
 0x305   : > { %2464 = vmatpush1.bf16.msra.mxu0 %v22681_v52  ;;  %2495 = vmatprep.mubr.bf16.mxu0 %v25409_v9  ;;  %v22753_v52 = vld [vmem:[%s31090_s3 + $0x43c] ss:$12 sps:$4 sm:$0xff]  }
 0x306   : > { %21280 = vmatpush3.bf16.msra.mxu1 %v22685_v34  ;;  %2697 = vmatprep.mubr.bf16.mxu1 %v25518_v56  ;;  %v22751_v34 = vld [vmem:[%s31090_s3 + $0x438] ss:$12 sps:$4 sm:$0xff]  }
 0x307   : > { %2465 = vmatprep.subr.bf16.mxu0 %v22688_v54  ;;  %21281 = vmatprep.subr.bf16.mxu1 %v22689_v55  ;;  %v22754_v54 = vld [vmem:[%s31090_s3 + $0x678] ss:$12 sps:$4 sm:$0xff]   ;;  %v22759_v55 = vld [vmem:[%s31090_s3 + $0x454] ss:$12 sps:$4 sm:$0xff]  }
 0x309   : > { %2466 = vmatpush1.bf16.msra.mxu0 %v22686_v57  ;;  %v22762_v57 = vld [vmem:[%s31090_s3 + $0x694] ss:$12 sps:$4 sm:$0xff]  }
 0x30a   : > { %21282 = vmatpush3.bf16.msra.mxu1 %v22690_v58  ;;  %2467 = vmatprep.subr.bf16.mxu0 %v22693_v59  ;;  %v22757_v58 = vld [vmem:[%s31090_s3 + $0x450] ss:$12 sps:$4 sm:$0xff]  }
 0x30b   : > { %21283 = vmatprep.subr.bf16.mxu1 %v22694_v60  ;;  %v22760_v59 = vld [vmem:[%s31090_s3 + $0x690] ss:$12 sps:$4 sm:$0xff]   ;;  %v22765_v60 = vld [vmem:[%s31090_s3 + $0x46c] ss:$12 sps:$4 sm:$0xff]  }
 0x30d   : > { %2468 = vmatpush1.bf16.msra.mxu0 %v22691_v61  ;;  %v22763_v61 = vld [vmem:[%s31090_s3 + $0x468] ss:$12 sps:$4 sm:$0xff]  }
 0x30e   : > { %21284 = vmatpush3.bf16.msra.mxu1 %v22695_v62  ;;  %2469 = vmatprep.subr.bf16.mxu0 %v22698_v1  ;;  %v22768_v62 = vld [vmem:[%s31090_s3 + $0x6ac] ss:$12 sps:$4 sm:$0xff]   ;;  %v22766_v1 = vld [vmem:[%s31090_s3 + $0x6a8] ss:$12 sps:$4 sm:$0xff]  }
 0x30f   : > { %21285 = vmatprep.subr.bf16.mxu1 %v22699_v2  ;;  %v22771_v2 = vld [vmem:[%s31090_s3 + $0x484] ss:$12 sps:$4 sm:$0xff]  }
 0x311   : > { %2470 = vmatpush1.bf16.msra.mxu0 %v22696_v3  ;;  %v22774_v3 = vld [vmem:[%s31090_s3 + $0x6c4] ss:$12 sps:$4 sm:$0xff]  }
 0x312   : > { %21286 = vmatpush3.bf16.msra.mxu1 %v22700_v5  ;;  %2471 = vmatprep.subr.bf16.mxu0 %v22703_v6  ;;  %v22769_v5 = vld [vmem:[%s31090_s3 + $0x480] ss:$12 sps:$4 sm:$0xff]  }
 0x313   : > { %21287 = vmatprep.subr.bf16.mxu1 %v22704_v8  ;;  %v22772_v6 = vld [vmem:[%s31090_s3 + $0x6c0] ss:$12 sps:$4 sm:$0xff]   ;;  %v22777_v8 = vld [vmem:[%s31090_s3 + $0x49c] ss:$12 sps:$4 sm:$0xff]  }
 0x315   : > { %2472 = vmatpush1.bf16.msra.mxu0 %v22701_v10  ;;  %v22780_v10 = vld [vmem:[%s31090_s3 + $0x6dc] ss:$12 sps:$4 sm:$0xff]  }
 0x316   : > { %21288 = vmatpush3.bf16.msra.mxu1 %v22705_v11  ;;  %2473 = vmatprep.subr.bf16.mxu0 %v22708_v12  ;;  %v22775_v11 = vld [vmem:[%s31090_s3 + $0x498] ss:$12 sps:$4 sm:$0xff]  }
 0x317   : > { %21289 = vmatprep.subr.bf16.mxu1 %v22709_v17  ;;  %v22778_v12 = vld [vmem:[%s31090_s3 + $0x6d8] ss:$12 sps:$4 sm:$0xff]   ;;  %v22781_v17 = vld [vmem:[%s31090_s3 + $0x4b0] ss:$12 sps:$4 sm:$0xff]  }
 0x319   : > { %2474 = vmatpush1.bf16.msra.mxu0 %v22706_v16  ;;  %v22786_v16 = vld [vmem:[%s31090_s3 + $0x6f4] ss:$12 sps:$4 sm:$0xff]  }
 0x31a   : > { %21290 = vmatpush3.bf16.msra.mxu1 %v22710_v20  ;;  %2475 = vmatprep.subr.bf16.mxu0 %v22713_v22  ;;  %v22784_v20 = vld [vmem:[%s31090_s3 + $0x6f0] ss:$12 sps:$4 sm:$0xff]   ;;  %v22789_v22 = vld [vmem:[%s31090_s3 + $0x4cc] ss:$12 sps:$4 sm:$0xff]  }
 0x31b   : > { %21291 = vmatprep.subr.bf16.mxu1 %v22714_v49  ;;  %v22790_v49 = vld [vmem:[%s31090_s3 + $0x708] ss:$12 sps:$4 sm:$0xff]  }
 0x31d   : > { %2476 = vmatpush1.bf16.msra.mxu0 %v22711_v36  ;;  %v22787_v36 = vld [vmem:[%s31090_s3 + $0x4c8] ss:$12 sps:$4 sm:$0xff]  }
 0x31e   : > { %21292 = vmatpush3.bf16.msra.mxu1 %v22715_v63  ;;  %2477 = vmatprep.subr.bf16.mxu0 %v22718_v0  ;;  %v22795_v63 = vld [vmem:[%s31090_s3 + $0x4e4] ss:$12 sps:$4 sm:$0xff]  }
 0x31f   : > { %21293 = vmatprep.subr.bf16.mxu1 %v22719_v25  ;;  %v22798_v0 = vld [vmem:[%s31090_s3 + $0x724] ss:$12 sps:$4 sm:$0xff]   ;;  %v22793_v25 = vld [vmem:[%s31090_s3 + $0x4e0] ss:$12 sps:$4 sm:$0xff]  }
 0x321   : > { %2478 = vmatpush1.bf16.msra.mxu0 %v22716_v26  ;;  %v22796_v26 = vld [vmem:[%s31090_s3 + $0x720] ss:$12 sps:$4 sm:$0xff]  }
 0x322   : > { %21294 = vmatpush3.bf16.msra.mxu1 %v22720_v28  ;;  %2479 = vmatprep.subr.bf16.mxu0 %v22723_v29  ;;  %v22799_v28 = vld [vmem:[%s31090_s3 + $0x4f8] ss:$12 sps:$4 sm:$0xff]   ;;  %v22804_v29 = vld [vmem:[%s31090_s3 + $0x73c] ss:$12 sps:$4 sm:$0xff]  }
 0x323   : > { %3990 = vmatprep.subr.bf16.mxu1 %v22726_v32  ;;  %v22807_v32 = vld [vmem:[%s31090_s3 + $0x514] ss:$12 sps:$4 sm:$0xff]  }
 0x325   : > { %2698 = vmatmul.mubr.bf16.vlgmr.msra.gmra.mrb[20].mxu1 %v25619_v30  ;;  %2480 = vmatpush1.bf16.msra.mxu0 %v22721_v31  ;;  %v22802_v31 = vld [vmem:[%s31090_s3 + $0x738] ss:$12 sps:$4 sm:$0xff]  }
 0x326   : > { %3991 = vmatpush1.bf16.msra.mxu1 %v22724_v35  ;;  %4022 = vmatprep.mubr.bf16.mxu1 %v25282_v19  ;;  %v22805_v35 = vld [vmem:[%s31090_s3 + $0x510] ss:$12 sps:$4 sm:$0xff]  }
 0x327   : > { %2481 = vmatprep.subr.bf16.mxu0 %v22729_v37  ;;  %3992 = vmatprep.subr.bf16.mxu1 %v22732_v42  ;;  %v22813_v37 = vld [vmem:[%s31090_s3 + $0x52c] ss:$12 sps:$4 sm:$0xff]  }
 0x328   : > { %v22816_v42 = vld [vmem:[%s31090_s3 + $0x76c] ss:$12 sps:$4 sm:$0xff]  }
 0x329   : > { %2482 = vmatpush1.bf16.msra.mxu0 %v22727_v46  ;;  %v22808_v46 = vld [vmem:[%s31090_s3 + $0x750] ss:$12 sps:$4 sm:$0xff]  }
 0x32a   : > { %3993 = vmatpush1.bf16.msra.mxu1 %v22730_v13  ;;  %2483 = vmatprep.subr.bf16.mxu0 %v22735_v38  ;;  %v22811_v13 = vld [vmem:[%s31090_s3 + $0x528] ss:$12 sps:$4 sm:$0xff]  }
 0x32b   : > { %3994 = vmatprep.subr.bf16.mxu1 %v22738_v39  ;;  %v22814_v38 = vld [vmem:[%s31090_s3 + $0x768] ss:$12 sps:$4 sm:$0xff]   ;;  %v22819_v39 = vld [vmem:[%s31090_s3 + $0x544] ss:$12 sps:$4 sm:$0xff]  }
 0x32d   : > { %2484 = vmatpush1.bf16.msra.mxu0 %v22733_v41  ;;  %v22817_v41 = vld [vmem:[%s31090_s3 + $0x540] ss:$12 sps:$4 sm:$0xff]  }
 0x32e   : > { %3995 = vmatpush1.bf16.msra.mxu1 %v22736_v43  ;;  %2485 = vmatprep.subr.bf16.mxu0 %v22741_v45  ;;  %v22822_v43 = vld [vmem:[%s31090_s3 + $0x784] ss:$12 sps:$4 sm:$0xff]   ;;  %v22820_v45 = vld [vmem:[%s31090_s3 + $0x780] ss:$12 sps:$4 sm:$0xff]  }
 0x32f   : > { %3996 = vmatprep.subr.bf16.mxu1 %v22744_v48  ;;  %v22825_v48 = vld [vmem:[%s31090_s3 + $0x55c] ss:$12 sps:$4 sm:$0xff]  }
 0x331   : > { %2486 = vmatpush1.bf16.msra.mxu0 %v22739_v15  ;;  %v22828_v15 = vld [vmem:[%s31090_s3 + $0x79c] ss:$12 sps:$4 sm:$0xff]  }
 0x332   : > { %3997 = vmatpush1.bf16.msra.mxu1 %v22742_v50  ;;  %2487 = vmatprep.subr.bf16.mxu0 %v22747_v24  ;;  %v22823_v50 = vld [vmem:[%s31090_s3 + $0x558] ss:$12 sps:$4 sm:$0xff]  }
 0x333   : > { %3998 = vmatprep.subr.bf16.mxu1 %v22750_v51  ;;  %v22826_v24 = vld [vmem:[%s31090_s3 + $0x798] ss:$12 sps:$4 sm:$0xff]   ;;  %v22831_v51 = vld [vmem:[%s31090_s3 + $0x574] ss:$12 sps:$4 sm:$0xff]  }
 0x335   : > { %2488 = vmatpush1.bf16.msra.mxu0 %v22745_v21  ;;  %v22834_v21 = vld [vmem:[%s31090_s3 + $0x7b4] ss:$12 sps:$4 sm:$0xff]  }
 0x336   : > { %3999 = vmatpush1.bf16.msra.mxu1 %v22748_v44  ;;  %2489 = vmatprep.subr.bf16.mxu0 %v22753_v52  ;;  %v22829_v44 = vld [vmem:[%s31090_s3 + $0x570] ss:$12 sps:$4 sm:$0xff]  }
 0x337   : > { %4000 = vmatprep.subr.bf16.mxu1 %v22756_v47  ;;  %v22832_v52 = vld [vmem:[%s31090_s3 + $0x7b0] ss:$12 sps:$4 sm:$0xff]   ;;  %v22840_v47 = vld [vmem:[%s31090_s3 + $0x7cc] ss:$12 sps:$4 sm:$0xff]  }
 0x339   : > { %2490 = vmatpush1.bf16.msra.mxu0 %v22751_v34  ;;  %v22837_v34 = vld [vmem:[%s31090_s3 + $0x58c] ss:$12 sps:$4 sm:$0xff]  }
 0x33a   : > { %4001 = vmatpush1.bf16.msra.mxu1 %v22754_v54  ;;  %2491 = vmatprep.subr.bf16.mxu0 %v22759_v55  ;;  %v22835_v54 = vld [vmem:[%s31090_s3 + $0x588] ss:$12 sps:$4 sm:$0xff]  }
 0x33b   : > { %4002 = vmatprep.subr.bf16.mxu1 %v22762_v57  ;;  %v22838_v55 = vld [vmem:[%s31090_s3 + $0x7c8] ss:$12 sps:$4 sm:$0xff]   ;;  %v22843_v57 = vld [vmem:[%s31090_s3 + $0x5a4] ss:$12 sps:$4 sm:$0xff]  }
 0x33d   : > { %2492 = vmatpush1.bf16.msra.mxu0 %v22757_v58  ;;  %v22846_v58 = vld [vmem:[%s31090_s3 + $0x7e4] ss:$12 sps:$4 sm:$0xff]  }
 0x33e   : > { %4003 = vmatpush1.bf16.msra.mxu1 %v22760_v59  ;;  %2493 = vmatprep.subr.bf16.mxu0 %v22765_v60  ;;  %v22841_v59 = vld [vmem:[%s31090_s3 + $0x5a0] ss:$12 sps:$4 sm:$0xff]  }
 0x33f   : > { %4004 = vmatprep.subr.bf16.mxu1 %v22768_v62  ;;  %v22844_v60 = vld [vmem:[%s31090_s3 + $0x7e0] ss:$12 sps:$4 sm:$0xff]   ;;  %v22847_v62 = vld [vmem:[%s31090_s3 + $0x5b8] ss:$12 sps:$4 sm:$0xff]  }
 0x341   : > { %2494 = vmatpush1.bf16.msra.mxu0 %v22763_v61  ;;  %v22849_v61 = vld [vmem:[%s31090_s3 + $0x5bc] ss:$12 sps:$4 sm:$0xff]  }
 0x342   : > { %4005 = vmatpush1.bf16.msra.mxu1 %v22766_v1  ;;  %2504 = vmatprep.subr.bf16.mxu0 %v22771_v2  ;;  %v22852_v1 = vld [vmem:[%s31090_s3 + $0x7fc] ss:$12 sps:$4 sm:$0xff]   ;;  %v22850_v2 = vld [vmem:[%s31090_s3 + $0x7f8] ss:$12 sps:$4 sm:$0xff]  }
 0x343   : > { %4006 = vmatprep.subr.bf16.mxu1 %v22774_v3  ;;  %v22855_v3 = vld [vmem:[%s31090_s3 + $0x5d4] ss:$12 sps:$4 sm:$0xff]  }
 0x344   : > { %2496 = vmatmul.mubr.bf16.vlgmr.msra.gmra.mrb[8].mxu0 %v25510_v53 }
 0x345   : > { %2505 = vmatpush1.bf16.msra.mxu0 %v22769_v5  ;;  %2536 = vmatprep.mubr.bf16.mxu0 %v25518_v56  ;;  %v22858_v5 = vld [vmem:[%s31090_s3 + $0x814] ss:$12 sps:$4 sm:$0xff]  }
 0x346   : > { %4007 = vmatpush1.bf16.msra.mxu1 %v22772_v6  ;;  %2506 = vmatprep.subr.bf16.mxu0 %v22777_v8  ;;  %v22853_v6 = vld [vmem:[%s31090_s3 + $0x5d0] ss:$12 sps:$4 sm:$0xff]  }
 0x347   : > { %4008 = vmatprep.subr.bf16.mxu1 %v22780_v10  ;;  %v22856_v8 = vld [vmem:[%s31090_s3 + $0x810] ss:$12 sps:$4 sm:$0xff]   ;;  %v22861_v10 = vld [vmem:[%s31090_s3 + $0x5ec] ss:$12 sps:$4 sm:$0xff]  }
 0x349   : > { %2507 = vmatpush1.bf16.msra.mxu0 %v22775_v11  ;;  %v22864_v11 = vld [vmem:[%s31090_s3 + $0x82c] ss:$12 sps:$4 sm:$0xff]  }
 0x34a   : > { %4009 = vmatpush1.bf16.msra.mxu1 %v22778_v12  ;;  %2508 = vmatprep.subr.bf16.mxu0 %v22783_v14  ;;  %v22859_v12 = vld [vmem:[%s31090_s3 + $0x5e8] ss:$12 sps:$4 sm:$0xff]  }
 0x34b   : > { %4010 = vmatprep.subr.bf16.mxu1 %v22786_v16  ;;  %v22862_v14 = vld [vmem:[%s31090_s3 + $0x828] ss:$12 sps:$4 sm:$0xff]  }
 0x34c   : > { %v22868_v16 = vld [vmem:[%s31090_s3 + $0x6c8] ss:$12 sps:$4 sm:$0xff]  }
 0x34d   : > { %2509 = vmatpush1.bf16.msra.mxu0 %v22781_v17  ;;  %v22867_v17 = vld [vmem:[%s31090_s3 + $0x844] ss:$12 sps:$4 sm:$0xff]  }
 0x34e   : > { %4011 = vmatpush1.bf16.msra.mxu1 %v22784_v20  ;;  %2510 = vmatprep.subr.bf16.mxu0 %v22789_v22  ;;  %v22865_v20 = vld [vmem:[%s31090_s3 + $0x840] ss:$12 sps:$4 sm:$0xff]   ;;  %v22869_v22 = vld [vmem:[%s31090_s3 + $0x608] ss:$12 sps:$4 sm:$0xff]  }
 0x34f   : > { %4012 = vmatprep.subr.bf16.mxu1 %v22792_v40  ;;  %v22872_v40 = vld [vmem:[%s31090_s3 + $0x85c] ss:$12 sps:$4 sm:$0xff]  }
 0x351   : > { %2511 = vmatpush1.bf16.msra.mxu0 %v22787_v36  ;;  %v22873_v36 = vld [vmem:[%s31090_s3 + $0x6e0] ss:$12 sps:$4 sm:$0xff]  }
 0x352   : > { %4013 = vmatpush1.bf16.msra.mxu1 %v22790_v49  ;;  %2512 = vmatprep.subr.bf16.mxu0 %v22795_v63  ;;  %v22874_v49 = vld [vmem:[%s31090_s3 + $0x620] ss:$12 sps:$4 sm:$0xff]   ;;  %v22870_v63 = vld [vmem:[%s31090_s3 + $0x858] ss:$12 sps:$4 sm:$0xff]  }
 0x353   : > { %4014 = vmatprep.subr.bf16.mxu1 %v22798_v0  ;;  %v22878_v0 = vld [vmem:[%s31090_s3 + $0x6f8] ss:$12 sps:$4 sm:$0xff]  }
 0x355   : > { %2513 = vmatpush1.bf16.msra.mxu0 %v22793_v25  ;;  %v22877_v25 = vld [vmem:[%s31090_s3 + $0x874] ss:$12 sps:$4 sm:$0xff]  }
 0x356   : > { %4015 = vmatpush1.bf16.msra.mxu1 %v22796_v26  ;;  %2514 = vmatprep.subr.bf16.mxu0 %v22801_v27  ;;  %v22879_v26 = vld [vmem:[%s31090_s3 + $0x638] ss:$12 sps:$4 sm:$0xff]   ;;  %v22875_v27 = vld [vmem:[%s31090_s3 + $0x870] ss:$12 sps:$4 sm:$0xff]  }
 0x357   : > { %4016 = vmatprep.subr.bf16.mxu1 %v22804_v29  ;;  %v22882_v29 = vld [vmem:[%s31090_s3 + $0x88c] ss:$12 sps:$4 sm:$0xff]  }
 0x359   : > { %2515 = vmatpush1.bf16.msra.mxu0 %v22799_v28  ;;  %v22883_v28 = vld [vmem:[%s31090_s3 + $0x710] ss:$12 sps:$4 sm:$0xff]  }
 0x35a   : > { %4017 = vmatpush1.bf16.msra.mxu1 %v22802_v31  ;;  %2516 = vmatprep.subr.bf16.mxu0 %v22807_v32  ;;  %v22884_v31 = vld [vmem:[%s31090_s3 + $0x650] ss:$12 sps:$4 sm:$0xff]   ;;  %v22880_v32 = vld [vmem:[%s31090_s3 + $0x888] ss:$12 sps:$4 sm:$0xff]  }
 0x35b   : > { %4018 = vmatprep.subr.bf16.mxu1 %v22810_v33  ;;  %v22888_v33 = vld [vmem:[%s31090_s3 + $0x728] ss:$12 sps:$4 sm:$0xff]  }
 0x35d   : > { %2517 = vmatpush1.bf16.msra.mxu0 %v22805_v35  ;;  %v22887_v35 = vld [vmem:[%s31090_s3 + $0x8a4] ss:$12 sps:$4 sm:$0xff]  }
 0x35e   : > { %4019 = vmatpush1.bf16.msra.mxu1 %v22808_v46  ;;  %2518 = vmatprep.subr.bf16.mxu0 %v22813_v37  ;;  %v22889_v46 = vld [vmem:[%s31090_s3 + $0x668] ss:$12 sps:$4 sm:$0xff]   ;;  %v22885_v37 = vld [vmem:[%s31090_s3 + $0x8a0] ss:$12 sps:$4 sm:$0xff]  }
 0x35f   : > { %4020 = vmatprep.subr.bf16.mxu1 %v22816_v42  ;;  %v22893_v42 = vld [vmem:[%s31090_s3 + $0x740] ss:$12 sps:$4 sm:$0xff]  }
 0x361   : > { %2519 = vmatpush1.bf16.msra.mxu0 %v22811_v13  ;;  %v22892_v13 = vld [vmem:[%s31090_s3 + $0x8bc] ss:$12 sps:$4 sm:$0xff]  }
 0x362   : > { %4021 = vmatpush1.bf16.msra.mxu1 %v22814_v38  ;;  %2520 = vmatprep.subr.bf16.mxu0 %v22819_v39  ;;  %v22894_v38 = vld [vmem:[%s31090_s3 + $0x680] ss:$12 sps:$4 sm:$0xff]   ;;  %v22890_v39 = vld [vmem:[%s31090_s3 + $0x8b8] ss:$12 sps:$4 sm:$0xff]  }
 0x363   : > { %4031 = vmatprep.subr.bf16.mxu1 %v22822_v43 }
 0x365   : > { %4023 = vmatmul.mubr.bf16.vlgmr.msra.gmra.mrb[24].mxu1 %v25280_v18  ;;  %2521 = vmatpush1.bf16.msra.mxu0 %v22817_v41  ;;  %v22898_v41 = vld [vmem:[%s31090_s3 + $0x758] ss:$12 sps:$4 sm:$0xff]  }
 0x366   : > { %4032 = vmatpush1.bf16.msra.mxu1 %v22820_v45  ;;  %4063 = vmatprep.mubr.bf16.mxu1 %v25292_v23  ;;  %v22897_v45 = vld [vmem:[%s31090_s3 + $0x8d4] ss:$12 sps:$4 sm:$0xff]  }
 0x367   : > { %2522 = vmatprep.subr.bf16.mxu0 %v22825_v48  ;;  %4033 = vmatprep.subr.bf16.mxu1 %v22828_v15  ;;  %v22899_v48 = vld [vmem:[%s31090_s3 + $0x698] ss:$12 sps:$4 sm:$0xff]  }
 0x369   : > { %2523 = vmatpush1.bf16.msra.mxu0 %v22823_v50 }
 0x36a   : > { %4034 = vmatpush1.bf16.msra.mxu1 %v22826_v24  ;;  %2524 = vmatprep.subr.bf16.mxu0 %v22831_v51 }
 0x36b   : > { %4035 = vmatprep.subr.bf16.mxu1 %v22834_v21  ;;  %v22895_v21 = vld [vmem:[%s31090_s3 + $0x8d0] ss:$12 sps:$4 sm:$0xff]  }
 0x36d   : > { %2525 = vmatpush1.bf16.msra.mxu0 %v22829_v44  ;;  %v22903_v44 = vld [vmem:[%s31090_s3 + $0x770] ss:$12 sps:$4 sm:$0xff]  }
 0x36e   : > { %4036 = vmatpush1.bf16.msra.mxu1 %v22832_v52  ;;  %2526 = vmatprep.subr.bf16.mxu0 %v22837_v34  ;;  %v22902_v52 = vld [vmem:[%s31090_s3 + $0x8ec] ss:$12 sps:$4 sm:$0xff]   ;;  %v22904_v34 = vld [vmem:[%s31090_s3 + $0x6b0] ss:$12 sps:$4 sm:$0xff]  }
 0x36f   : > { %4037 = vmatprep.subr.bf16.mxu1 %v22840_v47  ;;  %v22900_v47 = vld [vmem:[%s31090_s3 + $0x8e8] ss:$12 sps:$4 sm:$0xff]  }
 0x371   : > { %2527 = vmatpush1.bf16.msra.mxu0 %v22835_v54  ;;  %v22908_v54 = vld [vmem:[%s31090_s3 + $0x848] ss:$12 sps:$4 sm:$0xff]  }
 0x372   : > { %4038 = vmatpush1.bf16.msra.mxu1 %v22838_v55  ;;  %2528 = vmatprep.subr.bf16.mxu0 %v22843_v57  ;;  %v22907_v55 = vld [vmem:[%s31090_s3 + $0x904] ss:$12 sps:$4 sm:$0xff]   ;;  %v22909_v57 = vld [vmem:[%s31090_s3 + $0x788] ss:$12 sps:$4 sm:$0xff]  }
 0x373   : > { %4039 = vmatprep.subr.bf16.mxu1 %v22846_v58  ;;  %v22905_v58 = vld [vmem:[%s31090_s3 + $0x900] ss:$12 sps:$4 sm:$0xff]  }
 0x375   : > { %2529 = vmatpush1.bf16.msra.mxu0 %v22841_v59  ;;  %v22912_v59 = vld [vmem:[%s31090_s3 + $0x91c] ss:$12 sps:$4 sm:$0xff]  }
 0x376   : > { %4040 = vmatpush1.bf16.msra.mxu1 %v22844_v60  ;;  %2530 = vmatprep.subr.bf16.mxu0 %v22849_v61  ;;  %v22913_v60 = vld [vmem:[%s31090_s3 + $0x860] ss:$12 sps:$4 sm:$0xff]  }
 0x377   : > { %4041 = vmatprep.subr.bf16.mxu1 %v22852_v1  ;;  %v22914_v61 = vld [vmem:[%s31090_s3 + $0x7a0] ss:$12 sps:$4 sm:$0xff]   ;;  %v22918_v1 = vld [vmem:[%s31090_s3 + $0x878] ss:$12 sps:$4 sm:$0xff]  }
 0x379   : > { %2531 = vmatpush1.bf16.msra.mxu0 %v22847_v62  ;;  %v22910_v62 = vld [vmem:[%s31090_s3 + $0x918] ss:$12 sps:$4 sm:$0xff]  }
 0x37a   : > { %4042 = vmatpush1.bf16.msra.mxu1 %v22850_v2  ;;  %2532 = vmatprep.subr.bf16.mxu0 %v22855_v3  ;;  %v22917_v2 = vld [vmem:[%s31090_s3 + $0x934] ss:$12 sps:$4 sm:$0xff]   ;;  %v22919_v3 = vld [vmem:[%s31090_s3 + $0x7b8] ss:$12 sps:$4 sm:$0xff]  }
 0x37b   : > { %4043 = vmatprep.subr.bf16.mxu1 %v22858_v5  ;;  %v22915_v5 = vld [vmem:[%s31090_s3 + $0x930] ss:$12 sps:$4 sm:$0xff]  }
 0x37d   : > { %2533 = vmatpush1.bf16.msra.mxu0 %v22853_v6  ;;  %v22922_v6 = vld [vmem:[%s31090_s3 + $0x94c] ss:$12 sps:$4 sm:$0xff]  }
 0x37e   : > { %4044 = vmatpush1.bf16.msra.mxu1 %v22856_v8  ;;  %2534 = vmatprep.subr.bf16.mxu0 %v22861_v10  ;;  %v22923_v8 = vld [vmem:[%s31090_s3 + $0x890] ss:$12 sps:$4 sm:$0xff]  }
 0x37f   : > { %4045 = vmatprep.subr.bf16.mxu1 %v22864_v11  ;;  %v22924_v10 = vld [vmem:[%s31090_s3 + $0x7d0] ss:$12 sps:$4 sm:$0xff]   ;;  %v22920_v11 = vld [vmem:[%s31090_s3 + $0x948] ss:$12 sps:$4 sm:$0xff]  }
 0x381   : > { %2535 = vmatpush1.bf16.msra.mxu0 %v22859_v12  ;;  %v22927_v12 = vld [vmem:[%s31090_s3 + $0x964] ss:$12 sps:$4 sm:$0xff]  }
 0x382   : > { %4046 = vmatpush1.bf16.msra.mxu1 %v22862_v14  ;;  %21301 = vmatprep.subr.bf16.mxu0 %v22868_v16  ;;  %v22928_v14 = vld [vmem:[%s31090_s3 + $0x8a8] ss:$12 sps:$4 sm:$0xff]  }
 0x383   : > { %4047 = vmatprep.subr.bf16.mxu1 %v22867_v17  ;;  %v22929_v16 = vld [vmem:[%s31090_s3 + $0x7e8] ss:$12 sps:$4 sm:$0xff]   ;;  %v22925_v17 = vld [vmem:[%s31090_s3 + $0x960] ss:$12 sps:$4 sm:$0xff]  }
 0x384   : > { %2537 = vmatmul.mubr.bf16.vlgmr.msra.gmra.mrb[8].mxu0 %v25619_v30 }
 0x385   : > { %21302 = vmatpush3.bf16.msra.mxu0 %v22869_v22  ;;  %4186 = vmatprep.mubr.bf16.mxu0 %v25282_v19  ;;  %v22933_v22 = vld [vmem:[%s31090_s3 + $0x8c0] ss:$12 sps:$4 sm:$0xff]  }
 0x386   : > { %4048 = vmatpush1.bf16.msra.mxu1 %v22865_v20  ;;  %21303 = vmatprep.subr.bf16.mxu0 %v22873_v36  ;;  %v22932_v20 = vld [vmem:[%s31090_s3 + $0x97c] ss:$12 sps:$4 sm:$0xff]   ;;  %v22930_v36 = vld [vmem:[%s31090_s3 + $0x978] ss:$12 sps:$4 sm:$0xff]  }
 0x387   : > { %4049 = vmatprep.subr.bf16.mxu1 %v22872_v40  ;;  %v22934_v40 = vld [vmem:[%s31090_s3 + $0x800] ss:$12 sps:$4 sm:$0xff]  }
 0x389   : > { %21304 = vmatpush3.bf16.msra.mxu0 %v22874_v49  ;;  %v22937_v49 = vld [vmem:[%s31090_s3 + $0x994] ss:$12 sps:$4 sm:$0xff]  }
 0x38a   : > { %4050 = vmatpush1.bf16.msra.mxu1 %v22870_v63  ;;  %21305 = vmatprep.subr.bf16.mxu0 %v22878_v0  ;;  %v22938_v63 = vld [vmem:[%s31090_s3 + $0x8d8] ss:$12 sps:$4 sm:$0xff]  }
 0x38b   : > { %4051 = vmatprep.subr.bf16.mxu1 %v22877_v25 }
 0x38d   : > { %21306 = vmatpush3.bf16.msra.mxu0 %v22879_v26 }
 0x38e   : > { %4052 = vmatpush1.bf16.msra.mxu1 %v22875_v27  ;;  %21307 = vmatprep.subr.bf16.mxu0 %v22883_v28  ;;  %v22939_v28 = vld [vmem:[%s31090_s3 + $0x818] ss:$12 sps:$4 sm:$0xff]  }
 0x38f   : > { %4053 = vmatprep.subr.bf16.mxu1 %v22882_v29 }
 0x391   : > { %21308 = vmatpush3.bf16.msra.mxu0 %v22884_v31  ;;  %v22935_v31 = vld [vmem:[%s31090_s3 + $0x990] ss:$12 sps:$4 sm:$0xff]  }
 0x392   : > { %4054 = vmatpush1.bf16.msra.mxu1 %v22880_v32  ;;  %21309 = vmatprep.subr.bf16.mxu0 %v22888_v33  ;;  %v22943_v32 = vld [vmem:[%s31090_s3 + $0x8f0] ss:$12 sps:$4 sm:$0xff]  }
 0x393   : > { %4055 = vmatprep.subr.bf16.mxu1 %v22887_v35  ;;  %v22942_v35 = vld [vmem:[%s31090_s3 + $0x9ac] ss:$12 sps:$4 sm:$0xff]  }
 0x395   : > { %21310 = vmatpush3.bf16.msra.mxu0 %v22889_v46  ;;  %v22944_v46 = vld [vmem:[%s31090_s3 + $0x830] ss:$12 sps:$4 sm:$0xff]  }
 0x396   : > { %4056 = vmatpush1.bf16.msra.mxu1 %v22885_v37  ;;  %21311 = vmatprep.subr.bf16.mxu0 %v22893_v42  ;;  %v22940_v37 = vld [vmem:[%s31090_s3 + $0x9a8] ss:$12 sps:$4 sm:$0xff]   ;;  %v22947_v42 = vld [vmem:[%s31090_s3 + $0x9c4] ss:$12 sps:$4 sm:$0xff]  }
 0x397   : > { %v21229_v43 = vpop.f32.mrb[8].mxu1  ;;  %4057 = vmatprep.subr.bf16.mxu1 %v22892_v13  ;;  %v22948_v13 = vld [vmem:[%s31090_s3 + $0x9c8] ss:$12 sps:$4 sm:$0xff]  }
 0x398   : > { %v21230_v15 = vpop.f32.mrb[9].mxu1 }
 0x399   : > { %v25986_v50 = vadd.f32 %v21230_v15, %v21229_v43  ;;  %21312 = vmatpush3.bf16.msra.mxu0 %v22894_v38  ;;  %v21232_v24 = vpop.f32.mrb[10].mxu1  ;;  %v22949_v38 = vld [vmem:[%s31090_s3 + $0x908] ss:$12 sps:$4 sm:$0xff]   ;;  %v22953_v43 = vld [vmem:[%s31090_s3 + $0x9e0] ss:$12 sps:$4 sm:$0xff]  }
 0x39a   : > { %4058 = vmatpush1.bf16.msra.mxu1 %v22890_v39  ;;  %v21233_v51 = vpop.f32.mrb[11].mxu1  ;;  %21313 = vmatprep.subr.bf16.mxu0 %v22898_v41  ;;  %v22945_v39 = vld [vmem:[%s31090_s3 + $0x9c0] ss:$12 sps:$4 sm:$0xff]   ;;  %v22952_v41 = vld [vmem:[%s31090_s3 + $0x9dc] ss:$12 sps:$4 sm:$0xff]  }
 0x39b   : > { %4059 = vmatprep.subr.bf16.mxu1 %v22897_v45  ;;  %v22954_v45 = vld [vmem:[%s31090_s3 + $0x920] ss:$12 sps:$4 sm:$0xff]   ;;  %v22958_v15 = vld [vmem:[%s31090_s3 + $0x9f8] ss:$12 sps:$4 sm:$0xff]   ;;  %v22955_v51 = vld [vmem:[%s31090_s3 + $0x9f0] ss:$12 sps:$4 sm:$0xff]  }
 0x39c   : > { %v22959_v24 = vld [vmem:[%s31090_s3 + $0x938] ss:$12 sps:$4 sm:$0xff]  }
 0x39d   : > { %21314 = vmatpush3.bf16.msra.mxu0 %v22899_v48  ;;  %v22950_v48 = vld [vmem:[%s31090_s3 + $0x9d8] ss:$12 sps:$4 sm:$0xff]  }
 0x39e   : > { %4060 = vmatpush1.bf16.msra.mxu1 %v22895_v21  ;;  %21315 = vmatprep.subr.bf16.mxu0 %v22903_v44  ;;  %v22963_v21 = vld [vmem:[%s31090_s3 + $0xa10] ss:$12 sps:$4 sm:$0xff]   ;;  %v22962_v44 = vld [vmem:[%s31090_s3 + $0xa0c] ss:$12 sps:$4 sm:$0xff]  }
 0x39f   : > { %4061 = vmatprep.subr.bf16.mxu1 %v22902_v52  ;;  %v22964_v52 = vld [vmem:[%s31090_s3 + $0x950] ss:$12 sps:$4 sm:$0xff]  }
 0x3a1   : > { %21316 = vmatpush3.bf16.msra.mxu0 %v22904_v34  ;;  %v22960_v34 = vld [vmem:[%s31090_s3 + $0xa08] ss:$12 sps:$4 sm:$0xff]  }
 0x3a2   : > { %4062 = vmatpush1.bf16.msra.mxu1 %v22900_v47  ;;  %21323 = vmatprep.subr.bf16.mxu0 %v22908_v54  ;;  %v22968_v47 = vld [vmem:[%s31090_s3 + $0xa28] ss:$12 sps:$4 sm:$0xff]   ;;  %v22967_v54 = vld [vmem:[%s31090_s3 + $0xa24] ss:$12 sps:$4 sm:$0xff]  }
 0x3a3   : > { %4072 = vmatprep.subr.bf16.mxu1 %v22907_v55  ;;  %v22969_v55 = vld [vmem:[%s31090_s3 + $0x968] ss:$12 sps:$4 sm:$0xff]  }
 0x3a4   : > { %4187 = vmatmul.mubr.bf16.vlgmr.msra.gmra.mrb[12].mxu0 %v25280_v18 }
 0x3a5   : > { %4064 = vmatmul.mubr.bf16.vlgmr.msra.gmra.mrb[24].mxu1 %v25398_v4  ;;  %21324 = vmatpush3.bf16.msra.mxu0 %v22909_v57  ;;  %v22965_v57 = vld [vmem:[%s31090_s3 + $0xa20] ss:$12 sps:$4 sm:$0xff]  }
 0x3a6   : > { %4073 = vmatpush1.bf16.msra.mxu1 %v22905_v58  ;;  %4104 = vmatprep.mubr.bf16.mxu1 %v25409_v9  ;;  %v22973_v58 = vld [vmem:[%s31090_s3 + $0xa40] ss:$12 sps:$4 sm:$0xff]  }
 0x3a7   : > { %4226 = vmatprep.mubr.bf16.mxu0 %v25292_v23  ;;  %4074 = vmatprep.subr.bf16.mxu1 %v22912_v59  ;;  %v22972_v59 = vld [vmem:[%s31090_s3 + $0xa3c] ss:$12 sps:$4 sm:$0xff]  }
 0x3a8   : > { %21325 = vmatprep.subr.bf16.mxu0 %v22913_v60  ;;  %v22974_v60 = vld [vmem:[%s31090_s3 + $0x980] ss:$12 sps:$4 sm:$0xff]  }
 0x3a9   : > { %21326 = vmatpush3.bf16.msra.mxu0 %v22914_v61  ;;  %v22970_v61 = vld [vmem:[%s31090_s3 + $0xa38] ss:$12 sps:$4 sm:$0xff]  }
 0x3aa   : > { %4075 = vmatpush1.bf16.msra.mxu1 %v22910_v62  ;;  %21327 = vmatprep.subr.bf16.mxu0 %v22918_v1  ;;  %v22978_v62 = vld [vmem:[%s31090_s3 + $0xa58] ss:$12 sps:$4 sm:$0xff]  }
 0x3ab   : > { %4076 = vmatprep.subr.bf16.mxu1 %v22917_v2  ;;  %v22977_v2 = vld [vmem:[%s31090_s3 + $0xa54] ss:$12 sps:$4 sm:$0xff]  }
 0x3ad   : > { %21328 = vmatpush3.bf16.msra.mxu0 %v22919_v3 }
 0x3ae   : > { %4077 = vmatpush1.bf16.msra.mxu1 %v22915_v5  ;;  %21329 = vmatprep.subr.bf16.mxu0 %v22923_v8  ;;  %v22979_v8 = vld [vmem:[%s31090_s3 + $0x998] ss:$12 sps:$4 sm:$0xff]  }
 0x3af   : > { %4078 = vmatprep.subr.bf16.mxu1 %v22922_v6 }
 0x3b1   : > { %21330 = vmatpush3.bf16.msra.mxu0 %v22924_v10 }
 0x3b2   : > { %4079 = vmatpush1.bf16.msra.mxu1 %v22920_v11  ;;  %21331 = vmatprep.subr.bf16.mxu0 %v22928_v14  ;;  %v22975_v11 = vld [vmem:[%s31090_s3 + $0xa50] ss:$12 sps:$4 sm:$0xff]  }
 0x3b3   : > { %4080 = vmatprep.subr.bf16.mxu1 %v22927_v12  ;;  %v22983_v12 = vld [vmem:[%s31090_s3 + $0xa70] ss:$12 sps:$4 sm:$0xff]  }
 0x3b5   : > { %21332 = vmatpush3.bf16.msra.mxu0 %v22929_v16  ;;  %v22982_v16 = vld [vmem:[%s31090_s3 + $0xa6c] ss:$12 sps:$4 sm:$0xff]  }
 0x3b6   : > { %4081 = vmatpush1.bf16.msra.mxu1 %v22925_v17  ;;  %21333 = vmatprep.subr.bf16.mxu0 %v22933_v22  ;;  %v22984_v17 = vld [vmem:[%s31090_s3 + $0x9b0] ss:$12 sps:$4 sm:$0xff]   ;;  %v22988_v22 = vld [vmem:[%s31090_s3 + $0xb48] ss:$12 sps:$4 sm:$0xff]  }
 0x3b7   : > { %v21251_v0 = vpop.f32.mrb[12].mxu1  ;;  %4082 = vmatprep.subr.bf16.mxu1 %v22932_v20  ;;  %v22980_v20 = vld [vmem:[%s31090_s3 + $0xa68] ss:$12 sps:$4 sm:$0xff]  }
 0x3b8   : > { %v21252_v25 = vpop.f32.mrb[13].mxu1 }
 0x3b9   : > { %v21253_v26 = vadd.f32 %v21252_v25, %v21251_v0  ;;  %v21254_v27 = vpop.f32.mrb[14].mxu1  ;;  %21334 = vmatpush3.bf16.msra.mxu0 %v22934_v40  ;;  %v22987_v40 = vld [vmem:[%s31090_s3 + $0xa84] ss:$12 sps:$4 sm:$0xff]   ;;  %v22993_v0 = vld [vmem:[%s31090_s3 + $0xb60] ss:$12 sps:$4 sm:$0xff]  }
 0x3ba   : > { %4083 = vmatpush1.bf16.msra.mxu1 %v22930_v36  ;;  %v21255_v29 = vpop.f32.mrb[15].mxu1  ;;  %21335 = vmatprep.subr.bf16.mxu0 %v22938_v63  ;;  %v22989_v36 = vld [vmem:[%s31090_s3 + $0xa88] ss:$12 sps:$4 sm:$0xff]   ;;  %v22994_v25 = vld [vmem:[%s31090_s3 + $0xaa0] ss:$12 sps:$4 sm:$0xff]  }
 0x3bb   : > { %v26095_v33 = vadd.f32 %v21253_v26, %v25986_v50  ;;  %4084 = vmatprep.subr.bf16.mxu1 %v22937_v49  ;;  %v22957_v50 = vld [vmem:[%s31090_s3 + $0x9f4] ss:$12 sps:$4 sm:$0xff]   ;;  %v22992_v63 = vld [vmem:[%s31090_s3 + $0xa9c] ss:$12 sps:$4 sm:$0xff]   ;;  %v22990_v26 = vld [vmem:[%s31090_s3 + $0xa98] ss:$12 sps:$4 sm:$0xff]  }
 0x3bc   : > { %v22985_v49 = vld [vmem:[%s31090_s3 + $0xa80] ss:$12 sps:$4 sm:$0xff]   ;;  %v22998_v27 = vld [vmem:[%s31090_s3 + $0xb78] ss:$12 sps:$4 sm:$0xff]  }
 0x3bd   : > { %21336 = vmatpush3.bf16.msra.mxu0 %v22939_v28  ;;  %v22997_v28 = vld [vmem:[%s31090_s3 + $0xab4] ss:$12 sps:$4 sm:$0xff]   ;;  %v22999_v29 = vld [vmem:[%s31090_s3 + $0xab8] ss:$12 sps:$4 sm:$0xff]  }
 0x3be   : > { %4085 = vmatpush1.bf16.msra.mxu1 %v22935_v31  ;;  %21337 = vmatprep.subr.bf16.mxu0 %v22943_v32  ;;  %v22995_v31 = vld [vmem:[%s31090_s3 + $0xab0] ss:$12 sps:$4 sm:$0xff]  }
 0x3bf   : > { %4086 = vmatprep.subr.bf16.mxu1 %v22942_v35  ;;  %v23003_v32 = vld [vmem:[%s31090_s3 + $0xb90] ss:$12 sps:$4 sm:$0xff]  }
 0x3c0   : > { %v23004_v35 = vld [vmem:[%s31090_s3 + $0xad0] ss:$12 sps:$4 sm:$0xff]  }
 0x3c1   : > { %21338 = vmatpush3.bf16.msra.mxu0 %v22944_v46  ;;  %v23000_v46 = vld [vmem:[%s31090_s3 + $0xac8] ss:$12 sps:$4 sm:$0xff]  }
 0x3c2   : > { %4087 = vmatpush1.bf16.msra.mxu1 %v22940_v37  ;;  %21345 = vmatprep.subr.bf16.mxu0 %v22948_v13  ;;  %v23008_v37 = vld [vmem:[%s31090_s3 + $0xba8] ss:$12 sps:$4 sm:$0xff]  }
 0x3c3   : > { %4088 = vmatprep.subr.bf16.mxu1 %v22947_v42  ;;  %v23007_v42 = vld [vmem:[%s31090_s3 + $0xae4] ss:$12 sps:$4 sm:$0xff]   ;;  %v23009_v13 = vld [vmem:[%s31090_s3 + $0xae8] ss:$12 sps:$4 sm:$0xff]  }
 0x3c4   : > { %4227 = vmatmul.mubr.bf16.vlgmr.msra.gmra.mrb[16].mxu0 %v25398_v4 }
 0x3c5   : > { %21346 = vmatpush3.bf16.msra.mxu0 %v22949_v38  ;;  %4266 = vmatprep.mubr.bf16.mxu0 %v25409_v9  ;;  %v23005_v38 = vld [vmem:[%s31090_s3 + $0xae0] ss:$12 sps:$4 sm:$0xff]  }
 0x3c6   : > { %4089 = vmatpush1.bf16.msra.mxu1 %v22945_v39  ;;  %21347 = vmatprep.subr.bf16.mxu0 %v22953_v43  ;;  %v23013_v39 = vld [vmem:[%s31090_s3 + $0xbc0] ss:$12 sps:$4 sm:$0xff]  }
 0x3c7   : > { %4090 = vmatprep.subr.bf16.mxu1 %v22952_v41  ;;  %v23012_v41 = vld [vmem:[%s31090_s3 + $0xafc] ss:$12 sps:$4 sm:$0xff]   ;;  %v23014_v43 = vld [vmem:[%s31090_s3 + $0xb00] ss:$12 sps:$4 sm:$0xff]  }
 0x3c9   : > { %21348 = vmatpush3.bf16.msra.mxu0 %v22954_v45  ;;  %v23010_v45 = vld [vmem:[%s31090_s3 + $0xaf8] ss:$12 sps:$4 sm:$0xff]  }
 0x3ca   : > { %4091 = vmatpush1.bf16.msra.mxu1 %v22950_v48  ;;  %21349 = vmatprep.subr.bf16.mxu0 %v22958_v15  ;;  %v23018_v48 = vld [vmem:[%s31090_s3 + $0xbd8] ss:$12 sps:$4 sm:$0xff]   ;;  %v23017_v15 = vld [vmem:[%s31090_s3 + $0xb14] ss:$12 sps:$4 sm:$0xff]  }
 0x3cb   : > { %4092 = vmatprep.subr.bf16.mxu1 %v22957_v50 }
 0x3cd   : > { %21350 = vmatpush3.bf16.msra.mxu0 %v22959_v24 }
 0x3ce   : > { %4093 = vmatpush1.bf16.msra.mxu1 %v22955_v51  ;;  %21351 = vmatprep.subr.bf16.mxu0 %v22963_v21  ;;  %v23019_v51 = vld [vmem:[%s31090_s3 + $0xb18] ss:$12 sps:$4 sm:$0xff]  }
 0x3cf   : > { %4094 = vmatprep.subr.bf16.mxu1 %v22962_v44 }
 0x3d1   : > { %21352 = vmatpush3.bf16.msra.mxu0 %v22964_v52  ;;  %v23015_v52 = vld [vmem:[%s31090_s3 + $0xb10] ss:$12 sps:$4 sm:$0xff]  }
 0x3d2   : > { %4095 = vmatpush1.bf16.msra.mxu1 %v22960_v34  ;;  %21353 = vmatprep.subr.bf16.mxu0 %v22968_v47  ;;  %v23023_v34 = vld [vmem:[%s31090_s3 + $0xbf0] ss:$12 sps:$4 sm:$0xff]  }
 0x3d3   : > { %4096 = vmatprep.subr.bf16.mxu1 %v22967_v54  ;;  %v23022_v54 = vld [vmem:[%s31090_s3 + $0xb2c] ss:$12 sps:$4 sm:$0xff]  }
 0x3d5   : > { %21354 = vmatpush3.bf16.msra.mxu0 %v22969_v55 }
 0x3d6   : > { %4097 = vmatpush1.bf16.msra.mxu1 %v22965_v57  ;;  %21355 = vmatprep.subr.bf16.mxu0 %v22973_v58  ;;  %v23024_v57 = vld [vmem:[%s31090_s3 + $0xb30] ss:$12 sps:$4 sm:$0xff]   ;;  %v23020_v58 = vld [vmem:[%s31090_s3 + $0xb28] ss:$12 sps:$4 sm:$0xff]  }
 0x3d7   : > { %v21273_v1 = vpop.f32.mrb[16].mxu1  ;;  %4098 = vmatprep.subr.bf16.mxu1 %v22972_v59  ;;  %v23030_v59 = vld [vmem:[%s31090_s3 + $0xc04] ss:$12 sps:$4 sm:$0xff]  }
 0x3d8   : > { %v21274_v3 = vpop.f32.mrb[17].mxu1 }
 0x3d9   : > { %v21275_v5 = vadd.f32 %v21274_v3, %v21273_v1  ;;  %v21276_v6 = vpop.f32.mrb[18].mxu1  ;;  %21356 = vmatpush3.bf16.msra.mxu0 %v22974_v60  ;;  %v23027_v60 = vld [vmem:[%s31090_s3 + $0xb44] ss:$12 sps:$4 sm:$0xff]   ;;  %v23036_v1 = vld [vmem:[%s31090_s3 + $0xc1c] ss:$12 sps:$4 sm:$0xff]  }
 0x3da   : > { %4099 = vmatpush1.bf16.msra.mxu1 %v22970_v61  ;;  %v21277_v10 = vpop.f32.mrb[19].mxu1  ;;  %21357 = vmatprep.subr.bf16.mxu0 %v22978_v62  ;;  %v23028_v61 = vld [vmem:[%s31090_s3 + $0xc00] ss:$12 sps:$4 sm:$0xff]   ;;  %v23034_v3 = vld [vmem:[%s31090_s3 + $0xc18] ss:$12 sps:$4 sm:$0xff]  }
 0x3db   : > { %v26196_v14 = vadd.f32 %v21275_v5, %v26095_v33  ;;  %4100 = vmatprep.subr.bf16.mxu1 %v22977_v2  ;;  %v23002_v33 = vld [vmem:[%s31090_s3 + $0xacc] ss:$12 sps:$4 sm:$0xff]   ;;  %v23033_v2 = vld [vmem:[%s31090_s3 + $0xb5c] ss:$12 sps:$4 sm:$0xff]   ;;  %v23042_v6 = vld [vmem:[%s31090_s3 + $0xc34] ss:$12 sps:$4 sm:$0xff]  }
 0x3dc   : > { %v23025_v62 = vld [vmem:[%s31090_s3 + $0xb40] ss:$12 sps:$4 sm:$0xff]   ;;  %v23031_v5 = vld [vmem:[%s31090_s3 + $0xb58] ss:$12 sps:$4 sm:$0xff]   ;;  %v23040_v10 = vld [vmem:[%s31090_s3 + $0xc30] ss:$12 sps:$4 sm:$0xff]  }
 0x3dd   : > { %21358 = vmatpush3.bf16.msra.mxu0 %v22979_v8  ;;  %v23039_v8 = vld [vmem:[%s31090_s3 + $0xb74] ss:$12 sps:$4 sm:$0xff]  }
 0x3de   : > { %4101 = vmatpush1.bf16.msra.mxu1 %v22975_v11  ;;  %21359 = vmatprep.subr.bf16.mxu0 %v22983_v12  ;;  %v23037_v11 = vld [vmem:[%s31090_s3 + $0xb70] ss:$12 sps:$4 sm:$0xff]   ;;  %v23048_v12 = vld [vmem:[%s31090_s3 + $0xc4c] ss:$12 sps:$4 sm:$0xff]  }
 0x3df   : > { %4102 = vmatprep.subr.bf16.mxu1 %v22982_v16  ;;  %v23046_v16 = vld [vmem:[%s31090_s3 + $0xc48] ss:$12 sps:$4 sm:$0xff]  }
 0x3e1   : > { %21360 = vmatpush3.bf16.msra.mxu0 %v22984_v17  ;;  %v23043_v17 = vld [vmem:[%s31090_s3 + $0xb88] ss:$12 sps:$4 sm:$0xff]  }
 0x3e2   : > { %4103 = vmatpush1.bf16.msra.mxu1 %v22980_v20  ;;  %21367 = vmatprep.subr.bf16.mxu0 %v22988_v22  ;;  %v23054_v20 = vld [vmem:[%s31090_s3 + $0xc64] ss:$12 sps:$4 sm:$0xff]  }
 0x3e3   : > { %4113 = vmatprep.subr.bf16.mxu1 %v22987_v40  ;;  %v23051_v22 = vld [vmem:[%s31090_s3 + $0xba4] ss:$12 sps:$4 sm:$0xff]   ;;  %v23052_v40 = vld [vmem:[%s31090_s3 + $0xc60] ss:$12 sps:$4 sm:$0xff]  }
 0x3e4   : > { %4267 = vmatmul.mubr.bf16.vlgmr.msra.gmra.mrb[20].mxu0 %v25510_v53 }
 0x3e5   : > { %4105 = vmatmul.mubr.bf16.vlgmr.msra.gmra.mrb[24].mxu1 %v25510_v53  ;;  %21368 = vmatpush3.bf16.msra.mxu0 %v22989_v36  ;;  %v23049_v36 = vld [vmem:[%s31090_s3 + $0xba0] ss:$12 sps:$4 sm:$0xff]  }
 0x3e6   : > { %4114 = vmatpush1.bf16.msra.mxu1 %v22985_v49  ;;  %4145 = vmatprep.mubr.bf16.mxu1 %v25518_v56  ;;  %v23060_v49 = vld [vmem:[%s31090_s3 + $0xc7c] ss:$12 sps:$4 sm:$0xff]  }
 0x3e7   : > { %4306 = vmatprep.mubr.bf16.mxu0 %v25518_v56  ;;  %4115 = vmatprep.subr.bf16.mxu1 %v22992_v63  ;;  %v23057_v63 = vld [vmem:[%s31090_s3 + $0xbbc] ss:$12 sps:$4 sm:$0xff]  }
 0x3e8   : > { %21369 = vmatprep.subr.bf16.mxu0 %v22993_v0  ;;  %v23058_v0 = vld [vmem:[%s31090_s3 + $0xc78] ss:$12 sps:$4 sm:$0xff]  }
 0x3e9   : > { %21370 = vmatpush3.bf16.msra.mxu0 %v22994_v25  ;;  %v23055_v25 = vld [vmem:[%s31090_s3 + $0xbb8] ss:$12 sps:$4 sm:$0xff]  }
 0x3ea   : > { %4116 = vmatpush1.bf16.msra.mxu1 %v22990_v26  ;;  %21371 = vmatprep.subr.bf16.mxu0 %v22998_v27  ;;  %v23066_v26 = vld [vmem:[%s31090_s3 + $0xc94] ss:$12 sps:$4 sm:$0xff]  }
 0x3eb   : > { %4117 = vmatprep.subr.bf16.mxu1 %v22997_v28  ;;  %v23063_v27 = vld [vmem:[%s31090_s3 + $0xbd4] ss:$12 sps:$4 sm:$0xff]   ;;  %v23064_v28 = vld [vmem:[%s31090_s3 + $0xc90] ss:$12 sps:$4 sm:$0xff]  }
 0x3ed   : > { %21372 = vmatpush3.bf16.msra.mxu0 %v22999_v29  ;;  %v23061_v29 = vld [vmem:[%s31090_s3 + $0xbd0] ss:$12 sps:$4 sm:$0xff]  }
 0x3ee   : > { %4118 = vmatpush1.bf16.msra.mxu1 %v22995_v31  ;;  %21373 = vmatprep.subr.bf16.mxu0 %v23003_v32  ;;  %v23072_v31 = vld [vmem:[%s31090_s3 + $0xcac] ss:$12 sps:$4 sm:$0xff]  }
 0x3ef   : > { %4119 = vmatprep.subr.bf16.mxu1 %v23002_v33  ;;  %v23069_v32 = vld [vmem:[%s31090_s3 + $0xbec] ss:$12 sps:$4 sm:$0xff]   ;;  %v23070_v33 = vld [vmem:[%s31090_s3 + $0xca8] ss:$12 sps:$4 sm:$0xff]  }
 0x3f1   : > { %21374 = vmatpush3.bf16.msra.mxu0 %v23004_v35  ;;  %v23067_v35 = vld [vmem:[%s31090_s3 + $0xbe8] ss:$12 sps:$4 sm:$0xff]  }
 0x3f2   : > { %4120 = vmatpush1.bf16.msra.mxu1 %v23000_v46  ;;  %21375 = vmatprep.subr.bf16.mxu0 %v23008_v37  ;;  %v23075_v46 = vld [vmem:[%s31090_s3 + $0xcc4] ss:$12 sps:$4 sm:$0xff]   ;;  %v23076_v37 = vld [vmem:[%s31090_s3 + $0xcc8] ss:$12 sps:$4 sm:$0xff]  }
 0x3f3   : > { %4121 = vmatprep.subr.bf16.mxu1 %v23007_v42  ;;  %v23073_v42 = vld [vmem:[%s31090_s3 + $0xcc0] ss:$12 sps:$4 sm:$0xff]  }
 0x3f5   : > { %21376 = vmatpush3.bf16.msra.mxu0 %v23009_v13  ;;  %v23077_v13 = vld [vmem:[%s31090_s3 + $0xc08] ss:$12 sps:$4 sm:$0xff]  }
 0x3f6   : > { %4122 = vmatpush1.bf16.msra.mxu1 %v23005_v38  ;;  %21377 = vmatprep.subr.bf16.mxu0 %v23013_v39  ;;  %v23080_v38 = vld [vmem:[%s31090_s3 + $0xcdc] ss:$12 sps:$4 sm:$0xff]   ;;  %v23081_v39 = vld [vmem:[%s31090_s3 + $0xce0] ss:$12 sps:$4 sm:$0xff]  }
 0x3f7   : > { %4123 = vmatprep.subr.bf16.mxu1 %v23012_v41  ;;  %v23078_v41 = vld [vmem:[%s31090_s3 + $0xcd8] ss:$12 sps:$4 sm:$0xff]  }
 0x3f8   : > { %v21295_v50 = vpop.f32.mrb[20].mxu1 }
 0x3f9   : > { %v21296_v24 = vpop.f32.mrb[21].mxu1  ;;  %21378 = vmatpush3.bf16.msra.mxu0 %v23014_v43  ;;  %v23082_v43 = vld [vmem:[%s31090_s3 + $0xc20] ss:$12 sps:$4 sm:$0xff]  }
 0x3fa   : > { %v21297_v21 = vadd.f32 %v21296_v24, %v21295_v50  ;;  %v21298_v44 = vpop.f32.mrb[22].mxu1  ;;  %4124 = vmatpush1.bf16.msra.mxu1 %v23010_v45  ;;  %21379 = vmatprep.subr.bf16.mxu0 %v23018_v48  ;;  %v23085_v45 = vld [vmem:[%s31090_s3 + $0xcf4] ss:$12 sps:$4 sm:$0xff]   ;;  %v23086_v48 = vld [vmem:[%s31090_s3 + $0xcf8] ss:$12 sps:$4 sm:$0xff]  }
 0x3fb   : > { %v21299_v47 = vpop.f32.mrb[23].mxu1  ;;  %4125 = vmatprep.subr.bf16.mxu1 %v23017_v15  ;;  %v23083_v15 = vld [vmem:[%s31090_s3 + $0xcf0] ss:$12 sps:$4 sm:$0xff]   ;;  %v23087_v50 = vld [vmem:[%s31090_s3 + $0xc38] ss:$12 sps:$4 sm:$0xff]  }
 0x3fc   : > { %v2700_v55 = vadd.f32 %v21297_v21, %v26196_v14  ;;  %v23045_v14 = vld [vmem:[%s31090_s3 + $0xb8c] ss:$12 sps:$4 sm:$0xff]   ;;  %v23088_v21 = vld [vmem:[%s31090_s3 + $0xd08] ss:$12 sps:$4 sm:$0xff]   ;;  %v23092_v44 = vld [vmem:[%s31090_s3 + $0xc50] ss:$12 sps:$4 sm:$0xff]  }
 0x3fd   : > { %21380 = vmatpush3.bf16.msra.mxu0 %v23019_v51  ;;  %v23090_v24 = vld [vmem:[%s31090_s3 + $0xd0c] ss:$12 sps:$4 sm:$0xff]   ;;  %v23091_v51 = vld [vmem:[%s31090_s3 + $0xd10] ss:$12 sps:$4 sm:$0xff]  }
 0x3fe   : > { %2708 = vst.msk [vmem:[#allocation2 + $0x10] sm:$0xff] %vm2707_vm11, %v2700_v55  ;;  %4126 = vmatpush1.bf16.msra.mxu1 %v23015_v52  ;;  %21381 = vmatprep.subr.bf16.mxu0 %v23023_v34  ;;  %v23095_v52 = vld [vmem:[%s31090_s3 + $0xd24] ss:$12 sps:$4 sm:$0xff]   ;;  %v23096_v34 = vld [vmem:[%s31090_s3 + $0xd28] ss:$12 sps:$4 sm:$0xff]  }
 0x3ff   : > { %4127 = vmatprep.subr.bf16.mxu1 %v23022_v54  ;;  %v23093_v47 = vld [vmem:[%s31090_s3 + $0xd20] ss:$12 sps:$4 sm:$0xff]   ;;  %v23097_v54 = vld [vmem:[%s31090_s3 + $0xc68] ss:$12 sps:$4 sm:$0xff]  }
 0x400   : > { %v23100_v55 = vld [vmem:[%s31090_s3 + $0xd3c] ss:$12 sps:$4 sm:$0xff]  }
 0x401   : > { %21382 = vmatpush3.bf16.msra.mxu0 %v23024_v57  ;;  %v23101_v57 = vld [vmem:[%s31090_s3 + $0xd40] ss:$12 sps:$4 sm:$0xff]  }
 0x402   : > { %4128 = vmatpush1.bf16.msra.mxu1 %v23020_v58  ;;  %5598 = vmatprep.subr.bf16.mxu0 %v23030_v59  ;;  %v23098_v58 = vld [vmem:[%s31090_s3 + $0xd38] ss:$12 sps:$4 sm:$0xff]   ;;  %v23102_v59 = vld [vmem:[%s31090_s3 + $0xc80] ss:$12 sps:$4 sm:$0xff]  }
 0x403   : > { %4129 = vmatprep.subr.bf16.mxu1 %v23027_v60  ;;  %v23105_v60 = vld [vmem:[%s31090_s3 + $0xd54] ss:$12 sps:$4 sm:$0xff]  }
 0x404   : > { %4307 = vmatmul.mubr.bf16.vlgmr.msra.gmra.mrb[24].mxu0 %v25619_v30 }
 0x405   : > { %5599 = vmatpush1.bf16.msra.mxu0 %v23028_v61  ;;  %5630 = vmatprep.mubr.bf16.mxu0 %v25282_v19  ;;  %v23106_v61 = vld [vmem:[%s31090_s3 + $0xd58] ss:$12 sps:$4 sm:$0xff]  }
 0x406   : > { %4130 = vmatpush1.bf16.msra.mxu1 %v23025_v62  ;;  %5600 = vmatprep.subr.bf16.mxu0 %v23036_v1  ;;  %v23103_v62 = vld [vmem:[%s31090_s3 + $0xd50] ss:$12 sps:$4 sm:$0xff]   ;;  %v23107_v1 = vld [vmem:[%s31090_s3 + $0xc98] ss:$12 sps:$4 sm:$0xff]  }
 0x407   : > { %4131 = vmatprep.subr.bf16.mxu1 %v23033_v2  ;;  %v23110_v2 = vld [vmem:[%s31090_s3 + $0xd6c] ss:$12 sps:$4 sm:$0xff]  }
 0x409   : > { %5601 = vmatpush1.bf16.msra.mxu0 %v23034_v3  ;;  %v23111_v3 = vld [vmem:[%s31090_s3 + $0xd70] ss:$12 sps:$4 sm:$0xff]  }
 0x40a   : > { %4132 = vmatpush1.bf16.msra.mxu1 %v23031_v5  ;;  %5602 = vmatprep.subr.bf16.mxu0 %v23042_v6  ;;  %v23108_v5 = vld [vmem:[%s31090_s3 + $0xd68] ss:$12 sps:$4 sm:$0xff]   ;;  %v23112_v6 = vld [vmem:[%s31090_s3 + $0xcb0] ss:$12 sps:$4 sm:$0xff]  }
 0x40b   : > { %4133 = vmatprep.subr.bf16.mxu1 %v23039_v8  ;;  %v23115_v8 = vld [vmem:[%s31090_s3 + $0xd84] ss:$12 sps:$4 sm:$0xff]  }
 0x40d   : > { %5603 = vmatpush1.bf16.msra.mxu0 %v23040_v10  ;;  %v23116_v10 = vld [vmem:[%s31090_s3 + $0xe48] ss:$12 sps:$4 sm:$0xff]  }
 0x40e   : > { %4134 = vmatpush1.bf16.msra.mxu1 %v23037_v11  ;;  %5604 = vmatprep.subr.bf16.mxu0 %v23048_v12  ;;  %v23113_v11 = vld [vmem:[%s31090_s3 + $0xd80] ss:$12 sps:$4 sm:$0xff]   ;;  %v23117_v12 = vld [vmem:[%s31090_s3 + $0xd88] ss:$12 sps:$4 sm:$0xff]  }
 0x40f   : > { %4135 = vmatprep.subr.bf16.mxu1 %v23045_v14  ;;  %v23120_v14 = vld [vmem:[%s31090_s3 + $0xd9c] ss:$12 sps:$4 sm:$0xff]  }
 0x411   : > { %5605 = vmatpush1.bf16.msra.mxu0 %v23046_v16  ;;  %v23121_v16 = vld [vmem:[%s31090_s3 + $0xe60] ss:$12 sps:$4 sm:$0xff]  }
 0x412   : > { %4136 = vmatpush1.bf16.msra.mxu1 %v23043_v17  ;;  %5606 = vmatprep.subr.bf16.mxu0 %v23054_v20  ;;  %v23118_v17 = vld [vmem:[%s31090_s3 + $0xd98] ss:$12 sps:$4 sm:$0xff]   ;;  %v23122_v20 = vld [vmem:[%s31090_s3 + $0xda0] ss:$12 sps:$4 sm:$0xff]  }
 0x413   : > { %4137 = vmatprep.subr.bf16.mxu1 %v23051_v22  ;;  %v23125_v22 = vld [vmem:[%s31090_s3 + $0xdb4] ss:$12 sps:$4 sm:$0xff]  }
 0x415   : > { %5607 = vmatpush1.bf16.msra.mxu0 %v23052_v40  ;;  %v23126_v40 = vld [vmem:[%s31090_s3 + $0xe78] ss:$12 sps:$4 sm:$0xff]  }
 0x416   : > { %4138 = vmatpush1.bf16.msra.mxu1 %v23049_v36  ;;  %5608 = vmatprep.subr.bf16.mxu0 %v23060_v49  ;;  %v23123_v36 = vld [vmem:[%s31090_s3 + $0xdb0] ss:$12 sps:$4 sm:$0xff]   ;;  %v23127_v49 = vld [vmem:[%s31090_s3 + $0xdb8] ss:$12 sps:$4 sm:$0xff]  }
 0x417   : > { %4139 = vmatprep.subr.bf16.mxu1 %v23057_v63  ;;  %v23130_v63 = vld [vmem:[%s31090_s3 + $0xdcc] ss:$12 sps:$4 sm:$0xff]  }
 0x419   : > { %5609 = vmatpush1.bf16.msra.mxu0 %v23058_v0  ;;  %v23131_v0 = vld [vmem:[%s31090_s3 + $0xe90] ss:$12 sps:$4 sm:$0xff]  }
 0x41a   : > { %4140 = vmatpush1.bf16.msra.mxu1 %v23055_v25  ;;  %5610 = vmatprep.subr.bf16.mxu0 %v23066_v26  ;;  %v23128_v25 = vld [vmem:[%s31090_s3 + $0xdc8] ss:$12 sps:$4 sm:$0xff]   ;;  %v23132_v26 = vld [vmem:[%s31090_s3 + $0xdd0] ss:$12 sps:$4 sm:$0xff]  }
 0x41b   : > { %4141 = vmatprep.subr.bf16.mxu1 %v23063_v27  ;;  %v23135_v27 = vld [vmem:[%s31090_s3 + $0xde4] ss:$12 sps:$4 sm:$0xff]  }
 0x41d   : > { %5611 = vmatpush1.bf16.msra.mxu0 %v23064_v28  ;;  %v23136_v28 = vld [vmem:[%s31090_s3 + $0xea8] ss:$12 sps:$4 sm:$0xff]  }
 0x41e   : > { %4142 = vmatpush1.bf16.msra.mxu1 %v23061_v29  ;;  %5612 = vmatprep.subr.bf16.mxu0 %v23072_v31  ;;  %v23133_v29 = vld [vmem:[%s31090_s3 + $0xde0] ss:$12 sps:$4 sm:$0xff]   ;;  %v23137_v31 = vld [vmem:[%s31090_s3 + $0xde8] ss:$12 sps:$4 sm:$0xff]  }
 0x41f   : > { %4143 = vmatprep.subr.bf16.mxu1 %v23069_v32  ;;  %v23140_v32 = vld [vmem:[%s31090_s3 + $0xdfc] ss:$12 sps:$4 sm:$0xff]  }
 0x421   : > { %5613 = vmatpush1.bf16.msra.mxu0 %v23070_v33  ;;  %v23141_v33 = vld [vmem:[%s31090_s3 + $0xec0] ss:$12 sps:$4 sm:$0xff]  }
 0x422   : > { %4144 = vmatpush1.bf16.msra.mxu1 %v23067_v35  ;;  %5614 = vmatprep.subr.bf16.mxu0 %v23075_v46  ;;  %v23138_v35 = vld [vmem:[%s31090_s3 + $0xdf8] ss:$12 sps:$4 sm:$0xff]   ;;  %v23142_v46 = vld [vmem:[%s31090_s3 + $0xe00] ss:$12 sps:$4 sm:$0xff]  }
 0x423   : > { %21389 = vmatprep.subr.bf16.mxu1 %v23076_v37  ;;  %v23145_v37 = vld [vmem:[%s31090_s3 + $0xe14] ss:$12 sps:$4 sm:$0xff]  }
 0x425   : > { %4146 = vmatmul.mubr.bf16.vlgmr.msra.gmra.mrb[24].mxu1 %v25619_v30  ;;  %5615 = vmatpush1.bf16.msra.mxu0 %v23073_v42 }
 0x426   : > { %21390 = vmatpush3.bf16.msra.mxu1 %v23077_v13  ;;  %5794 = vmatprep.mubr.bf16.mxu1 %v25282_v19  ;;  %v23146_v13 = vld [vmem:[%s31090_s3 + $0xed8] ss:$12 sps:$4 sm:$0xff]  }
 0x427   : > { %5616 = vmatprep.subr.bf16.mxu0 %v23080_v38  ;;  %21391 = vmatprep.subr.bf16.mxu1 %v23081_v39 }
 0x429   : > { %5617 = vmatpush1.bf16.msra.mxu0 %v23078_v41  ;;  %v23143_v41 = vld [vmem:[%s31090_s3 + $0xe10] ss:$12 sps:$4 sm:$0xff]  }
 0x42a   : > { %21392 = vmatpush3.bf16.msra.mxu1 %v23082_v43  ;;  %5618 = vmatprep.subr.bf16.mxu0 %v23085_v45  ;;  %v23147_v45 = vld [vmem:[%s31090_s3 + $0xe18] ss:$12 sps:$4 sm:$0xff]  }
 0x42b   : > { %21393 = vmatprep.subr.bf16.mxu1 %v23086_v48  ;;  %v23150_v48 = vld [vmem:[%s31090_s3 + $0xe2c] ss:$12 sps:$4 sm:$0xff]  }
 0x42d   : > { %5619 = vmatpush1.bf16.msra.mxu0 %v23083_v15  ;;  %v23151_v15 = vld [vmem:[%s31090_s3 + $0xef0] ss:$12 sps:$4 sm:$0xff]  }
 0x42e   : > { %21394 = vmatpush3.bf16.msra.mxu1 %v23087_v50  ;;  %5620 = vmatprep.subr.bf16.mxu0 %v23090_v24  ;;  %v23148_v50 = vld [vmem:[%s31090_s3 + $0xe28] ss:$12 sps:$4 sm:$0xff]   ;;  %v23152_v24 = vld [vmem:[%s31090_s3 + $0xe30] ss:$12 sps:$4 sm:$0xff]  }
 0x42f   : > { %21395 = vmatprep.subr.bf16.mxu1 %v23091_v51  ;;  %v23155_v51 = vld [vmem:[%s31090_s3 + $0xe44] ss:$12 sps:$4 sm:$0xff]  }
 0x431   : > { %5621 = vmatpush1.bf16.msra.mxu0 %v23088_v21  ;;  %v23156_v21 = vld [vmem:[%s31090_s3 + $0xfc8] ss:$12 sps:$4 sm:$0xff]  }
 0x432   : > { %21396 = vmatpush3.bf16.msra.mxu1 %v23092_v44  ;;  %5622 = vmatprep.subr.bf16.mxu0 %v23095_v52  ;;  %v23153_v44 = vld [vmem:[%s31090_s3 + $0xe40] ss:$12 sps:$4 sm:$0xff]   ;;  %v23157_v52 = vld [vmem:[%s31090_s3 + $0xf08] ss:$12 sps:$4 sm:$0xff]  }
 0x433   : > { %21397 = vmatprep.subr.bf16.mxu1 %v23096_v34  ;;  %v23160_v34 = vld [vmem:[%s31090_s3 + $0xe5c] ss:$12 sps:$4 sm:$0xff]  }
 0x435   : > { %5623 = vmatpush1.bf16.msra.mxu0 %v23093_v47  ;;  %v23161_v47 = vld [vmem:[%s31090_s3 + $0xfe0] ss:$12 sps:$4 sm:$0xff]  }
 0x436   : > { %21398 = vmatpush3.bf16.msra.mxu1 %v23097_v54  ;;  %5624 = vmatprep.subr.bf16.mxu0 %v23100_v55  ;;  %v23158_v54 = vld [vmem:[%s31090_s3 + $0xe58] ss:$12 sps:$4 sm:$0xff]   ;;  %v23162_v55 = vld [vmem:[%s31090_s3 + $0xf20] ss:$12 sps:$4 sm:$0xff]  }
 0x437   : > { %21399 = vmatprep.subr.bf16.mxu1 %v23101_v57  ;;  %v23165_v57 = vld [vmem:[%s31090_s3 + $0xe74] ss:$12 sps:$4 sm:$0xff]  }
 0x439   : > { %5625 = vmatpush1.bf16.msra.mxu0 %v23098_v58  ;;  %v23166_v58 = vld [vmem:[%s31090_s3 + $0xff8] ss:$12 sps:$4 sm:$0xff]  }
 0x43a   : > { %21400 = vmatpush3.bf16.msra.mxu1 %v23102_v59  ;;  %5626 = vmatprep.subr.bf16.mxu0 %v23105_v60  ;;  %v23163_v59 = vld [vmem:[%s31090_s3 + $0xe70] ss:$12 sps:$4 sm:$0xff]   ;;  %v23167_v60 = vld [vmem:[%s31090_s3 + $0xf38] ss:$12 sps:$4 sm:$0xff]  }
 0x43b   : > { %21401 = vmatprep.subr.bf16.mxu1 %v23106_v61  ;;  %v23170_v61 = vld [vmem:[%s31090_s3 + $0xe8c] ss:$12 sps:$4 sm:$0xff]  }
 0x43d   : > { %5627 = vmatpush1.bf16.msra.mxu0 %v23103_v62  ;;  %v23171_v62 = vld [vmem:[%s31090_s3 + $0x1010] ss:$12 sps:$4 sm:$0xff]  }
 0x43e   : > { %21402 = vmatpush3.bf16.msra.mxu1 %v23107_v1  ;;  %5628 = vmatprep.subr.bf16.mxu0 %v23110_v2  ;;  %v23168_v1 = vld [vmem:[%s31090_s3 + $0xe88] ss:$12 sps:$4 sm:$0xff]   ;;  %v23172_v2 = vld [vmem:[%s31090_s3 + $0xf50] ss:$12 sps:$4 sm:$0xff]  }
 0x43f   : > { %21403 = vmatprep.subr.bf16.mxu1 %v23111_v3  ;;  %v23175_v3 = vld [vmem:[%s31090_s3 + $0xea4] ss:$12 sps:$4 sm:$0xff]  }
 0x441   : > { %5629 = vmatpush1.bf16.msra.mxu0 %v23108_v5  ;;  %v23176_v5 = vld [vmem:[%s31090_s3 + $0x1028] ss:$12 sps:$4 sm:$0xff]  }
 0x442   : > { %21404 = vmatpush3.bf16.msra.mxu1 %v23112_v6  ;;  %5639 = vmatprep.subr.bf16.mxu0 %v23115_v8  ;;  %v23173_v6 = vld [vmem:[%s31090_s3 + $0xea0] ss:$12 sps:$4 sm:$0xff]   ;;  %v23177_v8 = vld [vmem:[%s31090_s3 + $0xf68] ss:$12 sps:$4 sm:$0xff]  }
 0x443   : > { %21411 = vmatprep.subr.bf16.mxu1 %v23116_v10  ;;  %v23180_v10 = vld [vmem:[%s31090_s3 + $0xebc] ss:$12 sps:$4 sm:$0xff]  }
 0x444   : > { %5631 = vmatmul.mubr.bf16.vlgmr.msra.gmra.mrb[28].mxu0 %v25280_v18 }
 0x445   : > { %5795 = vmatmul.mubr.bf16.vlgmr.msra.gmra.mrb[28].mxu1 %v25280_v18  ;;  %5640 = vmatpush1.bf16.msra.mxu0 %v23113_v11  ;;  %v23181_v11 = vld [vmem:[%s31090_s3 + $0x1040] ss:$12 sps:$4 sm:$0xff]  }
 0x446   : > { %5671 = vmatprep.mubr.bf16.mxu0 %v25292_v23  ;;  %21412 = vmatpush3.bf16.msra.mxu1 %v23117_v12  ;;  %v23178_v12 = vld [vmem:[%s31090_s3 + $0xeb8] ss:$12 sps:$4 sm:$0xff]  }
 0x447   : > { %5834 = vmatprep.mubr.bf16.mxu1 %v25292_v23  ;;  %5641 = vmatprep.subr.bf16.mxu0 %v23120_v14  ;;  %v23182_v14 = vld [vmem:[%s31090_s3 + $0xf80] ss:$12 sps:$4 sm:$0xff]  }
 0x448   : > { %21413 = vmatprep.subr.bf16.mxu1 %v23121_v16  ;;  %v23185_v16 = vld [vmem:[%s31090_s3 + $0xed4] ss:$12 sps:$4 sm:$0xff]  }
 0x449   : > { %5642 = vmatpush1.bf16.msra.mxu0 %v23118_v17 }
 0x44a   : > { %21414 = vmatpush3.bf16.msra.mxu1 %v23122_v20  ;;  %5643 = vmatprep.subr.bf16.mxu0 %v23125_v22  ;;  %v23186_v20 = vld [vmem:[%s31090_s3 + $0x1058] ss:$12 sps:$4 sm:$0xff]  }
 0x44b   : > { %21415 = vmatprep.subr.bf16.mxu1 %v23126_v40 }
 0x44d   : > { %5644 = vmatpush1.bf16.msra.mxu0 %v23123_v36 }
 0x44e   : > { %21416 = vmatpush3.bf16.msra.mxu1 %v23127_v49  ;;  %5645 = vmatprep.subr.bf16.mxu0 %v23130_v63  ;;  %v23183_v49 = vld [vmem:[%s31090_s3 + $0xed0] ss:$12 sps:$4 sm:$0xff]  }
 0x44f   : > { %21417 = vmatprep.subr.bf16.mxu1 %v23131_v0  ;;  %v23187_v0 = vld [vmem:[%s31090_s3 + $0xf98] ss:$12 sps:$4 sm:$0xff]  }
 0x451   : > { %5646 = vmatpush1.bf16.msra.mxu0 %v23128_v25  ;;  %v23190_v25 = vld [vmem:[%s31090_s3 + $0xeec] ss:$12 sps:$4 sm:$0xff]  }
 0x452   : > { %21418 = vmatpush3.bf16.msra.mxu1 %v23132_v26  ;;  %5647 = vmatprep.subr.bf16.mxu0 %v23135_v27  ;;  %v23191_v26 = vld [vmem:[%s31090_s3 + $0x1070] ss:$12 sps:$4 sm:$0xff]   ;;  %v23188_v27 = vld [vmem:[%s31090_s3 + $0xee8] ss:$12 sps:$4 sm:$0xff]  }
 0x453   : > { %21419 = vmatprep.subr.bf16.mxu1 %v23136_v28  ;;  %v23192_v28 = vld [vmem:[%s31090_s3 + $0xfb0] ss:$12 sps:$4 sm:$0xff]  }
 0x455   : > { %5648 = vmatpush1.bf16.msra.mxu0 %v23133_v29  ;;  %v23195_v29 = vld [vmem:[%s31090_s3 + $0xf04] ss:$12 sps:$4 sm:$0xff]  }
 0x456   : > { %21420 = vmatpush3.bf16.msra.mxu1 %v23137_v31  ;;  %5649 = vmatprep.subr.bf16.mxu0 %v23140_v32  ;;  %v23196_v31 = vld [vmem:[%s31090_s3 + $0x1148] ss:$12 sps:$4 sm:$0xff]   ;;  %v23193_v32 = vld [vmem:[%s31090_s3 + $0xf00] ss:$12 sps:$4 sm:$0xff]  }
 0x457   : > { %v2538_v42 = vpop.f32.mrb[8].mxu0  ;;  %21421 = vmatprep.subr.bf16.mxu1 %v23141_v33  ;;  %v23197_v33 = vld [vmem:[%s31090_s3 + $0x1088] ss:$12 sps:$4 sm:$0xff]  }
 0x458   : > { %2705 = vst [vmem:[#allocation2] sm:$0xff] %v2538_v42  ;;  %v2540_v38 = vpop.f32.mrb[9].mxu0  ;;  %v23202_v42 = vld [vmem:[%s31090_s3 + $0x10a0] ss:$12 sps:$4 sm:$0xff]  }
 0x459   : > { %2706 = vst [vmem:[#allocation2 + $0x8] sm:$0xff] %v2540_v38  ;;  %v2542_v39 = vpop.f32.mrb[10].mxu0  ;;  %5650 = vmatpush1.bf16.msra.mxu0 %v23138_v35  ;;  %v23200_v35 = vld [vmem:[%s31090_s3 + $0xf1c] ss:$12 sps:$4 sm:$0xff]   ;;  %v23206_v38 = vld [vmem:[%s31090_s3 + $0x1178] ss:$12 sps:$4 sm:$0xff]  }
 0x45a   : > { %21422 = vmatpush3.bf16.msra.mxu1 %v23142_v46  ;;  %v2543_v43 = vpop.f32.mrb[11].mxu0  ;;  %5651 = vmatprep.subr.bf16.mxu0 %v23145_v37  ;;  %v23201_v46 = vld [vmem:[%s31090_s3 + $0x1160] ss:$12 sps:$4 sm:$0xff]   ;;  %v23198_v37 = vld [vmem:[%s31090_s3 + $0xf18] ss:$12 sps:$4 sm:$0xff]  }
 0x45b   : > { %21423 = vmatprep.subr.bf16.mxu1 %v23146_v13  ;;  %v23205_v13 = vld [vmem:[%s31090_s3 + $0xf34] ss:$12 sps:$4 sm:$0xff]   ;;  %v23203_v39 = vld [vmem:[%s31090_s3 + $0xf30] ss:$12 sps:$4 sm:$0xff]   ;;  %v23210_v43 = vld [vmem:[%s31090_s3 + $0xf4c] ss:$12 sps:$4 sm:$0xff]  }
 0x45d   : > { %5652 = vmatpush1.bf16.msra.mxu0 %v23143_v41  ;;  %v23207_v41 = vld [vmem:[%s31090_s3 + $0x10b8] ss:$12 sps:$4 sm:$0xff]  }
 0x45e   : > { %21424 = vmatpush3.bf16.msra.mxu1 %v23147_v45  ;;  %5653 = vmatprep.subr.bf16.mxu0 %v23150_v48  ;;  %v23211_v45 = vld [vmem:[%s31090_s3 + $0x1190] ss:$12 sps:$4 sm:$0xff]   ;;  %v23208_v48 = vld [vmem:[%s31090_s3 + $0xf48] ss:$12 sps:$4 sm:$0xff]  }
 0x45f   : > { %21425 = vmatprep.subr.bf16.mxu1 %v23151_v15  ;;  %v23212_v15 = vld [vmem:[%s31090_s3 + $0x10d0] ss:$12 sps:$4 sm:$0xff]  }
 0x461   : > { %5654 = vmatpush1.bf16.msra.mxu0 %v23148_v50  ;;  %v23215_v50 = vld [vmem:[%s31090_s3 + $0xf64] ss:$12 sps:$4 sm:$0xff]  }
 0x462   : > { %21426 = vmatpush3.bf16.msra.mxu1 %v23152_v24  ;;  %5655 = vmatprep.subr.bf16.mxu0 %v23155_v51  ;;  %v23216_v24 = vld [vmem:[%s31090_s3 + $0x11a8] ss:$12 sps:$4 sm:$0xff]   ;;  %v23213_v51 = vld [vmem:[%s31090_s3 + $0xf60] ss:$12 sps:$4 sm:$0xff]  }
 0x463   : > { %21433 = vmatprep.subr.bf16.mxu1 %v23156_v21  ;;  %v23217_v21 = vld [vmem:[%s31090_s3 + $0x10e8] ss:$12 sps:$4 sm:$0xff]  }
 0x465   : > { %5835 = vmatmul.mubr.bf16.vlgmr.msra.gmra.mrb[32].mxu1 %v25398_v4  ;;  %5656 = vmatpush1.bf16.msra.mxu0 %v23153_v44  ;;  %v23220_v44 = vld [vmem:[%s31090_s3 + $0xf7c] ss:$12 sps:$4 sm:$0xff]  }
 0x466   : > { %21434 = vmatpush3.bf16.msra.mxu1 %v23157_v52  ;;  %5874 = vmatprep.mubr.bf16.mxu1 %v25409_v9  ;;  %v23221_v52 = vld [vmem:[%s31090_s3 + $0x11c0] ss:$12 sps:$4 sm:$0xff]  }
 0x467   : > { %5657 = vmatprep.subr.bf16.mxu0 %v23160_v34  ;;  %21435 = vmatprep.subr.bf16.mxu1 %v23161_v47  ;;  %v23218_v34 = vld [vmem:[%s31090_s3 + $0xf78] ss:$12 sps:$4 sm:$0xff]   ;;  %v23222_v47 = vld [vmem:[%s31090_s3 + $0x1100] ss:$12 sps:$4 sm:$0xff]  }
 0x469   : > { %5658 = vmatpush1.bf16.msra.mxu0 %v23158_v54  ;;  %v23225_v54 = vld [vmem:[%s31090_s3 + $0xf94] ss:$12 sps:$4 sm:$0xff]  }
 0x46a   : > { %21436 = vmatpush3.bf16.msra.mxu1 %v23162_v55  ;;  %5659 = vmatprep.subr.bf16.mxu0 %v23165_v57  ;;  %v23226_v57 = vld [vmem:[%s31090_s3 + $0x11d8] ss:$12 sps:$4 sm:$0xff]  }
 0x46b   : > { %21437 = vmatprep.subr.bf16.mxu1 %v23166_v58 }
 0x46d   : > { %5660 = vmatpush1.bf16.msra.mxu0 %v23163_v59 }
 0x46e   : > { %21438 = vmatpush3.bf16.msra.mxu1 %v23167_v60  ;;  %5661 = vmatprep.subr.bf16.mxu0 %v23170_v61  ;;  %v23223_v61 = vld [vmem:[%s31090_s3 + $0xf90] ss:$12 sps:$4 sm:$0xff]  }
 0x46f   : > { %21439 = vmatprep.subr.bf16.mxu1 %v23171_v62 }
 0x471   : > { %5662 = vmatpush1.bf16.msra.mxu0 %v23168_v1  ;;  %v23227_v1 = vld [vmem:[%s31090_s3 + $0x1118] ss:$12 sps:$4 sm:$0xff]  }
 0x472   : > { %21440 = vmatpush3.bf16.msra.mxu1 %v23172_v2  ;;  %5663 = vmatprep.subr.bf16.mxu0 %v23175_v3  ;;  %v23230_v2 = vld [vmem:[%s31090_s3 + $0xfac] ss:$12 sps:$4 sm:$0xff]  }
 0x473   : > { %21441 = vmatprep.subr.bf16.mxu1 %v23176_v5  ;;  %v23231_v5 = vld [vmem:[%s31090_s3 + $0x11f0] ss:$12 sps:$4 sm:$0xff]  }
 0x475   : > { %5664 = vmatpush1.bf16.msra.mxu0 %v23173_v6  ;;  %v23228_v6 = vld [vmem:[%s31090_s3 + $0xfa8] ss:$12 sps:$4 sm:$0xff]  }
 0x476   : > { %21442 = vmatpush3.bf16.msra.mxu1 %v23177_v8  ;;  %5665 = vmatprep.subr.bf16.mxu0 %v23180_v10  ;;  %v23232_v8 = vld [vmem:[%s31090_s3 + $0x1130] ss:$12 sps:$4 sm:$0xff]  }
 0x477   : > { %v21317_v17 = vpop.f32.mrb[12].mxu0  ;;  %21443 = vmatprep.subr.bf16.mxu1 %v23181_v11  ;;  %v23235_v10 = vld [vmem:[%s31090_s3 + $0xfc4] ss:$12 sps:$4 sm:$0xff]  }
 0x478   : > { %v21318_v22 = vpop.f32.mrb[13].mxu0  ;;  %v23238_v11 = vld [vmem:[%s31090_s3 + $0x1204] ss:$12 sps:$4 sm:$0xff]  }
 0x479   : > { %v26685_v40 = vadd.f32 %v21318_v22, %v21317_v17  ;;  %v21320_v36 = vpop.f32.mrb[14].mxu0  ;;  %5666 = vmatpush1.bf16.msra.mxu0 %v23178_v12  ;;  %v23233_v12 = vld [vmem:[%s31090_s3 + $0xfc0] ss:$12 sps:$4 sm:$0xff]   ;;  %v23244_v17 = vld [vmem:[%s31090_s3 + $0x121c] ss:$12 sps:$4 sm:$0xff]  }
 0x47a   : > { %21444 = vmatpush3.bf16.msra.mxu1 %v23182_v14  ;;  %v21321_v63 = vpop.f32.mrb[15].mxu0  ;;  %5667 = vmatprep.subr.bf16.mxu0 %v23185_v16  ;;  %v23236_v14 = vld [vmem:[%s31090_s3 + $0x1200] ss:$12 sps:$4 sm:$0xff]   ;;  %v23241_v16 = vld [vmem:[%s31090_s3 + $0xfdc] ss:$12 sps:$4 sm:$0xff]  }
 0x47b   : > { %21445 = vmatprep.subr.bf16.mxu1 %v23186_v20  ;;  %v23239_v20 = vld [vmem:[%s31090_s3 + $0xfd8] ss:$12 sps:$4 sm:$0xff]   ;;  %v23250_v36 = vld [vmem:[%s31090_s3 + $0x1234] ss:$12 sps:$4 sm:$0xff]   ;;  %v23248_v63 = vld [vmem:[%s31090_s3 + $0x1230] ss:$12 sps:$4 sm:$0xff]  }
 0x47c   : > { %v23242_v22 = vld [vmem:[%s31090_s3 + $0x1218] ss:$12 sps:$4 sm:$0xff]  }
 0x47d   : > { %5668 = vmatpush1.bf16.msra.mxu0 %v23183_v49  ;;  %v23245_v49 = vld [vmem:[%s31090_s3 + $0xff0] ss:$12 sps:$4 sm:$0xff]  }
 0x47e   : > { %21446 = vmatpush3.bf16.msra.mxu1 %v23187_v0  ;;  %5669 = vmatprep.subr.bf16.mxu0 %v23190_v25  ;;  %v23253_v0 = vld [vmem:[%s31090_s3 + $0x100c] ss:$12 sps:$4 sm:$0xff]  }
 0x47f   : > { %21447 = vmatprep.subr.bf16.mxu1 %v23191_v26  ;;  %v23256_v25 = vld [vmem:[%s31090_s3 + $0x124c] ss:$12 sps:$4 sm:$0xff]   ;;  %v23251_v26 = vld [vmem:[%s31090_s3 + $0x1008] ss:$12 sps:$4 sm:$0xff]  }
 0x481   : > { %5670 = vmatpush1.bf16.msra.mxu0 %v23188_v27  ;;  %v23254_v27 = vld [vmem:[%s31090_s3 + $0x1248] ss:$12 sps:$4 sm:$0xff]  }
 0x482   : > { %21448 = vmatpush3.bf16.msra.mxu1 %v23192_v28  ;;  %5680 = vmatprep.subr.bf16.mxu0 %v23195_v29  ;;  %v23259_v28 = vld [vmem:[%s31090_s3 + $0x1024] ss:$12 sps:$4 sm:$0xff]  }
 0x483   : > { %21455 = vmatprep.subr.bf16.mxu1 %v23196_v31  ;;  %v23262_v29 = vld [vmem:[%s31090_s3 + $0x1264] ss:$12 sps:$4 sm:$0xff]   ;;  %v23257_v31 = vld [vmem:[%s31090_s3 + $0x1020] ss:$12 sps:$4 sm:$0xff]  }
 0x484   : > { %5672 = vmatmul.mubr.bf16.vlgmr.msra.gmra.mrb[28].mxu0 %v25398_v4 }
 0x485   : > { %5875 = vmatmul.mubr.bf16.vlgmr.msra.gmra.mrb[36].mxu1 %v25510_v53  ;;  %5681 = vmatpush1.bf16.msra.mxu0 %v23193_v32  ;;  %v23260_v32 = vld [vmem:[%s31090_s3 + $0x1260] ss:$12 sps:$4 sm:$0xff]  }
 0x486   : > { %5712 = vmatprep.mubr.bf16.mxu0 %v25409_v9  ;;  %21456 = vmatpush3.bf16.msra.mxu1 %v23197_v33  ;;  %v23265_v33 = vld [vmem:[%s31090_s3 + $0x103c] ss:$12 sps:$4 sm:$0xff]  }
 0x487   : > { %5914 = vmatprep.mubr.bf16.mxu1 %v25518_v56  ;;  %5682 = vmatprep.subr.bf16.mxu0 %v23200_v35  ;;  %v23268_v35 = vld [vmem:[%s31090_s3 + $0x127c] ss:$12 sps:$4 sm:$0xff]  }
 0x488   : > { %21457 = vmatprep.subr.bf16.mxu1 %v23201_v46  ;;  %v23263_v46 = vld [vmem:[%s31090_s3 + $0x1038] ss:$12 sps:$4 sm:$0xff]  }
 0x489   : > { %5683 = vmatpush1.bf16.msra.mxu0 %v23198_v37  ;;  %v23266_v37 = vld [vmem:[%s31090_s3 + $0x1278] ss:$12 sps:$4 sm:$0xff]  }
 0x48a   : > { %21458 = vmatpush3.bf16.msra.mxu1 %v23202_v42  ;;  %5684 = vmatprep.subr.bf16.mxu0 %v23205_v13  ;;  %v23271_v42 = vld [vmem:[%s31090_s3 + $0x1054] ss:$12 sps:$4 sm:$0xff]  }
 0x48b   : > { %21459 = vmatprep.subr.bf16.mxu1 %v23206_v38  ;;  %v23274_v38 = vld [vmem:[%s31090_s3 + $0x1294] ss:$12 sps:$4 sm:$0xff]  }
 0x48d   : > { %5685 = vmatpush1.bf16.msra.mxu0 %v23203_v39 }
 0x48e   : > { %21460 = vmatpush3.bf16.msra.mxu1 %v23207_v41  ;;  %5686 = vmatprep.subr.bf16.mxu0 %v23210_v43 }
 0x48f   : > { %21461 = vmatprep.subr.bf16.mxu1 %v23211_v45  ;;  %v23269_v45 = vld [vmem:[%s31090_s3 + $0x1050] ss:$12 sps:$4 sm:$0xff]  }
 0x491   : > { %5687 = vmatpush1.bf16.msra.mxu0 %v23208_v48 }
 0x492   : > { %21462 = vmatpush3.bf16.msra.mxu1 %v23212_v15  ;;  %5688 = vmatprep.subr.bf16.mxu0 %v23215_v50  ;;  %v23272_v15 = vld [vmem:[%s31090_s3 + $0x1290] ss:$12 sps:$4 sm:$0xff]   ;;  %v23277_v50 = vld [vmem:[%s31090_s3 + $0x106c] ss:$12 sps:$4 sm:$0xff]  }
 0x493   : > { %21463 = vmatprep.subr.bf16.mxu1 %v23216_v24 }
 0x495   : > { %5689 = vmatpush1.bf16.msra.mxu0 %v23213_v51  ;;  %v23280_v51 = vld [vmem:[%s31090_s3 + $0x12ac] ss:$12 sps:$4 sm:$0xff]  }
 0x496   : > { %21464 = vmatpush3.bf16.msra.mxu1 %v23217_v21  ;;  %5690 = vmatprep.subr.bf16.mxu0 %v23220_v44  ;;  %v23275_v21 = vld [vmem:[%s31090_s3 + $0x1068] ss:$12 sps:$4 sm:$0xff]  }
 0x497   : > { %v21339_v55 = vpop.f32.mrb[16].mxu0  ;;  %21465 = vmatprep.subr.bf16.mxu1 %v23221_v52  ;;  %v23278_v44 = vld [vmem:[%s31090_s3 + $0x12a8] ss:$12 sps:$4 sm:$0xff]   ;;  %v23283_v52 = vld [vmem:[%s31090_s3 + $0x1084] ss:$12 sps:$4 sm:$0xff]  }
 0x498   : > { %v21340_v58 = vpop.f32.mrb[17].mxu0 }
 0x499   : > { %v21341_v59 = vadd.f32 %v21340_v58, %v21339_v55  ;;  %v21342_v60 = vpop.f32.mrb[18].mxu0  ;;  %5691 = vmatpush1.bf16.msra.mxu0 %v23218_v34  ;;  %v23286_v34 = vld [vmem:[%s31090_s3 + $0x12c4] ss:$12 sps:$4 sm:$0xff]   ;;  %v23289_v55 = vld [vmem:[%s31090_s3 + $0x109c] ss:$12 sps:$4 sm:$0xff]  }
 0x49a   : > { %21466 = vmatpush3.bf16.msra.mxu1 %v23222_v47  ;;  %v21343_v62 = vpop.f32.mrb[19].mxu0  ;;  %5692 = vmatprep.subr.bf16.mxu0 %v23225_v54  ;;  %v23281_v47 = vld [vmem:[%s31090_s3 + $0x1080] ss:$12 sps:$4 sm:$0xff]   ;;  %v23287_v58 = vld [vmem:[%s31090_s3 + $0x1098] ss:$12 sps:$4 sm:$0xff]  }
 0x49b   : > { %v26797_v3 = vadd.f32 %v21341_v59, %v26685_v40  ;;  %21467 = vmatprep.subr.bf16.mxu1 %v23226_v57  ;;  %v23247_v40 = vld [vmem:[%s31090_s3 + $0xff4] ss:$12 sps:$4 sm:$0xff]   ;;  %v23292_v57 = vld [vmem:[%s31090_s3 + $0x12dc] ss:$12 sps:$4 sm:$0xff]   ;;  %v23290_v59 = vld [vmem:[%s31090_s3 + $0x12d8] ss:$12 sps:$4 sm:$0xff]  }
 0x49c   : > { %v23284_v54 = vld [vmem:[%s31090_s3 + $0x12c0] ss:$12 sps:$4 sm:$0xff]   ;;  %v23293_v62 = vld [vmem:[%s31090_s3 + $0x10b0] ss:$12 sps:$4 sm:$0xff]  }
 0x49d   : > { %5693 = vmatpush1.bf16.msra.mxu0 %v23223_v61  ;;  %v23295_v60 = vld [vmem:[%s31090_s3 + $0x10b4] ss:$12 sps:$4 sm:$0xff]  }
 0x49e   : > { %21468 = vmatpush3.bf16.msra.mxu1 %v23227_v1  ;;  %5694 = vmatprep.subr.bf16.mxu0 %v23230_v2  ;;  %v23298_v61 = vld [vmem:[%s31090_s3 + $0x12f4] ss:$12 sps:$4 sm:$0xff]   ;;  %v23296_v1 = vld [vmem:[%s31090_s3 + $0x12f0] ss:$12 sps:$4 sm:$0xff]   ;;  %v23301_v2 = vld [vmem:[%s31090_s3 + $0x10cc] ss:$12 sps:$4 sm:$0xff]  }
 0x49f   : > { %21469 = vmatprep.subr.bf16.mxu1 %v23231_v5  ;;  %v23299_v5 = vld [vmem:[%s31090_s3 + $0x10c8] ss:$12 sps:$4 sm:$0xff]  }
 0x4a1   : > { %5695 = vmatpush1.bf16.msra.mxu0 %v23228_v6  ;;  %v23302_v6 = vld [vmem:[%s31090_s3 + $0x1308] ss:$12 sps:$4 sm:$0xff]  }
 0x4a2   : > { %21470 = vmatpush3.bf16.msra.mxu1 %v23232_v8  ;;  %5696 = vmatprep.subr.bf16.mxu0 %v23235_v10  ;;  %v23307_v8 = vld [vmem:[%s31090_s3 + $0x10e4] ss:$12 sps:$4 sm:$0xff]  }
 0x4a3   : > { %7206 = vmatprep.subr.bf16.mxu1 %v23238_v11  ;;  %v23310_v10 = vld [vmem:[%s31090_s3 + $0x1324] ss:$12 sps:$4 sm:$0xff]   ;;  %v23305_v11 = vld [vmem:[%s31090_s3 + $0x10e0] ss:$12 sps:$4 sm:$0xff]  }
 0x4a5   : > { %5915 = vmatmul.mubr.bf16.vlgmr.msra.gmra.mrb[40].mxu1 %v25619_v30  ;;  %5697 = vmatpush1.bf16.msra.mxu0 %v23233_v12  ;;  %v23308_v12 = vld [vmem:[%s31090_s3 + $0x1320] ss:$12 sps:$4 sm:$0xff]  }
 0x4a6   : > { %7207 = vmatpush1.bf16.msra.mxu1 %v23236_v14  ;;  %7238 = vmatprep.mubr.bf16.mxu1 %v25282_v19  ;;  %v23313_v14 = vld [vmem:[%s31090_s3 + $0x10fc] ss:$12 sps:$4 sm:$0xff]  }
 0x4a7   : > { %5698 = vmatprep.subr.bf16.mxu0 %v23241_v16  ;;  %7208 = vmatprep.subr.bf16.mxu1 %v23244_v17  ;;  %v23316_v16 = vld [vmem:[%s31090_s3 + $0x133c] ss:$12 sps:$4 sm:$0xff]   ;;  %v23311_v17 = vld [vmem:[%s31090_s3 + $0x10f8] ss:$12 sps:$4 sm:$0xff]  }
 0x4a9   : > { %5699 = vmatpush1.bf16.msra.mxu0 %v23239_v20  ;;  %v23314_v20 = vld [vmem:[%s31090_s3 + $0x1338] ss:$12 sps:$4 sm:$0xff]  }
 0x4aa   : > { %7209 = vmatpush1.bf16.msra.mxu1 %v23242_v22  ;;  %5700 = vmatprep.subr.bf16.mxu0 %v23247_v40  ;;  %v23319_v22 = vld [vmem:[%s31090_s3 + $0x1114] ss:$12 sps:$4 sm:$0xff]  }
 0x4ab   : > { %7210 = vmatprep.subr.bf16.mxu1 %v23250_v36  ;;  %v23322_v36 = vld [vmem:[%s31090_s3 + $0x1354] ss:$12 sps:$4 sm:$0xff]  }
 0x4ad   : > { %5701 = vmatpush1.bf16.msra.mxu0 %v23245_v49 }
 0x4ae   : > { %7211 = vmatpush1.bf16.msra.mxu1 %v23248_v63  ;;  %5702 = vmatprep.subr.bf16.mxu0 %v23253_v0 }
 0x4af   : > { %7212 = vmatprep.subr.bf16.mxu1 %v23256_v25  ;;  %v23317_v25 = vld [vmem:[%s31090_s3 + $0x1110] ss:$12 sps:$4 sm:$0xff]  }
 0x4b1   : > { %5703 = vmatpush1.bf16.msra.mxu0 %v23251_v26 }
 0x4b2   : > { %7213 = vmatpush1.bf16.msra.mxu1 %v23254_v27  ;;  %5704 = vmatprep.subr.bf16.mxu0 %v23259_v28  ;;  %v23320_v27 = vld [vmem:[%s31090_s3 + $0x1350] ss:$12 sps:$4 sm:$0xff]   ;;  %v23325_v28 = vld [vmem:[%s31090_s3 + $0x112c] ss:$12 sps:$4 sm:$0xff]  }
 0x4b3   : > { %7214 = vmatprep.subr.bf16.mxu1 %v23262_v29 }
 0x4b5   : > { %5705 = vmatpush1.bf16.msra.mxu0 %v23257_v31  ;;  %v23328_v31 = vld [vmem:[%s31090_s3 + $0x136c] ss:$12 sps:$4 sm:$0xff]  }
 0x4b6   : > { %7215 = vmatpush1.bf16.msra.mxu1 %v23260_v32  ;;  %5706 = vmatprep.subr.bf16.mxu0 %v23265_v33  ;;  %v23323_v32 = vld [vmem:[%s31090_s3 + $0x1128] ss:$12 sps:$4 sm:$0xff]  }
 0x4b7   : > { %v21361_v13 = vpop.f32.mrb[20].mxu0  ;;  %7216 = vmatprep.subr.bf16.mxu1 %v23268_v35  ;;  %v23326_v33 = vld [vmem:[%s31090_s3 + $0x1368] ss:$12 sps:$4 sm:$0xff]   ;;  %v23331_v35 = vld [vmem:[%s31090_s3 + $0x1144] ss:$12 sps:$4 sm:$0xff]  }
 0x4b8   : > { %v21362_v39 = vpop.f32.mrb[21].mxu0 }
 0x4b9   : > { %v21363_v41 = vadd.f32 %v21362_v39, %v21361_v13  ;;  %v21364_v43 = vpop.f32.mrb[22].mxu0  ;;  %5707 = vmatpush1.bf16.msra.mxu0 %v23263_v46  ;;  %v23334_v46 = vld [vmem:[%s31090_s3 + $0x1384] ss:$12 sps:$4 sm:$0xff]   ;;  %v23337_v13 = vld [vmem:[%s31090_s3 + $0x115c] ss:$12 sps:$4 sm:$0xff]  }
 0x4ba   : > { %7217 = vmatpush1.bf16.msra.mxu1 %v23266_v37  ;;  %v21365_v48 = vpop.f32.mrb[23].mxu0  ;;  %5708 = vmatprep.subr.bf16.mxu0 %v23271_v42  ;;  %v23329_v37 = vld [vmem:[%s31090_s3 + $0x1140] ss:$12 sps:$4 sm:$0xff]  }
 0x4bb   : > { %v26898_v24 = vadd.f32 %v21363_v41, %v26797_v3  ;;  %7218 = vmatprep.subr.bf16.mxu1 %v23274_v38  ;;  %v23304_v3 = vld [vmem:[%s31090_s3 + $0x130c] ss:$12 sps:$4 sm:$0xff]   ;;  %v13967_v38 = vld [vmem:[#allocation2 + $0x10] sm:$0xff]  ;;  %v23340_v41 = vld [vmem:[%s31090_s3 + $0x139c] ss:$12 sps:$4 sm:$0xff]  }
 0x4bc   : > { %v23332_v42 = vld [vmem:[%s31090_s3 + $0x1380] ss:$12 sps:$4 sm:$0xff]   ;;  %v23338_v48 = vld [vmem:[%s31090_s3 + $0x1398] ss:$12 sps:$4 sm:$0xff]  }
 0x4bd   : > { %5709 = vmatpush1.bf16.msra.mxu0 %v23269_v45  ;;  %v23335_v45 = vld [vmem:[%s31090_s3 + $0x1158] ss:$12 sps:$4 sm:$0xff]  }
 0x4be   : > { %7219 = vmatpush1.bf16.msra.mxu1 %v23272_v15  ;;  %5710 = vmatprep.subr.bf16.mxu0 %v23277_v50  ;;  %v23343_v15 = vld [vmem:[%s31090_s3 + $0x1174] ss:$12 sps:$4 sm:$0xff]  }
 0x4bf   : > { %7220 = vmatprep.subr.bf16.mxu1 %v23280_v51  ;;  %v23346_v50 = vld [vmem:[%s31090_s3 + $0x13b4] ss:$12 sps:$4 sm:$0xff]   ;;  %v23344_v51 = vld [vmem:[%s31090_s3 + $0x13b0] ss:$12 sps:$4 sm:$0xff]  }
 0x4c1   : > { %5711 = vmatpush1.bf16.msra.mxu0 %v23275_v21  ;;  %v23349_v21 = vld [vmem:[%s31090_s3 + $0x118c] ss:$12 sps:$4 sm:$0xff]  }
 0x4c2   : > { %7221 = vmatpush1.bf16.msra.mxu1 %v23278_v44  ;;  %5721 = vmatprep.subr.bf16.mxu0 %v23283_v52  ;;  %v23352_v44 = vld [vmem:[%s31090_s3 + $0x13cc] ss:$12 sps:$4 sm:$0xff]   ;;  %v23347_v52 = vld [vmem:[%s31090_s3 + $0x1188] ss:$12 sps:$4 sm:$0xff]  }
 0x4c3   : > { %7222 = vmatprep.subr.bf16.mxu1 %v23286_v34  ;;  %v23350_v34 = vld [vmem:[%s31090_s3 + $0x13c8] ss:$12 sps:$4 sm:$0xff]  }
 0x4c4   : > { %5713 = vmatmul.mubr.bf16.vlgmr.msra.gmra.mrb[28].mxu0 %v25510_v53 }
 0x4c5   : > { %5722 = vmatpush1.bf16.msra.mxu0 %v23281_v47  ;;  %5753 = vmatprep.mubr.bf16.mxu0 %v25518_v56  ;;  %v23355_v47 = vld [vmem:[%s31090_s3 + $0x11a4] ss:$12 sps:$4 sm:$0xff]  }
 0x4c6   : > { %7223 = vmatpush1.bf16.msra.mxu1 %v23284_v54  ;;  %5723 = vmatprep.subr.bf16.mxu0 %v23289_v55  ;;  %v23358_v54 = vld [vmem:[%s31090_s3 + $0x13e4] ss:$12 sps:$4 sm:$0xff]   ;;  %v23353_v55 = vld [vmem:[%s31090_s3 + $0x11a0] ss:$12 sps:$4 sm:$0xff]  }
 0x4c7   : > { %7224 = vmatprep.subr.bf16.mxu1 %v23292_v57  ;;  %v23356_v57 = vld [vmem:[%s31090_s3 + $0x13e0] ss:$12 sps:$4 sm:$0xff]  }
 0x4c9   : > { %5724 = vmatpush1.bf16.msra.mxu0 %v23287_v58  ;;  %v23361_v58 = vld [vmem:[%s31090_s3 + $0x11bc] ss:$12 sps:$4 sm:$0xff]  }
 0x4ca   : > { %7225 = vmatpush1.bf16.msra.mxu1 %v23290_v59  ;;  %5725 = vmatprep.subr.bf16.mxu0 %v23295_v60  ;;  %v23364_v59 = vld [vmem:[%s31090_s3 + $0x13fc] ss:$12 sps:$4 sm:$0xff]   ;;  %v23359_v60 = vld [vmem:[%s31090_s3 + $0x11b8] ss:$12 sps:$4 sm:$0xff]  }
 0x4cb   : > { %7226 = vmatprep.subr.bf16.mxu1 %v23298_v61  ;;  %v23362_v61 = vld [vmem:[%s31090_s3 + $0x13f8] ss:$12 sps:$4 sm:$0xff]  }
 0x4cd   : > { %5726 = vmatpush1.bf16.msra.mxu0 %v23293_v62  ;;  %v23367_v62 = vld [vmem:[%s31090_s3 + $0x11d4] ss:$12 sps:$4 sm:$0xff]  }
 0x4ce   : > { %7227 = vmatpush1.bf16.msra.mxu1 %v23296_v1  ;;  %5727 = vmatprep.subr.bf16.mxu0 %v23301_v2  ;;  %v23370_v1 = vld [vmem:[%s31090_s3 + $0x1414] ss:$12 sps:$4 sm:$0xff]  }
 0x4cf   : > { %7228 = vmatprep.subr.bf16.mxu1 %v23304_v3  ;;  %v13965_v3 = vld [vmem:[#allocation2] sm:$0xff] }
 0x4d1   : > { %5728 = vmatpush1.bf16.msra.mxu0 %v23299_v5 }
 0x4d2   : > { %7229 = vmatpush1.bf16.msra.mxu1 %v23302_v6  ;;  %5729 = vmatprep.subr.bf16.mxu0 %v23307_v8  ;;  %v23365_v6 = vld [vmem:[%s31090_s3 + $0x11d0] ss:$12 sps:$4 sm:$0xff]  }
 0x4d3   : > { %7230 = vmatprep.subr.bf16.mxu1 %v23310_v10 }
 0x4d5   : > { %5730 = vmatpush1.bf16.msra.mxu0 %v23305_v11  ;;  %v23368_v11 = vld [vmem:[%s31090_s3 + $0x1410] ss:$12 sps:$4 sm:$0xff]  }
 0x4d6   : > { %7231 = vmatpush1.bf16.msra.mxu1 %v23308_v12  ;;  %5731 = vmatprep.subr.bf16.mxu0 %v23313_v14  ;;  %v23373_v12 = vld [vmem:[%s31090_s3 + $0x11ec] ss:$12 sps:$4 sm:$0xff]  }
 0x4d7   : > { %v21383_v40 = vpop.f32.mrb[24].mxu0  ;;  %7232 = vmatprep.subr.bf16.mxu1 %v23316_v16  ;;  %v23376_v16 = vld [vmem:[%s31090_s3 + $0x142c] ss:$12 sps:$4 sm:$0xff]  }
 0x4d8   : > { %v21384_v49 = vpop.f32.mrb[25].mxu0 }
 0x4d9   : > { %v21385_v63 = vadd.f32 %v21384_v49, %v21383_v40  ;;  %v21386_v0 = vpop.f32.mrb[26].mxu0  ;;  %5732 = vmatpush1.bf16.msra.mxu0 %v23311_v17  ;;  %v13966_v17 = vld [vmem:[#allocation2 + $0x8] sm:$0xff]  ;;  %v23379_v49 = vld [vmem:[%s31090_s3 + $0x1444] ss:$12 sps:$4 sm:$0xff]  }
 0x4da   : > { %7233 = vmatpush1.bf16.msra.mxu1 %v23314_v20  ;;  %v21387_v26 = vpop.f32.mrb[27].mxu0  ;;  %5733 = vmatprep.subr.bf16.mxu0 %v23319_v22  ;;  %v23371_v20 = vld [vmem:[%s31090_s3 + $0x11e8] ss:$12 sps:$4 sm:$0xff]   ;;  %v23377_v0 = vld [vmem:[%s31090_s3 + $0x1440] ss:$12 sps:$4 sm:$0xff]  }
 0x4db   : > { %v4309_v29 = vadd.f32 %v21385_v63, %v26898_v24  ;;  %7234 = vmatprep.subr.bf16.mxu1 %v23322_v36  ;;  %v23341_v24 = vld [vmem:[%s31090_s3 + $0x1170] ss:$12 sps:$4 sm:$0xff]   ;;  %v23374_v40 = vld [vmem:[%s31090_s3 + $0x1428] ss:$12 sps:$4 sm:$0xff]  }
 0x4dc   : > { %v23380_v36 = vld [vmem:[%s31090_s3 + $0x12c8] ss:$12 sps:$4 sm:$0xff]  }
 0x4dd   : > { %4316 = vst.msk [vmem:[#allocation2 + $0x28] sm:$0xff] %vm2707_vm11, %v4309_v29  ;;  %5734 = vmatpush1.bf16.msra.mxu0 %v23317_v25  ;;  %v23381_v63 = vld [vmem:[%s31090_s3 + $0x1208] ss:$12 sps:$4 sm:$0xff]   ;;  %v23385_v25 = vld [vmem:[%s31090_s3 + $0x12e0] ss:$12 sps:$4 sm:$0xff]  }
 0x4de   : > { %7235 = vmatpush1.bf16.msra.mxu1 %v23320_v27  ;;  %5735 = vmatprep.subr.bf16.mxu0 %v23325_v28  ;;  %v23384_v26 = vld [vmem:[%s31090_s3 + $0x145c] ss:$12 sps:$4 sm:$0xff]   ;;  %v23386_v27 = vld [vmem:[%s31090_s3 + $0x1220] ss:$12 sps:$4 sm:$0xff]   ;;  %v23382_v28 = vld [vmem:[%s31090_s3 + $0x1458] ss:$12 sps:$4 sm:$0xff]  }
 0x4df   : > { %7236 = vmatprep.subr.bf16.mxu1 %v23328_v31  ;;  %v23390_v29 = vld [vmem:[%s31090_s3 + $0x12f8] ss:$12 sps:$4 sm:$0xff]   ;;  %v23389_v31 = vld [vmem:[%s31090_s3 + $0x1474] ss:$12 sps:$4 sm:$0xff]  }
 0x4e1   : > { %5736 = vmatpush1.bf16.msra.mxu0 %v23323_v32  ;;  %v23391_v32 = vld [vmem:[%s31090_s3 + $0x1238] ss:$12 sps:$4 sm:$0xff]  }
 0x4e2   : > { %7237 = vmatpush1.bf16.msra.mxu1 %v23326_v33  ;;  %5737 = vmatprep.subr.bf16.mxu0 %v23331_v35  ;;  %v23387_v33 = vld [vmem:[%s31090_s3 + $0x1470] ss:$12 sps:$4 sm:$0xff]  }
 0x4e3   : > { %7247 = vmatprep.subr.bf16.mxu1 %v23334_v46  ;;  %v23395_v35 = vld [vmem:[%s31090_s3 + $0x1310] ss:$12 sps:$4 sm:$0xff]   ;;  %v23394_v46 = vld [vmem:[%s31090_s3 + $0x148c] ss:$12 sps:$4 sm:$0xff]  }
 0x4e4   : > { %v13970_v39 = vld [vmem:[#allocation2 + $0x28] sm:$0xff] }
 0x4e5   : > { %7239 = vmatmul.mubr.bf16.vlgmr.msra.gmra.mrb[44].mxu1 %v25280_v18  ;;  %5738 = vmatpush1.bf16.msra.mxu0 %v23329_v37  ;;  %v13991_v43 = vpack.c.bf16 %v13970_v39, %v13967_v38  ;;  %v23396_v37 = vld [vmem:[%s31090_s3 + $0x1250] ss:$12 sps:$4 sm:$0xff]   ;;  %v23401_v39 = vld [vmem:[%s31090_s3 + $0x1268] ss:$12 sps:$4 sm:$0xff]  }
 0x4e6   : > { %7248 = vmatpush1.bf16.msra.mxu1 %v23332_v42  ;;  %7279 = vmatprep.mubr.bf16.mxu1 %v25292_v23  ;;  %v23392_v42 = vld [vmem:[%s31090_s3 + $0x1488] ss:$12 sps:$4 sm:$0xff]   ;;  %v23399_v38 = vld [vmem:[%s31090_s3 + $0x14a4] ss:$12 sps:$4 sm:$0xff]  }
 0x4e7   : > { %14027 = vrot.lane.b32.xlu1 %v13991_v43, %s24823_s13  ;;  %5739 = vmatprep.subr.bf16.mxu0 %v23337_v13  ;;  %v23400_v13 = vld [vmem:[%s31090_s3 + $0x1328] ss:$12 sps:$4 sm:$0xff]   ;;  %v23405_v43 = vld [vmem:[%s31090_s3 + $0x1340] ss:$12 sps:$4 sm:$0xff]  }
 0x4e8   : > { %7249 = vmatprep.subr.bf16.mxu1 %v23340_v41  ;;  %v23397_v41 = vld [vmem:[%s31090_s3 + $0x14a0] ss:$12 sps:$4 sm:$0xff]  }
 0x4e9   : > { %5740 = vmatpush1.bf16.msra.mxu0 %v23335_v45  ;;  %v23404_v45 = vld [vmem:[%s31090_s3 + $0x14bc] ss:$12 sps:$4 sm:$0xff]  }
 0x4ea   : > { %7250 = vmatpush1.bf16.msra.mxu1 %v23338_v48  ;;  %5741 = vmatprep.subr.bf16.mxu0 %v23343_v15  ;;  %v23406_v48 = vld [vmem:[%s31090_s3 + $0x1280] ss:$12 sps:$4 sm:$0xff]   ;;  %v23402_v15 = vld [vmem:[%s31090_s3 + $0x14b8] ss:$12 sps:$4 sm:$0xff]  }
 0x4eb   : > { %7251 = vmatprep.subr.bf16.mxu1 %v23346_v50  ;;  %v23410_v50 = vld [vmem:[%s31090_s3 + $0x1358] ss:$12 sps:$4 sm:$0xff]  }
 0x4ed   : > { %5742 = vmatpush1.bf16.msra.mxu0 %v23341_v24  ;;  %v23409_v24 = vld [vmem:[%s31090_s3 + $0x14d4] ss:$12 sps:$4 sm:$0xff]  }
 0x4ee   : > { %7252 = vmatpush1.bf16.msra.mxu1 %v23344_v51  ;;  %5743 = vmatprep.subr.bf16.mxu0 %v23349_v21 }
 0x4ef   : > { %7253 = vmatprep.subr.bf16.mxu1 %v23352_v44  ;;  %v23411_v44 = vld [vmem:[%s31090_s3 + $0x1298] ss:$12 sps:$4 sm:$0xff]  }
 0x4f1   : > { %5744 = vmatpush1.bf16.msra.mxu0 %v23347_v52 }
 0x4f2   : > { %7254 = vmatpush1.bf16.msra.mxu1 %v23350_v34  ;;  %5745 = vmatprep.subr.bf16.mxu0 %v23355_v47  ;;  %v23407_v47 = vld [vmem:[%s31090_s3 + $0x14d0] ss:$12 sps:$4 sm:$0xff]  }
 0x4f3   : > { %7255 = vmatprep.subr.bf16.mxu1 %v23358_v54  ;;  %v23415_v54 = vld [vmem:[%s31090_s3 + $0x1370] ss:$12 sps:$4 sm:$0xff]  }
 0x4f5   : > { %5746 = vmatpush1.bf16.msra.mxu0 %v23353_v55 }
 0x4f6   : > { %7256 = vmatpush1.bf16.msra.mxu1 %v23356_v57  ;;  %5747 = vmatprep.subr.bf16.mxu0 %v23361_v58  ;;  %v23414_v57 = vld [vmem:[%s31090_s3 + $0x14ec] ss:$12 sps:$4 sm:$0xff]   ;;  %v23416_v58 = vld [vmem:[%s31090_s3 + $0x12b0] ss:$12 sps:$4 sm:$0xff]  }
 0x4f7   : > { %7257 = vmatprep.subr.bf16.mxu1 %v23364_v59  ;;  %v23412_v59 = vld [vmem:[%s31090_s3 + $0x14e8] ss:$12 sps:$4 sm:$0xff]  }
 0x4f8   : > { %v4147_v2 = vpop.f32.mrb[24].mxu1 }
 0x4f9   : > { %v4149_v5 = vpop.f32.mrb[25].mxu1  ;;  %5748 = vmatpush1.bf16.msra.mxu0 %v23359_v60  ;;  %v27093_v8 = vpack.c.bf16 %v4147_v2, %v13965_v3  ;;  %v23420_v60 = vld [vmem:[%s31090_s3 + $0x1448] ss:$12 sps:$4 sm:$0xff]   ;;  %v23425_v3 = vld [vmem:[%s31090_s3 + $0x1460] ss:$12 sps:$4 sm:$0xff]  }
 0x4fa   : > { %v4151_v10 = vpop.f32.mrb[26].mxu1  ;;  %7258 = vmatpush1.bf16.msra.mxu1 %v23362_v61  ;;  %5749 = vmatprep.subr.bf16.mxu0 %v23367_v62  ;;  %v27109_v22 = vpack.c.bf16 %v4149_v5, %v13966_v17  ;;  %v23419_v61 = vld [vmem:[%s31090_s3 + $0x1504] ss:$12 sps:$4 sm:$0xff]   ;;  %v23421_v62 = vld [vmem:[%s31090_s3 + $0x1388] ss:$12 sps:$4 sm:$0xff]  }
 0x4fb   : > { %v4152_v14 = vpop.f32.mrb[27].mxu1  ;;  %7259 = vmatprep.subr.bf16.mxu1 %v23370_v1  ;;  %14023 = vrot.lane.b32.xlu1 %v27093_v8, %s24823_s13  ;;  %v23417_v1 = vld [vmem:[%s31090_s3 + $0x1500] ss:$12 sps:$4 sm:$0xff]   ;;  %v23424_v2 = vld [vmem:[%s31090_s3 + $0x151c] ss:$12 sps:$4 sm:$0xff]  }
 0x4fc   : > { %v23426_v5 = vld [vmem:[%s31090_s3 + $0x13a0] ss:$12 sps:$4 sm:$0xff]   ;;  %v23430_v10 = vld [vmem:[%s31090_s3 + $0x1478] ss:$12 sps:$4 sm:$0xff]   ;;  %v23427_v14 = vld [vmem:[%s31090_s3 + $0x1530] ss:$12 sps:$4 sm:$0xff]  }
 0x4fd   : > { %5750 = vmatpush1.bf16.msra.mxu0 %v23365_v6  ;;  %v23422_v6 = vld [vmem:[%s31090_s3 + $0x1518] ss:$12 sps:$4 sm:$0xff]  }
 0x4fe   : > { %7260 = vmatpush1.bf16.msra.mxu1 %v23368_v11  ;;  %5751 = vmatprep.subr.bf16.mxu0 %v23373_v12  ;;  %v23429_v11 = vld [vmem:[%s31090_s3 + $0x1534] ss:$12 sps:$4 sm:$0xff]   ;;  %v23431_v12 = vld [vmem:[%s31090_s3 + $0x13b8] ss:$12 sps:$4 sm:$0xff]  }
 0x4ff   : > { %7261 = vmatprep.subr.bf16.mxu1 %v23376_v16  ;;  %14025 = vrot.lane.b32.xlu1 %v27109_v22, %s24823_s13  ;;  %v23435_v16 = vld [vmem:[%s31090_s3 + $0x1490] ss:$12 sps:$4 sm:$0xff]   ;;  %v23434_v17 = vld [vmem:[%s31090_s3 + $0x154c] ss:$12 sps:$4 sm:$0xff]  }
 0x501   : > { %5752 = vmatpush1.bf16.msra.mxu0 %v23371_v20  ;;  %v23436_v20 = vld [vmem:[%s31090_s3 + $0x13d0] ss:$12 sps:$4 sm:$0xff]  }
 0x502   : > { %7262 = vmatpush1.bf16.msra.mxu1 %v23374_v40  ;;  %21477 = vmatprep.subr.bf16.mxu0 %v23380_v36  ;;  %v23432_v40 = vld [vmem:[%s31090_s3 + $0x1548] ss:$12 sps:$4 sm:$0xff]  }
 0x503   : > { %7263 = vmatprep.subr.bf16.mxu1 %v23379_v49  ;;  %v23440_v36 = vld [vmem:[%s31090_s3 + $0x14a8] ss:$12 sps:$4 sm:$0xff]   ;;  %v23439_v49 = vld [vmem:[%s31090_s3 + $0x1564] ss:$12 sps:$4 sm:$0xff]  }
 0x504   : > { %5754 = vmatmul.mubr.bf16.vlgmr.msra.gmra.mrb[28].mxu0 %v25619_v30 }
 0x505   : > { %21478 = vmatpush3.bf16.msra.mxu0 %v23381_v63  ;;  %7402 = vmatprep.mubr.bf16.mxu0 %v25282_v19  ;;  %v23441_v63 = vld [vmem:[%s31090_s3 + $0x13e8] ss:$12 sps:$4 sm:$0xff]  }
 0x506   : > { %7264 = vmatpush1.bf16.msra.mxu1 %v23377_v0  ;;  %21479 = vmatprep.subr.bf16.mxu0 %v23385_v25  ;;  %v23437_v0 = vld [vmem:[%s31090_s3 + $0x1560] ss:$12 sps:$4 sm:$0xff]  }
 0x507   : > { %7265 = vmatprep.subr.bf16.mxu1 %v23384_v26  ;;  %v23445_v25 = vld [vmem:[%s31090_s3 + $0x14c0] ss:$12 sps:$4 sm:$0xff]   ;;  %v23444_v26 = vld [vmem:[%s31090_s3 + $0x157c] ss:$12 sps:$4 sm:$0xff]  }
 0x509   : > { %21480 = vmatpush3.bf16.msra.mxu0 %v23386_v27  ;;  %v23446_v27 = vld [vmem:[%s31090_s3 + $0x1400] ss:$12 sps:$4 sm:$0xff]  }
 0x50a   : > { %7266 = vmatpush1.bf16.msra.mxu1 %v23382_v28  ;;  %21481 = vmatprep.subr.bf16.mxu0 %v23390_v29  ;;  %v23442_v28 = vld [vmem:[%s31090_s3 + $0x1578] ss:$12 sps:$4 sm:$0xff]  }
 0x50b   : > { %7267 = vmatprep.subr.bf16.mxu1 %v23389_v31  ;;  %v23450_v29 = vld [vmem:[%s31090_s3 + $0x14d8] ss:$12 sps:$4 sm:$0xff]   ;;  %v23449_v31 = vld [vmem:[%s31090_s3 + $0x1594] ss:$12 sps:$4 sm:$0xff]  }
 0x50d   : > { %21482 = vmatpush3.bf16.msra.mxu0 %v23391_v32 }
 0x50e   : > { %7268 = vmatpush1.bf16.msra.mxu1 %v23387_v33  ;;  %21483 = vmatprep.subr.bf16.mxu0 %v23395_v35  ;;  %v23451_v35 = vld [vmem:[%s31090_s3 + $0x1418] ss:$12 sps:$4 sm:$0xff]  }
 0x50f   : > { %7269 = vmatprep.subr.bf16.mxu1 %v23394_v46 }
 0x511   : > { %21484 = vmatpush3.bf16.msra.mxu0 %v23396_v37 }
 0x512   : > { %7270 = vmatpush1.bf16.msra.mxu1 %v23392_v42  ;;  %21485 = vmatprep.subr.bf16.mxu0 %v23400_v13  ;;  %v23447_v42 = vld [vmem:[%s31090_s3 + $0x1590] ss:$12 sps:$4 sm:$0xff]  }
 0x513   : > { %7271 = vmatprep.subr.bf16.mxu1 %v23399_v38  ;;  %v23455_v13 = vld [vmem:[%s31090_s3 + $0x14f0] ss:$12 sps:$4 sm:$0xff]  }
 0x515   : > { %21486 = vmatpush3.bf16.msra.mxu0 %v23401_v39  ;;  %v23454_v39 = vld [vmem:[%s31090_s3 + $0x15ac] ss:$12 sps:$4 sm:$0xff]  }
 0x516   : > { %7272 = vmatpush1.bf16.msra.mxu1 %v23397_v41  ;;  %21487 = vmatprep.subr.bf16.mxu0 %v23405_v43  ;;  %v23456_v43 = vld [vmem:[%s31090_s3 + $0x1430] ss:$12 sps:$4 sm:$0xff]  }
 0x517   : > { %7273 = vmatprep.subr.bf16.mxu1 %v23404_v45  ;;  %v23452_v45 = vld [vmem:[%s31090_s3 + $0x15a8] ss:$12 sps:$4 sm:$0xff]  }
 0x518   : > { %v21405_v51 = vpop.f32.mrb[28].mxu1 }
 0x519   : > { %v21406_v21 = vpop.f32.mrb[29].mxu1  ;;  %21488 = vmatpush3.bf16.msra.mxu0 %v23406_v48  ;;  %v23460_v48 = vld [vmem:[%s31090_s3 + $0x15c8] ss:$12 sps:$4 sm:$0xff]  }
 0x51a   : > { %v27199_v52 = vadd.f32 %v21406_v21, %v21405_v51  ;;  %v21408_v34 = vpop.f32.mrb[30].mxu1  ;;  %7274 = vmatpush1.bf16.msra.mxu1 %v23402_v15  ;;  %21489 = vmatprep.subr.bf16.mxu0 %v23410_v50  ;;  %v23459_v15 = vld [vmem:[%s31090_s3 + $0x15c4] ss:$12 sps:$4 sm:$0xff]   ;;  %v23461_v50 = vld [vmem:[%s31090_s3 + $0x1508] ss:$12 sps:$4 sm:$0xff]  }
 0x51b   : > { %v21409_v55 = vpop.f32.mrb[31].mxu1  ;;  %7275 = vmatprep.subr.bf16.mxu1 %v23409_v24  ;;  %v23457_v24 = vld [vmem:[%s31090_s3 + $0x15c0] ss:$12 sps:$4 sm:$0xff]   ;;  %v23464_v21 = vld [vmem:[%s31090_s3 + $0x15dc] ss:$12 sps:$4 sm:$0xff]  }
 0x51c   : > { %v23465_v51 = vld [vmem:[%s31090_s3 + $0x15e0] ss:$12 sps:$4 sm:$0xff]   ;;  %v23470_v34 = vld [vmem:[%s31090_s3 + $0x15f8] ss:$12 sps:$4 sm:$0xff]   ;;  %v23467_v55 = vld [vmem:[%s31090_s3 + $0x15f0] ss:$12 sps:$4 sm:$0xff]  }
 0x51d   : > { %21490 = vmatpush3.bf16.msra.mxu0 %v23411_v44  ;;  %v23466_v44 = vld [vmem:[%s31090_s3 + $0x1520] ss:$12 sps:$4 sm:$0xff]  }
 0x51e   : > { %7276 = vmatpush1.bf16.msra.mxu1 %v23407_v47  ;;  %21491 = vmatprep.subr.bf16.mxu0 %v23415_v54  ;;  %v23469_v47 = vld [vmem:[%s31090_s3 + $0x15f4] ss:$12 sps:$4 sm:$0xff]   ;;  %v23471_v54 = vld [vmem:[%s31090_s3 + $0x1538] ss:$12 sps:$4 sm:$0xff]  }
 0x51f   : > { %7277 = vmatprep.subr.bf16.mxu1 %v23414_v57  ;;  %v23475_v57 = vld [vmem:[%s31090_s3 + $0x1610] ss:$12 sps:$4 sm:$0xff]  }
 0x521   : > { %21492 = vmatpush3.bf16.msra.mxu0 %v23416_v58  ;;  %v23474_v58 = vld [vmem:[%s31090_s3 + $0x160c] ss:$12 sps:$4 sm:$0xff]  }
 0x522   : > { %7278 = vmatpush1.bf16.msra.mxu1 %v23412_v59  ;;  %21499 = vmatprep.subr.bf16.mxu0 %v23420_v60  ;;  %v23476_v59 = vld [vmem:[%s31090_s3 + $0x1550] ss:$12 sps:$4 sm:$0xff]   ;;  %v23472_v60 = vld [vmem:[%s31090_s3 + $0x1608] ss:$12 sps:$4 sm:$0xff]  }
 0x523   : > { %7288 = vmatprep.subr.bf16.mxu1 %v23419_v61  ;;  %v23480_v61 = vld [vmem:[%s31090_s3 + $0x1628] ss:$12 sps:$4 sm:$0xff]  }
 0x524   : > { %7403 = vmatmul.mubr.bf16.vlgmr.msra.gmra.mrb[32].mxu0 %v25280_v18 }
 0x525   : > { %7280 = vmatmul.mubr.bf16.vlgmr.msra.gmra.mrb[44].mxu1 %v25398_v4  ;;  %21500 = vmatpush3.bf16.msra.mxu0 %v23421_v62  ;;  %v23479_v62 = vld [vmem:[%s31090_s3 + $0x1624] ss:$12 sps:$4 sm:$0xff]  }
 0x526   : > { %7289 = vmatpush1.bf16.msra.mxu1 %v23417_v1  ;;  %7320 = vmatprep.mubr.bf16.mxu1 %v25409_v9  ;;  %v23481_v1 = vld [vmem:[%s31090_s3 + $0x1568] ss:$12 sps:$4 sm:$0xff]  }
 0x527   : > { %7442 = vmatprep.mubr.bf16.mxu0 %v25292_v23  ;;  %7290 = vmatprep.subr.bf16.mxu1 %v23424_v2  ;;  %v23477_v2 = vld [vmem:[%s31090_s3 + $0x1620] ss:$12 sps:$4 sm:$0xff]  }
 0x528   : > { %21501 = vmatprep.subr.bf16.mxu0 %v23425_v3  ;;  %v23485_v3 = vld [vmem:[%s31090_s3 + $0x1640] ss:$12 sps:$4 sm:$0xff]  }
 0x529   : > { %21502 = vmatpush3.bf16.msra.mxu0 %v23426_v5  ;;  %v23484_v5 = vld [vmem:[%s31090_s3 + $0x163c] ss:$12 sps:$4 sm:$0xff]  }
 0x52a   : > { %7291 = vmatpush1.bf16.msra.mxu1 %v23422_v6  ;;  %21503 = vmatprep.subr.bf16.mxu0 %v23430_v10  ;;  %v23486_v6 = vld [vmem:[%s31090_s3 + $0x1580] ss:$12 sps:$4 sm:$0xff]   ;;  %v23482_v10 = vld [vmem:[%s31090_s3 + $0x1638] ss:$12 sps:$4 sm:$0xff]  }
 0x52b   : > { %7292 = vmatprep.subr.bf16.mxu1 %v23429_v11  ;;  %v23490_v11 = vld [vmem:[%s31090_s3 + $0x1658] ss:$12 sps:$4 sm:$0xff]  }
 0x52d   : > { %21504 = vmatpush3.bf16.msra.mxu0 %v23431_v12  ;;  %v23489_v12 = vld [vmem:[%s31090_s3 + $0x1654] ss:$12 sps:$4 sm:$0xff]  }
 0x52e   : > { %7293 = vmatpush1.bf16.msra.mxu1 %v23427_v14  ;;  %21505 = vmatprep.subr.bf16.mxu0 %v23435_v16 }
 0x52f   : > { %7294 = vmatprep.subr.bf16.mxu1 %v23434_v17  ;;  %v23491_v17 = vld [vmem:[%s31090_s3 + $0x1598] ss:$12 sps:$4 sm:$0xff]  }
 0x531   : > { %21506 = vmatpush3.bf16.msra.mxu0 %v23436_v20 }
 0x532   : > { %7295 = vmatpush1.bf16.msra.mxu1 %v23432_v40  ;;  %21507 = vmatprep.subr.bf16.mxu0 %v23440_v36  ;;  %v23487_v36 = vld [vmem:[%s31090_s3 + $0x1650] ss:$12 sps:$4 sm:$0xff]  }
 0x533   : > { %7296 = vmatprep.subr.bf16.mxu1 %v23439_v49  ;;  %v23495_v49 = vld [vmem:[%s31090_s3 + $0x1670] ss:$12 sps:$4 sm:$0xff]  }
 0x535   : > { %21508 = vmatpush3.bf16.msra.mxu0 %v23441_v63 }
 0x536   : > { %7297 = vmatpush1.bf16.msra.mxu1 %v23437_v0  ;;  %21509 = vmatprep.subr.bf16.mxu0 %v23445_v25  ;;  %v23494_v0 = vld [vmem:[%s31090_s3 + $0x166c] ss:$12 sps:$4 sm:$0xff]  }
 0x537   : > { %7298 = vmatprep.subr.bf16.mxu1 %v23444_v26  ;;  %v23496_v26 = vld [vmem:[%s31090_s3 + $0x15b0] ss:$12 sps:$4 sm:$0xff]  }
 0x538   : > { %v21427_v32 = vpop.f32.mrb[32].mxu1 }
 0x539   : > { %v21428_v33 = vpop.f32.mrb[33].mxu1  ;;  %21510 = vmatpush3.bf16.msra.mxu0 %v23446_v27  ;;  %v23492_v27 = vld [vmem:[%s31090_s3 + $0x1668] ss:$12 sps:$4 sm:$0xff]  }
 0x53a   : > { %v21429_v46 = vadd.f32 %v21428_v33, %v21427_v32  ;;  %v21430_v37 = vpop.f32.mrb[34].mxu1  ;;  %7299 = vmatpush1.bf16.msra.mxu1 %v23442_v28  ;;  %21511 = vmatprep.subr.bf16.mxu0 %v23450_v29  ;;  %v23500_v28 = vld [vmem:[%s31090_s3 + $0x1748] ss:$12 sps:$4 sm:$0xff]   ;;  %v23499_v29 = vld [vmem:[%s31090_s3 + $0x1684] ss:$12 sps:$4 sm:$0xff]  }
 0x53b   : > { %v21431_v38 = vpop.f32.mrb[35].mxu1  ;;  %7300 = vmatprep.subr.bf16.mxu1 %v23449_v31  ;;  %v23501_v31 = vld [vmem:[%s31090_s3 + $0x1688] ss:$12 sps:$4 sm:$0xff]   ;;  %v23497_v32 = vld [vmem:[%s31090_s3 + $0x1680] ss:$12 sps:$4 sm:$0xff]  }
 0x53c   : > { %v27311_v41 = vadd.f32 %v21429_v46, %v27199_v52  ;;  %v23462_v52 = vld [vmem:[%s31090_s3 + $0x15d8] ss:$12 sps:$4 sm:$0xff]   ;;  %v23504_v33 = vld [vmem:[%s31090_s3 + $0x169c] ss:$12 sps:$4 sm:$0xff]   ;;  %v23506_v46 = vld [vmem:[%s31090_s3 + $0x16a0] ss:$12 sps:$4 sm:$0xff]  }
 0x53d   : > { %21512 = vmatpush3.bf16.msra.mxu0 %v23451_v35  ;;  %v23505_v35 = vld [vmem:[%s31090_s3 + $0x1760] ss:$12 sps:$4 sm:$0xff]   ;;  %v23502_v37 = vld [vmem:[%s31090_s3 + $0x1698] ss:$12 sps:$4 sm:$0xff]  }
 0x53e   : > { %7301 = vmatpush1.bf16.msra.mxu1 %v23447_v42  ;;  %21513 = vmatprep.subr.bf16.mxu0 %v23455_v13  ;;  %v23510_v42 = vld [vmem:[%s31090_s3 + $0x1778] ss:$12 sps:$4 sm:$0xff]   ;;  %v23509_v13 = vld [vmem:[%s31090_s3 + $0x16b4] ss:$12 sps:$4 sm:$0xff]  }
 0x53f   : > { %7302 = vmatprep.subr.bf16.mxu1 %v23454_v39  ;;  %v23511_v38 = vld [vmem:[%s31090_s3 + $0x16b8] ss:$12 sps:$4 sm:$0xff]   ;;  %v23507_v39 = vld [vmem:[%s31090_s3 + $0x16b0] ss:$12 sps:$4 sm:$0xff]  }
 0x541   : > { %21514 = vmatpush3.bf16.msra.mxu0 %v23456_v43  ;;  %v23514_v43 = vld [vmem:[%s31090_s3 + $0x16cc] ss:$12 sps:$4 sm:$0xff]  }
 0x542   : > { %7303 = vmatpush1.bf16.msra.mxu1 %v23452_v45  ;;  %21521 = vmatprep.subr.bf16.mxu0 %v23460_v48  ;;  %v23516_v45 = vld [vmem:[%s31090_s3 + $0x16d0] ss:$12 sps:$4 sm:$0xff]   ;;  %v23512_v48 = vld [vmem:[%s31090_s3 + $0x16c8] ss:$12 sps:$4 sm:$0xff]  }
 0x543   : > { %7304 = vmatprep.subr.bf16.mxu1 %v23459_v15  ;;  %v23520_v15 = vld [vmem:[%s31090_s3 + $0x17a8] ss:$12 sps:$4 sm:$0xff]  }
 0x544   : > { %7443 = vmatmul.mubr.bf16.vlgmr.msra.gmra.mrb[36].mxu0 %v25398_v4 }
 0x545   : > { %21522 = vmatpush3.bf16.msra.mxu0 %v23461_v50  ;;  %7482 = vmatprep.mubr.bf16.mxu0 %v25409_v9  ;;  %v23519_v50 = vld [vmem:[%s31090_s3 + $0x16e4] ss:$12 sps:$4 sm:$0xff]  }
 0x546   : > { %7305 = vmatpush1.bf16.msra.mxu1 %v23457_v24  ;;  %21523 = vmatprep.subr.bf16.mxu0 %v23465_v51  ;;  %v23521_v24 = vld [vmem:[%s31090_s3 + $0x16e8] ss:$12 sps:$4 sm:$0xff]   ;;  %v23517_v51 = vld [vmem:[%s31090_s3 + $0x16e0] ss:$12 sps:$4 sm:$0xff]  }
 0x547   : > { %7306 = vmatprep.subr.bf16.mxu1 %v23464_v21  ;;  %v23525_v21 = vld [vmem:[%s31090_s3 + $0x17c0] ss:$12 sps:$4 sm:$0xff]  }
 0x549   : > { %21524 = vmatpush3.bf16.msra.mxu0 %v23466_v44  ;;  %v23524_v44 = vld [vmem:[%s31090_s3 + $0x16fc] ss:$12 sps:$4 sm:$0xff]  }
 0x54a   : > { %7307 = vmatpush1.bf16.msra.mxu1 %v23462_v52  ;;  %21525 = vmatprep.subr.bf16.mxu0 %v23470_v34  ;;  %v23526_v52 = vld [vmem:[%s31090_s3 + $0x1700] ss:$12 sps:$4 sm:$0xff]   ;;  %v23522_v34 = vld [vmem:[%s31090_s3 + $0x16f8] ss:$12 sps:$4 sm:$0xff]  }
 0x54b   : > { %7308 = vmatprep.subr.bf16.mxu1 %v23469_v47  ;;  %v23530_v47 = vld [vmem:[%s31090_s3 + $0x17d8] ss:$12 sps:$4 sm:$0xff]  }
 0x54d   : > { %21526 = vmatpush3.bf16.msra.mxu0 %v23471_v54  ;;  %v23529_v54 = vld [vmem:[%s31090_s3 + $0x1714] ss:$12 sps:$4 sm:$0xff]  }
 0x54e   : > { %7309 = vmatpush1.bf16.msra.mxu1 %v23467_v55  ;;  %21527 = vmatprep.subr.bf16.mxu0 %v23475_v57 }
 0x54f   : > { %7310 = vmatprep.subr.bf16.mxu1 %v23474_v58  ;;  %v23531_v58 = vld [vmem:[%s31090_s3 + $0x1718] ss:$12 sps:$4 sm:$0xff]  }
 0x551   : > { %21528 = vmatpush3.bf16.msra.mxu0 %v23476_v59 }
 0x552   : > { %7311 = vmatpush1.bf16.msra.mxu1 %v23472_v60  ;;  %21529 = vmatprep.subr.bf16.mxu0 %v23480_v61  ;;  %v23527_v61 = vld [vmem:[%s31090_s3 + $0x1710] ss:$12 sps:$4 sm:$0xff]  }
 0x553   : > { %7312 = vmatprep.subr.bf16.mxu1 %v23479_v62  ;;  %v23535_v62 = vld [vmem:[%s31090_s3 + $0x17f0] ss:$12 sps:$4 sm:$0xff]  }
 0x555   : > { %21530 = vmatpush3.bf16.msra.mxu0 %v23481_v1 }
 0x556   : > { %7313 = vmatpush1.bf16.msra.mxu1 %v23477_v2  ;;  %21531 = vmatprep.subr.bf16.mxu0 %v23485_v3  ;;  %v23534_v2 = vld [vmem:[%s31090_s3 + $0x172c] ss:$12 sps:$4 sm:$0xff]  }
 0x557   : > { %7314 = vmatprep.subr.bf16.mxu1 %v23484_v5  ;;  %v23536_v5 = vld [vmem:[%s31090_s3 + $0x1730] ss:$12 sps:$4 sm:$0xff]  }
 0x558   : > { %v21449_v14 = vpop.f32.mrb[36].mxu1 }
 0x559   : > { %v21450_v16 = vpop.f32.mrb[37].mxu1  ;;  %21532 = vmatpush3.bf16.msra.mxu0 %v23486_v6  ;;  %v23532_v6 = vld [vmem:[%s31090_s3 + $0x1728] ss:$12 sps:$4 sm:$0xff]  }
 0x55a   : > { %v21451_v20 = vadd.f32 %v21450_v16, %v21449_v14  ;;  %v21452_v40 = vpop.f32.mrb[38].mxu1  ;;  %7315 = vmatpush1.bf16.msra.mxu1 %v23482_v10  ;;  %21533 = vmatprep.subr.bf16.mxu0 %v23490_v11  ;;  %v23542_v10 = vld [vmem:[%s31090_s3 + $0x1804] ss:$12 sps:$4 sm:$0xff]   ;;  %v23537_v14 = vld [vmem:[%s31090_s3 + $0x1740] ss:$12 sps:$4 sm:$0xff]  }
 0x55b   : > { %v21453_v63 = vpop.f32.mrb[39].mxu1  ;;  %7316 = vmatprep.subr.bf16.mxu1 %v23489_v12  ;;  %v23539_v11 = vld [vmem:[%s31090_s3 + $0x1744] ss:$12 sps:$4 sm:$0xff]   ;;  %v23540_v12 = vld [vmem:[%s31090_s3 + $0x1800] ss:$12 sps:$4 sm:$0xff]  }
 0x55c   : > { %v27412_v25 = vadd.f32 %v21451_v20, %v27311_v41  ;;  %v23515_v41 = vld [vmem:[%s31090_s3 + $0x1790] ss:$12 sps:$4 sm:$0xff]   ;;  %v23546_v20 = vld [vmem:[%s31090_s3 + $0x1818] ss:$12 sps:$4 sm:$0xff]  }
 0x55d   : > { %21534 = vmatpush3.bf16.msra.mxu0 %v23491_v17  ;;  %v23548_v16 = vld [vmem:[%s31090_s3 + $0x181c] ss:$12 sps:$4 sm:$0xff]   ;;  %v23543_v40 = vld [vmem:[%s31090_s3 + $0x1758] ss:$12 sps:$4 sm:$0xff]  }
 0x55e   : > { %7317 = vmatpush1.bf16.msra.mxu1 %v23487_v36  ;;  %21535 = vmatprep.subr.bf16.mxu0 %v23495_v49  ;;  %v23545_v17 = vld [vmem:[%s31090_s3 + $0x175c] ss:$12 sps:$4 sm:$0xff]   ;;  %v23554_v36 = vld [vmem:[%s31090_s3 + $0x1834] ss:$12 sps:$4 sm:$0xff]  }
 0x55f   : > { %7318 = vmatprep.subr.bf16.mxu1 %v23494_v0  ;;  %v23551_v49 = vld [vmem:[%s31090_s3 + $0x1774] ss:$12 sps:$4 sm:$0xff]   ;;  %v23552_v63 = vld [vmem:[%s31090_s3 + $0x1830] ss:$12 sps:$4 sm:$0xff]  }
 0x560   : > { %v23549_v0 = vld [vmem:[%s31090_s3 + $0x1770] ss:$12 sps:$4 sm:$0xff]  }
 0x561   : > { %21536 = vmatpush3.bf16.msra.mxu0 %v23496_v26  ;;  %v23557_v26 = vld [vmem:[%s31090_s3 + $0x178c] ss:$12 sps:$4 sm:$0xff]  }
 0x562   : > { %7319 = vmatpush1.bf16.msra.mxu1 %v23492_v27  ;;  %21543 = vmatprep.subr.bf16.mxu0 %v23500_v28  ;;  %v23558_v27 = vld [vmem:[%s31090_s3 + $0x1848] ss:$12 sps:$4 sm:$0xff]  }
 0x563   : > { %7329 = vmatprep.subr.bf16.mxu1 %v23499_v29  ;;  %v23555_v28 = vld [vmem:[%s31090_s3 + $0x1788] ss:$12 sps:$4 sm:$0xff]   ;;  %v23566_v29 = vld [vmem:[%s31090_s3 + $0x1864] ss:$12 sps:$4 sm:$0xff]  }
 0x564   : > { %7483 = vmatmul.mubr.bf16.vlgmr.msra.gmra.mrb[40].mxu0 %v25510_v53 }
 0x565   : > { %7321 = vmatmul.mubr.bf16.vlgmr.msra.gmra.mrb[44].mxu1 %v25510_v53  ;;  %21544 = vmatpush3.bf16.msra.mxu0 %v23501_v31  ;;  %v23563_v31 = vld [vmem:[%s31090_s3 + $0x17a4] ss:$12 sps:$4 sm:$0xff]  }
 0x566   : > { %7330 = vmatpush1.bf16.msra.mxu1 %v23497_v32  ;;  %7361 = vmatprep.mubr.bf16.mxu1 %v25518_v56  ;;  %v23564_v32 = vld [vmem:[%s31090_s3 + $0x1860] ss:$12 sps:$4 sm:$0xff]  }
 0x567   : > { %7522 = vmatprep.mubr.bf16.mxu0 %v25518_v56  ;;  %7331 = vmatprep.subr.bf16.mxu1 %v23504_v33  ;;  %v23561_v33 = vld [vmem:[%s31090_s3 + $0x17a0] ss:$12 sps:$4 sm:$0xff]  }
 0x568   : > { %21545 = vmatprep.subr.bf16.mxu0 %v23505_v35  ;;  %v23572_v35 = vld [vmem:[%s31090_s3 + $0x187c] ss:$12 sps:$4 sm:$0xff]  }
 0x569   : > { %21546 = vmatpush3.bf16.msra.mxu0 %v23506_v46  ;;  %v23569_v46 = vld [vmem:[%s31090_s3 + $0x17bc] ss:$12 sps:$4 sm:$0xff]  }
 0x56a   : > { %7332 = vmatpush1.bf16.msra.mxu1 %v23502_v37  ;;  %21547 = vmatprep.subr.bf16.mxu0 %v23510_v42  ;;  %v23570_v37 = vld [vmem:[%s31090_s3 + $0x1878] ss:$12 sps:$4 sm:$0xff]  }
 0x56b   : > { %7333 = vmatprep.subr.bf16.mxu1 %v23509_v13  ;;  %v23567_v42 = vld [vmem:[%s31090_s3 + $0x17b8] ss:$12 sps:$4 sm:$0xff]   ;;  %v23578_v13 = vld [vmem:[%s31090_s3 + $0x1894] ss:$12 sps:$4 sm:$0xff]  }
 0x56d   : > { %21548 = vmatpush3.bf16.msra.mxu0 %v23511_v38  ;;  %v23575_v38 = vld [vmem:[%s31090_s3 + $0x17d4] ss:$12 sps:$4 sm:$0xff]  }
 0x56e   : > { %7334 = vmatpush1.bf16.msra.mxu1 %v23507_v39  ;;  %21549 = vmatprep.subr.bf16.mxu0 %v23515_v41  ;;  %v23576_v39 = vld [vmem:[%s31090_s3 + $0x1890] ss:$12 sps:$4 sm:$0xff]  }
 0x56f   : > { %7335 = vmatprep.subr.bf16.mxu1 %v23514_v43  ;;  %v23573_v41 = vld [vmem:[%s31090_s3 + $0x17d0] ss:$12 sps:$4 sm:$0xff]   ;;  %v23584_v43 = vld [vmem:[%s31090_s3 + $0x18ac] ss:$12 sps:$4 sm:$0xff]  }
 0x571   : > { %21550 = vmatpush3.bf16.msra.mxu0 %v23516_v45  ;;  %v23581_v45 = vld [vmem:[%s31090_s3 + $0x17ec] ss:$12 sps:$4 sm:$0xff]  }
 0x572   : > { %7336 = vmatpush1.bf16.msra.mxu1 %v23512_v48  ;;  %21551 = vmatprep.subr.bf16.mxu0 %v23520_v15  ;;  %v23582_v48 = vld [vmem:[%s31090_s3 + $0x18a8] ss:$12 sps:$4 sm:$0xff]  }
 0x573   : > { %7337 = vmatprep.subr.bf16.mxu1 %v23519_v50  ;;  %v23579_v15 = vld [vmem:[%s31090_s3 + $0x17e8] ss:$12 sps:$4 sm:$0xff]   ;;  %v23587_v50 = vld [vmem:[%s31090_s3 + $0x18c4] ss:$12 sps:$4 sm:$0xff]  }
 0x575   : > { %21552 = vmatpush3.bf16.msra.mxu0 %v23521_v24  ;;  %v23588_v24 = vld [vmem:[%s31090_s3 + $0x18c8] ss:$12 sps:$4 sm:$0xff]  }
 0x576   : > { %7338 = vmatpush1.bf16.msra.mxu1 %v23517_v51  ;;  %21553 = vmatprep.subr.bf16.mxu0 %v23525_v21  ;;  %v23585_v51 = vld [vmem:[%s31090_s3 + $0x18c0] ss:$12 sps:$4 sm:$0xff]   ;;  %v23589_v21 = vld [vmem:[%s31090_s3 + $0x1808] ss:$12 sps:$4 sm:$0xff]  }
 0x577   : > { %7339 = vmatprep.subr.bf16.mxu1 %v23524_v44  ;;  %v23592_v44 = vld [vmem:[%s31090_s3 + $0x18dc] ss:$12 sps:$4 sm:$0xff]  }
 0x578   : > { %v21471_v55 = vpop.f32.mrb[40].mxu1 }
 0x579   : > { %v21472_v57 = vpop.f32.mrb[41].mxu1  ;;  %21554 = vmatpush3.bf16.msra.mxu0 %v23526_v52  ;;  %v23593_v52 = vld [vmem:[%s31090_s3 + $0x18e0] ss:$12 sps:$4 sm:$0xff]  }
 0x57a   : > { %v21473_v59 = vadd.f32 %v21472_v57, %v21471_v55  ;;  %v21474_v60 = vpop.f32.mrb[42].mxu1  ;;  %7340 = vmatpush1.bf16.msra.mxu1 %v23522_v34  ;;  %21555 = vmatprep.subr.bf16.mxu0 %v23530_v47  ;;  %v23590_v34 = vld [vmem:[%s31090_s3 + $0x18d8] ss:$12 sps:$4 sm:$0xff]   ;;  %v23594_v47 = vld [vmem:[%s31090_s3 + $0x1820] ss:$12 sps:$4 sm:$0xff]  }
 0x57b   : > { %v21475_v1 = vpop.f32.mrb[43].mxu1  ;;  %7341 = vmatprep.subr.bf16.mxu1 %v23529_v54  ;;  %v23597_v54 = vld [vmem:[%s31090_s3 + $0x18f4] ss:$12 sps:$4 sm:$0xff]   ;;  %v23598_v55 = vld [vmem:[%s31090_s3 + $0x18f8] ss:$12 sps:$4 sm:$0xff]  }
 0x57c   : > { %v5917_v3 = vadd.f32 %v21473_v59, %v27412_v25  ;;  %v23560_v25 = vld [vmem:[%s31090_s3 + $0x184c] ss:$12 sps:$4 sm:$0xff]   ;;  %v23595_v57 = vld [vmem:[%s31090_s3 + $0x18f0] ss:$12 sps:$4 sm:$0xff]  }
 0x57d   : > { %21556 = vmatpush3.bf16.msra.mxu0 %v23531_v58  ;;  %v23599_v58 = vld [vmem:[%s31090_s3 + $0x1838] ss:$12 sps:$4 sm:$0xff]   ;;  %v23603_v60 = vld [vmem:[%s31090_s3 + $0x1910] ss:$12 sps:$4 sm:$0xff]  }
 0x57e   : > { %5924 = vst.msk [vmem:[#allocation2 + $0x40] sm:$0xff] %vm2707_vm11, %v5917_v3  ;;  %7342 = vmatpush1.bf16.msra.mxu1 %v23527_v61  ;;  %21557 = vmatprep.subr.bf16.mxu0 %v23535_v62  ;;  %v23602_v59 = vld [vmem:[%s31090_s3 + $0x190c] ss:$12 sps:$4 sm:$0xff]   ;;  %v23600_v61 = vld [vmem:[%s31090_s3 + $0x1908] ss:$12 sps:$4 sm:$0xff]  }
 0x57f   : > { %7343 = vmatprep.subr.bf16.mxu1 %v23534_v2  ;;  %v23604_v62 = vld [vmem:[%s31090_s3 + $0x1850] ss:$12 sps:$4 sm:$0xff]   ;;  %v23608_v2 = vld [vmem:[%s31090_s3 + $0x1928] ss:$12 sps:$4 sm:$0xff]   ;;  %v23605_v3 = vld [vmem:[%s31090_s3 + $0x1920] ss:$12 sps:$4 sm:$0xff]  }
 0x580   : > { %v23607_v1 = vld [vmem:[%s31090_s3 + $0x1924] ss:$12 sps:$4 sm:$0xff]  }
 0x581   : > { %21558 = vmatpush3.bf16.msra.mxu0 %v23536_v5  ;;  %v23609_v5 = vld [vmem:[%s31090_s3 + $0x1868] ss:$12 sps:$4 sm:$0xff]  }
 0x582   : > { %7344 = vmatpush1.bf16.msra.mxu1 %v23532_v6  ;;  %8814 = vmatprep.subr.bf16.mxu0 %v23542_v10  ;;  %v23612_v6 = vld [vmem:[%s31090_s3 + $0x193c] ss:$12 sps:$4 sm:$0xff]   ;;  %v23613_v10 = vld [vmem:[%s31090_s3 + $0x1940] ss:$12 sps:$4 sm:$0xff]  }
 0x583   : > { %7345 = vmatprep.subr.bf16.mxu1 %v23539_v11  ;;  %v23610_v11 = vld [vmem:[%s31090_s3 + $0x1938] ss:$12 sps:$4 sm:$0xff]  }
 0x584   : > { %7523 = vmatmul.mubr.bf16.vlgmr.msra.gmra.mrb[44].mxu0 %v25619_v30 }
 0x585   : > { %8815 = vmatpush1.bf16.msra.mxu0 %v23540_v12  ;;  %8846 = vmatprep.mubr.bf16.mxu0 %v25282_v19  ;;  %v23614_v12 = vld [vmem:[%s31090_s3 + $0x1880] ss:$12 sps:$4 sm:$0xff]  }
 0x586   : > { %7346 = vmatpush1.bf16.msra.mxu1 %v23537_v14  ;;  %8816 = vmatprep.subr.bf16.mxu0 %v23548_v16  ;;  %v23617_v14 = vld [vmem:[%s31090_s3 + $0x1954] ss:$12 sps:$4 sm:$0xff]   ;;  %v23618_v16 = vld [vmem:[%s31090_s3 + $0x1958] ss:$12 sps:$4 sm:$0xff]  }
 0x587   : > { %7347 = vmatprep.subr.bf16.mxu1 %v23545_v17  ;;  %v23615_v17 = vld [vmem:[%s31090_s3 + $0x1950] ss:$12 sps:$4 sm:$0xff]  }
 0x589   : > { %8817 = vmatpush1.bf16.msra.mxu0 %v23546_v20  ;;  %v23619_v20 = vld [vmem:[%s31090_s3 + $0x1898] ss:$12 sps:$4 sm:$0xff]  }
 0x58a   : > { %7348 = vmatpush1.bf16.msra.mxu1 %v23543_v40  ;;  %8818 = vmatprep.subr.bf16.mxu0 %v23554_v36  ;;  %v23622_v40 = vld [vmem:[%s31090_s3 + $0x196c] ss:$12 sps:$4 sm:$0xff]   ;;  %v23623_v36 = vld [vmem:[%s31090_s3 + $0x1970] ss:$12 sps:$4 sm:$0xff]  }
 0x58b   : > { %7349 = vmatprep.subr.bf16.mxu1 %v23551_v49  ;;  %v23620_v49 = vld [vmem:[%s31090_s3 + $0x1968] ss:$12 sps:$4 sm:$0xff]  }
 0x58d   : > { %8819 = vmatpush1.bf16.msra.mxu0 %v23552_v63  ;;  %v23624_v63 = vld [vmem:[%s31090_s3 + $0x18b0] ss:$12 sps:$4 sm:$0xff]  }
 0x58e   : > { %7350 = vmatpush1.bf16.msra.mxu1 %v23549_v0  ;;  %8820 = vmatprep.subr.bf16.mxu0 %v23560_v25  ;;  %v23627_v0 = vld [vmem:[%s31090_s3 + $0x1984] ss:$12 sps:$4 sm:$0xff]   ;;  %v23628_v25 = vld [vmem:[%s31090_s3 + $0x1a48] ss:$12 sps:$4 sm:$0xff]  }
 0x58f   : > { %7351 = vmatprep.subr.bf16.mxu1 %v23557_v26  ;;  %v23625_v26 = vld [vmem:[%s31090_s3 + $0x1980] ss:$12 sps:$4 sm:$0xff]  }
 0x591   : > { %8821 = vmatpush1.bf16.msra.mxu0 %v23558_v27  ;;  %v23629_v27 = vld [vmem:[%s31090_s3 + $0x1988] ss:$12 sps:$4 sm:$0xff]  }
 0x592   : > { %7352 = vmatpush1.bf16.msra.mxu1 %v23555_v28  ;;  %8822 = vmatprep.subr.bf16.mxu0 %v23566_v29  ;;  %v23632_v28 = vld [vmem:[%s31090_s3 + $0x199c] ss:$12 sps:$4 sm:$0xff]   ;;  %v23633_v29 = vld [vmem:[%s31090_s3 + $0x1a60] ss:$12 sps:$4 sm:$0xff]  }
 0x593   : > { %7353 = vmatprep.subr.bf16.mxu1 %v23563_v31  ;;  %v23630_v31 = vld [vmem:[%s31090_s3 + $0x1998] ss:$12 sps:$4 sm:$0xff]  }
 0x595   : > { %8823 = vmatpush1.bf16.msra.mxu0 %v23564_v32  ;;  %v23634_v32 = vld [vmem:[%s31090_s3 + $0x19a0] ss:$12 sps:$4 sm:$0xff]  }
 0x596   : > { %7354 = vmatpush1.bf16.msra.mxu1 %v23561_v33  ;;  %8824 = vmatprep.subr.bf16.mxu0 %v23572_v35  ;;  %v23637_v33 = vld [vmem:[%s31090_s3 + $0x19b4] ss:$12 sps:$4 sm:$0xff]   ;;  %v23638_v35 = vld [vmem:[%s31090_s3 + $0x1a78] ss:$12 sps:$4 sm:$0xff]  }
 0x597   : > { %7355 = vmatprep.subr.bf16.mxu1 %v23569_v46  ;;  %v23635_v46 = vld [vmem:[%s31090_s3 + $0x19b0] ss:$12 sps:$4 sm:$0xff]  }
 0x599   : > { %8825 = vmatpush1.bf16.msra.mxu0 %v23570_v37  ;;  %v23639_v37 = vld [vmem:[%s31090_s3 + $0x19b8] ss:$12 sps:$4 sm:$0xff]  }
 0x59a   : > { %7356 = vmatpush1.bf16.msra.mxu1 %v23567_v42  ;;  %8826 = vmatprep.subr.bf16.mxu0 %v23578_v13  ;;  %v23642_v42 = vld [vmem:[%s31090_s3 + $0x19cc] ss:$12 sps:$4 sm:$0xff]   ;;  %v23643_v13 = vld [vmem:[%s31090_s3 + $0x1a90] ss:$12 sps:$4 sm:$0xff]  }
 0x59b   : > { %7357 = vmatprep.subr.bf16.mxu1 %v23575_v38  ;;  %v23640_v38 = vld [vmem:[%s31090_s3 + $0x19c8] ss:$12 sps:$4 sm:$0xff]  }
 0x59d   : > { %8827 = vmatpush1.bf16.msra.mxu0 %v23576_v39  ;;  %v23644_v39 = vld [vmem:[%s31090_s3 + $0x19d0] ss:$12 sps:$4 sm:$0xff]  }
 0x59e   : > { %7358 = vmatpush1.bf16.msra.mxu1 %v23573_v41  ;;  %8828 = vmatprep.subr.bf16.mxu0 %v23584_v43  ;;  %v23647_v41 = vld [vmem:[%s31090_s3 + $0x19e4] ss:$12 sps:$4 sm:$0xff]   ;;  %v23648_v43 = vld [vmem:[%s31090_s3 + $0x1aa8] ss:$12 sps:$4 sm:$0xff]  }
 0x59f   : > { %7359 = vmatprep.subr.bf16.mxu1 %v23581_v45  ;;  %v23645_v45 = vld [vmem:[%s31090_s3 + $0x19e0] ss:$12 sps:$4 sm:$0xff]  }
 0x5a1   : > { %8829 = vmatpush1.bf16.msra.mxu0 %v23582_v48  ;;  %v23649_v48 = vld [vmem:[%s31090_s3 + $0x19e8] ss:$12 sps:$4 sm:$0xff]  }
 0x5a2   : > { %7360 = vmatpush1.bf16.msra.mxu1 %v23579_v15  ;;  %8830 = vmatprep.subr.bf16.mxu0 %v23587_v50  ;;  %v23652_v15 = vld [vmem:[%s31090_s3 + $0x19fc] ss:$12 sps:$4 sm:$0xff]   ;;  %v23653_v50 = vld [vmem:[%s31090_s3 + $0x1ac0] ss:$12 sps:$4 sm:$0xff]  }
 0x5a3   : > { %21565 = vmatprep.subr.bf16.mxu1 %v23588_v24  ;;  %v23650_v24 = vld [vmem:[%s31090_s3 + $0x19f8] ss:$12 sps:$4 sm:$0xff]  }
 0x5a5   : > { %7362 = vmatmul.mubr.bf16.vlgmr.msra.gmra.mrb[44].mxu1 %v25619_v30  ;;  %8831 = vmatpush1.bf16.msra.mxu0 %v23585_v51  ;;  %v23654_v51 = vld [vmem:[%s31090_s3 + $0x1a00] ss:$12 sps:$4 sm:$0xff]  }
 0x5a6   : > { %21566 = vmatpush3.bf16.msra.mxu1 %v23589_v21  ;;  %9010 = vmatprep.mubr.bf16.mxu1 %v25282_v19  ;;  %v23657_v21 = vld [vmem:[%s31090_s3 + $0x1a14] ss:$12 sps:$4 sm:$0xff]  }
 0x5a7   : > { %8832 = vmatprep.subr.bf16.mxu0 %v23592_v44  ;;  %21567 = vmatprep.subr.bf16.mxu1 %v23593_v52  ;;  %v23658_v52 = vld [vmem:[%s31090_s3 + $0x1ad8] ss:$12 sps:$4 sm:$0xff]  }
 0x5a9   : > { %8833 = vmatpush1.bf16.msra.mxu0 %v23590_v34 }
 0x5aa   : > { %21568 = vmatpush3.bf16.msra.mxu1 %v23594_v47  ;;  %8834 = vmatprep.subr.bf16.mxu0 %v23597_v54  ;;  %v23655_v54 = vld [vmem:[%s31090_s3 + $0x1a10] ss:$12 sps:$4 sm:$0xff]  }
 0x5ab   : > { %21569 = vmatprep.subr.bf16.mxu1 %v23598_v55 }
 0x5ad   : > { %8835 = vmatpush1.bf16.msra.mxu0 %v23595_v57  ;;  %v23659_v57 = vld [vmem:[%s31090_s3 + $0x1a18] ss:$12 sps:$4 sm:$0xff]  }
 0x5ae   : > { %21570 = vmatpush3.bf16.msra.mxu1 %v23599_v58  ;;  %8836 = vmatprep.subr.bf16.mxu0 %v23602_v59  ;;  %v23662_v58 = vld [vmem:[%s31090_s3 + $0x1a2c] ss:$12 sps:$4 sm:$0xff]   ;;  %v23663_v59 = vld [vmem:[%s31090_s3 + $0x1af0] ss:$12 sps:$4 sm:$0xff]  }
 0x5af   : > { %21571 = vmatprep.subr.bf16.mxu1 %v23603_v60  ;;  %v23660_v60 = vld [vmem:[%s31090_s3 + $0x1a28] ss:$12 sps:$4 sm:$0xff]  }
 0x5b1   : > { %8837 = vmatpush1.bf16.msra.mxu0 %v23600_v61  ;;  %v23664_v61 = vld [vmem:[%s31090_s3 + $0x1a30] ss:$12 sps:$4 sm:$0xff]  }
 0x5b2   : > { %21572 = vmatpush3.bf16.msra.mxu1 %v23604_v62  ;;  %8838 = vmatprep.subr.bf16.mxu0 %v23607_v1  ;;  %v23667_v62 = vld [vmem:[%s31090_s3 + $0x1a44] ss:$12 sps:$4 sm:$0xff]   ;;  %v23668_v1 = vld [vmem:[%s31090_s3 + $0x1bc8] ss:$12 sps:$4 sm:$0xff]  }
 0x5b3   : > { %21573 = vmatprep.subr.bf16.mxu1 %v23608_v2  ;;  %v23665_v2 = vld [vmem:[%s31090_s3 + $0x1a40] ss:$12 sps:$4 sm:$0xff]  }
 0x5b5   : > { %8839 = vmatpush1.bf16.msra.mxu0 %v23605_v3  ;;  %v23669_v3 = vld [vmem:[%s31090_s3 + $0x1b08] ss:$12 sps:$4 sm:$0xff]  }
 0x5b6   : > { %21574 = vmatpush3.bf16.msra.mxu1 %v23609_v5  ;;  %8840 = vmatprep.subr.bf16.mxu0 %v23612_v6  ;;  %v23672_v5 = vld [vmem:[%s31090_s3 + $0x1a5c] ss:$12 sps:$4 sm:$0xff]   ;;  %v23673_v6 = vld [vmem:[%s31090_s3 + $0x1be0] ss:$12 sps:$4 sm:$0xff]  }
 0x5b7   : > { %21575 = vmatprep.subr.bf16.mxu1 %v23613_v10  ;;  %v23670_v10 = vld [vmem:[%s31090_s3 + $0x1a58] ss:$12 sps:$4 sm:$0xff]  }
 0x5b9   : > { %8841 = vmatpush1.bf16.msra.mxu0 %v23610_v11  ;;  %v23674_v11 = vld [vmem:[%s31090_s3 + $0x1b20] ss:$12 sps:$4 sm:$0xff]  }
 0x5ba   : > { %21576 = vmatpush3.bf16.msra.mxu1 %v23614_v12  ;;  %8842 = vmatprep.subr.bf16.mxu0 %v23617_v14  ;;  %v23677_v12 = vld [vmem:[%s31090_s3 + $0x1a74] ss:$12 sps:$4 sm:$0xff]   ;;  %v23678_v14 = vld [vmem:[%s31090_s3 + $0x1bf8] ss:$12 sps:$4 sm:$0xff]  }
 0x5bb   : > { %21577 = vmatprep.subr.bf16.mxu1 %v23618_v16  ;;  %v23675_v16 = vld [vmem:[%s31090_s3 + $0x1a70] ss:$12 sps:$4 sm:$0xff]  }
 0x5bd   : > { %8843 = vmatpush1.bf16.msra.mxu0 %v23615_v17  ;;  %v23679_v17 = vld [vmem:[%s31090_s3 + $0x1b38] ss:$12 sps:$4 sm:$0xff]  }
 0x5be   : > { %21578 = vmatpush3.bf16.msra.mxu1 %v23619_v20  ;;  %8844 = vmatprep.subr.bf16.mxu0 %v23622_v40  ;;  %v23682_v20 = vld [vmem:[%s31090_s3 + $0x1a8c] ss:$12 sps:$4 sm:$0xff]   ;;  %v23683_v40 = vld [vmem:[%s31090_s3 + $0x1c10] ss:$12 sps:$4 sm:$0xff]  }
 0x5bf   : > { %21579 = vmatprep.subr.bf16.mxu1 %v23623_v36  ;;  %v23680_v36 = vld [vmem:[%s31090_s3 + $0x1a88] ss:$12 sps:$4 sm:$0xff]  }
 0x5c1   : > { %8845 = vmatpush1.bf16.msra.mxu0 %v23620_v49  ;;  %v23684_v49 = vld [vmem:[%s31090_s3 + $0x1b50] ss:$12 sps:$4 sm:$0xff]  }
 0x5c2   : > { %21580 = vmatpush3.bf16.msra.mxu1 %v23624_v63  ;;  %8855 = vmatprep.subr.bf16.mxu0 %v23627_v0  ;;  %v23687_v63 = vld [vmem:[%s31090_s3 + $0x1aa4] ss:$12 sps:$4 sm:$0xff]   ;;  %v23688_v0 = vld [vmem:[%s31090_s3 + $0x1c28] ss:$12 sps:$4 sm:$0xff]  }
 0x5c3   : > { %21587 = vmatprep.subr.bf16.mxu1 %v23628_v25  ;;  %v23685_v25 = vld [vmem:[%s31090_s3 + $0x1aa0] ss:$12 sps:$4 sm:$0xff]  }
 0x5c4   : > { %8847 = vmatmul.mubr.bf16.vlgmr.msra.gmra.mrb[48].mxu0 %v25280_v18 }
 0x5c5   : > { %9011 = vmatmul.mubr.bf16.vlgmr.msra.gmra.mrb[48].mxu1 %v25280_v18  ;;  %8856 = vmatpush1.bf16.msra.mxu0 %v23625_v26  ;;  %v23689_v26 = vld [vmem:[%s31090_s3 + $0x1b68] ss:$12 sps:$4 sm:$0xff]  }
 0x5c6   : > { %8887 = vmatprep.mubr.bf16.mxu0 %v25292_v23  ;;  %21588 = vmatpush3.bf16.msra.mxu1 %v23629_v27  ;;  %v23692_v27 = vld [vmem:[%s31090_s3 + $0x1abc] ss:$12 sps:$4 sm:$0xff]  }
 0x5c7   : > { %9050 = vmatprep.mubr.bf16.mxu1 %v25292_v23  ;;  %8857 = vmatprep.subr.bf16.mxu0 %v23632_v28  ;;  %v23693_v28 = vld [vmem:[%s31090_s3 + $0x1c40] ss:$12 sps:$4 sm:$0xff]  }
 0x5c8   : > { %21589 = vmatprep.subr.bf16.mxu1 %v23633_v29  ;;  %v23690_v29 = vld [vmem:[%s31090_s3 + $0x1ab8] ss:$12 sps:$4 sm:$0xff]  }
 0x5c9   : > { %8858 = vmatpush1.bf16.msra.mxu0 %v23630_v31  ;;  %v23694_v31 = vld [vmem:[%s31090_s3 + $0x1b80] ss:$12 sps:$4 sm:$0xff]  }
 0x5ca   : > { %21590 = vmatpush3.bf16.msra.mxu1 %v23634_v32  ;;  %8859 = vmatprep.subr.bf16.mxu0 %v23637_v33  ;;  %v23697_v32 = vld [vmem:[%s31090_s3 + $0x1ad4] ss:$12 sps:$4 sm:$0xff]  }
 0x5cb   : > { %21591 = vmatprep.subr.bf16.mxu1 %v23638_v35  ;;  %v23698_v35 = vld [vmem:[%s31090_s3 + $0x1c58] ss:$12 sps:$4 sm:$0xff]  }
 0x5cd   : > { %8860 = vmatpush1.bf16.msra.mxu0 %v23635_v46 }
 0x5ce   : > { %21592 = vmatpush3.bf16.msra.mxu1 %v23639_v37  ;;  %8861 = vmatprep.subr.bf16.mxu0 %v23642_v42 }
 0x5cf   : > { %21593 = vmatprep.subr.bf16.mxu1 %v23643_v13  ;;  %v23695_v13 = vld [vmem:[%s31090_s3 + $0x1ad0] ss:$12 sps:$4 sm:$0xff]  }
 0x5d1   : > { %8862 = vmatpush1.bf16.msra.mxu0 %v23640_v38 }
 0x5d2   : > { %21594 = vmatpush3.bf16.msra.mxu1 %v23644_v39  ;;  %8863 = vmatprep.subr.bf16.mxu0 %v23647_v41  ;;  %v23699_v39 = vld [vmem:[%s31090_s3 + $0x1b98] ss:$12 sps:$4 sm:$0xff]  }
 0x5d3   : > { %21595 = vmatprep.subr.bf16.mxu1 %v23648_v43  ;;  %v23702_v41 = vld [vmem:[%s31090_s3 + $0x1aec] ss:$12 sps:$4 sm:$0xff]   ;;  %v23703_v43 = vld [vmem:[%s31090_s3 + $0x1c70] ss:$12 sps:$4 sm:$0xff]  }
 0x5d5   : > { %8864 = vmatpush1.bf16.msra.mxu0 %v23645_v45  ;;  %v23700_v45 = vld [vmem:[%s31090_s3 + $0x1ae8] ss:$12 sps:$4 sm:$0xff]  }
 0x5d6   : > { %21596 = vmatpush3.bf16.msra.mxu1 %v23649_v48  ;;  %8865 = vmatprep.subr.bf16.mxu0 %v23652_v15  ;;  %v23704_v48 = vld [vmem:[%s31090_s3 + $0x1bb0] ss:$12 sps:$4 sm:$0xff]  }
 0x5d7   : > { %v5755_v44 = vpop.f32.mrb[28].mxu0  ;;  %21597 = vmatprep.subr.bf16.mxu1 %v23653_v50  ;;  %v23707_v15 = vld [vmem:[%s31090_s3 + $0x1b04] ss:$12 sps:$4 sm:$0xff]   ;;  %v23708_v50 = vld [vmem:[%s31090_s3 + $0x1d48] ss:$12 sps:$4 sm:$0xff]  }
 0x5d8   : > { %5922 = vst [vmem:[#allocation2 + $0x30] sm:$0xff] %v5755_v44  ;;  %v5757_v34 = vpop.f32.mrb[29].mxu0  ;;  %v23713_v44 = vld [vmem:[%s31090_s3 + $0x1d60] ss:$12 sps:$4 sm:$0xff]  }
 0x5d9   : > { %5923 = vst [vmem:[#allocation2 + $0x38] sm:$0xff] %v5757_v34  ;;  %v5759_v47 = vpop.f32.mrb[30].mxu0  ;;  %8866 = vmatpush1.bf16.msra.mxu0 %v23650_v24  ;;  %v23705_v24 = vld [vmem:[%s31090_s3 + $0x1b00] ss:$12 sps:$4 sm:$0xff]  }
 0x5da   : > { %21598 = vmatpush3.bf16.msra.mxu1 %v23654_v51  ;;  %v5760_v55 = vpop.f32.mrb[31].mxu0  ;;  %8867 = vmatprep.subr.bf16.mxu0 %v23657_v21  ;;  %v23709_v51 = vld [vmem:[%s31090_s3 + $0x1c88] ss:$12 sps:$4 sm:$0xff]   ;;  %v23714_v34 = vld [vmem:[%s31090_s3 + $0x1ca0] ss:$12 sps:$4 sm:$0xff]  }
 0x5db   : > { %21599 = vmatprep.subr.bf16.mxu1 %v23658_v52  ;;  %v23712_v21 = vld [vmem:[%s31090_s3 + $0x1b1c] ss:$12 sps:$4 sm:$0xff]   ;;  %v23710_v52 = vld [vmem:[%s31090_s3 + $0x1b18] ss:$12 sps:$4 sm:$0xff]   ;;  %v23717_v47 = vld [vmem:[%s31090_s3 + $0x1b34] ss:$12 sps:$4 sm:$0xff]  }
 0x5dc   : > { %v23715_v55 = vld [vmem:[%s31090_s3 + $0x1b30] ss:$12 sps:$4 sm:$0xff]  }
 0x5dd   : > { %8868 = vmatpush1.bf16.msra.mxu0 %v23655_v54  ;;  %v23718_v54 = vld [vmem:[%s31090_s3 + $0x1d78] ss:$12 sps:$4 sm:$0xff]  }
 0x5de   : > { %21600 = vmatpush3.bf16.msra.mxu1 %v23659_v57  ;;  %8869 = vmatprep.subr.bf16.mxu0 %v23662_v58  ;;  %v23719_v57 = vld [vmem:[%s31090_s3 + $0x1cb8] ss:$12 sps:$4 sm:$0xff]  }
 0x5df   : > { %21601 = vmatprep.subr.bf16.mxu1 %v23663_v59  ;;  %v23722_v58 = vld [vmem:[%s31090_s3 + $0x1b4c] ss:$12 sps:$4 sm:$0xff]   ;;  %v23723_v59 = vld [vmem:[%s31090_s3 + $0x1d90] ss:$12 sps:$4 sm:$0xff]  }
 0x5e1   : > { %8870 = vmatpush1.bf16.msra.mxu0 %v23660_v60  ;;  %v23720_v60 = vld [vmem:[%s31090_s3 + $0x1b48] ss:$12 sps:$4 sm:$0xff]  }
 0x5e2   : > { %21602 = vmatpush3.bf16.msra.mxu1 %v23664_v61  ;;  %8871 = vmatprep.subr.bf16.mxu0 %v23667_v62  ;;  %v23724_v61 = vld [vmem:[%s31090_s3 + $0x1cd0] ss:$12 sps:$4 sm:$0xff]  }
 0x5e3   : > { %21609 = vmatprep.subr.bf16.mxu1 %v23668_v1  ;;  %v23727_v62 = vld [vmem:[%s31090_s3 + $0x1b64] ss:$12 sps:$4 sm:$0xff]   ;;  %v23728_v1 = vld [vmem:[%s31090_s3 + $0x1da8] ss:$12 sps:$4 sm:$0xff]  }
 0x5e5   : > { %9051 = vmatmul.mubr.bf16.vlgmr.msra.gmra.mrb[52].mxu1 %v25398_v4  ;;  %8872 = vmatpush1.bf16.msra.mxu0 %v23665_v2  ;;  %v23725_v2 = vld [vmem:[%s31090_s3 + $0x1b60] ss:$12 sps:$4 sm:$0xff]  }
 0x5e6   : > { %21610 = vmatpush3.bf16.msra.mxu1 %v23669_v3  ;;  %9090 = vmatprep.mubr.bf16.mxu1 %v25409_v9  ;;  %v23729_v3 = vld [vmem:[%s31090_s3 + $0x1ce8] ss:$12 sps:$4 sm:$0xff]  }
 0x5e7   : > { %8873 = vmatprep.subr.bf16.mxu0 %v23672_v5  ;;  %21611 = vmatprep.subr.bf16.mxu1 %v23673_v6  ;;  %v23732_v5 = vld [vmem:[%s31090_s3 + $0x1b7c] ss:$12 sps:$4 sm:$0xff]   ;;  %v23733_v6 = vld [vmem:[%s31090_s3 + $0x1dc0] ss:$12 sps:$4 sm:$0xff]  }
 0x5e9   : > { %8874 = vmatpush1.bf16.msra.mxu0 %v23670_v10  ;;  %v23730_v10 = vld [vmem:[%s31090_s3 + $0x1b78] ss:$12 sps:$4 sm:$0xff]  }
 0x5ea   : > { %21612 = vmatpush3.bf16.msra.mxu1 %v23674_v11  ;;  %8875 = vmatprep.subr.bf16.mxu0 %v23677_v12  ;;  %v23734_v11 = vld [vmem:[%s31090_s3 + $0x1d00] ss:$12 sps:$4 sm:$0xff]  }
 0x5eb   : > { %21613 = vmatprep.subr.bf16.mxu1 %v23678_v14  ;;  %v23737_v12 = vld [vmem:[%s31090_s3 + $0x1b94] ss:$12 sps:$4 sm:$0xff]  }
 0x5ed   : > { %8876 = vmatpush1.bf16.msra.mxu0 %v23675_v16  ;;  %v23738_v16 = vld [vmem:[%s31090_s3 + $0x1dd8] ss:$12 sps:$4 sm:$0xff]  }
 0x5ee   : > { %21614 = vmatpush3.bf16.msra.mxu1 %v23679_v17  ;;  %8877 = vmatprep.subr.bf16.mxu0 %v23682_v20 }
 0x5ef   : > { %21615 = vmatprep.subr.bf16.mxu1 %v23683_v40 }
 0x5f1   : > { %8878 = vmatpush1.bf16.msra.mxu0 %v23680_v36  ;;  %v23735_v36 = vld [vmem:[%s31090_s3 + $0x1b90] ss:$12 sps:$4 sm:$0xff]  }
 0x5f2   : > { %21616 = vmatpush3.bf16.msra.mxu1 %v23684_v49  ;;  %8879 = vmatprep.subr.bf16.mxu0 %v23687_v63  ;;  %v23739_v63 = vld [vmem:[%s31090_s3 + $0x1d18] ss:$12 sps:$4 sm:$0xff]  }
 0x5f3   : > { %21617 = vmatprep.subr.bf16.mxu1 %v23688_v0  ;;  %v23742_v0 = vld [vmem:[%s31090_s3 + $0x1bac] ss:$12 sps:$4 sm:$0xff]  }
 0x5f5   : > { %8880 = vmatpush1.bf16.msra.mxu0 %v23685_v25 }
 0x5f6   : > { %21618 = vmatpush3.bf16.msra.mxu1 %v23689_v26  ;;  %8881 = vmatprep.subr.bf16.mxu0 %v23692_v27  ;;  %v23743_v26 = vld [vmem:[%s31090_s3 + $0x1df0] ss:$12 sps:$4 sm:$0xff]   ;;  %v23740_v27 = vld [vmem:[%s31090_s3 + $0x1ba8] ss:$12 sps:$4 sm:$0xff]  }
 0x5f7   : > { %v21493_v33 = vpop.f32.mrb[32].mxu0  ;;  %21619 = vmatprep.subr.bf16.mxu1 %v23693_v28  ;;  %v23744_v28 = vld [vmem:[%s31090_s3 + $0x1d30] ss:$12 sps:$4 sm:$0xff]  }
 0x5f8   : > { %v21494_v46 = vpop.f32.mrb[33].mxu0 }
 0x5f9   : > { %v27898_v37 = vadd.f32 %v21494_v46, %v21493_v33  ;;  %v21496_v42 = vpop.f32.mrb[34].mxu0  ;;  %8882 = vmatpush1.bf16.msra.mxu0 %v23690_v29  ;;  %v23747_v29 = vld [vmem:[%s31090_s3 + $0x1bc4] ss:$12 sps:$4 sm:$0xff]   ;;  %v23748_v33 = vld [vmem:[%s31090_s3 + $0x1e00] ss:$12 sps:$4 sm:$0xff]  }
 0x5fa   : > { %21620 = vmatpush3.bf16.msra.mxu1 %v23694_v31  ;;  %v21497_v38 = vpop.f32.mrb[35].mxu0  ;;  %8883 = vmatprep.subr.bf16.mxu0 %v23697_v32  ;;  %v23750_v31 = vld [vmem:[%s31090_s3 + $0x1e04] ss:$12 sps:$4 sm:$0xff]   ;;  %v23745_v32 = vld [vmem:[%s31090_s3 + $0x1bc0] ss:$12 sps:$4 sm:$0xff]  }
 0x5fb   : > { %21621 = vmatprep.subr.bf16.mxu1 %v23698_v35  ;;  %v23753_v35 = vld [vmem:[%s31090_s3 + $0x1bdc] ss:$12 sps:$4 sm:$0xff]   ;;  %v23754_v42 = vld [vmem:[%s31090_s3 + $0x1e18] ss:$12 sps:$4 sm:$0xff]   ;;  %v23762_v38 = vld [vmem:[%s31090_s3 + $0x1e34] ss:$12 sps:$4 sm:$0xff]  }
 0x5fc   : > { %v23756_v46 = vld [vmem:[%s31090_s3 + $0x1e1c] ss:$12 sps:$4 sm:$0xff]  }
 0x5fd   : > { %8884 = vmatpush1.bf16.msra.mxu0 %v23695_v13  ;;  %v23759_v13 = vld [vmem:[%s31090_s3 + $0x1bf4] ss:$12 sps:$4 sm:$0xff]  }
 0x5fe   : > { %21622 = vmatpush3.bf16.msra.mxu1 %v23699_v39  ;;  %8885 = vmatprep.subr.bf16.mxu0 %v23702_v41  ;;  %v23757_v39 = vld [vmem:[%s31090_s3 + $0x1bf0] ss:$12 sps:$4 sm:$0xff]  }
 0x5ff   : > { %21623 = vmatprep.subr.bf16.mxu1 %v23703_v43  ;;  %v23760_v41 = vld [vmem:[%s31090_s3 + $0x1e30] ss:$12 sps:$4 sm:$0xff]   ;;  %v23765_v43 = vld [vmem:[%s31090_s3 + $0x1c0c] ss:$12 sps:$4 sm:$0xff]  }
 0x601   : > { %8886 = vmatpush1.bf16.msra.mxu0 %v23700_v45  ;;  %v23768_v45 = vld [vmem:[%s31090_s3 + $0x1e4c] ss:$12 sps:$4 sm:$0xff]  }
 0x602   : > { %21624 = vmatpush3.bf16.msra.mxu1 %v23704_v48  ;;  %8896 = vmatprep.subr.bf16.mxu0 %v23707_v15  ;;  %v23763_v48 = vld [vmem:[%s31090_s3 + $0x1c08] ss:$12 sps:$4 sm:$0xff]  }
 0x603   : > { %21631 = vmatprep.subr.bf16.mxu1 %v23708_v50  ;;  %v23766_v15 = vld [vmem:[%s31090_s3 + $0x1e48] ss:$12 sps:$4 sm:$0xff]   ;;  %v23771_v50 = vld [vmem:[%s31090_s3 + $0x1c24] ss:$12 sps:$4 sm:$0xff]  }
 0x604   : > { %8888 = vmatmul.mubr.bf16.vlgmr.msra.gmra.mrb[48].mxu0 %v25398_v4 }
 0x605   : > { %9091 = vmatmul.mubr.bf16.vlgmr.msra.gmra.mrb[56].mxu1 %v25510_v53  ;;  %8897 = vmatpush1.bf16.msra.mxu0 %v23705_v24  ;;  %v23774_v24 = vld [vmem:[%s31090_s3 + $0x1e64] ss:$12 sps:$4 sm:$0xff]  }
 0x606   : > { %8928 = vmatprep.mubr.bf16.mxu0 %v25409_v9  ;;  %21632 = vmatpush3.bf16.msra.mxu1 %v23709_v51  ;;  %v23769_v51 = vld [vmem:[%s31090_s3 + $0x1c20] ss:$12 sps:$4 sm:$0xff]  }
 0x607   : > { %9130 = vmatprep.mubr.bf16.mxu1 %v25518_v56  ;;  %8898 = vmatprep.subr.bf16.mxu0 %v23712_v21  ;;  %v23772_v21 = vld [vmem:[%s31090_s3 + $0x1e60] ss:$12 sps:$4 sm:$0xff]  }
 0x608   : > { %21633 = vmatprep.subr.bf16.mxu1 %v23713_v44  ;;  %v23777_v44 = vld [vmem:[%s31090_s3 + $0x1c3c] ss:$12 sps:$4 sm:$0xff]  }
 0x609   : > { %8899 = vmatpush1.bf16.msra.mxu0 %v23710_v52  ;;  %v23780_v52 = vld [vmem:[%s31090_s3 + $0x1e7c] ss:$12 sps:$4 sm:$0xff]  }
 0x60a   : > { %21634 = vmatpush3.bf16.msra.mxu1 %v23714_v34  ;;  %8900 = vmatprep.subr.bf16.mxu0 %v23717_v47  ;;  %v23775_v34 = vld [vmem:[%s31090_s3 + $0x1c38] ss:$12 sps:$4 sm:$0xff]  }
 0x60b   : > { %21635 = vmatprep.subr.bf16.mxu1 %v23718_v54  ;;  %v23778_v47 = vld [vmem:[%s31090_s3 + $0x1e78] ss:$12 sps:$4 sm:$0xff]   ;;  %v23783_v54 = vld [vmem:[%s31090_s3 + $0x1c54] ss:$12 sps:$4 sm:$0xff]  }
 0x60d   : > { %8901 = vmatpush1.bf16.msra.mxu0 %v23715_v55 }
 0x60e   : > { %21636 = vmatpush3.bf16.msra.mxu1 %v23719_v57  ;;  %8902 = vmatprep.subr.bf16.mxu0 %v23722_v58  ;;  %v23786_v57 = vld [vmem:[%s31090_s3 + $0x1e94] ss:$12 sps:$4 sm:$0xff]  }
 0x60f   : > { %21637 = vmatprep.subr.bf16.mxu1 %v23723_v59 }
 0x611   : > { %8903 = vmatpush1.bf16.msra.mxu0 %v23720_v60 }
 0x612   : > { %21638 = vmatpush3.bf16.msra.mxu1 %v23724_v61  ;;  %8904 = vmatprep.subr.bf16.mxu0 %v23727_v62  ;;  %v23781_v61 = vld [vmem:[%s31090_s3 + $0x1c50] ss:$12 sps:$4 sm:$0xff]  }
 0x613   : > { %21639 = vmatprep.subr.bf16.mxu1 %v23728_v1  ;;  %v23784_v1 = vld [vmem:[%s31090_s3 + $0x1e90] ss:$12 sps:$4 sm:$0xff]  }
 0x615   : > { %8905 = vmatpush1.bf16.msra.mxu0 %v23725_v2  ;;  %v23789_v2 = vld [vmem:[%s31090_s3 + $0x1c6c] ss:$12 sps:$4 sm:$0xff]  }
 0x616   : > { %21640 = vmatpush3.bf16.msra.mxu1 %v23729_v3  ;;  %8906 = vmatprep.subr.bf16.mxu0 %v23732_v5  ;;  %v23792_v5 = vld [vmem:[%s31090_s3 + $0x1eac] ss:$12 sps:$4 sm:$0xff]  }
 0x617   : > { %v21515_v14 = vpop.f32.mrb[36].mxu0  ;;  %21641 = vmatprep.subr.bf16.mxu1 %v23733_v6  ;;  %v23787_v6 = vld [vmem:[%s31090_s3 + $0x1c68] ss:$12 sps:$4 sm:$0xff]  }
 0x618   : > { %v21516_v17 = vpop.f32.mrb[37].mxu0 }
 0x619   : > { %v21517_v20 = vadd.f32 %v21516_v17, %v21515_v14  ;;  %v21518_v40 = vpop.f32.mrb[38].mxu0  ;;  %8907 = vmatpush1.bf16.msra.mxu0 %v23730_v10  ;;  %v23790_v10 = vld [vmem:[%s31090_s3 + $0x1ea8] ss:$12 sps:$4 sm:$0xff]   ;;  %v23793_v14 = vld [vmem:[%s31090_s3 + $0x1c80] ss:$12 sps:$4 sm:$0xff]  }
 0x61a   : > { %21642 = vmatpush3.bf16.msra.mxu1 %v23734_v11  ;;  %v21519_v49 = vpop.f32.mrb[39].mxu0  ;;  %8908 = vmatprep.subr.bf16.mxu0 %v23737_v12  ;;  %v23795_v11 = vld [vmem:[%s31090_s3 + $0x1c84] ss:$12 sps:$4 sm:$0xff]   ;;  %v23801_v17 = vld [vmem:[%s31090_s3 + $0x1c9c] ss:$12 sps:$4 sm:$0xff]  }
 0x61b   : > { %v28010_v25 = vadd.f32 %v21517_v20, %v27898_v37  ;;  %21643 = vmatprep.subr.bf16.mxu1 %v23738_v16  ;;  %v23751_v37 = vld [vmem:[%s31090_s3 + $0x1bd8] ss:$12 sps:$4 sm:$0xff]   ;;  %v23796_v16 = vld [vmem:[%s31090_s3 + $0x1ec0] ss:$12 sps:$4 sm:$0xff]   ;;  %v23804_v20 = vld [vmem:[%s31090_s3 + $0x1edc] ss:$12 sps:$4 sm:$0xff]  }
 0x61c   : > { %v23798_v12 = vld [vmem:[%s31090_s3 + $0x1ec4] ss:$12 sps:$4 sm:$0xff]   ;;  %v23807_v49 = vld [vmem:[%s31090_s3 + $0x1cb4] ss:$12 sps:$4 sm:$0xff]  }
 0x61d   : > { %8909 = vmatpush1.bf16.msra.mxu0 %v23735_v36  ;;  %v23799_v40 = vld [vmem:[%s31090_s3 + $0x1c98] ss:$12 sps:$4 sm:$0xff]  }
 0x61e   : > { %21644 = vmatpush3.bf16.msra.mxu1 %v23739_v63  ;;  %8910 = vmatprep.subr.bf16.mxu0 %v23742_v0  ;;  %v23802_v36 = vld [vmem:[%s31090_s3 + $0x1ed8] ss:$12 sps:$4 sm:$0xff]   ;;  %v23810_v63 = vld [vmem:[%s31090_s3 + $0x1ef4] ss:$12 sps:$4 sm:$0xff]   ;;  %v23805_v0 = vld [vmem:[%s31090_s3 + $0x1cb0] ss:$12 sps:$4 sm:$0xff]  }
 0x61f   : > { %21645 = vmatprep.subr.bf16.mxu1 %v23743_v26  ;;  %v23813_v26 = vld [vmem:[%s31090_s3 + $0x1ccc] ss:$12 sps:$4 sm:$0xff]  }
 0x621   : > { %8911 = vmatpush1.bf16.msra.mxu0 %v23740_v27  ;;  %v23816_v27 = vld [vmem:[%s31090_s3 + $0x1f0c] ss:$12 sps:$4 sm:$0xff]  }
 0x622   : > { %21646 = vmatpush3.bf16.msra.mxu1 %v23744_v28  ;;  %8912 = vmatprep.subr.bf16.mxu0 %v23747_v29  ;;  %v23811_v28 = vld [vmem:[%s31090_s3 + $0x1cc8] ss:$12 sps:$4 sm:$0xff]  }
 0x623   : > { %10422 = vmatprep.subr.bf16.mxu1 %v23750_v31  ;;  %v23814_v29 = vld [vmem:[%s31090_s3 + $0x1f08] ss:$12 sps:$4 sm:$0xff]   ;;  %v23819_v31 = vld [vmem:[%s31090_s3 + $0x1ce4] ss:$12 sps:$4 sm:$0xff]  }
 0x625   : > { %9131 = vmatmul.mubr.bf16.vlgmr.msra.gmra.mrb[60].mxu1 %v25619_v30  ;;  %8913 = vmatpush1.bf16.msra.mxu0 %v23745_v32  ;;  %v23822_v32 = vld [vmem:[%s31090_s3 + $0x1f24] ss:$12 sps:$4 sm:$0xff]  }
 0x626   : > { %10423 = vmatpush1.bf16.msra.mxu1 %v23748_v33  ;;  %10454 = vmatprep.mubr.bf16.mxu1 %v25282_v19  ;;  %v23817_v33 = vld [vmem:[%s31090_s3 + $0x1ce0] ss:$12 sps:$4 sm:$0xff]  }
 0x627   : > { %8914 = vmatprep.subr.bf16.mxu0 %v23753_v35  ;;  %10424 = vmatprep.subr.bf16.mxu1 %v23756_v46  ;;  %v23820_v35 = vld [vmem:[%s31090_s3 + $0x1f20] ss:$12 sps:$4 sm:$0xff]   ;;  %v23825_v46 = vld [vmem:[%s31090_s3 + $0x1cfc] ss:$12 sps:$4 sm:$0xff]  }
 0x629   : > { %8915 = vmatpush1.bf16.msra.mxu0 %v23751_v37  ;;  %v23828_v37 = vld [vmem:[%s31090_s3 + $0x1f3c] ss:$12 sps:$4 sm:$0xff]  }
 0x62a   : > { %10425 = vmatpush1.bf16.msra.mxu1 %v23754_v42  ;;  %8916 = vmatprep.subr.bf16.mxu0 %v23759_v13  ;;  %v23823_v42 = vld [vmem:[%s31090_s3 + $0x1cf8] ss:$12 sps:$4 sm:$0xff]  }
 0x62b   : > { %10426 = vmatprep.subr.bf16.mxu1 %v23762_v38  ;;  %v23826_v13 = vld [vmem:[%s31090_s3 + $0x1f38] ss:$12 sps:$4 sm:$0xff]   ;;  %v23831_v38 = vld [vmem:[%s31090_s3 + $0x1d14] ss:$12 sps:$4 sm:$0xff]  }
 0x62d   : > { %8917 = vmatpush1.bf16.msra.mxu0 %v23757_v39 }
 0x62e   : > { %10427 = vmatpush1.bf16.msra.mxu1 %v23760_v41  ;;  %8918 = vmatprep.subr.bf16.mxu0 %v23765_v43  ;;  %v23834_v41 = vld [vmem:[%s31090_s3 + $0x1f54] ss:$12 sps:$4 sm:$0xff]  }
 0x62f   : > { %10428 = vmatprep.subr.bf16.mxu1 %v23768_v45 }
 0x631   : > { %8919 = vmatpush1.bf16.msra.mxu0 %v23763_v48 }
 0x632   : > { %10429 = vmatpush1.bf16.msra.mxu1 %v23766_v15  ;;  %8920 = vmatprep.subr.bf16.mxu0 %v23771_v50  ;;  %v23829_v15 = vld [vmem:[%s31090_s3 + $0x1d10] ss:$12 sps:$4 sm:$0xff]  }
 0x633   : > { %10430 = vmatprep.subr.bf16.mxu1 %v23774_v24  ;;  %v23832_v24 = vld [vmem:[%s31090_s3 + $0x1f50] ss:$12 sps:$4 sm:$0xff]  }
 0x635   : > { %8921 = vmatpush1.bf16.msra.mxu0 %v23769_v51  ;;  %v23837_v51 = vld [vmem:[%s31090_s3 + $0x1d2c] ss:$12 sps:$4 sm:$0xff]  }
 0x636   : > { %10431 = vmatpush1.bf16.msra.mxu1 %v23772_v21  ;;  %8922 = vmatprep.subr.bf16.mxu0 %v23777_v44  ;;  %v23840_v44 = vld [vmem:[%s31090_s3 + $0x1f6c] ss:$12 sps:$4 sm:$0xff]  }
 0x637   : > { %v21537_v55 = vpop.f32.mrb[40].mxu0  ;;  %10432 = vmatprep.subr.bf16.mxu1 %v23780_v52  ;;  %v23835_v52 = vld [vmem:[%s31090_s3 + $0x1d28] ss:$12 sps:$4 sm:$0xff]  }
 0x638   : > { %v21538_v58 = vpop.f32.mrb[41].mxu0 }
 0x639   : > { %v21539_v59 = vadd.f32 %v21538_v58, %v21537_v55  ;;  %v21540_v60 = vpop.f32.mrb[42].mxu0  ;;  %8923 = vmatpush1.bf16.msra.mxu0 %v23775_v34  ;;  %v23838_v34 = vld [vmem:[%s31090_s3 + $0x1f68] ss:$12 sps:$4 sm:$0xff]   ;;  %v23841_v55 = vld [vmem:[%s31090_s3 + $0x1d40] ss:$12 sps:$4 sm:$0xff]  }
 0x63a   : > { %10433 = vmatpush1.bf16.msra.mxu1 %v23778_v47  ;;  %v21541_v62 = vpop.f32.mrb[43].mxu0  ;;  %8924 = vmatprep.subr.bf16.mxu0 %v23783_v54  ;;  %v23843_v47 = vld [vmem:[%s31090_s3 + $0x1d44] ss:$12 sps:$4 sm:$0xff]   ;;  %v23849_v58 = vld [vmem:[%s31090_s3 + $0x1d5c] ss:$12 sps:$4 sm:$0xff]  }
 0x63b   : > { %v28111_v3 = vadd.f32 %v21539_v59, %v28010_v25  ;;  %10434 = vmatprep.subr.bf16.mxu1 %v23786_v57  ;;  %v23808_v25 = vld [vmem:[%s31090_s3 + $0x1ef0] ss:$12 sps:$4 sm:$0xff]   ;;  %v23844_v57 = vld [vmem:[%s31090_s3 + $0x1f80] ss:$12 sps:$4 sm:$0xff]  }
 0x63c   : > { %v23846_v54 = vld [vmem:[%s31090_s3 + $0x1f84] ss:$12 sps:$4 sm:$0xff]  }
 0x63d   : > { %8925 = vmatpush1.bf16.msra.mxu0 %v23781_v61  ;;  %v13973_v59 = vld [vmem:[#allocation2 + $0x40] sm:$0xff]  ;;  %v23852_v61 = vld [vmem:[%s31090_s3 + $0x1f9c] ss:$12 sps:$4 sm:$0xff]  }
 0x63e   : > { %10435 = vmatpush1.bf16.msra.mxu1 %v23784_v1  ;;  %8926 = vmatprep.subr.bf16.mxu0 %v23789_v2  ;;  %v23847_v1 = vld [vmem:[%s31090_s3 + $0x1d58] ss:$12 sps:$4 sm:$0xff]  }
 0x63f   : > { %10436 = vmatprep.subr.bf16.mxu1 %v23792_v5  ;;  %v23850_v2 = vld [vmem:[%s31090_s3 + $0x1f98] ss:$12 sps:$4 sm:$0xff]   ;;  %v23858_v5 = vld [vmem:[%s31090_s3 + $0x1fb4] ss:$12 sps:$4 sm:$0xff]  }
 0x641   : > { %8927 = vmatpush1.bf16.msra.mxu0 %v23787_v6  ;;  %v23853_v6 = vld [vmem:[%s31090_s3 + $0x1d70] ss:$12 sps:$4 sm:$0xff]  }
 0x642   : > { %10437 = vmatpush1.bf16.msra.mxu1 %v23790_v10  ;;  %8937 = vmatprep.subr.bf16.mxu0 %v23795_v11  ;;  %v23856_v10 = vld [vmem:[%s31090_s3 + $0x1fb0] ss:$12 sps:$4 sm:$0xff]   ;;  %v23861_v11 = vld [vmem:[%s31090_s3 + $0x1d8c] ss:$12 sps:$4 sm:$0xff]  }
 0x643   : > { %10438 = vmatprep.subr.bf16.mxu1 %v23798_v12  ;;  %v23864_v12 = vld [vmem:[%s31090_s3 + $0x1fcc] ss:$12 sps:$4 sm:$0xff]  }
 0x644   : > { %8929 = vmatmul.mubr.bf16.vlgmr.msra.gmra.mrb[48].mxu0 %v25510_v53 }
 0x645   : > { %8938 = vmatpush1.bf16.msra.mxu0 %v23793_v14  ;;  %8969 = vmatprep.mubr.bf16.mxu0 %v25518_v56  ;;  %v23859_v14 = vld [vmem:[%s31090_s3 + $0x1d88] ss:$12 sps:$4 sm:$0xff]  }
 0x646   : > { %10439 = vmatpush1.bf16.msra.mxu1 %v23796_v16  ;;  %8939 = vmatprep.subr.bf16.mxu0 %v23801_v17  ;;  %v23862_v16 = vld [vmem:[%s31090_s3 + $0x1fc8] ss:$12 sps:$4 sm:$0xff]   ;;  %v23867_v17 = vld [vmem:[%s31090_s3 + $0x1da4] ss:$12 sps:$4 sm:$0xff]  }
 0x647   : > { %10440 = vmatprep.subr.bf16.mxu1 %v23804_v20  ;;  %v23870_v20 = vld [vmem:[%s31090_s3 + $0x1fe4] ss:$12 sps:$4 sm:$0xff]  }
 0x649   : > { %8940 = vmatpush1.bf16.msra.mxu0 %v23799_v40  ;;  %v23865_v40 = vld [vmem:[%s31090_s3 + $0x1da0] ss:$12 sps:$4 sm:$0xff]  }
 0x64a   : > { %10441 = vmatpush1.bf16.msra.mxu1 %v23802_v36  ;;  %8941 = vmatprep.subr.bf16.mxu0 %v23807_v49  ;;  %v23868_v36 = vld [vmem:[%s31090_s3 + $0x1fe0] ss:$12 sps:$4 sm:$0xff]   ;;  %v23873_v49 = vld [vmem:[%s31090_s3 + $0x1dbc] ss:$12 sps:$4 sm:$0xff]  }
 0x64b   : > { %10442 = vmatprep.subr.bf16.mxu1 %v23810_v63  ;;  %v23876_v63 = vld [vmem:[%s31090_s3 + $0x1ffc] ss:$12 sps:$4 sm:$0xff]  }
 0x64d   : > { %8942 = vmatpush1.bf16.msra.mxu0 %v23805_v0  ;;  %v23871_v0 = vld [vmem:[%s31090_s3 + $0x1db8] ss:$12 sps:$4 sm:$0xff]  }
 0x64e   : > { %10443 = vmatpush1.bf16.msra.mxu1 %v23808_v25  ;;  %8943 = vmatprep.subr.bf16.mxu0 %v23813_v26  ;;  %v23874_v25 = vld [vmem:[%s31090_s3 + $0x1ff8] ss:$12 sps:$4 sm:$0xff]   ;;  %v23879_v26 = vld [vmem:[%s31090_s3 + $0x1dd4] ss:$12 sps:$4 sm:$0xff]  }
 0x64f   : > { %10444 = vmatprep.subr.bf16.mxu1 %v23816_v27  ;;  %v23882_v27 = vld [vmem:[%s31090_s3 + $0x2014] ss:$12 sps:$4 sm:$0xff]  }
 0x651   : > { %8944 = vmatpush1.bf16.msra.mxu0 %v23811_v28 }
 0x652   : > { %10445 = vmatpush1.bf16.msra.mxu1 %v23814_v29  ;;  %8945 = vmatprep.subr.bf16.mxu0 %v23819_v31  ;;  %v13971_v29 = vld [vmem:[#allocation2 + $0x30] sm:$0xff] }
 0x653   : > { %10446 = vmatprep.subr.bf16.mxu1 %v23822_v32  ;;  %v23877_v32 = vld [vmem:[%s31090_s3 + $0x1dd0] ss:$12 sps:$4 sm:$0xff]  }
 0x655   : > { %8946 = vmatpush1.bf16.msra.mxu0 %v23817_v33 }
 0x656   : > { %10447 = vmatpush1.bf16.msra.mxu1 %v23820_v35  ;;  %8947 = vmatprep.subr.bf16.mxu0 %v23825_v46  ;;  %v23880_v46 = vld [vmem:[%s31090_s3 + $0x2010] ss:$12 sps:$4 sm:$0xff]  }
 0x657   : > { %v21559_v39 = vpop.f32.mrb[44].mxu0  ;;  %10448 = vmatprep.subr.bf16.mxu1 %v23828_v37  ;;  %v23885_v37 = vld [vmem:[%s31090_s3 + $0x1dec] ss:$12 sps:$4 sm:$0xff]  }
 0x658   : > { %v21560_v43 = vpop.f32.mrb[45].mxu0 }
 0x659   : > { %v21561_v45 = vadd.f32 %v21560_v43, %v21559_v39  ;;  %v21562_v48 = vpop.f32.mrb[46].mxu0  ;;  %8948 = vmatpush1.bf16.msra.mxu0 %v23823_v42  ;;  %v23883_v39 = vld [vmem:[%s31090_s3 + $0x1de8] ss:$12 sps:$4 sm:$0xff]  }
 0x65a   : > { %10449 = vmatpush1.bf16.msra.mxu1 %v23826_v13  ;;  %v21563_v50 = vpop.f32.mrb[47].mxu0  ;;  %8949 = vmatprep.subr.bf16.mxu0 %v23831_v38  ;;  %v23888_v13 = vld [vmem:[%s31090_s3 + $0x202c] ss:$12 sps:$4 sm:$0xff]   ;;  %v23886_v43 = vld [vmem:[%s31090_s3 + $0x2028] ss:$12 sps:$4 sm:$0xff]  }
 0x65b   : > { %v7525_v21 = vadd.f32 %v21561_v45, %v28111_v3  ;;  %10450 = vmatprep.subr.bf16.mxu1 %v23834_v41  ;;  %v23855_v3 = vld [vmem:[%s31090_s3 + $0x1d74] ss:$12 sps:$4 sm:$0xff]   ;;  %v13972_v38 = vld [vmem:[#allocation2 + $0x38] sm:$0xff]  ;;  %v23891_v48 = vld [vmem:[%s31090_s3 + $0x2044] ss:$12 sps:$4 sm:$0xff]  }
 0x65c   : > { %v23892_v45 = vld [vmem:[%s31090_s3 + $0x1ec8] ss:$12 sps:$4 sm:$0xff]   ;;  %v23889_v50 = vld [vmem:[%s31090_s3 + $0x2040] ss:$12 sps:$4 sm:$0xff]  }
 0x65d   : > { %7532 = vst.msk [vmem:[#allocation2 + $0x58] sm:$0xff] %vm2707_vm11, %v7525_v21  ;;  %8950 = vmatpush1.bf16.msra.mxu0 %v23829_v15  ;;  %v23893_v15 = vld [vmem:[%s31090_s3 + $0x1e08] ss:$12 sps:$4 sm:$0xff]   ;;  %v23898_v21 = vld [vmem:[%s31090_s3 + $0x1e20] ss:$12 sps:$4 sm:$0xff]  }
 0x65e   : > { %10451 = vmatpush1.bf16.msra.mxu1 %v23832_v24  ;;  %8951 = vmatprep.subr.bf16.mxu0 %v23837_v51  ;;  %v23897_v24 = vld [vmem:[%s31090_s3 + $0x1ee0] ss:$12 sps:$4 sm:$0xff]   ;;  %v23896_v51 = vld [vmem:[%s31090_s3 + $0x205c] ss:$12 sps:$4 sm:$0xff]  }
 0x65f   : > { %10452 = vmatprep.subr.bf16.mxu1 %v23840_v44  ;;  %v23894_v44 = vld [vmem:[%s31090_s3 + $0x2058] ss:$12 sps:$4 sm:$0xff]  }
 0x661   : > { %8952 = vmatpush1.bf16.msra.mxu0 %v23835_v52  ;;  %v23902_v52 = vld [vmem:[%s31090_s3 + $0x1ef8] ss:$12 sps:$4 sm:$0xff]  }
 0x662   : > { %10453 = vmatpush1.bf16.msra.mxu1 %v23838_v34  ;;  %8953 = vmatprep.subr.bf16.mxu0 %v23843_v47  ;;  %v23901_v34 = vld [vmem:[%s31090_s3 + $0x2074] ss:$12 sps:$4 sm:$0xff]   ;;  %v23903_v47 = vld [vmem:[%s31090_s3 + $0x1e38] ss:$12 sps:$4 sm:$0xff]  }
 0x663   : > { %10463 = vmatprep.subr.bf16.mxu1 %v23846_v54  ;;  %v23899_v54 = vld [vmem:[%s31090_s3 + $0x2070] ss:$12 sps:$4 sm:$0xff]  }
 0x664   : > { %v13976_v60 = vld [vmem:[#allocation2 + $0x58] sm:$0xff] }
 0x665   : > { %10455 = vmatmul.mubr.bf16.vlgmr.msra.gmra.mrb[64].mxu1 %v25280_v18  ;;  %8954 = vmatpush1.bf16.msra.mxu0 %v23841_v55  ;;  %v13994_v62 = vpack.c.bf16 %v13976_v60, %v13973_v59  ;;  %v23907_v55 = vld [vmem:[%s31090_s3 + $0x1f10] ss:$12 sps:$4 sm:$0xff]   ;;  %v23904_v59 = vld [vmem:[%s31090_s3 + $0x2088] ss:$12 sps:$4 sm:$0xff]  }
 0x666   : > { %10464 = vmatpush1.bf16.msra.mxu1 %v23844_v57  ;;  %10495 = vmatprep.mubr.bf16.mxu1 %v25292_v23  ;;  %v23906_v57 = vld [vmem:[%s31090_s3 + $0x208c] ss:$12 sps:$4 sm:$0xff]   ;;  %v23912_v60 = vld [vmem:[%s31090_s3 + $0x1f28] ss:$12 sps:$4 sm:$0xff]  }
 0x667   : > { %14033 = vrot.lane.b32.xlu1 %v13994_v62, %s24823_s13  ;;  %8955 = vmatprep.subr.bf16.mxu0 %v23849_v58  ;;  %v23908_v58 = vld [vmem:[%s31090_s3 + $0x1e50] ss:$12 sps:$4 sm:$0xff]   ;;  %v23913_v62 = vld [vmem:[%s31090_s3 + $0x1e68] ss:$12 sps:$4 sm:$0xff]  }
 0x668   : > { %10465 = vmatprep.subr.bf16.mxu1 %v23852_v61  ;;  %v23911_v61 = vld [vmem:[%s31090_s3 + $0x20a4] ss:$12 sps:$4 sm:$0xff]  }
 0x669   : > { %8956 = vmatpush1.bf16.msra.mxu0 %v23847_v1  ;;  %v23909_v1 = vld [vmem:[%s31090_s3 + $0x20a0] ss:$12 sps:$4 sm:$0xff]  }
 0x66a   : > { %10466 = vmatpush1.bf16.msra.mxu1 %v23850_v2  ;;  %8957 = vmatprep.subr.bf16.mxu0 %v23855_v3  ;;  %v23917_v2 = vld [vmem:[%s31090_s3 + $0x1f40] ss:$12 sps:$4 sm:$0xff]   ;;  %v23916_v3 = vld [vmem:[%s31090_s3 + $0x20bc] ss:$12 sps:$4 sm:$0xff]  }
 0x66b   : > { %10467 = vmatprep.subr.bf16.mxu1 %v23858_v5  ;;  %v23918_v5 = vld [vmem:[%s31090_s3 + $0x1e80] ss:$12 sps:$4 sm:$0xff]  }
 0x66d   : > { %8958 = vmatpush1.bf16.msra.mxu0 %v23853_v6  ;;  %v23914_v6 = vld [vmem:[%s31090_s3 + $0x20b8] ss:$12 sps:$4 sm:$0xff]  }
 0x66e   : > { %10468 = vmatpush1.bf16.msra.mxu1 %v23856_v10  ;;  %8959 = vmatprep.subr.bf16.mxu0 %v23861_v11  ;;  %v23922_v10 = vld [vmem:[%s31090_s3 + $0x1f58] ss:$12 sps:$4 sm:$0xff]   ;;  %v23921_v11 = vld [vmem:[%s31090_s3 + $0x20d4] ss:$12 sps:$4 sm:$0xff]  }
 0x66f   : > { %10469 = vmatprep.subr.bf16.mxu1 %v23864_v12 }
 0x671   : > { %8960 = vmatpush1.bf16.msra.mxu0 %v23859_v14 }
 0x672   : > { %10470 = vmatpush1.bf16.msra.mxu1 %v23862_v16  ;;  %8961 = vmatprep.subr.bf16.mxu0 %v23867_v17  ;;  %v23923_v16 = vld [vmem:[%s31090_s3 + $0x1e98] ss:$12 sps:$4 sm:$0xff]  }
 0x673   : > { %10471 = vmatprep.subr.bf16.mxu1 %v23870_v20 }
 0x675   : > { %8962 = vmatpush1.bf16.msra.mxu0 %v23865_v40  ;;  %v23919_v40 = vld [vmem:[%s31090_s3 + $0x20d0] ss:$12 sps:$4 sm:$0xff]  }
 0x676   : > { %10472 = vmatpush1.bf16.msra.mxu1 %v23868_v36  ;;  %8963 = vmatprep.subr.bf16.mxu0 %v23873_v49  ;;  %v23927_v36 = vld [vmem:[%s31090_s3 + $0x1f70] ss:$12 sps:$4 sm:$0xff]  }
 0x677   : > { %10473 = vmatprep.subr.bf16.mxu1 %v23876_v63  ;;  %v23926_v63 = vld [vmem:[%s31090_s3 + $0x20ec] ss:$12 sps:$4 sm:$0xff]  }
 0x678   : > { %v7363_v28 = vpop.f32.mrb[44].mxu1 }
 0x679   : > { %v7365_v31 = vpop.f32.mrb[45].mxu1  ;;  %8964 = vmatpush1.bf16.msra.mxu0 %v23871_v0  ;;  %v28306_v33 = vpack.c.bf16 %v7363_v28, %v13971_v29  ;;  %v23928_v0 = vld [vmem:[%s31090_s3 + $0x1eb0] ss:$12 sps:$4 sm:$0xff]   ;;  %v23933_v28 = vld [vmem:[%s31090_s3 + $0x1f88] ss:$12 sps:$4 sm:$0xff]  }
 0x67a   : > { %v7367_v35 = vpop.f32.mrb[46].mxu1  ;;  %10474 = vmatpush1.bf16.msra.mxu1 %v23874_v25  ;;  %8965 = vmatprep.subr.bf16.mxu0 %v23879_v26  ;;  %v28322_v41 = vpack.c.bf16 %v7365_v31, %v13972_v38  ;;  %v23924_v25 = vld [vmem:[%s31090_s3 + $0x20e8] ss:$12 sps:$4 sm:$0xff]   ;;  %v23929_v29 = vld [vmem:[%s31090_s3 + $0x2100] ss:$12 sps:$4 sm:$0xff]  }
 0x67b   : > { %v7368_v42 = vpop.f32.mrb[47].mxu1  ;;  %10475 = vmatprep.subr.bf16.mxu1 %v23882_v27  ;;  %14029 = vrot.lane.b32.xlu1 %v28306_v33, %s24823_s13  ;;  %v23932_v26 = vld [vmem:[%s31090_s3 + $0x2048] ss:$12 sps:$4 sm:$0xff]   ;;  %v23931_v27 = vld [vmem:[%s31090_s3 + $0x2104] ss:$12 sps:$4 sm:$0xff]  }
 0x67c   : > { %v23936_v31 = vld [vmem:[%s31090_s3 + $0x211c] ss:$12 sps:$4 sm:$0xff]   ;;  %v23938_v35 = vld [vmem:[%s31090_s3 + $0x1fa0] ss:$12 sps:$4 sm:$0xff]  }
 0x67d   : > { %8966 = vmatpush1.bf16.msra.mxu0 %v23877_v32  ;;  %v23937_v32 = vld [vmem:[%s31090_s3 + $0x2060] ss:$12 sps:$4 sm:$0xff]   ;;  %v23939_v38 = vld [vmem:[%s31090_s3 + $0x2130] ss:$12 sps:$4 sm:$0xff]  }
 0x67e   : > { %10476 = vmatpush1.bf16.msra.mxu1 %v23880_v46  ;;  %8967 = vmatprep.subr.bf16.mxu0 %v23885_v37  ;;  %v23934_v46 = vld [vmem:[%s31090_s3 + $0x2118] ss:$12 sps:$4 sm:$0xff]   ;;  %v23941_v42 = vld [vmem:[%s31090_s3 + $0x2134] ss:$12 sps:$4 sm:$0xff]  }
 0x67f   : > { %10477 = vmatprep.subr.bf16.mxu1 %v23888_v13  ;;  %14031 = vrot.lane.b32.xlu1 %v28322_v41, %s24823_s13  ;;  %v23942_v37 = vld [vmem:[%s31090_s3 + $0x2078] ss:$12 sps:$4 sm:$0xff]  }
 0x680   : > { %v23943_v13 = vld [vmem:[%s31090_s3 + $0x1fb8] ss:$12 sps:$4 sm:$0xff]  }
 0x681   : > { %8968 = vmatpush1.bf16.msra.mxu0 %v23883_v39  ;;  %v23947_v39 = vld [vmem:[%s31090_s3 + $0x2090] ss:$12 sps:$4 sm:$0xff]  }
 0x682   : > { %10478 = vmatpush1.bf16.msra.mxu1 %v23886_v43  ;;  %21653 = vmatprep.subr.bf16.mxu0 %v23892_v45  ;;  %v23946_v43 = vld [vmem:[%s31090_s3 + $0x214c] ss:$12 sps:$4 sm:$0xff]   ;;  %v23948_v45 = vld [vmem:[%s31090_s3 + $0x1fd0] ss:$12 sps:$4 sm:$0xff]  }
 0x683   : > { %10479 = vmatprep.subr.bf16.mxu1 %v23891_v48  ;;  %v23944_v48 = vld [vmem:[%s31090_s3 + $0x2148] ss:$12 sps:$4 sm:$0xff]  }
 0x684   : > { %8970 = vmatmul.mubr.bf16.vlgmr.msra.gmra.mrb[48].mxu0 %v25619_v30 }
 0x685   : > { %21654 = vmatpush3.bf16.msra.mxu0 %v23893_v15  ;;  %10618 = vmatprep.mubr.bf16.mxu0 %v25282_v19  ;;  %v23952_v15 = vld [vmem:[%s31090_s3 + $0x20a8] ss:$12 sps:$4 sm:$0xff]  }
 0x686   : > { %10480 = vmatpush1.bf16.msra.mxu1 %v23889_v50  ;;  %21655 = vmatprep.subr.bf16.mxu0 %v23897_v24  ;;  %v23951_v50 = vld [vmem:[%s31090_s3 + $0x2164] ss:$12 sps:$4 sm:$0xff]   ;;  %v23953_v24 = vld [vmem:[%s31090_s3 + $0x1fe8] ss:$12 sps:$4 sm:$0xff]  }
 0x687   : > { %10481 = vmatprep.subr.bf16.mxu1 %v23896_v51  ;;  %v23949_v51 = vld [vmem:[%s31090_s3 + $0x2160] ss:$12 sps:$4 sm:$0xff]  }
 0x689   : > { %21656 = vmatpush3.bf16.msra.mxu0 %v23898_v21  ;;  %v23957_v21 = vld [vmem:[%s31090_s3 + $0x20c0] ss:$12 sps:$4 sm:$0xff]  }
 0x68a   : > { %10482 = vmatpush1.bf16.msra.mxu1 %v23894_v44  ;;  %21657 = vmatprep.subr.bf16.mxu0 %v23902_v52  ;;  %v23956_v44 = vld [vmem:[%s31090_s3 + $0x217c] ss:$12 sps:$4 sm:$0xff]   ;;  %v23958_v52 = vld [vmem:[%s31090_s3 + $0x2000] ss:$12 sps:$4 sm:$0xff]  }
 0x68b   : > { %10483 = vmatprep.subr.bf16.mxu1 %v23901_v34  ;;  %v23954_v34 = vld [vmem:[%s31090_s3 + $0x2178] ss:$12 sps:$4 sm:$0xff]  }
 0x68d   : > { %21658 = vmatpush3.bf16.msra.mxu0 %v23903_v47  ;;  %v23962_v47 = vld [vmem:[%s31090_s3 + $0x20d8] ss:$12 sps:$4 sm:$0xff]  }
 0x68e   : > { %10484 = vmatpush1.bf16.msra.mxu1 %v23899_v54  ;;  %21659 = vmatprep.subr.bf16.mxu0 %v23907_v55  ;;  %v23961_v54 = vld [vmem:[%s31090_s3 + $0x2194] ss:$12 sps:$4 sm:$0xff]  }
 0x68f   : > { %10485 = vmatprep.subr.bf16.mxu1 %v23906_v57 }
 0x691   : > { %21660 = vmatpush3.bf16.msra.mxu0 %v23908_v58  ;;  %v23963_v58 = vld [vmem:[%s31090_s3 + $0x2018] ss:$12 sps:$4 sm:$0xff]  }
 0x692   : > { %10486 = vmatpush1.bf16.msra.mxu1 %v23904_v59  ;;  %21661 = vmatprep.subr.bf16.mxu0 %v23912_v60 }
 0x693   : > { %10487 = vmatprep.subr.bf16.mxu1 %v23911_v61  ;;  %v23959_v61 = vld [vmem:[%s31090_s3 + $0x2190] ss:$12 sps:$4 sm:$0xff]  }
 0x695   : > { %21662 = vmatpush3.bf16.msra.mxu0 %v23913_v62  ;;  %v23967_v62 = vld [vmem:[%s31090_s3 + $0x20f0] ss:$12 sps:$4 sm:$0xff]  }
 0x696   : > { %10488 = vmatpush1.bf16.msra.mxu1 %v23909_v1  ;;  %21663 = vmatprep.subr.bf16.mxu0 %v23917_v2  ;;  %v23966_v2 = vld [vmem:[%s31090_s3 + $0x21ac] ss:$12 sps:$4 sm:$0xff]  }
 0x697   : > { %10489 = vmatprep.subr.bf16.mxu1 %v23916_v3 }
 0x698   : > { %v21581_v12 = vpop.f32.mrb[48].mxu1 }
 0x699   : > { %v21582_v14 = vpop.f32.mrb[49].mxu1  ;;  %21664 = vmatpush3.bf16.msra.mxu0 %v23918_v5  ;;  %v23968_v5 = vld [vmem:[%s31090_s3 + $0x2030] ss:$12 sps:$4 sm:$0xff]  }
 0x69a   : > { %v28412_v17 = vadd.f32 %v21582_v14, %v21581_v12  ;;  %v21584_v20 = vpop.f32.mrb[50].mxu1  ;;  %10490 = vmatpush1.bf16.msra.mxu1 %v23914_v6  ;;  %21665 = vmatprep.subr.bf16.mxu0 %v23922_v10  ;;  %v23964_v6 = vld [vmem:[%s31090_s3 + $0x21a8] ss:$12 sps:$4 sm:$0xff]   ;;  %v23969_v14 = vld [vmem:[%s31090_s3 + $0x21c0] ss:$12 sps:$4 sm:$0xff]  }
 0x69b   : > { %v21585_v49 = vpop.f32.mrb[51].mxu1  ;;  %10491 = vmatprep.subr.bf16.mxu1 %v23921_v11  ;;  %v23972_v10 = vld [vmem:[%s31090_s3 + $0x21c8] ss:$12 sps:$4 sm:$0xff]   ;;  %v23971_v11 = vld [vmem:[%s31090_s3 + $0x21c4] ss:$12 sps:$4 sm:$0xff]  }
 0x69c   : > { %v23973_v12 = vld [vmem:[%s31090_s3 + $0x2108] ss:$12 sps:$4 sm:$0xff]   ;;  %v23978_v20 = vld [vmem:[%s31090_s3 + $0x2120] ss:$12 sps:$4 sm:$0xff]  }
 0x69d   : > { %21666 = vmatpush3.bf16.msra.mxu0 %v23923_v16  ;;  %v23977_v16 = vld [vmem:[%s31090_s3 + $0x21e0] ss:$12 sps:$4 sm:$0xff]  }
 0x69e   : > { %10492 = vmatpush1.bf16.msra.mxu1 %v23919_v40  ;;  %21667 = vmatprep.subr.bf16.mxu0 %v23927_v36  ;;  %v23974_v40 = vld [vmem:[%s31090_s3 + $0x21d8] ss:$12 sps:$4 sm:$0xff]   ;;  %v23981_v49 = vld [vmem:[%s31090_s3 + $0x21f4] ss:$12 sps:$4 sm:$0xff]  }
 0x69f   : > { %10493 = vmatprep.subr.bf16.mxu1 %v23926_v63  ;;  %v23982_v36 = vld [vmem:[%s31090_s3 + $0x21f8] ss:$12 sps:$4 sm:$0xff]  }
 0x6a0   : > { %v23983_v63 = vld [vmem:[%s31090_s3 + $0x2138] ss:$12 sps:$4 sm:$0xff]  }
 0x6a1   : > { %21668 = vmatpush3.bf16.msra.mxu0 %v23928_v0  ;;  %v23979_v0 = vld [vmem:[%s31090_s3 + $0x21f0] ss:$12 sps:$4 sm:$0xff]  }
 0x6a2   : > { %10494 = vmatpush1.bf16.msra.mxu1 %v23924_v25  ;;  %21675 = vmatprep.subr.bf16.mxu0 %v23932_v26  ;;  %v23987_v25 = vld [vmem:[%s31090_s3 + $0x2210] ss:$12 sps:$4 sm:$0xff]   ;;  %v23986_v26 = vld [vmem:[%s31090_s3 + $0x220c] ss:$12 sps:$4 sm:$0xff]  }
 0x6a3   : > { %10504 = vmatprep.subr.bf16.mxu1 %v23931_v27  ;;  %v23988_v27 = vld [vmem:[%s31090_s3 + $0x2150] ss:$12 sps:$4 sm:$0xff]  }
 0x6a4   : > { %10619 = vmatmul.mubr.bf16.vlgmr.msra.gmra.mrb[52].mxu0 %v25280_v18 }
 0x6a5   : > { %10496 = vmatmul.mubr.bf16.vlgmr.msra.gmra.mrb[64].mxu1 %v25398_v4  ;;  %21676 = vmatpush3.bf16.msra.mxu0 %v23933_v28  ;;  %v23984_v28 = vld [vmem:[%s31090_s3 + $0x2208] ss:$12 sps:$4 sm:$0xff]  }
 0x6a6   : > { %10505 = vmatpush1.bf16.msra.mxu1 %v23929_v29  ;;  %10536 = vmatprep.mubr.bf16.mxu1 %v25409_v9  ;;  %v23992_v29 = vld [vmem:[%s31090_s3 + $0x2228] ss:$12 sps:$4 sm:$0xff]  }
 0x6a7   : > { %10658 = vmatprep.mubr.bf16.mxu0 %v25292_v23  ;;  %10506 = vmatprep.subr.bf16.mxu1 %v23936_v31  ;;  %v23991_v31 = vld [vmem:[%s31090_s3 + $0x2224] ss:$12 sps:$4 sm:$0xff]  }
 0x6a8   : > { %21677 = vmatprep.subr.bf16.mxu0 %v23937_v32  ;;  %v23993_v32 = vld [vmem:[%s31090_s3 + $0x2168] ss:$12 sps:$4 sm:$0xff]  }
 0x6a9   : > { %21678 = vmatpush3.bf16.msra.mxu0 %v23938_v35  ;;  %v23989_v35 = vld [vmem:[%s31090_s3 + $0x2220] ss:$12 sps:$4 sm:$0xff]  }
 0x6aa   : > { %10507 = vmatpush1.bf16.msra.mxu1 %v23934_v46  ;;  %21679 = vmatprep.subr.bf16.mxu0 %v23942_v37  ;;  %v23997_v46 = vld [vmem:[%s31090_s3 + $0x2240] ss:$12 sps:$4 sm:$0xff]   ;;  %v23996_v37 = vld [vmem:[%s31090_s3 + $0x223c] ss:$12 sps:$4 sm:$0xff]  }
 0x6ab   : > { %10508 = vmatprep.subr.bf16.mxu1 %v23941_v42  ;;  %v23998_v42 = vld [vmem:[%s31090_s3 + $0x2180] ss:$12 sps:$4 sm:$0xff]  }
 0x6ad   : > { %21680 = vmatpush3.bf16.msra.mxu0 %v23943_v13  ;;  %v23994_v13 = vld [vmem:[%s31090_s3 + $0x2238] ss:$12 sps:$4 sm:$0xff]  }
 0x6ae   : > { %10509 = vmatpush1.bf16.msra.mxu1 %v23939_v38  ;;  %21681 = vmatprep.subr.bf16.mxu0 %v23947_v39  ;;  %v24002_v38 = vld [vmem:[%s31090_s3 + $0x2258] ss:$12 sps:$4 sm:$0xff]   ;;  %v24001_v39 = vld [vmem:[%s31090_s3 + $0x2254] ss:$12 sps:$4 sm:$0xff]  }
 0x6af   : > { %10510 = vmatprep.subr.bf16.mxu1 %v23946_v43 }
 0x6b1   : > { %21682 = vmatpush3.bf16.msra.mxu0 %v23948_v45 }
 0x6b2   : > { %10511 = vmatpush1.bf16.msra.mxu1 %v23944_v48  ;;  %21683 = vmatprep.subr.bf16.mxu0 %v23952_v15  ;;  %v24003_v48 = vld [vmem:[%s31090_s3 + $0x2198] ss:$12 sps:$4 sm:$0xff]  }
 0x6b3   : > { %10512 = vmatprep.subr.bf16.mxu1 %v23951_v50 }
 0x6b5   : > { %21684 = vmatpush3.bf16.msra.mxu0 %v23953_v24  ;;  %v23999_v24 = vld [vmem:[%s31090_s3 + $0x2250] ss:$12 sps:$4 sm:$0xff]  }
 0x6b6   : > { %10513 = vmatpush1.bf16.msra.mxu1 %v23949_v51  ;;  %21685 = vmatprep.subr.bf16.mxu0 %v23957_v21  ;;  %v24007_v51 = vld [vmem:[%s31090_s3 + $0x2270] ss:$12 sps:$4 sm:$0xff]  }
 0x6b7   : > { %10514 = vmatprep.subr.bf16.mxu1 %v23956_v44  ;;  %v24006_v44 = vld [vmem:[%s31090_s3 + $0x226c] ss:$12 sps:$4 sm:$0xff]  }
 0x6b8   : > { %v21603_v55 = vpop.f32.mrb[52].mxu1 }
 0x6b9   : > { %v21604_v57 = vpop.f32.mrb[53].mxu1  ;;  %21686 = vmatpush3.bf16.msra.mxu0 %v23958_v52 }
 0x6ba   : > { %v21605_v59 = vadd.f32 %v21604_v57, %v21603_v55  ;;  %v21606_v60 = vpop.f32.mrb[54].mxu1  ;;  %10515 = vmatpush1.bf16.msra.mxu1 %v23954_v34  ;;  %21687 = vmatprep.subr.bf16.mxu0 %v23962_v47  ;;  %v24008_v34 = vld [vmem:[%s31090_s3 + $0x21b0] ss:$12 sps:$4 sm:$0xff]   ;;  %v24004_v47 = vld [vmem:[%s31090_s3 + $0x2268] ss:$12 sps:$4 sm:$0xff]  }
 0x6bb   : > { %v21607_v1 = vpop.f32.mrb[55].mxu1  ;;  %10516 = vmatprep.subr.bf16.mxu1 %v23961_v54  ;;  %v24012_v54 = vld [vmem:[%s31090_s3 + $0x2348] ss:$12 sps:$4 sm:$0xff]   ;;  %v24011_v55 = vld [vmem:[%s31090_s3 + $0x2284] ss:$12 sps:$4 sm:$0xff]  }
 0x6bc   : > { %v28524_v3 = vadd.f32 %v21605_v59, %v28412_v17  ;;  %v23976_v17 = vld [vmem:[%s31090_s3 + $0x21dc] ss:$12 sps:$4 sm:$0xff]   ;;  %v24017_v60 = vld [vmem:[%s31090_s3 + $0x2360] ss:$12 sps:$4 sm:$0xff]   ;;  %v24022_v1 = vld [vmem:[%s31090_s3 + $0x2378] ss:$12 sps:$4 sm:$0xff]  }
 0x6bd   : > { %21688 = vmatpush3.bf16.msra.mxu0 %v23963_v58  ;;  %v24013_v57 = vld [vmem:[%s31090_s3 + $0x2288] ss:$12 sps:$4 sm:$0xff]   ;;  %v24009_v58 = vld [vmem:[%s31090_s3 + $0x2280] ss:$12 sps:$4 sm:$0xff]  }
 0x6be   : > { %10517 = vmatpush1.bf16.msra.mxu1 %v23959_v61  ;;  %21689 = vmatprep.subr.bf16.mxu0 %v23967_v62  ;;  %v24016_v59 = vld [vmem:[%s31090_s3 + $0x229c] ss:$12 sps:$4 sm:$0xff]   ;;  %v24018_v61 = vld [vmem:[%s31090_s3 + $0x22a0] ss:$12 sps:$4 sm:$0xff]   ;;  %v24014_v62 = vld [vmem:[%s31090_s3 + $0x2298] ss:$12 sps:$4 sm:$0xff]  }
 0x6bf   : > { %10518 = vmatprep.subr.bf16.mxu1 %v23966_v2  ;;  %v24021_v2 = vld [vmem:[%s31090_s3 + $0x22b4] ss:$12 sps:$4 sm:$0xff]  }
 0x6c1   : > { %21690 = vmatpush3.bf16.msra.mxu0 %v23968_v5  ;;  %v24019_v5 = vld [vmem:[%s31090_s3 + $0x22b0] ss:$12 sps:$4 sm:$0xff]  }
 0x6c2   : > { %10519 = vmatpush1.bf16.msra.mxu1 %v23964_v6  ;;  %21697 = vmatprep.subr.bf16.mxu0 %v23972_v10  ;;  %v24027_v6 = vld [vmem:[%s31090_s3 + $0x2390] ss:$12 sps:$4 sm:$0xff]   ;;  %v24026_v10 = vld [vmem:[%s31090_s3 + $0x22cc] ss:$12 sps:$4 sm:$0xff]  }
 0x6c3   : > { %10520 = vmatprep.subr.bf16.mxu1 %v23971_v11  ;;  %v24028_v11 = vld [vmem:[%s31090_s3 + $0x22d0] ss:$12 sps:$4 sm:$0xff]  }
 0x6c4   : > { %10659 = vmatmul.mubr.bf16.vlgmr.msra.gmra.mrb[56].mxu0 %v25398_v4 }
 0x6c5   : > { %21698 = vmatpush3.bf16.msra.mxu0 %v23973_v12  ;;  %10698 = vmatprep.mubr.bf16.mxu0 %v25409_v9  ;;  %v24024_v12 = vld [vmem:[%s31090_s3 + $0x22c8] ss:$12 sps:$4 sm:$0xff]  }
 0x6c6   : > { %10521 = vmatpush1.bf16.msra.mxu1 %v23969_v14  ;;  %21699 = vmatprep.subr.bf16.mxu0 %v23977_v16  ;;  %v24032_v14 = vld [vmem:[%s31090_s3 + $0x23a8] ss:$12 sps:$4 sm:$0xff]   ;;  %v24031_v16 = vld [vmem:[%s31090_s3 + $0x22e4] ss:$12 sps:$4 sm:$0xff]  }
 0x6c7   : > { %10522 = vmatprep.subr.bf16.mxu1 %v23976_v17  ;;  %v24033_v17 = vld [vmem:[%s31090_s3 + $0x22e8] ss:$12 sps:$4 sm:$0xff]  }
 0x6c9   : > { %21700 = vmatpush3.bf16.msra.mxu0 %v23978_v20  ;;  %v24029_v20 = vld [vmem:[%s31090_s3 + $0x22e0] ss:$12 sps:$4 sm:$0xff]  }
 0x6ca   : > { %10523 = vmatpush1.bf16.msra.mxu1 %v23974_v40  ;;  %21701 = vmatprep.subr.bf16.mxu0 %v23982_v36  ;;  %v24037_v40 = vld [vmem:[%s31090_s3 + $0x23c0] ss:$12 sps:$4 sm:$0xff]   ;;  %v24036_v36 = vld [vmem:[%s31090_s3 + $0x22fc] ss:$12 sps:$4 sm:$0xff]  }
 0x6cb   : > { %10524 = vmatprep.subr.bf16.mxu1 %v23981_v49  ;;  %v24038_v49 = vld [vmem:[%s31090_s3 + $0x2300] ss:$12 sps:$4 sm:$0xff]  }
 0x6cd   : > { %21702 = vmatpush3.bf16.msra.mxu0 %v23983_v63  ;;  %v24034_v63 = vld [vmem:[%s31090_s3 + $0x22f8] ss:$12 sps:$4 sm:$0xff]  }
 0x6ce   : > { %10525 = vmatpush1.bf16.msra.mxu1 %v23979_v0  ;;  %21703 = vmatprep.subr.bf16.mxu0 %v23987_v25  ;;  %v24042_v0 = vld [vmem:[%s31090_s3 + $0x23d8] ss:$12 sps:$4 sm:$0xff]   ;;  %v24041_v25 = vld [vmem:[%s31090_s3 + $0x2314] ss:$12 sps:$4 sm:$0xff]  }
 0x6cf   : > { %10526 = vmatprep.subr.bf16.mxu1 %v23986_v26 }
 0x6d1   : > { %21704 = vmatpush3.bf16.msra.mxu0 %v23988_v27 }
 0x6d2   : > { %10527 = vmatpush1.bf16.msra.mxu1 %v23984_v28  ;;  %21705 = vmatprep.subr.bf16.mxu0 %v23992_v29  ;;  %v24043_v28 = vld [vmem:[%s31090_s3 + $0x2318] ss:$12 sps:$4 sm:$0xff]  }
 0x6d3   : > { %10528 = vmatprep.subr.bf16.mxu1 %v23991_v31 }
 0x6d5   : > { %21706 = vmatpush3.bf16.msra.mxu0 %v23993_v32  ;;  %v24039_v32 = vld [vmem:[%s31090_s3 + $0x2310] ss:$12 sps:$4 sm:$0xff]  }
 0x6d6   : > { %10529 = vmatpush1.bf16.msra.mxu1 %v23989_v35  ;;  %21707 = vmatprep.subr.bf16.mxu0 %v23997_v46  ;;  %v24047_v35 = vld [vmem:[%s31090_s3 + $0x23f0] ss:$12 sps:$4 sm:$0xff]  }
 0x6d7   : > { %10530 = vmatprep.subr.bf16.mxu1 %v23996_v37  ;;  %v24046_v37 = vld [vmem:[%s31090_s3 + $0x232c] ss:$12 sps:$4 sm:$0xff]  }
 0x6d8   : > { %v21625_v43 = vpop.f32.mrb[56].mxu1 }
 0x6d9   : > { %v21626_v45 = vpop.f32.mrb[57].mxu1  ;;  %21708 = vmatpush3.bf16.msra.mxu0 %v23998_v42 }
 0x6da   : > { %v21627_v15 = vadd.f32 %v21626_v45, %v21625_v43  ;;  %v21628_v50 = vpop.f32.mrb[58].mxu1  ;;  %10531 = vmatpush1.bf16.msra.mxu1 %v23994_v13  ;;  %21709 = vmatprep.subr.bf16.mxu0 %v24002_v38  ;;  %v24048_v13 = vld [vmem:[%s31090_s3 + $0x2330] ss:$12 sps:$4 sm:$0xff]   ;;  %v24044_v38 = vld [vmem:[%s31090_s3 + $0x2328] ss:$12 sps:$4 sm:$0xff]  }
 0x6db   : > { %v21629_v21 = vpop.f32.mrb[59].mxu1  ;;  %10532 = vmatprep.subr.bf16.mxu1 %v24001_v39  ;;  %v24054_v39 = vld [vmem:[%s31090_s3 + $0x2404] ss:$12 sps:$4 sm:$0xff]   ;;  %v24052_v45 = vld [vmem:[%s31090_s3 + $0x2400] ss:$12 sps:$4 sm:$0xff]  }
 0x6dc   : > { %v28625_v52 = vadd.f32 %v21627_v15, %v28524_v3  ;;  %v24023_v3 = vld [vmem:[%s31090_s3 + $0x22b8] ss:$12 sps:$4 sm:$0xff]   ;;  %v24060_v15 = vld [vmem:[%s31090_s3 + $0x241c] ss:$12 sps:$4 sm:$0xff]   ;;  %v24066_v21 = vld [vmem:[%s31090_s3 + $0x2434] ss:$12 sps:$4 sm:$0xff]  }
 0x6dd   : > { %21710 = vmatpush3.bf16.msra.mxu0 %v24003_v48  ;;  %v24051_v43 = vld [vmem:[%s31090_s3 + $0x2344] ss:$12 sps:$4 sm:$0xff]   ;;  %v24049_v48 = vld [vmem:[%s31090_s3 + $0x2340] ss:$12 sps:$4 sm:$0xff]   ;;  %v24057_v50 = vld [vmem:[%s31090_s3 + $0x235c] ss:$12 sps:$4 sm:$0xff]  }
 0x6de   : > { %10533 = vmatpush1.bf16.msra.mxu1 %v23999_v24  ;;  %21711 = vmatprep.subr.bf16.mxu0 %v24007_v51  ;;  %v24058_v24 = vld [vmem:[%s31090_s3 + $0x2418] ss:$12 sps:$4 sm:$0xff]  }
 0x6df   : > { %10534 = vmatprep.subr.bf16.mxu1 %v24006_v44  ;;  %v24055_v51 = vld [vmem:[%s31090_s3 + $0x2358] ss:$12 sps:$4 sm:$0xff]   ;;  %v24063_v44 = vld [vmem:[%s31090_s3 + $0x2374] ss:$12 sps:$4 sm:$0xff]  }
 0x6e1   : > { %21712 = vmatpush3.bf16.msra.mxu0 %v24008_v34  ;;  %v24061_v34 = vld [vmem:[%s31090_s3 + $0x2370] ss:$12 sps:$4 sm:$0xff]  }
 0x6e2   : > { %10535 = vmatpush1.bf16.msra.mxu1 %v24004_v47  ;;  %21719 = vmatprep.subr.bf16.mxu0 %v24012_v54  ;;  %v24072_v47 = vld [vmem:[%s31090_s3 + $0x244c] ss:$12 sps:$4 sm:$0xff]  }
 0x6e3   : > { %10545 = vmatprep.subr.bf16.mxu1 %v24011_v55  ;;  %v24069_v54 = vld [vmem:[%s31090_s3 + $0x238c] ss:$12 sps:$4 sm:$0xff]   ;;  %v24070_v55 = vld [vmem:[%s31090_s3 + $0x2448] ss:$12 sps:$4 sm:$0xff]  }
 0x6e4   : > { %10699 = vmatmul.mubr.bf16.vlgmr.msra.gmra.mrb[60].mxu0 %v25510_v53 }
 0x6e5   : > { %10537 = vmatmul.mubr.bf16.vlgmr.msra.gmra.mrb[64].mxu1 %v25510_v53  ;;  %21720 = vmatpush3.bf16.msra.mxu0 %v24013_v57  ;;  %v24067_v57 = vld [vmem:[%s31090_s3 + $0x2388] ss:$12 sps:$4 sm:$0xff]  }
 0x6e6   : > { %10546 = vmatpush1.bf16.msra.mxu1 %v24009_v58  ;;  %10577 = vmatprep.mubr.bf16.mxu1 %v25518_v56  ;;  %v24078_v58 = vld [vmem:[%s31090_s3 + $0x2464] ss:$12 sps:$4 sm:$0xff]  }
 0x6e7   : > { %10738 = vmatprep.mubr.bf16.mxu0 %v25518_v56  ;;  %10547 = vmatprep.subr.bf16.mxu1 %v24016_v59  ;;  %v24075_v59 = vld [vmem:[%s31090_s3 + $0x23a4] ss:$12 sps:$4 sm:$0xff]  }
 0x6e8   : > { %21721 = vmatprep.subr.bf16.mxu0 %v24017_v60  ;;  %v24076_v60 = vld [vmem:[%s31090_s3 + $0x2460] ss:$12 sps:$4 sm:$0xff]  }
 0x6e9   : > { %21722 = vmatpush3.bf16.msra.mxu0 %v24018_v61  ;;  %v24073_v61 = vld [vmem:[%s31090_s3 + $0x23a0] ss:$12 sps:$4 sm:$0xff]  }
 0x6ea   : > { %10548 = vmatpush1.bf16.msra.mxu1 %v24014_v62  ;;  %21723 = vmatprep.subr.bf16.mxu0 %v24022_v1  ;;  %v24084_v62 = vld [vmem:[%s31090_s3 + $0x247c] ss:$12 sps:$4 sm:$0xff]  }
 0x6eb   : > { %10549 = vmatprep.subr.bf16.mxu1 %v24021_v2  ;;  %v24081_v1 = vld [vmem:[%s31090_s3 + $0x23bc] ss:$12 sps:$4 sm:$0xff]   ;;  %v24082_v2 = vld [vmem:[%s31090_s3 + $0x2478] ss:$12 sps:$4 sm:$0xff]  }
 0x6ed   : > { %21724 = vmatpush3.bf16.msra.mxu0 %v24023_v3  ;;  %v24079_v3 = vld [vmem:[%s31090_s3 + $0x23b8] ss:$12 sps:$4 sm:$0xff]  }
 0x6ee   : > { %10550 = vmatpush1.bf16.msra.mxu1 %v24019_v5  ;;  %21725 = vmatprep.subr.bf16.mxu0 %v24027_v6  ;;  %v24090_v5 = vld [vmem:[%s31090_s3 + $0x2494] ss:$12 sps:$4 sm:$0xff]  }
 0x6ef   : > { %10551 = vmatprep.subr.bf16.mxu1 %v24026_v10  ;;  %v24087_v6 = vld [vmem:[%s31090_s3 + $0x23d4] ss:$12 sps:$4 sm:$0xff]   ;;  %v24088_v10 = vld [vmem:[%s31090_s3 + $0x2490] ss:$12 sps:$4 sm:$0xff]  }
 0x6f1   : > { %21726 = vmatpush3.bf16.msra.mxu0 %v24028_v11  ;;  %v24085_v11 = vld [vmem:[%s31090_s3 + $0x23d0] ss:$12 sps:$4 sm:$0xff]  }
 0x6f2   : > { %10552 = vmatpush1.bf16.msra.mxu1 %v24024_v12  ;;  %21727 = vmatprep.subr.bf16.mxu0 %v24032_v14  ;;  %v24096_v12 = vld [vmem:[%s31090_s3 + $0x24ac] ss:$12 sps:$4 sm:$0xff]  }
 0x6f3   : > { %10553 = vmatprep.subr.bf16.mxu1 %v24031_v16  ;;  %v24093_v14 = vld [vmem:[%s31090_s3 + $0x23ec] ss:$12 sps:$4 sm:$0xff]   ;;  %v24094_v16 = vld [vmem:[%s31090_s3 + $0x24a8] ss:$12 sps:$4 sm:$0xff]  }
 0x6f5   : > { %21728 = vmatpush3.bf16.msra.mxu0 %v24033_v17  ;;  %v24091_v17 = vld [vmem:[%s31090_s3 + $0x23e8] ss:$12 sps:$4 sm:$0xff]  }
 0x6f6   : > { %10554 = vmatpush1.bf16.msra.mxu1 %v24029_v20  ;;  %21729 = vmatprep.subr.bf16.mxu0 %v24037_v40  ;;  %v24099_v20 = vld [vmem:[%s31090_s3 + $0x24c4] ss:$12 sps:$4 sm:$0xff]   ;;  %v24100_v40 = vld [vmem:[%s31090_s3 + $0x24c8] ss:$12 sps:$4 sm:$0xff]  }
 0x6f7   : > { %10555 = vmatprep.subr.bf16.mxu1 %v24036_v36  ;;  %v24097_v36 = vld [vmem:[%s31090_s3 + $0x24c0] ss:$12 sps:$4 sm:$0xff]  }
 0x6f8   : > { %v21647_v26 = vpop.f32.mrb[60].mxu1 }
 0x6f9   : > { %v21648_v27 = vpop.f32.mrb[61].mxu1  ;;  %21730 = vmatpush3.bf16.msra.mxu0 %v24038_v49  ;;  %v24101_v49 = vld [vmem:[%s31090_s3 + $0x2408] ss:$12 sps:$4 sm:$0xff]  }
 0x6fa   : > { %v21649_v29 = vadd.f32 %v21648_v27, %v21647_v26  ;;  %v21650_v31 = vpop.f32.mrb[62].mxu1  ;;  %10556 = vmatpush1.bf16.msra.mxu1 %v24034_v63  ;;  %21731 = vmatprep.subr.bf16.mxu0 %v24042_v0  ;;  %v24104_v63 = vld [vmem:[%s31090_s3 + $0x24dc] ss:$12 sps:$4 sm:$0xff]   ;;  %v24105_v0 = vld [vmem:[%s31090_s3 + $0x24e0] ss:$12 sps:$4 sm:$0xff]  }
 0x6fb   : > { %v21651_v46 = vpop.f32.mrb[63].mxu1  ;;  %10557 = vmatprep.subr.bf16.mxu1 %v24041_v25  ;;  %v24102_v25 = vld [vmem:[%s31090_s3 + $0x24d8] ss:$12 sps:$4 sm:$0xff]   ;;  %v24106_v26 = vld [vmem:[%s31090_s3 + $0x2420] ss:$12 sps:$4 sm:$0xff]  }
 0x6fc   : > { %v9133_v42 = vadd.f32 %v21649_v29, %v28625_v52  ;;  %v24064_v52 = vld [vmem:[%s31090_s3 + $0x2430] ss:$12 sps:$4 sm:$0xff]   ;;  %v24109_v27 = vld [vmem:[%s31090_s3 + $0x24f4] ss:$12 sps:$4 sm:$0xff]   ;;  %v24111_v31 = vld [vmem:[%s31090_s3 + $0x2438] ss:$12 sps:$4 sm:$0xff]  }
 0x6fd   : > { %21732 = vmatpush3.bf16.msra.mxu0 %v24043_v28  ;;  %v24110_v28 = vld [vmem:[%s31090_s3 + $0x24f8] ss:$12 sps:$4 sm:$0xff]   ;;  %v24107_v29 = vld [vmem:[%s31090_s3 + $0x24f0] ss:$12 sps:$4 sm:$0xff]   ;;  %v24112_v46 = vld [vmem:[%s31090_s3 + $0x2508] ss:$12 sps:$4 sm:$0xff]  }
 0x6fe   : > { %9140 = vst.msk [vmem:[#allocation2 + $0x70] sm:$0xff] %vm2707_vm11, %v9133_v42  ;;  %10558 = vmatpush1.bf16.msra.mxu1 %v24039_v32  ;;  %21733 = vmatprep.subr.bf16.mxu0 %v24047_v35  ;;  %v24114_v32 = vld [vmem:[%s31090_s3 + $0x250c] ss:$12 sps:$4 sm:$0xff]   ;;  %v24115_v35 = vld [vmem:[%s31090_s3 + $0x2510] ss:$12 sps:$4 sm:$0xff]  }
 0x6ff   : > { %10559 = vmatprep.subr.bf16.mxu1 %v24046_v37  ;;  %v24116_v37 = vld [vmem:[%s31090_s3 + $0x2450] ss:$12 sps:$4 sm:$0xff]  }
 0x700   : > { %v24119_v42 = vld [vmem:[%s31090_s3 + $0x2524] ss:$12 sps:$4 sm:$0xff]  }
 0x701   : > { %21734 = vmatpush3.bf16.msra.mxu0 %v24048_v13  ;;  %v24120_v13 = vld [vmem:[%s31090_s3 + $0x2528] ss:$12 sps:$4 sm:$0xff]  }
 0x702   : > { %10560 = vmatpush1.bf16.msra.mxu1 %v24044_v38  ;;  %12030 = vmatprep.subr.bf16.mxu0 %v24054_v39  ;;  %v24117_v38 = vld [vmem:[%s31090_s3 + $0x2520] ss:$12 sps:$4 sm:$0xff]   ;;  %v24121_v39 = vld [vmem:[%s31090_s3 + $0x2468] ss:$12 sps:$4 sm:$0xff]  }
 0x703   : > { %10561 = vmatprep.subr.bf16.mxu1 %v24051_v43  ;;  %v24124_v43 = vld [vmem:[%s31090_s3 + $0x253c] ss:$12 sps:$4 sm:$0xff]  }
 0x704   : > { %10739 = vmatmul.mubr.bf16.vlgmr.msra.gmra.mrb[64].mxu0 %v25619_v30 }
 0x705   : > { %12031 = vmatpush1.bf16.msra.mxu0 %v24052_v45  ;;  %12062 = vmatprep.mubr.bf16.mxu0 %v25282_v19  ;;  %v24125_v45 = vld [vmem:[%s31090_s3 + $0x2540] ss:$12 sps:$4 sm:$0xff]  }
 0x706   : > { %10562 = vmatpush1.bf16.msra.mxu1 %v24049_v48  ;;  %12032 = vmatprep.subr.bf16.mxu0 %v24060_v15  ;;  %v24122_v48 = vld [vmem:[%s31090_s3 + $0x2538] ss:$12 sps:$4 sm:$0xff]   ;;  %v24126_v15 = vld [vmem:[%s31090_s3 + $0x2480] ss:$12 sps:$4 sm:$0xff]  }
 0x707   : > { %10563 = vmatprep.subr.bf16.mxu1 %v24057_v50  ;;  %v24129_v50 = vld [vmem:[%s31090_s3 + $0x2554] ss:$12 sps:$4 sm:$0xff]  }
 0x709   : > { %12033 = vmatpush1.bf16.msra.mxu0 %v24058_v24  ;;  %v24130_v24 = vld [vmem:[%s31090_s3 + $0x2558] ss:$12 sps:$4 sm:$0xff]  }
 0x70a   : > { %10564 = vmatpush1.bf16.msra.mxu1 %v24055_v51  ;;  %12034 = vmatprep.subr.bf16.mxu0 %v24066_v21  ;;  %v24127_v51 = vld [vmem:[%s31090_s3 + $0x2550] ss:$12 sps:$4 sm:$0xff]   ;;  %v24131_v21 = vld [vmem:[%s31090_s3 + $0x2498] ss:$12 sps:$4 sm:$0xff]  }
 0x70b   : > { %10565 = vmatprep.subr.bf16.mxu1 %v24063_v44  ;;  %v24134_v44 = vld [vmem:[%s31090_s3 + $0x256c] ss:$12 sps:$4 sm:$0xff]  }
 0x70d   : > { %12035 = vmatpush1.bf16.msra.mxu0 %v24064_v52  ;;  %v24135_v52 = vld [vmem:[%s31090_s3 + $0x2570] ss:$12 sps:$4 sm:$0xff]  }
 0x70e   : > { %10566 = vmatpush1.bf16.msra.mxu1 %v24061_v34  ;;  %12036 = vmatprep.subr.bf16.mxu0 %v24072_v47  ;;  %v24132_v34 = vld [vmem:[%s31090_s3 + $0x2568] ss:$12 sps:$4 sm:$0xff]   ;;  %v24136_v47 = vld [vmem:[%s31090_s3 + $0x24b0] ss:$12 sps:$4 sm:$0xff]  }
 0x70f   : > { %10567 = vmatprep.subr.bf16.mxu1 %v24069_v54  ;;  %v24139_v54 = vld [vmem:[%s31090_s3 + $0x2584] ss:$12 sps:$4 sm:$0xff]  }
 0x711   : > { %12037 = vmatpush1.bf16.msra.mxu0 %v24070_v55  ;;  %v24140_v55 = vld [vmem:[%s31090_s3 + $0x2648] ss:$12 sps:$4 sm:$0xff]  }
 0x712   : > { %10568 = vmatpush1.bf16.msra.mxu1 %v24067_v57  ;;  %12038 = vmatprep.subr.bf16.mxu0 %v24078_v58  ;;  %v24137_v57 = vld [vmem:[%s31090_s3 + $0x2580] ss:$12 sps:$4 sm:$0xff]   ;;  %v24141_v58 = vld [vmem:[%s31090_s3 + $0x2588] ss:$12 sps:$4 sm:$0xff]  }
 0x713   : > { %10569 = vmatprep.subr.bf16.mxu1 %v24075_v59  ;;  %v24144_v59 = vld [vmem:[%s31090_s3 + $0x259c] ss:$12 sps:$4 sm:$0xff]  }
 0x715   : > { %12039 = vmatpush1.bf16.msra.mxu0 %v24076_v60  ;;  %v24145_v60 = vld [vmem:[%s31090_s3 + $0x2660] ss:$12 sps:$4 sm:$0xff]  }
 0x716   : > { %10570 = vmatpush1.bf16.msra.mxu1 %v24073_v61  ;;  %12040 = vmatprep.subr.bf16.mxu0 %v24084_v62  ;;  %v24142_v61 = vld [vmem:[%s31090_s3 + $0x2598] ss:$12 sps:$4 sm:$0xff]   ;;  %v24146_v62 = vld [vmem:[%s31090_s3 + $0x25a0] ss:$12 sps:$4 sm:$0xff]  }
 0x717   : > { %10571 = vmatprep.subr.bf16.mxu1 %v24081_v1  ;;  %v24149_v1 = vld [vmem:[%s31090_s3 + $0x25b4] ss:$12 sps:$4 sm:$0xff]  }
 0x719   : > { %12041 = vmatpush1.bf16.msra.mxu0 %v24082_v2  ;;  %v24150_v2 = vld [vmem:[%s31090_s3 + $0x2678] ss:$12 sps:$4 sm:$0xff]  }
 0x71a   : > { %10572 = vmatpush1.bf16.msra.mxu1 %v24079_v3  ;;  %12042 = vmatprep.subr.bf16.mxu0 %v24090_v5  ;;  %v24147_v3 = vld [vmem:[%s31090_s3 + $0x25b0] ss:$12 sps:$4 sm:$0xff]   ;;  %v24151_v5 = vld [vmem:[%s31090_s3 + $0x25b8] ss:$12 sps:$4 sm:$0xff]  }
 0x71b   : > { %10573 = vmatprep.subr.bf16.mxu1 %v24087_v6  ;;  %v24154_v6 = vld [vmem:[%s31090_s3 + $0x25cc] ss:$12 sps:$4 sm:$0xff]  }
 0x71d   : > { %12043 = vmatpush1.bf16.msra.mxu0 %v24088_v10  ;;  %v24155_v10 = vld [vmem:[%s31090_s3 + $0x2690] ss:$12 sps:$4 sm:$0xff]  }
 0x71e   : > { %10574 = vmatpush1.bf16.msra.mxu1 %v24085_v11  ;;  %12044 = vmatprep.subr.bf16.mxu0 %v24096_v12  ;;  %v24152_v11 = vld [vmem:[%s31090_s3 + $0x25c8] ss:$12 sps:$4 sm:$0xff]   ;;  %v24156_v12 = vld [vmem:[%s31090_s3 + $0x25d0] ss:$12 sps:$4 sm:$0xff]  }
 0x71f   : > { %10575 = vmatprep.subr.bf16.mxu1 %v24093_v14  ;;  %v24159_v14 = vld [vmem:[%s31090_s3 + $0x25e4] ss:$12 sps:$4 sm:$0xff]  }
 0x721   : > { %12045 = vmatpush1.bf16.msra.mxu0 %v24094_v16  ;;  %v24160_v16 = vld [vmem:[%s31090_s3 + $0x26a8] ss:$12 sps:$4 sm:$0xff]  }
 0x722   : > { %10576 = vmatpush1.bf16.msra.mxu1 %v24091_v17  ;;  %12046 = vmatprep.subr.bf16.mxu0 %v24099_v20  ;;  %v24157_v17 = vld [vmem:[%s31090_s3 + $0x25e0] ss:$12 sps:$4 sm:$0xff]   ;;  %v24161_v20 = vld [vmem:[%s31090_s3 + $0x25e8] ss:$12 sps:$4 sm:$0xff]  }
 0x723   : > { %21741 = vmatprep.subr.bf16.mxu1 %v24100_v40  ;;  %v24164_v40 = vld [vmem:[%s31090_s3 + $0x25fc] ss:$12 sps:$4 sm:$0xff]  }
 0x725   : > { %10578 = vmatmul.mubr.bf16.vlgmr.msra.gmra.mrb[64].mxu1 %v25619_v30  ;;  %12047 = vmatpush1.bf16.msra.mxu0 %v24097_v36  ;;  %v24165_v36 = vld [vmem:[%s31090_s3 + $0x26c0] ss:$12 sps:$4 sm:$0xff]  }
 0x726   : > { %21742 = vmatpush3.bf16.msra.mxu1 %v24101_v49  ;;  %12226 = vmatprep.mubr.bf16.mxu1 %v25282_v19  ;;  %v24162_v49 = vld [vmem:[%s31090_s3 + $0x25f8] ss:$12 sps:$4 sm:$0xff]  }
 0x727   : > { %12048 = vmatprep.subr.bf16.mxu0 %v24104_v63  ;;  %21743 = vmatprep.subr.bf16.mxu1 %v24105_v0  ;;  %v24166_v63 = vld [vmem:[%s31090_s3 + $0x2600] ss:$12 sps:$4 sm:$0xff]  }
 0x728   : > { %v24169_v0 = vld [vmem:[%s31090_s3 + $0x2614] ss:$12 sps:$4 sm:$0xff]  }
 0x729   : > { %12049 = vmatpush1.bf16.msra.mxu0 %v24102_v25 }
 0x72a   : > { %21744 = vmatpush3.bf16.msra.mxu1 %v24106_v26  ;;  %12050 = vmatprep.subr.bf16.mxu0 %v24109_v27  ;;  %v24170_v26 = vld [vmem:[%s31090_s3 + $0x26d8] ss:$12 sps:$4 sm:$0xff]  }
 0x72b   : > { %21745 = vmatprep.subr.bf16.mxu1 %v24110_v28 }
 0x72d   : > { %12051 = vmatpush1.bf16.msra.mxu0 %v24107_v29  ;;  %v24167_v29 = vld [vmem:[%s31090_s3 + $0x2610] ss:$12 sps:$4 sm:$0xff]  }
 0x72e   : > { %21746 = vmatpush3.bf16.msra.mxu1 %v24111_v31  ;;  %12052 = vmatprep.subr.bf16.mxu0 %v24114_v32  ;;  %v24171_v32 = vld [vmem:[%s31090_s3 + $0x2618] ss:$12 sps:$4 sm:$0xff]  }
 0x72f   : > { %21747 = vmatprep.subr.bf16.mxu1 %v24115_v35  ;;  %v24174_v35 = vld [vmem:[%s31090_s3 + $0x262c] ss:$12 sps:$4 sm:$0xff]  }
 0x731   : > { %12053 = vmatpush1.bf16.msra.mxu0 %v24112_v46  ;;  %v24175_v46 = vld [vmem:[%s31090_s3 + $0x26f0] ss:$12 sps:$4 sm:$0xff]  }
 0x732   : > { %21748 = vmatpush3.bf16.msra.mxu1 %v24116_v37  ;;  %12054 = vmatprep.subr.bf16.mxu0 %v24119_v42  ;;  %v24172_v37 = vld [vmem:[%s31090_s3 + $0x2628] ss:$12 sps:$4 sm:$0xff]   ;;  %v24176_v42 = vld [vmem:[%s31090_s3 + $0x2630] ss:$12 sps:$4 sm:$0xff]  }
 0x733   : > { %21749 = vmatprep.subr.bf16.mxu1 %v24120_v13  ;;  %v24179_v13 = vld [vmem:[%s31090_s3 + $0x2644] ss:$12 sps:$4 sm:$0xff]  }
 0x735   : > { %12055 = vmatpush1.bf16.msra.mxu0 %v24117_v38  ;;  %v24180_v38 = vld [vmem:[%s31090_s3 + $0x27c8] ss:$12 sps:$4 sm:$0xff]  }
 0x736   : > { %21750 = vmatpush3.bf16.msra.mxu1 %v24121_v39  ;;  %12056 = vmatprep.subr.bf16.mxu0 %v24124_v43  ;;  %v24177_v39 = vld [vmem:[%s31090_s3 + $0x2640] ss:$12 sps:$4 sm:$0xff]   ;;  %v24181_v43 = vld [vmem:[%s31090_s3 + $0x2708] ss:$12 sps:$4 sm:$0xff]  }
 0x737   : > { %21751 = vmatprep.subr.bf16.mxu1 %v24125_v45  ;;  %v24184_v45 = vld [vmem:[%s31090_s3 + $0x265c] ss:$12 sps:$4 sm:$0xff]  }
 0x739   : > { %12057 = vmatpush1.bf16.msra.mxu0 %v24122_v48  ;;  %v24185_v48 = vld [vmem:[%s31090_s3 + $0x27e0] ss:$12 sps:$4 sm:$0xff]  }
 0x73a   : > { %21752 = vmatpush3.bf16.msra.mxu1 %v24126_v15  ;;  %12058 = vmatprep.subr.bf16.mxu0 %v24129_v50  ;;  %v24182_v15 = vld [vmem:[%s31090_s3 + $0x2658] ss:$12 sps:$4 sm:$0xff]   ;;  %v24186_v50 = vld [vmem:[%s31090_s3 + $0x2720] ss:$12 sps:$4 sm:$0xff]  }
 0x73b   : > { %21753 = vmatprep.subr.bf16.mxu1 %v24130_v24  ;;  %v24189_v24 = vld [vmem:[%s31090_s3 + $0x2674] ss:$12 sps:$4 sm:$0xff]  }
 0x73d   : > { %12059 = vmatpush1.bf16.msra.mxu0 %v24127_v51  ;;  %v24190_v51 = vld [vmem:[%s31090_s3 + $0x27f8] ss:$12 sps:$4 sm:$0xff]  }
 0x73e   : > { %21754 = vmatpush3.bf16.msra.mxu1 %v24131_v21  ;;  %12060 = vmatprep.subr.bf16.mxu0 %v24134_v44  ;;  %v24187_v21 = vld [vmem:[%s31090_s3 + $0x2670] ss:$12 sps:$4 sm:$0xff]   ;;  %v24191_v44 = vld [vmem:[%s31090_s3 + $0x2738] ss:$12 sps:$4 sm:$0xff]  }
 0x73f   : > { %21755 = vmatprep.subr.bf16.mxu1 %v24135_v52  ;;  %v24194_v52 = vld [vmem:[%s31090_s3 + $0x268c] ss:$12 sps:$4 sm:$0xff]  }
 0x741   : > { %12061 = vmatpush1.bf16.msra.mxu0 %v24132_v34  ;;  %v24195_v34 = vld [vmem:[%s31090_s3 + $0x2810] ss:$12 sps:$4 sm:$0xff]  }
 0x742   : > { %21756 = vmatpush3.bf16.msra.mxu1 %v24136_v47  ;;  %12071 = vmatprep.subr.bf16.mxu0 %v24139_v54  ;;  %v24192_v47 = vld [vmem:[%s31090_s3 + $0x2688] ss:$12 sps:$4 sm:$0xff]   ;;  %v24196_v54 = vld [vmem:[%s31090_s3 + $0x2750] ss:$12 sps:$4 sm:$0xff]  }
 0x743   : > { %21763 = vmatprep.subr.bf16.mxu1 %v24140_v55  ;;  %v24199_v55 = vld [vmem:[%s31090_s3 + $0x26a4] ss:$12 sps:$4 sm:$0xff]  }
 0x744   : > { %12063 = vmatmul.mubr.bf16.vlgmr.msra.gmra.mrb[68].mxu0 %v25280_v18 }
 0x745   : > { %12227 = vmatmul.mubr.bf16.vlgmr.msra.gmra.mrb[68].mxu1 %v25280_v18  ;;  %12072 = vmatpush1.bf16.msra.mxu0 %v24137_v57  ;;  %v24200_v57 = vld [vmem:[%s31090_s3 + $0x2828] ss:$12 sps:$4 sm:$0xff]  }
 0x746   : > { %12103 = vmatprep.mubr.bf16.mxu0 %v25292_v23  ;;  %21764 = vmatpush3.bf16.msra.mxu1 %v24141_v58  ;;  %v24197_v58 = vld [vmem:[%s31090_s3 + $0x26a0] ss:$12 sps:$4 sm:$0xff]  }
 0x747   : > { %12266 = vmatprep.mubr.bf16.mxu1 %v25292_v23  ;;  %12073 = vmatprep.subr.bf16.mxu0 %v24144_v59  ;;  %v24201_v59 = vld [vmem:[%s31090_s3 + $0x2768] ss:$12 sps:$4 sm:$0xff]  }
 0x748   : > { %21765 = vmatprep.subr.bf16.mxu1 %v24145_v60  ;;  %v24204_v60 = vld [vmem:[%s31090_s3 + $0x26bc] ss:$12 sps:$4 sm:$0xff]  }
 0x749   : > { %12074 = vmatpush1.bf16.msra.mxu0 %v24142_v61  ;;  %v24205_v61 = vld [vmem:[%s31090_s3 + $0x2840] ss:$12 sps:$4 sm:$0xff]  }
 0x74a   : > { %21766 = vmatpush3.bf16.msra.mxu1 %v24146_v62  ;;  %12075 = vmatprep.subr.bf16.mxu0 %v24149_v1  ;;  %v24202_v62 = vld [vmem:[%s31090_s3 + $0x26b8] ss:$12 sps:$4 sm:$0xff]   ;;  %v24206_v1 = vld [vmem:[%s31090_s3 + $0x2780] ss:$12 sps:$4 sm:$0xff]  }
 0x74b   : > { %21767 = vmatprep.subr.bf16.mxu1 %v24150_v2  ;;  %v24209_v2 = vld [vmem:[%s31090_s3 + $0x26d4] ss:$12 sps:$4 sm:$0xff]  }
 0x74d   : > { %12076 = vmatpush1.bf16.msra.mxu0 %v24147_v3 }
 0x74e   : > { %21768 = vmatpush3.bf16.msra.mxu1 %v24151_v5  ;;  %12077 = vmatprep.subr.bf16.mxu0 %v24154_v6  ;;  %v24210_v5 = vld [vmem:[%s31090_s3 + $0x2858] ss:$12 sps:$4 sm:$0xff]  }
 0x74f   : > { %21769 = vmatprep.subr.bf16.mxu1 %v24155_v10 }
 0x751   : > { %12078 = vmatpush1.bf16.msra.mxu0 %v24152_v11 }
 0x752   : > { %21770 = vmatpush3.bf16.msra.mxu1 %v24156_v12  ;;  %12079 = vmatprep.subr.bf16.mxu0 %v24159_v14  ;;  %v24207_v12 = vld [vmem:[%s31090_s3 + $0x26d0] ss:$12 sps:$4 sm:$0xff]  }
 0x753   : > { %21771 = vmatprep.subr.bf16.mxu1 %v24160_v16  ;;  %v24211_v16 = vld [vmem:[%s31090_s3 + $0x2798] ss:$12 sps:$4 sm:$0xff]  }
 0x755   : > { %12080 = vmatpush1.bf16.msra.mxu0 %v24157_v17  ;;  %v24214_v17 = vld [vmem:[%s31090_s3 + $0x26ec] ss:$12 sps:$4 sm:$0xff]  }
 0x756   : > { %21772 = vmatpush3.bf16.msra.mxu1 %v24161_v20  ;;  %12081 = vmatprep.subr.bf16.mxu0 %v24164_v40  ;;  %v24215_v20 = vld [vmem:[%s31090_s3 + $0x2870] ss:$12 sps:$4 sm:$0xff]   ;;  %v24212_v40 = vld [vmem:[%s31090_s3 + $0x26e8] ss:$12 sps:$4 sm:$0xff]  }
 0x757   : > { %v8971_v25 = vpop.f32.mrb[48].mxu0  ;;  %21773 = vmatprep.subr.bf16.mxu1 %v24165_v36  ;;  %v24216_v36 = vld [vmem:[%s31090_s3 + $0x27b0] ss:$12 sps:$4 sm:$0xff]  }
 0x758   : > { %9138 = vst [vmem:[#allocation2 + $0x60] sm:$0xff] %v8971_v25  ;;  %v8973_v27 = vpop.f32.mrb[49].mxu0  ;;  %v24221_v25 = vld [vmem:[%s31090_s3 + $0x2888] ss:$12 sps:$4 sm:$0xff]  }
 0x759   : > { %9139 = vst [vmem:[#allocation2 + $0x68] sm:$0xff] %v8973_v27  ;;  %v8975_v28 = vpop.f32.mrb[50].mxu0  ;;  %12082 = vmatpush1.bf16.msra.mxu0 %v24162_v49  ;;  %v24219_v49 = vld [vmem:[%s31090_s3 + $0x2704] ss:$12 sps:$4 sm:$0xff]   ;;  %v24225_v27 = vld [vmem:[%s31090_s3 + $0x2960] ss:$12 sps:$4 sm:$0xff]  }
 0x75a   : > { %21774 = vmatpush3.bf16.msra.mxu1 %v24166_v63  ;;  %v8976_v31 = vpop.f32.mrb[51].mxu0  ;;  %12083 = vmatprep.subr.bf16.mxu0 %v24169_v0  ;;  %v24220_v63 = vld [vmem:[%s31090_s3 + $0x2948] ss:$12 sps:$4 sm:$0xff]   ;;  %v24217_v0 = vld [vmem:[%s31090_s3 + $0x2700] ss:$12 sps:$4 sm:$0xff]  }
 0x75b   : > { %21775 = vmatprep.subr.bf16.mxu1 %v24170_v26  ;;  %v24224_v26 = vld [vmem:[%s31090_s3 + $0x271c] ss:$12 sps:$4 sm:$0xff]   ;;  %v24222_v28 = vld [vmem:[%s31090_s3 + $0x2718] ss:$12 sps:$4 sm:$0xff]   ;;  %v24229_v31 = vld [vmem:[%s31090_s3 + $0x2734] ss:$12 sps:$4 sm:$0xff]  }
 0x75d   : > { %12084 = vmatpush1.bf16.msra.mxu0 %v24167_v29  ;;  %v24226_v29 = vld [vmem:[%s31090_s3 + $0x28a0] ss:$12 sps:$4 sm:$0xff]  }
 0x75e   : > { %21776 = vmatpush3.bf16.msra.mxu1 %v24171_v32  ;;  %12085 = vmatprep.subr.bf16.mxu0 %v24174_v35  ;;  %v24230_v32 = vld [vmem:[%s31090_s3 + $0x2978] ss:$12 sps:$4 sm:$0xff]   ;;  %v24227_v35 = vld [vmem:[%s31090_s3 + $0x2730] ss:$12 sps:$4 sm:$0xff]  }
 0x75f   : > { %21777 = vmatprep.subr.bf16.mxu1 %v24175_v46  ;;  %v24231_v46 = vld [vmem:[%s31090_s3 + $0x28b8] ss:$12 sps:$4 sm:$0xff]  }
 0x761   : > { %12086 = vmatpush1.bf16.msra.mxu0 %v24172_v37  ;;  %v24234_v37 = vld [vmem:[%s31090_s3 + $0x274c] ss:$12 sps:$4 sm:$0xff]  }
 0x762   : > { %21778 = vmatpush3.bf16.msra.mxu1 %v24176_v42  ;;  %12087 = vmatprep.subr.bf16.mxu0 %v24179_v13  ;;  %v24235_v42 = vld [vmem:[%s31090_s3 + $0x2990] ss:$12 sps:$4 sm:$0xff]   ;;  %v24232_v13 = vld [vmem:[%s31090_s3 + $0x2748] ss:$12 sps:$4 sm:$0xff]  }
 0x763   : > { %21785 = vmatprep.subr.bf16.mxu1 %v24180_v38  ;;  %v24236_v38 = vld [vmem:[%s31090_s3 + $0x28d0] ss:$12 sps:$4 sm:$0xff]  }
 0x765   : > { %12267 = vmatmul.mubr.bf16.vlgmr.msra.gmra.mrb[72].mxu1 %v25398_v4  ;;  %12088 = vmatpush1.bf16.msra.mxu0 %v24177_v39  ;;  %v24239_v39 = vld [vmem:[%s31090_s3 + $0x2764] ss:$12 sps:$4 sm:$0xff]  }
 0x766   : > { %21786 = vmatpush3.bf16.msra.mxu1 %v24181_v43  ;;  %12306 = vmatprep.mubr.bf16.mxu1 %v25409_v9  ;;  %v24240_v43 = vld [vmem:[%s31090_s3 + $0x29a8] ss:$12 sps:$4 sm:$0xff]  }
 0x767   : > { %12089 = vmatprep.subr.bf16.mxu0 %v24184_v45  ;;  %21787 = vmatprep.subr.bf16.mxu1 %v24185_v48  ;;  %v24237_v45 = vld [vmem:[%s31090_s3 + $0x2760] ss:$12 sps:$4 sm:$0xff]   ;;  %v24241_v48 = vld [vmem:[%s31090_s3 + $0x28e8] ss:$12 sps:$4 sm:$0xff]  }
 0x769   : > { %12090 = vmatpush1.bf16.msra.mxu0 %v24182_v15  ;;  %v24244_v15 = vld [vmem:[%s31090_s3 + $0x277c] ss:$12 sps:$4 sm:$0xff]  }
 0x76a   : > { %21788 = vmatpush3.bf16.msra.mxu1 %v24186_v50  ;;  %12091 = vmatprep.subr.bf16.mxu0 %v24189_v24  ;;  %v24245_v50 = vld [vmem:[%s31090_s3 + $0x29c0] ss:$12 sps:$4 sm:$0xff]   ;;  %v24242_v24 = vld [vmem:[%s31090_s3 + $0x2778] ss:$12 sps:$4 sm:$0xff]  }
 0x76b   : > { %21789 = vmatprep.subr.bf16.mxu1 %v24190_v51  ;;  %v24246_v51 = vld [vmem:[%s31090_s3 + $0x2900] ss:$12 sps:$4 sm:$0xff]  }
 0x76d   : > { %12092 = vmatpush1.bf16.msra.mxu0 %v24187_v21  ;;  %v24249_v21 = vld [vmem:[%s31090_s3 + $0x2794] ss:$12 sps:$4 sm:$0xff]  }
 0x76e   : > { %21790 = vmatpush3.bf16.msra.mxu1 %v24191_v44  ;;  %12093 = vmatprep.subr.bf16.mxu0 %v24194_v52  ;;  %v24250_v52 = vld [vmem:[%s31090_s3 + $0x29d8] ss:$12 sps:$4 sm:$0xff]  }
 0x76f   : > { %21791 = vmatprep.subr.bf16.mxu1 %v24195_v34 }
 0x771   : > { %12094 = vmatpush1.bf16.msra.mxu0 %v24192_v47 }
 0x772   : > { %21792 = vmatpush3.bf16.msra.mxu1 %v24196_v54  ;;  %12095 = vmatprep.subr.bf16.mxu0 %v24199_v55  ;;  %v24247_v55 = vld [vmem:[%s31090_s3 + $0x2790] ss:$12 sps:$4 sm:$0xff]  }
 0x773   : > { %21793 = vmatprep.subr.bf16.mxu1 %v24200_v57 }
 0x775   : > { %12096 = vmatpush1.bf16.msra.mxu0 %v24197_v58  ;;  %v24251_v58 = vld [vmem:[%s31090_s3 + $0x2918] ss:$12 sps:$4 sm:$0xff]  }
 0x776   : > { %21794 = vmatpush3.bf16.msra.mxu1 %v24201_v59  ;;  %12097 = vmatprep.subr.bf16.mxu0 %v24204_v60  ;;  %v24254_v59 = vld [vmem:[%s31090_s3 + $0x27ac] ss:$12 sps:$4 sm:$0xff]  }
 0x777   : > { %v21669_v3 = vpop.f32.mrb[52].mxu0  ;;  %21795 = vmatprep.subr.bf16.mxu1 %v24205_v61  ;;  %v24255_v61 = vld [vmem:[%s31090_s3 + $0x29f0] ss:$12 sps:$4 sm:$0xff]  }
 0x778   : > { %v21670_v6 = vpop.f32.mrb[53].mxu0 }
 0x779   : > { %v29111_v10 = vadd.f32 %v21670_v6, %v21669_v3  ;;  %v21672_v11 = vpop.f32.mrb[54].mxu0  ;;  %12098 = vmatpush1.bf16.msra.mxu0 %v24202_v62  ;;  %v24252_v62 = vld [vmem:[%s31090_s3 + $0x27a8] ss:$12 sps:$4 sm:$0xff]   ;;  %v24262_v3 = vld [vmem:[%s31090_s3 + $0x2a04] ss:$12 sps:$4 sm:$0xff]  }
 0x77a   : > { %21796 = vmatpush3.bf16.msra.mxu1 %v24206_v1  ;;  %v21673_v14 = vpop.f32.mrb[55].mxu0  ;;  %12099 = vmatprep.subr.bf16.mxu0 %v24209_v2  ;;  %v24256_v1 = vld [vmem:[%s31090_s3 + $0x2930] ss:$12 sps:$4 sm:$0xff]   ;;  %v24260_v6 = vld [vmem:[%s31090_s3 + $0x2a00] ss:$12 sps:$4 sm:$0xff]  }
 0x77b   : > { %21797 = vmatprep.subr.bf16.mxu1 %v24210_v5  ;;  %v24259_v2 = vld [vmem:[%s31090_s3 + $0x27c4] ss:$12 sps:$4 sm:$0xff]   ;;  %v24257_v5 = vld [vmem:[%s31090_s3 + $0x27c0] ss:$12 sps:$4 sm:$0xff]   ;;  %v24268_v11 = vld [vmem:[%s31090_s3 + $0x2a1c] ss:$12 sps:$4 sm:$0xff]  }
 0x77c   : > { %v24266_v14 = vld [vmem:[%s31090_s3 + $0x2a18] ss:$12 sps:$4 sm:$0xff]  }
 0x77d   : > { %12100 = vmatpush1.bf16.msra.mxu0 %v24207_v12  ;;  %v24263_v12 = vld [vmem:[%s31090_s3 + $0x27d8] ss:$12 sps:$4 sm:$0xff]  }
 0x77e   : > { %21798 = vmatpush3.bf16.msra.mxu1 %v24211_v16  ;;  %12101 = vmatprep.subr.bf16.mxu0 %v24214_v17  ;;  %v24271_v16 = vld [vmem:[%s31090_s3 + $0x27f4] ss:$12 sps:$4 sm:$0xff]  }
 0x77f   : > { %21799 = vmatprep.subr.bf16.mxu1 %v24215_v20  ;;  %v24274_v17 = vld [vmem:[%s31090_s3 + $0x2a34] ss:$12 sps:$4 sm:$0xff]   ;;  %v24269_v20 = vld [vmem:[%s31090_s3 + $0x27f0] ss:$12 sps:$4 sm:$0xff]  }
 0x781   : > { %12102 = vmatpush1.bf16.msra.mxu0 %v24212_v40  ;;  %v24272_v40 = vld [vmem:[%s31090_s3 + $0x2a30] ss:$12 sps:$4 sm:$0xff]  }
 0x782   : > { %21800 = vmatpush3.bf16.msra.mxu1 %v24216_v36  ;;  %12112 = vmatprep.subr.bf16.mxu0 %v24219_v49  ;;  %v24277_v36 = vld [vmem:[%s31090_s3 + $0x280c] ss:$12 sps:$4 sm:$0xff]  }
 0x783   : > { %21807 = vmatprep.subr.bf16.mxu1 %v24220_v63  ;;  %v24280_v49 = vld [vmem:[%s31090_s3 + $0x2a4c] ss:$12 sps:$4 sm:$0xff]   ;;  %v24275_v63 = vld [vmem:[%s31090_s3 + $0x2808] ss:$12 sps:$4 sm:$0xff]  }
 0x784   : > { %12104 = vmatmul.mubr.bf16.vlgmr.msra.gmra.mrb[68].mxu0 %v25398_v4 }
 0x785   : > { %12307 = vmatmul.mubr.bf16.vlgmr.msra.gmra.mrb[76].mxu1 %v25510_v53  ;;  %12113 = vmatpush1.bf16.msra.mxu0 %v24217_v0  ;;  %v24278_v0 = vld [vmem:[%s31090_s3 + $0x2a48] ss:$12 sps:$4 sm:$0xff]  }
 0x786   : > { %12144 = vmatprep.mubr.bf16.mxu0 %v25409_v9  ;;  %21808 = vmatpush3.bf16.msra.mxu1 %v24221_v25  ;;  %v24283_v25 = vld [vmem:[%s31090_s3 + $0x2824] ss:$12 sps:$4 sm:$0xff]  }
 0x787   : > { %12346 = vmatprep.mubr.bf16.mxu1 %v25518_v56  ;;  %12114 = vmatprep.subr.bf16.mxu0 %v24224_v26  ;;  %v24286_v26 = vld [vmem:[%s31090_s3 + $0x2a64] ss:$12 sps:$4 sm:$0xff]  }
 0x788   : > { %21809 = vmatprep.subr.bf16.mxu1 %v24225_v27  ;;  %v24281_v27 = vld [vmem:[%s31090_s3 + $0x2820] ss:$12 sps:$4 sm:$0xff]  }
 0x789   : > { %12115 = vmatpush1.bf16.msra.mxu0 %v24222_v28  ;;  %v24284_v28 = vld [vmem:[%s31090_s3 + $0x2a60] ss:$12 sps:$4 sm:$0xff]  }
 0x78a   : > { %21810 = vmatpush3.bf16.msra.mxu1 %v24226_v29  ;;  %12116 = vmatprep.subr.bf16.mxu0 %v24229_v31  ;;  %v24289_v29 = vld [vmem:[%s31090_s3 + $0x283c] ss:$12 sps:$4 sm:$0xff]  }
 0x78b   : > { %21811 = vmatprep.subr.bf16.mxu1 %v24230_v32  ;;  %v24292_v31 = vld [vmem:[%s31090_s3 + $0x2a7c] ss:$12 sps:$4 sm:$0xff]   ;;  %v24287_v32 = vld [vmem:[%s31090_s3 + $0x2838] ss:$12 sps:$4 sm:$0xff]  }
 0x78d   : > { %12117 = vmatpush1.bf16.msra.mxu0 %v24227_v35  ;;  %v24290_v35 = vld [vmem:[%s31090_s3 + $0x2a78] ss:$12 sps:$4 sm:$0xff]  }
 0x78e   : > { %21812 = vmatpush3.bf16.msra.mxu1 %v24231_v46  ;;  %12118 = vmatprep.subr.bf16.mxu0 %v24234_v37  ;;  %v24295_v46 = vld [vmem:[%s31090_s3 + $0x2854] ss:$12 sps:$4 sm:$0xff]  }
 0x78f   : > { %21813 = vmatprep.subr.bf16.mxu1 %v24235_v42  ;;  %v24298_v42 = vld [vmem:[%s31090_s3 + $0x2a94] ss:$12 sps:$4 sm:$0xff]  }
 0x791   : > { %12119 = vmatpush1.bf16.msra.mxu0 %v24232_v13 }
 0x792   : > { %21814 = vmatpush3.bf16.msra.mxu1 %v24236_v38  ;;  %12120 = vmatprep.subr.bf16.mxu0 %v24239_v39 }
 0x793   : > { %21815 = vmatprep.subr.bf16.mxu1 %v24240_v43  ;;  %v24293_v43 = vld [vmem:[%s31090_s3 + $0x2850] ss:$12 sps:$4 sm:$0xff]  }
 0x795   : > { %12121 = vmatpush1.bf16.msra.mxu0 %v24237_v45 }
 0x796   : > { %21816 = vmatpush3.bf16.msra.mxu1 %v24241_v48  ;;  %12122 = vmatprep.subr.bf16.mxu0 %v24244_v15  ;;  %v24296_v48 = vld [vmem:[%s31090_s3 + $0x2a90] ss:$12 sps:$4 sm:$0xff]   ;;  %v24301_v15 = vld [vmem:[%s31090_s3 + $0x286c] ss:$12 sps:$4 sm:$0xff]  }
 0x797   : > { %v21691_v44 = vpop.f32.mrb[56].mxu0  ;;  %21817 = vmatprep.subr.bf16.mxu1 %v24245_v50 }
 0x798   : > { %v21692_v34 = vpop.f32.mrb[57].mxu0 }
 0x799   : > { %v21693_v47 = vadd.f32 %v21692_v34, %v21691_v44  ;;  %v21694_v54 = vpop.f32.mrb[58].mxu0  ;;  %12123 = vmatpush1.bf16.msra.mxu0 %v24242_v24  ;;  %v24304_v24 = vld [vmem:[%s31090_s3 + $0x2aac] ss:$12 sps:$4 sm:$0xff]   ;;  %v24307_v44 = vld [vmem:[%s31090_s3 + $0x2884] ss:$12 sps:$4 sm:$0xff]  }
 0x79a   : > { %21818 = vmatpush3.bf16.msra.mxu1 %v24246_v51  ;;  %v21695_v57 = vpop.f32.mrb[59].mxu0  ;;  %12124 = vmatprep.subr.bf16.mxu0 %v24249_v21  ;;  %v24299_v51 = vld [vmem:[%s31090_s3 + $0x2868] ss:$12 sps:$4 sm:$0xff]   ;;  %v24305_v34 = vld [vmem:[%s31090_s3 + $0x2880] ss:$12 sps:$4 sm:$0xff]  }
 0x79b   : > { %v29223_v60 = vadd.f32 %v21693_v47, %v29111_v10  ;;  %21819 = vmatprep.subr.bf16.mxu1 %v24250_v52  ;;  %v24265_v10 = vld [vmem:[%s31090_s3 + $0x27dc] ss:$12 sps:$4 sm:$0xff]   ;;  %v24310_v52 = vld [vmem:[%s31090_s3 + $0x2ac4] ss:$12 sps:$4 sm:$0xff]   ;;  %v24308_v47 = vld [vmem:[%s31090_s3 + $0x2ac0] ss:$12 sps:$4 sm:$0xff]  }
 0x79c   : > { %v24302_v21 = vld [vmem:[%s31090_s3 + $0x2aa8] ss:$12 sps:$4 sm:$0xff]   ;;  %v24311_v57 = vld [vmem:[%s31090_s3 + $0x2898] ss:$12 sps:$4 sm:$0xff]  }
 0x79d   : > { %12125 = vmatpush1.bf16.msra.mxu0 %v24247_v55  ;;  %v24313_v54 = vld [vmem:[%s31090_s3 + $0x289c] ss:$12 sps:$4 sm:$0xff]  }
 0x79e   : > { %21820 = vmatpush3.bf16.msra.mxu1 %v24251_v58  ;;  %12126 = vmatprep.subr.bf16.mxu0 %v24254_v59  ;;  %v24316_v55 = vld [vmem:[%s31090_s3 + $0x2adc] ss:$12 sps:$4 sm:$0xff]   ;;  %v24314_v58 = vld [vmem:[%s31090_s3 + $0x2ad8] ss:$12 sps:$4 sm:$0xff]   ;;  %v24319_v59 = vld [vmem:[%s31090_s3 + $0x28b4] ss:$12 sps:$4 sm:$0xff]  }
 0x79f   : > { %21821 = vmatprep.subr.bf16.mxu1 %v24255_v61  ;;  %v24317_v61 = vld [vmem:[%s31090_s3 + $0x28b0] ss:$12 sps:$4 sm:$0xff]  }
 0x7a1   : > { %12127 = vmatpush1.bf16.msra.mxu0 %v24252_v62  ;;  %v24320_v62 = vld [vmem:[%s31090_s3 + $0x2af0] ss:$12 sps:$4 sm:$0xff]  }
 0x7a2   : > { %21822 = vmatpush3.bf16.msra.mxu1 %v24256_v1  ;;  %12128 = vmatprep.subr.bf16.mxu0 %v24259_v2  ;;  %v24325_v1 = vld [vmem:[%s31090_s3 + $0x28cc] ss:$12 sps:$4 sm:$0xff]  }
 0x7a3   : > { %13638 = vmatprep.subr.bf16.mxu1 %v24262_v3  ;;  %v24328_v2 = vld [vmem:[%s31090_s3 + $0x2b0c] ss:$12 sps:$4 sm:$0xff]   ;;  %v24323_v3 = vld [vmem:[%s31090_s3 + $0x28c8] ss:$12 sps:$4 sm:$0xff]  }
 0x7a5   : > { %12347 = vmatmul.mubr.bf16.vlgmr.msra.gmra.mrb[80].mxu1 %v25619_v30  ;;  %12129 = vmatpush1.bf16.msra.mxu0 %v24257_v5  ;;  %v24326_v5 = vld [vmem:[%s31090_s3 + $0x2b08] ss:$12 sps:$4 sm:$0xff]  }
 0x7a6   : > { %13639 = vmatpush1.bf16.msra.mxu1 %v24260_v6  ;;  %13670 = vmatprep.mubr.bf16.mxu1 %v25282_v19  ;;  %v24331_v6 = vld [vmem:[%s31090_s3 + $0x28e4] ss:$12 sps:$4 sm:$0xff]  }
 0x7a7   : > { %12130 = vmatprep.subr.bf16.mxu0 %v24265_v10  ;;  %13640 = vmatprep.subr.bf16.mxu1 %v24268_v11  ;;  %v24334_v10 = vld [vmem:[%s31090_s3 + $0x2b24] ss:$12 sps:$4 sm:$0xff]   ;;  %v24329_v11 = vld [vmem:[%s31090_s3 + $0x28e0] ss:$12 sps:$4 sm:$0xff]  }
 0x7a9   : > { %12131 = vmatpush1.bf16.msra.mxu0 %v24263_v12  ;;  %v24332_v12 = vld [vmem:[%s31090_s3 + $0x2b20] ss:$12 sps:$4 sm:$0xff]  }
 0x7aa   : > { %13641 = vmatpush1.bf16.msra.mxu1 %v24266_v14  ;;  %12132 = vmatprep.subr.bf16.mxu0 %v24271_v16  ;;  %v24337_v14 = vld [vmem:[%s31090_s3 + $0x28fc] ss:$12 sps:$4 sm:$0xff]  }
 0x7ab   : > { %13642 = vmatprep.subr.bf16.mxu1 %v24274_v17  ;;  %v24340_v16 = vld [vmem:[%s31090_s3 + $0x2b3c] ss:$12 sps:$4 sm:$0xff]   ;;  %v24335_v17 = vld [vmem:[%s31090_s3 + $0x28f8] ss:$12 sps:$4 sm:$0xff]  }
 0x7ad   : > { %12133 = vmatpush1.bf16.msra.mxu0 %v24269_v20  ;;  %v24338_v20 = vld [vmem:[%s31090_s3 + $0x2b38] ss:$12 sps:$4 sm:$0xff]  }
 0x7ae   : > { %13643 = vmatpush1.bf16.msra.mxu1 %v24272_v40  ;;  %12134 = vmatprep.subr.bf16.mxu0 %v24277_v36  ;;  %v24343_v40 = vld [vmem:[%s31090_s3 + $0x2914] ss:$12 sps:$4 sm:$0xff]  }
 0x7af   : > { %13644 = vmatprep.subr.bf16.mxu1 %v24280_v49  ;;  %v24346_v49 = vld [vmem:[%s31090_s3 + $0x2b54] ss:$12 sps:$4 sm:$0xff]  }
 0x7b1   : > { %12135 = vmatpush1.bf16.msra.mxu0 %v24275_v63 }
 0x7b2   : > { %13645 = vmatpush1.bf16.msra.mxu1 %v24278_v0  ;;  %12136 = vmatprep.subr.bf16.mxu0 %v24283_v25 }
 0x7b3   : > { %13646 = vmatprep.subr.bf16.mxu1 %v24286_v26  ;;  %v24341_v26 = vld [vmem:[%s31090_s3 + $0x2910] ss:$12 sps:$4 sm:$0xff]  }
 0x7b5   : > { %12137 = vmatpush1.bf16.msra.mxu0 %v24281_v27 }
 0x7b6   : > { %13647 = vmatpush1.bf16.msra.mxu1 %v24284_v28  ;;  %12138 = vmatprep.subr.bf16.mxu0 %v24289_v29  ;;  %v24344_v28 = vld [vmem:[%s31090_s3 + $0x2b50] ss:$12 sps:$4 sm:$0xff]   ;;  %v24349_v29 = vld [vmem:[%s31090_s3 + $0x292c] ss:$12 sps:$4 sm:$0xff]  }
 0x7b7   : > { %v21713_v37 = vpop.f32.mrb[60].mxu0  ;;  %13648 = vmatprep.subr.bf16.mxu1 %v24292_v31 }
 0x7b8   : > { %v21714_v13 = vpop.f32.mrb[61].mxu0 }
 0x7b9   : > { %v21715_v38 = vadd.f32 %v21714_v13, %v21713_v37  ;;  %v21716_v39 = vpop.f32.mrb[62].mxu0  ;;  %12139 = vmatpush1.bf16.msra.mxu0 %v24287_v32  ;;  %v24352_v32 = vld [vmem:[%s31090_s3 + $0x2b6c] ss:$12 sps:$4 sm:$0xff]   ;;  %v24355_v37 = vld [vmem:[%s31090_s3 + $0x2944] ss:$12 sps:$4 sm:$0xff]  }
 0x7ba   : > { %13649 = vmatpush1.bf16.msra.mxu1 %v24290_v35  ;;  %v21717_v45 = vpop.f32.mrb[63].mxu0  ;;  %12140 = vmatprep.subr.bf16.mxu0 %v24295_v46  ;;  %v24347_v35 = vld [vmem:[%s31090_s3 + $0x2928] ss:$12 sps:$4 sm:$0xff]   ;;  %v24353_v13 = vld [vmem:[%s31090_s3 + $0x2940] ss:$12 sps:$4 sm:$0xff]  }
 0x7bb   : > { %v29324_v50 = vadd.f32 %v21715_v38, %v29223_v60  ;;  %13650 = vmatprep.subr.bf16.mxu1 %v24298_v42  ;;  %v24322_v60 = vld [vmem:[%s31090_s3 + $0x2af4] ss:$12 sps:$4 sm:$0xff]   ;;  %v24358_v42 = vld [vmem:[%s31090_s3 + $0x2b84] ss:$12 sps:$4 sm:$0xff]   ;;  %v24361_v39 = vld [vmem:[%s31090_s3 + $0x295c] ss:$12 sps:$4 sm:$0xff]  }
 0x7bc   : > { %v24350_v46 = vld [vmem:[%s31090_s3 + $0x2b68] ss:$12 sps:$4 sm:$0xff]   ;;  %v24356_v38 = vld [vmem:[%s31090_s3 + $0x2b80] ss:$12 sps:$4 sm:$0xff]  }
 0x7bd   : > { %12141 = vmatpush1.bf16.msra.mxu0 %v24293_v43  ;;  %v13979_v43 = vld [vmem:[#allocation2 + $0x70] sm:$0xff] }
 0x7be   : > { %13651 = vmatpush1.bf16.msra.mxu1 %v24296_v48  ;;  %12142 = vmatprep.subr.bf16.mxu0 %v24301_v15  ;;  %v24364_v48 = vld [vmem:[%s31090_s3 + $0x2b9c] ss:$12 sps:$4 sm:$0xff]  }
 0x7bf   : > { %13652 = vmatprep.subr.bf16.mxu1 %v24304_v24  ;;  %v24362_v24 = vld [vmem:[%s31090_s3 + $0x2b98] ss:$12 sps:$4 sm:$0xff]  }
 0x7c1   : > { %12143 = vmatpush1.bf16.msra.mxu0 %v24299_v51  ;;  %v24367_v51 = vld [vmem:[%s31090_s3 + $0x2974] ss:$12 sps:$4 sm:$0xff]  }
 0x7c2   : > { %13653 = vmatpush1.bf16.msra.mxu1 %v24302_v21  ;;  %12153 = vmatprep.subr.bf16.mxu0 %v24307_v44  ;;  %v24370_v21 = vld [vmem:[%s31090_s3 + $0x2bb4] ss:$12 sps:$4 sm:$0xff]   ;;  %v24365_v44 = vld [vmem:[%s31090_s3 + $0x2970] ss:$12 sps:$4 sm:$0xff]  }
 0x7c3   : > { %13654 = vmatprep.subr.bf16.mxu1 %v24310_v52  ;;  %v24368_v52 = vld [vmem:[%s31090_s3 + $0x2bb0] ss:$12 sps:$4 sm:$0xff]  }
 0x7c4   : > { %12145 = vmatmul.mubr.bf16.vlgmr.msra.gmra.mrb[68].mxu0 %v25510_v53 }
 0x7c5   : > { %12154 = vmatpush1.bf16.msra.mxu0 %v24305_v34  ;;  %12185 = vmatprep.mubr.bf16.mxu0 %v25518_v56  ;;  %v24373_v34 = vld [vmem:[%s31090_s3 + $0x298c] ss:$12 sps:$4 sm:$0xff]  }
 0x7c6   : > { %13655 = vmatpush1.bf16.msra.mxu1 %v24308_v47  ;;  %12155 = vmatprep.subr.bf16.mxu0 %v24313_v54  ;;  %v24376_v47 = vld [vmem:[%s31090_s3 + $0x2bcc] ss:$12 sps:$4 sm:$0xff]   ;;  %v24371_v54 = vld [vmem:[%s31090_s3 + $0x2988] ss:$12 sps:$4 sm:$0xff]  }
 0x7c7   : > { %13656 = vmatprep.subr.bf16.mxu1 %v24316_v55  ;;  %v24374_v55 = vld [vmem:[%s31090_s3 + $0x2bc8] ss:$12 sps:$4 sm:$0xff]  }
 0x7c9   : > { %12156 = vmatpush1.bf16.msra.mxu0 %v24311_v57  ;;  %v24379_v57 = vld [vmem:[%s31090_s3 + $0x29a4] ss:$12 sps:$4 sm:$0xff]  }
 0x7ca   : > { %13657 = vmatpush1.bf16.msra.mxu1 %v24314_v58  ;;  %12157 = vmatprep.subr.bf16.mxu0 %v24319_v59  ;;  %v24382_v58 = vld [vmem:[%s31090_s3 + $0x2be4] ss:$12 sps:$4 sm:$0xff]   ;;  %v24377_v59 = vld [vmem:[%s31090_s3 + $0x29a0] ss:$12 sps:$4 sm:$0xff]  }
 0x7cb   : > { %13658 = vmatprep.subr.bf16.mxu1 %v24322_v60  ;;  %v24380_v60 = vld [vmem:[%s31090_s3 + $0x2be0] ss:$12 sps:$4 sm:$0xff]  }
 0x7cd   : > { %12158 = vmatpush1.bf16.msra.mxu0 %v24317_v61  ;;  %v24385_v61 = vld [vmem:[%s31090_s3 + $0x29bc] ss:$12 sps:$4 sm:$0xff]  }
 0x7ce   : > { %13659 = vmatpush1.bf16.msra.mxu1 %v24320_v62  ;;  %12159 = vmatprep.subr.bf16.mxu0 %v24325_v1  ;;  %v24388_v62 = vld [vmem:[%s31090_s3 + $0x2bfc] ss:$12 sps:$4 sm:$0xff]   ;;  %v24383_v1 = vld [vmem:[%s31090_s3 + $0x29b8] ss:$12 sps:$4 sm:$0xff]  }
 0x7cf   : > { %13660 = vmatprep.subr.bf16.mxu1 %v24328_v2  ;;  %v24386_v2 = vld [vmem:[%s31090_s3 + $0x2bf8] ss:$12 sps:$4 sm:$0xff]  }
 0x7d1   : > { %12160 = vmatpush1.bf16.msra.mxu0 %v24323_v3  ;;  %v24391_v3 = vld [vmem:[%s31090_s3 + $0x29d4] ss:$12 sps:$4 sm:$0xff]  }
 0x7d2   : > { %13661 = vmatpush1.bf16.msra.mxu1 %v24326_v5  ;;  %12161 = vmatprep.subr.bf16.mxu0 %v24331_v6  ;;  %v24394_v5 = vld [vmem:[%s31090_s3 + $0x2c14] ss:$12 sps:$4 sm:$0xff]  }
 0x7d3   : > { %13662 = vmatprep.subr.bf16.mxu1 %v24334_v10  ;;  %v13977_v10 = vld [vmem:[#allocation2 + $0x60] sm:$0xff] }
 0x7d5   : > { %12162 = vmatpush1.bf16.msra.mxu0 %v24329_v11 }
 0x7d6   : > { %13663 = vmatpush1.bf16.msra.mxu1 %v24332_v12  ;;  %12163 = vmatprep.subr.bf16.mxu0 %v24337_v14  ;;  %v24389_v12 = vld [vmem:[%s31090_s3 + $0x29d0] ss:$12 sps:$4 sm:$0xff]  }
 0x7d7   : > { %v21735_v36 = vpop.f32.mrb[64].mxu0  ;;  %13664 = vmatprep.subr.bf16.mxu1 %v24340_v16 }
 0x7d8   : > { %v21736_v63 = vpop.f32.mrb[65].mxu0 }
 0x7d9   : > { %v21737_v0 = vadd.f32 %v21736_v63, %v21735_v36  ;;  %v21738_v25 = vpop.f32.mrb[66].mxu0  ;;  %12164 = vmatpush1.bf16.msra.mxu0 %v24335_v17  ;;  %v24392_v17 = vld [vmem:[%s31090_s3 + $0x2c10] ss:$12 sps:$4 sm:$0xff]   ;;  %v24400_v36 = vld [vmem:[%s31090_s3 + $0x2c2c] ss:$12 sps:$4 sm:$0xff]  }
 0x7da   : > { %13665 = vmatpush1.bf16.msra.mxu1 %v24338_v20  ;;  %v21739_v27 = vpop.f32.mrb[67].mxu0  ;;  %12165 = vmatprep.subr.bf16.mxu0 %v24343_v40  ;;  %v24397_v20 = vld [vmem:[%s31090_s3 + $0x29ec] ss:$12 sps:$4 sm:$0xff]   ;;  %v24395_v63 = vld [vmem:[%s31090_s3 + $0x29e8] ss:$12 sps:$4 sm:$0xff]  }
 0x7db   : > { %v10741_v31 = vadd.f32 %v21737_v0, %v29324_v50  ;;  %13666 = vmatprep.subr.bf16.mxu1 %v24346_v49  ;;  %v24359_v50 = vld [vmem:[%s31090_s3 + $0x2958] ss:$12 sps:$4 sm:$0xff]   ;;  %v13978_v49 = vld [vmem:[#allocation2 + $0x68] sm:$0xff] }
 0x7dc   : > { %v24398_v25 = vld [vmem:[%s31090_s3 + $0x2c28] ss:$12 sps:$4 sm:$0xff]   ;;  %v24403_v27 = vld [vmem:[%s31090_s3 + $0x2c44] ss:$12 sps:$4 sm:$0xff]  }
 0x7dd   : > { %10748 = vst.msk [vmem:[#allocation2 + $0x88] sm:$0xff] %vm2707_vm11, %v10741_v31  ;;  %12166 = vmatpush1.bf16.msra.mxu0 %v24341_v26  ;;  %v24404_v26 = vld [vmem:[%s31090_s3 + $0x2ac8] ss:$12 sps:$4 sm:$0xff]   ;;  %v24409_v31 = vld [vmem:[%s31090_s3 + $0x2ae0] ss:$12 sps:$4 sm:$0xff]  }
 0x7de   : > { %13667 = vmatpush1.bf16.msra.mxu1 %v24344_v28  ;;  %12167 = vmatprep.subr.bf16.mxu0 %v24349_v29  ;;  %v24405_v28 = vld [vmem:[%s31090_s3 + $0x2a08] ss:$12 sps:$4 sm:$0xff]   ;;  %v24401_v29 = vld [vmem:[%s31090_s3 + $0x2c40] ss:$12 sps:$4 sm:$0xff]  }
 0x7df   : > { %13668 = vmatprep.subr.bf16.mxu1 %v24352_v32  ;;  %v24408_v32 = vld [vmem:[%s31090_s3 + $0x2c5c] ss:$12 sps:$4 sm:$0xff]  }
 0x7e1   : > { %12168 = vmatpush1.bf16.msra.mxu0 %v24347_v35  ;;  %v24410_v35 = vld [vmem:[%s31090_s3 + $0x2a20] ss:$12 sps:$4 sm:$0xff]  }
 0x7e2   : > { %13669 = vmatpush1.bf16.msra.mxu1 %v24350_v46  ;;  %12169 = vmatprep.subr.bf16.mxu0 %v24355_v37  ;;  %v24406_v46 = vld [vmem:[%s31090_s3 + $0x2c58] ss:$12 sps:$4 sm:$0xff]  }
 0x7e3   : > { %13679 = vmatprep.subr.bf16.mxu1 %v24358_v42  ;;  %v24414_v37 = vld [vmem:[%s31090_s3 + $0x2af8] ss:$12 sps:$4 sm:$0xff]   ;;  %v24413_v42 = vld [vmem:[%s31090_s3 + $0x2c74] ss:$12 sps:$4 sm:$0xff]  }
 0x7e4   : > { %v13982_v45 = vld [vmem:[#allocation2 + $0x88] sm:$0xff] }
 0x7e5   : > { %13671 = vmatmul.mubr.bf16.vlgmr.msra.gmra.mrb[84].mxu1 %v25280_v18  ;;  %12170 = vmatpush1.bf16.msra.mxu0 %v24353_v13  ;;  %v13997_v15 = vpack.c.bf16 %v13982_v45, %v13979_v43  ;;  %v24411_v13 = vld [vmem:[%s31090_s3 + $0x2c70] ss:$12 sps:$4 sm:$0xff]   ;;  %v24416_v45 = vld [vmem:[%s31090_s3 + $0x2c88] ss:$12 sps:$4 sm:$0xff]  }
 0x7e6   : > { %13680 = vmatpush1.bf16.msra.mxu1 %v24356_v38  ;;  %13711 = vmatprep.mubr.bf16.mxu1 %v25292_v23  ;;  %v24419_v38 = vld [vmem:[%s31090_s3 + $0x2b10] ss:$12 sps:$4 sm:$0xff]  }
 0x7e7   : > { %14039 = vrot.lane.b32.xlu1 %v13997_v15, %s24823_s13  ;;  %12171 = vmatprep.subr.bf16.mxu0 %v24361_v39  ;;  %v24418_v39 = vld [vmem:[%s31090_s3 + $0x2c8c] ss:$12 sps:$4 sm:$0xff]   ;;  %v24420_v43 = vld [vmem:[%s31090_s3 + $0x2a50] ss:$12 sps:$4 sm:$0xff]  }
 0x7e8   : > { %13681 = vmatprep.subr.bf16.mxu1 %v24364_v48  ;;  %v24424_v48 = vld [vmem:[%s31090_s3 + $0x2b28] ss:$12 sps:$4 sm:$0xff]   ;;  %v24423_v15 = vld [vmem:[%s31090_s3 + $0x2ca4] ss:$12 sps:$4 sm:$0xff]  }
 0x7e9   : > { %12172 = vmatpush1.bf16.msra.mxu0 %v24359_v50  ;;  %v24425_v50 = vld [vmem:[%s31090_s3 + $0x2a68] ss:$12 sps:$4 sm:$0xff]  }
 0x7ea   : > { %13682 = vmatpush1.bf16.msra.mxu1 %v24362_v24  ;;  %12173 = vmatprep.subr.bf16.mxu0 %v24367_v51  ;;  %v24421_v24 = vld [vmem:[%s31090_s3 + $0x2ca0] ss:$12 sps:$4 sm:$0xff]  }
 0x7eb   : > { %13683 = vmatprep.subr.bf16.mxu1 %v24370_v21  ;;  %v24429_v51 = vld [vmem:[%s31090_s3 + $0x2b40] ss:$12 sps:$4 sm:$0xff]   ;;  %v24428_v21 = vld [vmem:[%s31090_s3 + $0x2cbc] ss:$12 sps:$4 sm:$0xff]  }
 0x7ed   : > { %12174 = vmatpush1.bf16.msra.mxu0 %v24365_v44  ;;  %v24430_v44 = vld [vmem:[%s31090_s3 + $0x2a80] ss:$12 sps:$4 sm:$0xff]  }
 0x7ee   : > { %13684 = vmatpush1.bf16.msra.mxu1 %v24368_v52  ;;  %12175 = vmatprep.subr.bf16.mxu0 %v24373_v34  ;;  %v24426_v52 = vld [vmem:[%s31090_s3 + $0x2cb8] ss:$12 sps:$4 sm:$0xff]  }
 0x7ef   : > { %13685 = vmatprep.subr.bf16.mxu1 %v24376_v47  ;;  %v24434_v34 = vld [vmem:[%s31090_s3 + $0x2b58] ss:$12 sps:$4 sm:$0xff]   ;;  %v24433_v47 = vld [vmem:[%s31090_s3 + $0x2cd4] ss:$12 sps:$4 sm:$0xff]  }
 0x7f1   : > { %12176 = vmatpush1.bf16.msra.mxu0 %v24371_v54 }
 0x7f2   : > { %13686 = vmatpush1.bf16.msra.mxu1 %v24374_v55  ;;  %12177 = vmatprep.subr.bf16.mxu0 %v24379_v57  ;;  %v24435_v57 = vld [vmem:[%s31090_s3 + $0x2a98] ss:$12 sps:$4 sm:$0xff]  }
 0x7f3   : > { %13687 = vmatprep.subr.bf16.mxu1 %v24382_v58 }
 0x7f5   : > { %12178 = vmatpush1.bf16.msra.mxu0 %v24377_v59 }
 0x7f6   : > { %13688 = vmatpush1.bf16.msra.mxu1 %v24380_v60  ;;  %12179 = vmatprep.subr.bf16.mxu0 %v24385_v61  ;;  %v24431_v60 = vld [vmem:[%s31090_s3 + $0x2cd0] ss:$12 sps:$4 sm:$0xff]  }
 0x7f7   : > { %13689 = vmatprep.subr.bf16.mxu1 %v24388_v62  ;;  %v24439_v61 = vld [vmem:[%s31090_s3 + $0x2b70] ss:$12 sps:$4 sm:$0xff]  }
 0x7f8   : > { %v10579_v6 = vpop.f32.mrb[64].mxu1 }
 0x7f9   : > { %v10581_v11 = vpop.f32.mrb[65].mxu1  ;;  %12180 = vmatpush1.bf16.msra.mxu0 %v24383_v1  ;;  %v29519_v14 = vpack.c.bf16 %v10579_v6, %v13977_v10  ;;  %v24438_v1 = vld [vmem:[%s31090_s3 + $0x2cec] ss:$12 sps:$4 sm:$0xff]   ;;  %v24443_v6 = vld [vmem:[%s31090_s3 + $0x2d04] ss:$12 sps:$4 sm:$0xff]  }
 0x7fa   : > { %v10583_v16 = vpop.f32.mrb[66].mxu1  ;;  %13690 = vmatpush1.bf16.msra.mxu1 %v24386_v2  ;;  %12181 = vmatprep.subr.bf16.mxu0 %v24391_v3  ;;  %v29535_v0 = vpack.c.bf16 %v10581_v11, %v13978_v49  ;;  %v24440_v2 = vld [vmem:[%s31090_s3 + $0x2ab0] ss:$12 sps:$4 sm:$0xff]   ;;  %v24436_v3 = vld [vmem:[%s31090_s3 + $0x2ce8] ss:$12 sps:$4 sm:$0xff]  }
 0x7fb   : > { %v10584_v40 = vpop.f32.mrb[67].mxu1  ;;  %13691 = vmatprep.subr.bf16.mxu1 %v24394_v5  ;;  %14035 = vrot.lane.b32.xlu0 %v29519_v14, %s24823_s13  ;;  %v24444_v5 = vld [vmem:[%s31090_s3 + $0x2c48] ss:$12 sps:$4 sm:$0xff]   ;;  %v24441_v11 = vld [vmem:[%s31090_s3 + $0x2d00] ss:$12 sps:$4 sm:$0xff]  }
 0x7fc   : > { %v24445_v10 = vld [vmem:[%s31090_s3 + $0x2b88] ss:$12 sps:$4 sm:$0xff]   ;;  %v24449_v16 = vld [vmem:[%s31090_s3 + $0x2c60] ss:$12 sps:$4 sm:$0xff]   ;;  %v24451_v49 = vld [vmem:[%s31090_s3 + $0x2d30] ss:$12 sps:$4 sm:$0xff]  }
 0x7fd   : > { %12182 = vmatpush1.bf16.msra.mxu0 %v24389_v12  ;;  %v24448_v12 = vld [vmem:[%s31090_s3 + $0x2d1c] ss:$12 sps:$4 sm:$0xff]   ;;  %v24453_v40 = vld [vmem:[%s31090_s3 + $0x2d34] ss:$12 sps:$4 sm:$0xff]  }
 0x7fe   : > { %13692 = vmatpush1.bf16.msra.mxu1 %v24392_v17  ;;  %12183 = vmatprep.subr.bf16.mxu0 %v24397_v20  ;;  %v24450_v17 = vld [vmem:[%s31090_s3 + $0x2ba0] ss:$12 sps:$4 sm:$0xff]   ;;  %v24446_v20 = vld [vmem:[%s31090_s3 + $0x2d18] ss:$12 sps:$4 sm:$0xff]  }
 0x7ff   : > { %13693 = vmatprep.subr.bf16.mxu1 %v24400_v36  ;;  %14037 = vrot.lane.b32.xlu0 %v29535_v0, %s24823_s13  ;;  %v24455_v36 = vld [vmem:[%s31090_s3 + $0x2bb8] ss:$12 sps:$4 sm:$0xff]  }
 0x801   : > { %12184 = vmatpush1.bf16.msra.mxu0 %v24395_v63  ;;  %v24458_v63 = vld [vmem:[%s31090_s3 + $0x2d4c] ss:$12 sps:$4 sm:$0xff]  }
 0x802   : > { %13694 = vmatpush1.bf16.msra.mxu1 %v24398_v25  ;;  %21829 = vmatprep.subr.bf16.mxu0 %v24404_v26  ;;  %v24460_v25 = vld [vmem:[%s31090_s3 + $0x2bd0] ss:$12 sps:$4 sm:$0xff]   ;;  %v24456_v26 = vld [vmem:[%s31090_s3 + $0x2d48] ss:$12 sps:$4 sm:$0xff]  }
 0x803   : > { %13695 = vmatprep.subr.bf16.mxu1 %v24403_v27  ;;  %v24464_v27 = vld [vmem:[%s31090_s3 + $0x2ca8] ss:$12 sps:$4 sm:$0xff]  }
 0x804   : > { %12186 = vmatmul.mubr.bf16.vlgmr.msra.gmra.mrb[68].mxu0 %v25619_v30 }
 0x805   : > { %21830 = vmatpush3.bf16.msra.mxu0 %v24405_v28  ;;  %13834 = vmatprep.mubr.bf16.mxu0 %v25282_v19  ;;  %v24415_v19 = vld [vmem:[%s31090_s3 + $0x2a38] ss:$12 sps:$4 sm:$0xff]  }
 0x806   : > { %13696 = vmatpush1.bf16.msra.mxu1 %v24401_v29  ;;  %21831 = vmatprep.subr.bf16.mxu0 %v24409_v31  ;;  %v24463_v28 = vld [vmem:[%s31090_s3 + $0x2d64] ss:$12 sps:$4 sm:$0xff]   ;;  %v24465_v29 = vld [vmem:[%s31090_s3 + $0x2be8] ss:$12 sps:$4 sm:$0xff]   ;;  %v24461_v31 = vld [vmem:[%s31090_s3 + $0x2d60] ss:$12 sps:$4 sm:$0xff]  }
 0x807   : > { %13697 = vmatprep.subr.bf16.mxu1 %v24408_v32  ;;  %v24469_v32 = vld [vmem:[%s31090_s3 + $0x2cc0] ss:$12 sps:$4 sm:$0xff]  }
 0x809   : > { %21832 = vmatpush3.bf16.msra.mxu0 %v24410_v35  ;;  %v24468_v35 = vld [vmem:[%s31090_s3 + $0x2d7c] ss:$12 sps:$4 sm:$0xff]  }
 0x80a   : > { %13698 = vmatpush1.bf16.msra.mxu1 %v24406_v46  ;;  %21833 = vmatprep.subr.bf16.mxu0 %v24414_v37  ;;  %v24470_v46 = vld [vmem:[%s31090_s3 + $0x2c00] ss:$12 sps:$4 sm:$0xff]   ;;  %v24466_v37 = vld [vmem:[%s31090_s3 + $0x2d78] ss:$12 sps:$4 sm:$0xff]  }
 0x80b   : > { %13699 = vmatprep.subr.bf16.mxu1 %v24413_v42  ;;  %v24474_v42 = vld [vmem:[%s31090_s3 + $0x2cd8] ss:$12 sps:$4 sm:$0xff]  }
 0x80d   : > { %21834 = vmatpush3.bf16.msra.mxu0 %v24415_v19  ;;  %v24473_v19 = vld [vmem:[%s31090_s3 + $0x2d94] ss:$12 sps:$4 sm:$0xff]  }
 0x80e   : > { %13700 = vmatpush1.bf16.msra.mxu1 %v24411_v13  ;;  %21835 = vmatprep.subr.bf16.mxu0 %v24419_v38 }
 0x80f   : > { %13701 = vmatprep.subr.bf16.mxu1 %v24418_v39  ;;  %v24475_v39 = vld [vmem:[%s31090_s3 + $0x2c18] ss:$12 sps:$4 sm:$0xff]  }
 0x811   : > { %21836 = vmatpush3.bf16.msra.mxu0 %v24420_v43 }
 0x812   : > { %13702 = vmatpush1.bf16.msra.mxu1 %v24416_v45  ;;  %21837 = vmatprep.subr.bf16.mxu0 %v24424_v48  ;;  %v24471_v48 = vld [vmem:[%s31090_s3 + $0x2d90] ss:$12 sps:$4 sm:$0xff]  }
 0x813   : > { %13703 = vmatprep.subr.bf16.mxu1 %v24423_v15  ;;  %v24479_v15 = vld [vmem:[%s31090_s3 + $0x2cf0] ss:$12 sps:$4 sm:$0xff]  }
 0x815   : > { %21838 = vmatpush3.bf16.msra.mxu0 %v24425_v50 }
 0x816   : > { %13704 = vmatpush1.bf16.msra.mxu1 %v24421_v24  ;;  %21839 = vmatprep.subr.bf16.mxu0 %v24429_v51  ;;  %v24478_v24 = vld [vmem:[%s31090_s3 + $0x2dac] ss:$12 sps:$4 sm:$0xff]  }
 0x817   : > { %13705 = vmatprep.subr.bf16.mxu1 %v24428_v21  ;;  %v24480_v21 = vld [vmem:[%s31090_s3 + $0x2c30] ss:$12 sps:$4 sm:$0xff]  }
 0x818   : > { %v21757_v54 = vpop.f32.mrb[68].mxu1 }
 0x819   : > { %v21758_v55 = vpop.f32.mrb[69].mxu1  ;;  %21840 = vmatpush3.bf16.msra.mxu0 %v24430_v44  ;;  %v24476_v44 = vld [vmem:[%s31090_s3 + $0x2da8] ss:$12 sps:$4 sm:$0xff]  }
 0x81a   : > { %v29625_v58 = vadd.f32 %v21758_v55, %v21757_v54  ;;  %v21760_v59 = vpop.f32.mrb[70].mxu1  ;;  %13706 = vmatpush1.bf16.msra.mxu1 %v24426_v52  ;;  %21841 = vmatprep.subr.bf16.mxu0 %v24434_v34  ;;  %v24484_v52 = vld [vmem:[%s31090_s3 + $0x2dc8] ss:$12 sps:$4 sm:$0xff]   ;;  %v24483_v34 = vld [vmem:[%s31090_s3 + $0x2dc4] ss:$12 sps:$4 sm:$0xff]  }
 0x81b   : > { %v21761_v62 = vpop.f32.mrb[71].mxu1  ;;  %13707 = vmatprep.subr.bf16.mxu1 %v24433_v47  ;;  %v24485_v47 = vld [vmem:[%s31090_s3 + $0x2d08] ss:$12 sps:$4 sm:$0xff]   ;;  %v24481_v54 = vld [vmem:[%s31090_s3 + $0x2dc0] ss:$12 sps:$4 sm:$0xff]  }
 0x81c   : > { %v24489_v55 = vld [vmem:[%s31090_s3 + $0x2de0] ss:$12 sps:$4 sm:$0xff]   ;;  %v24486_v59 = vld [vmem:[%s31090_s3 + $0x2dd8] ss:$12 sps:$4 sm:$0xff]   ;;  %v24499_v62 = vld [vmem:[%s31090_s3 + $0x2e10] ss:$12 sps:$4 sm:$0xff]  }
 0x81d   : > { %21842 = vmatpush3.bf16.msra.mxu0 %v24435_v57  ;;  %v24488_v57 = vld [vmem:[%s31090_s3 + $0x2ddc] ss:$12 sps:$4 sm:$0xff]  }
 0x81e   : > { %13708 = vmatpush1.bf16.msra.mxu1 %v24431_v60  ;;  %21843 = vmatprep.subr.bf16.mxu0 %v24439_v61  ;;  %v24494_v60 = vld [vmem:[%s31090_s3 + $0x2df8] ss:$12 sps:$4 sm:$0xff]   ;;  %v24491_v61 = vld [vmem:[%s31090_s3 + $0x2df0] ss:$12 sps:$4 sm:$0xff]  }
 0x81f   : > { %13709 = vmatprep.subr.bf16.mxu1 %v24438_v1  ;;  %v24498_v1 = vld [vmem:[%s31090_s3 + $0x2e0c] ss:$12 sps:$4 sm:$0xff]  }
 0x821   : > { %21844 = vmatpush3.bf16.msra.mxu0 %v24440_v2  ;;  %v24500_v2 = vld [vmem:[%s31090_s3 + $0x2d50] ss:$12 sps:$4 sm:$0xff]  }
 0x822   : > { %13710 = vmatpush1.bf16.msra.mxu1 %v24436_v3  ;;  %21851 = vmatprep.subr.bf16.mxu0 %v24444_v5  ;;  %v24496_v3 = vld [vmem:[%s31090_s3 + $0x2e08] ss:$12 sps:$4 sm:$0xff]  }
 0x823   : > { %13720 = vmatprep.subr.bf16.mxu1 %v24443_v6  ;;  %v24504_v5 = vld [vmem:[%s31090_s3 + $0x2e28] ss:$12 sps:$4 sm:$0xff]   ;;  %v24503_v6 = vld [vmem:[%s31090_s3 + $0x2e24] ss:$12 sps:$4 sm:$0xff]  }
 0x824   : > { %13835 = vmatmul.mubr.bf16.vlgmr.msra.gmra.mrb[72].mxu0 %v25280_v18  ;;  %v24454_v18 = vld [vmem:[%s31090_s3 + $0x2c78] ss:$12 sps:$4 sm:$0xff]  }
 0x825   : > { %13712 = vmatmul.mubr.bf16.vlgmr.msra.gmra.mrb[84].mxu1 %v25398_v4  ;;  %21852 = vmatpush3.bf16.msra.mxu0 %v24445_v10  ;;  %v24505_v10 = vld [vmem:[%s31090_s3 + $0x2d68] ss:$12 sps:$4 sm:$0xff]  }
 0x826   : > { %13721 = vmatpush1.bf16.msra.mxu1 %v24441_v11  ;;  %13752 = vmatprep.mubr.bf16.mxu1 %v25409_v9  ;;  %v24501_v11 = vld [vmem:[%s31090_s3 + $0x2e20] ss:$12 sps:$4 sm:$0xff]  }
 0x827   : > { %13874 = vmatprep.mubr.bf16.mxu0 %v25292_v23  ;;  %13722 = vmatprep.subr.bf16.mxu1 %v24448_v12  ;;  %v24459_v23 = vld [vmem:[%s31090_s3 + $0x2c90] ss:$12 sps:$4 sm:$0xff]   ;;  %v24509_v12 = vld [vmem:[%s31090_s3 + $0x2e40] ss:$12 sps:$4 sm:$0xff]  }
 0x828   : > { %21853 = vmatprep.subr.bf16.mxu0 %v24449_v16  ;;  %v24508_v16 = vld [vmem:[%s31090_s3 + $0x2e3c] ss:$12 sps:$4 sm:$0xff]  }
 0x829   : > { %21854 = vmatpush3.bf16.msra.mxu0 %v24450_v17  ;;  %v24510_v17 = vld [vmem:[%s31090_s3 + $0x2d80] ss:$12 sps:$4 sm:$0xff]  }
 0x82a   : > { %13723 = vmatpush1.bf16.msra.mxu1 %v24446_v20  ;;  %21855 = vmatprep.subr.bf16.mxu0 %v24454_v18  ;;  %v24506_v20 = vld [vmem:[%s31090_s3 + $0x2e38] ss:$12 sps:$4 sm:$0xff]  }
 0x82b   : > { %13724 = vmatprep.subr.bf16.mxu1 %v24453_v40  ;;  %v24514_v18 = vld [vmem:[%s31090_s3 + $0x2e58] ss:$12 sps:$4 sm:$0xff]   ;;  %v24513_v40 = vld [vmem:[%s31090_s3 + $0x2e54] ss:$12 sps:$4 sm:$0xff]  }
 0x82d   : > { %21856 = vmatpush3.bf16.msra.mxu0 %v24455_v36 }
 0x82e   : > { %13725 = vmatpush1.bf16.msra.mxu1 %v24451_v49  ;;  %21857 = vmatprep.subr.bf16.mxu0 %v24459_v23  ;;  %v24515_v23 = vld [vmem:[%s31090_s3 + $0x2d98] ss:$12 sps:$4 sm:$0xff]  }
 0x82f   : > { %13726 = vmatprep.subr.bf16.mxu1 %v24458_v63 }
 0x831   : > { %21858 = vmatpush3.bf16.msra.mxu0 %v24460_v25 }
 0x832   : > { %13727 = vmatpush1.bf16.msra.mxu1 %v24456_v26  ;;  %21859 = vmatprep.subr.bf16.mxu0 %v24464_v27  ;;  %v24511_v26 = vld [vmem:[%s31090_s3 + $0x2e50] ss:$12 sps:$4 sm:$0xff]  }
 0x833   : > { %13728 = vmatprep.subr.bf16.mxu1 %v24463_v28  ;;  %v24519_v27 = vld [vmem:[%s31090_s3 + $0x2e70] ss:$12 sps:$4 sm:$0xff]  }
 0x835   : > { %21860 = vmatpush3.bf16.msra.mxu0 %v24465_v29  ;;  %v24518_v29 = vld [vmem:[%s31090_s3 + $0x2e6c] ss:$12 sps:$4 sm:$0xff]  }
 0x836   : > { %13729 = vmatpush1.bf16.msra.mxu1 %v24461_v31  ;;  %21861 = vmatprep.subr.bf16.mxu0 %v24469_v32  ;;  %v24520_v32 = vld [vmem:[%s31090_s3 + $0x2db0] ss:$12 sps:$4 sm:$0xff]  }
 0x837   : > { %13730 = vmatprep.subr.bf16.mxu1 %v24468_v35  ;;  %v24516_v35 = vld [vmem:[%s31090_s3 + $0x2e68] ss:$12 sps:$4 sm:$0xff]  }
 0x838   : > { %v21779_v13 = vpop.f32.mrb[72].mxu1 }
 0x839   : > { %v21780_v38 = vpop.f32.mrb[73].mxu1  ;;  %21862 = vmatpush3.bf16.msra.mxu0 %v24470_v46  ;;  %v24524_v46 = vld [vmem:[%s31090_s3 + $0x2f48] ss:$12 sps:$4 sm:$0xff]  }
 0x83a   : > { %v21781_v43 = vadd.f32 %v21780_v38, %v21779_v13  ;;  %v21782_v45 = vpop.f32.mrb[74].mxu1  ;;  %13731 = vmatpush1.bf16.msra.mxu1 %v24466_v37  ;;  %21863 = vmatprep.subr.bf16.mxu0 %v24474_v42  ;;  %v24523_v37 = vld [vmem:[%s31090_s3 + $0x2e84] ss:$12 sps:$4 sm:$0xff]   ;;  %v24525_v42 = vld [vmem:[%s31090_s3 + $0x2e88] ss:$12 sps:$4 sm:$0xff]  }
 0x83b   : > { %v21783_v50 = vpop.f32.mrb[75].mxu1  ;;  %13732 = vmatprep.subr.bf16.mxu1 %v24473_v19  ;;  %v24521_v19 = vld [vmem:[%s31090_s3 + $0x2e80] ss:$12 sps:$4 sm:$0xff]   ;;  %v24528_v13 = vld [vmem:[%s31090_s3 + $0x2e9c] ss:$12 sps:$4 sm:$0xff]  }
 0x83c   : > { %v29737_v51 = vadd.f32 %v21781_v43, %v29625_v58  ;;  %v24490_v58 = vld [vmem:[%s31090_s3 + $0x2d20] ss:$12 sps:$4 sm:$0xff]   ;;  %v24526_v43 = vld [vmem:[%s31090_s3 + $0x2e98] ss:$12 sps:$4 sm:$0xff]   ;;  %v24531_v50 = vld [vmem:[%s31090_s3 + $0x2eb0] ss:$12 sps:$4 sm:$0xff]  }
 0x83d   : > { %21864 = vmatpush3.bf16.msra.mxu0 %v24475_v39  ;;  %v24529_v38 = vld [vmem:[%s31090_s3 + $0x2f60] ss:$12 sps:$4 sm:$0xff]   ;;  %v24534_v45 = vld [vmem:[%s31090_s3 + $0x2f78] ss:$12 sps:$4 sm:$0xff]  }
 0x83e   : > { %13733 = vmatpush1.bf16.msra.mxu1 %v24471_v48  ;;  %21865 = vmatprep.subr.bf16.mxu0 %v24479_v15  ;;  %v24530_v39 = vld [vmem:[%s31090_s3 + $0x2ea0] ss:$12 sps:$4 sm:$0xff]   ;;  %v24535_v48 = vld [vmem:[%s31090_s3 + $0x2eb8] ss:$12 sps:$4 sm:$0xff]   ;;  %v14028_v15 = vpop.permute.xlu1 %14027 }
 0x83f   : > { %13734 = vmatprep.subr.bf16.mxu1 %v24478_v24  ;;  %v24538_v24 = vld [vmem:[%s31090_s3 + $0x2ecc] ss:$12 sps:$4 sm:$0xff]  }
 0x841   : > { %21866 = vmatpush3.bf16.msra.mxu0 %v24480_v21 }
 0x842   : > { %13735 = vmatpush1.bf16.msra.mxu1 %v24476_v44  ;;  %21873 = vmatprep.subr.bf16.mxu0 %v24484_v52  ;;  %v14024_v21 = vpop.permute.xlu1 %14023  ;;  %v24536_v44 = vld [vmem:[%s31090_s3 + $0x2ec8] ss:$12 sps:$4 sm:$0xff]  }
 0x843   : > { %13736 = vmatprep.subr.bf16.mxu1 %v24483_v34  ;;  %v24544_v52 = vld [vmem:[%s31090_s3 + $0x2fa8] ss:$12 sps:$4 sm:$0xff]   ;;  %v24543_v34 = vld [vmem:[%s31090_s3 + $0x2ee4] ss:$12 sps:$4 sm:$0xff]  }
 0x844   : > { %13875 = vmatmul.mubr.bf16.vlgmr.msra.gmra.mrb[76].mxu0 %v25398_v4  ;;  %v24493_v4 = vld [vmem:[%s31090_s3 + $0x2df4] ss:$12 sps:$4 sm:$0xff]  }
 0x845   : > { %21874 = vmatpush3.bf16.msra.mxu0 %v24485_v47  ;;  %13914 = vmatprep.mubr.bf16.mxu0 %v25409_v9  ;;  %v24495_v9 = vld [vmem:[%s31090_s3 + $0x2d38] ss:$12 sps:$4 sm:$0xff]   ;;  %v24545_v47 = vld [vmem:[%s31090_s3 + $0x2ee8] ss:$12 sps:$4 sm:$0xff]  }
 0x846   : > { %13737 = vmatpush1.bf16.msra.mxu1 %v24481_v54  ;;  %21875 = vmatprep.subr.bf16.mxu0 %v24489_v55  ;;  %v24541_v54 = vld [vmem:[%s31090_s3 + $0x2ee0] ss:$12 sps:$4 sm:$0xff]  }
 0x847   : > { %13738 = vmatprep.subr.bf16.mxu1 %v24488_v57  ;;  %v24549_v55 = vld [vmem:[%s31090_s3 + $0x2fc0] ss:$12 sps:$4 sm:$0xff]   ;;  %v24548_v57 = vld [vmem:[%s31090_s3 + $0x2efc] ss:$12 sps:$4 sm:$0xff]  }
 0x849   : > { %21876 = vmatpush3.bf16.msra.mxu0 %v24490_v58  ;;  %v14026_v58 = vpop.permute.xlu1 %14025 }
 0x84a   : > { %13739 = vmatpush1.bf16.msra.mxu1 %v24486_v59  ;;  %21877 = vmatprep.subr.bf16.mxu0 %v24494_v60  ;;  %v24550_v59 = vld [vmem:[%s31090_s3 + $0x2f00] ss:$12 sps:$4 sm:$0xff]   ;;  %v24546_v60 = vld [vmem:[%s31090_s3 + $0x2ef8] ss:$12 sps:$4 sm:$0xff]  }
 0x84b   : > { %13740 = vmatprep.subr.bf16.mxu1 %v24493_v4  ;;  %v24554_v4 = vld [vmem:[%s31090_s3 + $0x2fd8] ss:$12 sps:$4 sm:$0xff]  }
 0x84d   : > { %21878 = vmatpush3.bf16.msra.mxu0 %v24495_v9  ;;  %v24553_v9 = vld [vmem:[%s31090_s3 + $0x2f14] ss:$12 sps:$4 sm:$0xff]  }
 0x84e   : > { %13741 = vmatpush1.bf16.msra.mxu1 %v24491_v61  ;;  %21879 = vmatprep.subr.bf16.mxu0 %v24499_v62  ;;  %v14034_v61 = vpop.permute.xlu1 %14033 }
 0x84f   : > { %13742 = vmatprep.subr.bf16.mxu1 %v24498_v1 }
 0x851   : > { %21880 = vmatpush3.bf16.msra.mxu0 %v24500_v2  ;;  %v24555_v2 = vld [vmem:[%s31090_s3 + $0x2f18] ss:$12 sps:$4 sm:$0xff]  }
 0x852   : > { %13743 = vmatpush1.bf16.msra.mxu1 %v24496_v3  ;;  %21881 = vmatprep.subr.bf16.mxu0 %v24504_v5 }
 0x853   : > { %13744 = vmatprep.subr.bf16.mxu1 %v24503_v6  ;;  %v24551_v6 = vld [vmem:[%s31090_s3 + $0x2f10] ss:$12 sps:$4 sm:$0xff]  }
 0x855   : > { %21882 = vmatpush3.bf16.msra.mxu0 %v24505_v10  ;;  %v24559_v10 = vld [vmem:[%s31090_s3 + $0x2ff0] ss:$12 sps:$4 sm:$0xff]  }
 0x856   : > { %13745 = vmatpush1.bf16.msra.mxu1 %v24501_v11  ;;  %21883 = vmatprep.subr.bf16.mxu0 %v24509_v12  ;;  %v24558_v12 = vld [vmem:[%s31090_s3 + $0x2f2c] ss:$12 sps:$4 sm:$0xff]  }
 0x857   : > { %13746 = vmatprep.subr.bf16.mxu1 %v24508_v16  ;;  %v14030_v16 = vpop.permute.xlu1 %14029 }
 0x858   : > { %v21801_v36 = vpop.f32.mrb[76].mxu1 }
 0x859   : > { %v21802_v49 = vpop.f32.mrb[77].mxu1  ;;  %21884 = vmatpush3.bf16.msra.mxu0 %v24510_v17 }
 0x85a   : > { %v21803_v63 = vadd.f32 %v21802_v49, %v21801_v36  ;;  %v21804_v25 = vpop.f32.mrb[78].mxu1  ;;  %13747 = vmatpush1.bf16.msra.mxu1 %v24506_v20  ;;  %21885 = vmatprep.subr.bf16.mxu0 %v24514_v18  ;;  %v24560_v20 = vld [vmem:[%s31090_s3 + $0x2f30] ss:$12 sps:$4 sm:$0xff]   ;;  %v24556_v18 = vld [vmem:[%s31090_s3 + $0x2f28] ss:$12 sps:$4 sm:$0xff]   ;;  %v14049_v49 = vsel %vm14047_vm12, %v14026_v58, %v14028_v15 }
 0x85b   : > { %v21805_v28 = vpop.f32.mrb[79].mxu1  ;;  %13748 = vmatprep.subr.bf16.mxu1 %v24513_v40  ;;  %v24563_v40 = vld [vmem:[%s31090_s3 + $0x2f44] ss:$12 sps:$4 sm:$0xff]   ;;  %v24566_v25 = vld [vmem:[%s31090_s3 + $0x2f5c] ss:$12 sps:$4 sm:$0xff]  }
 0x85c   : > { %v29838_v31 = vadd.f32 %v21803_v63, %v29737_v51  ;;  %v24540_v51 = vld [vmem:[%s31090_s3 + $0x2ed0] ss:$12 sps:$4 sm:$0xff]   ;;  %v24561_v63 = vld [vmem:[%s31090_s3 + $0x2f40] ss:$12 sps:$4 sm:$0xff]  }
 0x85d   : > { %21886 = vmatpush3.bf16.msra.mxu0 %v24515_v23  ;;  %v14032_v23 = vpop.permute.xlu1 %14031  ;;  %v24584_v15 = vld [vmem:[%s31090_s3 + $0x2fec] ss:$12 sps:$4 sm:$0xff]  }
 0x85e   : > { %13749 = vmatpush1.bf16.msra.mxu1 %v24511_v26  ;;  %21887 = vmatprep.subr.bf16.mxu0 %v24519_v27  ;;  %v14048_v26 = vsel %vm14047_vm12, %v14024_v21, %v14026_v58  ;;  %v14051_v27 = vsel %vm14047_vm12, %v14032_v23, %v14034_v61 }
 0x85f   : > { %13750 = vmatprep.subr.bf16.mxu1 %v24518_v29  ;;  %v24564_v29 = vld [vmem:[%s31090_s3 + $0x2f58] ss:$12 sps:$4 sm:$0xff]  }
 0x861   : > { %21888 = vmatpush3.bf16.msra.mxu0 %v24520_v32  ;;  %v14050_v32 = vsel %vm14047_vm12, %v14030_v16, %v14032_v23 }
 0x862   : > { %13751 = vmatpush1.bf16.msra.mxu1 %v24516_v35  ;;  %21895 = vmatprep.subr.bf16.mxu0 %v24524_v46  ;;  %v14040_v35 = vpop.permute.xlu1 %14039 }
 0x863   : > { %13761 = vmatprep.subr.bf16.mxu1 %v24523_v37  ;;  %v24567_v37 = vld [vmem:[%s31090_s3 + $0x2f70] ss:$12 sps:$4 sm:$0xff]  }
 0x864   : > { %13915 = vmatmul.mubr.bf16.vlgmr.msra.gmra.mrb[80].mxu0 %v25510_v53 }
 0x865   : > { %13753 = vmatmul.mubr.bf16.vlgmr.msra.gmra.mrb[84].mxu1 %v25510_v53  ;;  %21896 = vmatpush3.bf16.msra.mxu0 %v24525_v42  ;;  %v24533_v53 = vld [vmem:[%s31090_s3 + $0x2eb4] ss:$12 sps:$4 sm:$0xff]   ;;  %v24572_v42 = vld [vmem:[%s31090_s3 + $0x2f8c] ss:$12 sps:$4 sm:$0xff]  }
 0x866   : > { %13762 = vmatpush1.bf16.msra.mxu1 %v24521_v19  ;;  %13793 = vmatprep.mubr.bf16.mxu1 %v25518_v56 }
 0x867   : > { %13954 = vmatprep.mubr.bf16.mxu0 %v25518_v56  ;;  %13763 = vmatprep.subr.bf16.mxu1 %v24528_v13  ;;  %v24539_v56 = vld [vmem:[%s31090_s3 + $0x2f90] ss:$12 sps:$4 sm:$0xff]   ;;  %v24570_v13 = vld [vmem:[%s31090_s3 + $0x2f88] ss:$12 sps:$4 sm:$0xff]  }
 0x868   : > { %21897 = vmatprep.subr.bf16.mxu0 %v24529_v38  ;;  %v24575_v38 = vld [vmem:[%s31090_s3 + $0x2fa4] ss:$12 sps:$4 sm:$0xff]  }
 0x869   : > { %21898 = vmatpush3.bf16.msra.mxu0 %v24530_v39  ;;  %v24573_v39 = vld [vmem:[%s31090_s3 + $0x2fa0] ss:$12 sps:$4 sm:$0xff]  }
 0x86a   : > { %13764 = vmatpush1.bf16.msra.mxu1 %v24526_v43  ;;  %21899 = vmatprep.subr.bf16.mxu0 %v24534_v45  ;;  %v24578_v43 = vld [vmem:[%s31090_s3 + $0x2fbc] ss:$12 sps:$4 sm:$0xff]   ;;  %v24576_v45 = vld [vmem:[%s31090_s3 + $0x2fb8] ss:$12 sps:$4 sm:$0xff]  }
 0x86b   : > { %13765 = vmatprep.subr.bf16.mxu1 %v24533_v53  ;;  %v24581_v53 = vld [vmem:[%s31090_s3 + $0x2fd4] ss:$12 sps:$4 sm:$0xff]  }
 0x86d   : > { %21900 = vmatpush3.bf16.msra.mxu0 %v24535_v48  ;;  %v14036_v36 = vpop.permute.xlu0 %14035  ;;  %v24579_v48 = vld [vmem:[%s31090_s3 + $0x2fd0] ss:$12 sps:$4 sm:$0xff]  }
 0x86e   : > { %13766 = vmatpush1.bf16.msra.mxu1 %v24531_v50  ;;  %21901 = vmatprep.subr.bf16.mxu0 %v24539_v56  ;;  %v24582_v50 = vld [vmem:[%s31090_s3 + $0x2fe8] ss:$12 sps:$4 sm:$0xff]  }
 0x86f   : > { %13767 = vmatprep.subr.bf16.mxu1 %v24538_v24 }
 0x871   : > { %21902 = vmatpush3.bf16.msra.mxu0 %v24540_v51  ;;  %v14038_v28 = vpop.permute.xlu0 %14037 }
 0x872   : > { %13768 = vmatpush1.bf16.msra.mxu1 %v24536_v44  ;;  %21903 = vmatprep.subr.bf16.mxu0 %v24544_v52  ;;  %v14053_v46 = vsel %vm14047_vm12, %v14038_v28, %v14040_v35  ;;  %v14052_v19 = vsel %vm14047_vm12, %v14036_v36, %v14038_v28 }
 0x873   : > { %13769 = vmatprep.subr.bf16.mxu1 %v24543_v34 }
 0x875   : > { %21904 = vmatpush3.bf16.msra.mxu0 %v24545_v47 }
 0x876   : > { %13770 = vmatpush1.bf16.msra.mxu1 %v24541_v54  ;;  %21905 = vmatprep.subr.bf16.mxu0 %v24549_v55 }
 0x877   : > { %13771 = vmatprep.subr.bf16.mxu1 %v24548_v57 }
 0x878   : > { %v21823_v62 = vpop.f32.mrb[80].mxu1 }
 0x879   : > { %v21824_v1 = vpop.f32.mrb[81].mxu1  ;;  %21906 = vmatpush3.bf16.msra.mxu0 %v24550_v59 }
 0x87a   : > { %v21825_v3 = vadd.f32 %v21824_v1, %v21823_v62  ;;  %v21826_v5 = vpop.f32.mrb[82].mxu1  ;;  %13772 = vmatpush1.bf16.msra.mxu1 %v24546_v60  ;;  %21907 = vmatprep.subr.bf16.mxu0 %v24554_v4 }
 0x87b   : > { %v21827_v11 = vpop.f32.mrb[83].mxu1  ;;  %13773 = vmatprep.subr.bf16.mxu1 %v24553_v9 }
 0x87c   : > { %v12349_v17 = vadd.f32 %v21825_v3, %v29838_v31  ;;  %v24569_v31 = vld [vmem:[%s31090_s3 + $0x2f74] ss:$12 sps:$4 sm:$0xff]  }
 0x87d   : > { %21908 = vmatpush3.bf16.msra.mxu0 %v24555_v2 }
 0x87e   : > { %12356 = vst.msk [vmem:[#allocation2 + $0xa0] sm:$0xff] %vm2707_vm11, %v12349_v17  ;;  %13774 = vmatpush1.bf16.msra.mxu1 %v24551_v6  ;;  %21909 = vmatprep.subr.bf16.mxu0 %v24559_v10 }
 0x87f   : > { %13775 = vmatprep.subr.bf16.mxu1 %v24558_v12 }
 0x881   : > { %21910 = vmatpush3.bf16.msra.mxu0 %v24560_v20 }
 0x882   : > { %13776 = vmatpush1.bf16.msra.mxu1 %v24556_v18  ;;  %14068 = vmatprep.subr.bf16.mxu0 %v14049_v49 }
 0x883   : > { %13777 = vmatprep.subr.bf16.mxu1 %v24563_v40 }
 0x884   : > { %13955 = vmatmul.mubr.bf16.vlgmr.msra.gmra.mrb[84].mxu0 %v25619_v30 }
 0x885   : > { %14069 = vmatpush1.bf16.msra.mxu0 %v14048_v26  ;;  %14100 = vmatprep.mubr.bf16.mxu0 %v24822_v7  ;;  %v13985_v16 = vld [vmem:[#allocation2 + $0xa0] sm:$0xff] }
 0x886   : > { %13778 = vmatpush1.bf16.msra.mxu1 %v24561_v63  ;;  %14070 = vmatprep.subr.bf16.mxu0 %v14051_v27 }
 0x887   : > { %13779 = vmatprep.subr.bf16.mxu1 %v24566_v25 }
 0x889   : > { %14071 = vmatpush1.bf16.msra.mxu0 %v14050_v32  ;;  %v24586_v32 = vld [vmem:[%s31091_s4] sm:$0xff]  }
 0x88a   : > { %13780 = vmatpush1.bf16.msra.mxu1 %v24564_v29  ;;  %14072 = vmatprep.subr.bf16.mxu0 %v14053_v46 }
 0x88b   : > { %13781 = vmatprep.subr.bf16.mxu1 %v24569_v31  ;;  %v24585_v31 = vld [vmem:[%s31091_s4 + $0x8] sm:$0xff]  }
 0x88d   : > { %14073 = vmatpush1.bf16.msra.mxu0 %v14052_v19 }
 0x88e   : > { %13782 = vmatpush1.bf16.msra.mxu1 %v24567_v37 }
 0x88f   : > { %13783 = vmatprep.subr.bf16.mxu1 %v24572_v42 }
 0x892   : > { %13784 = vmatpush1.bf16.msra.mxu1 %v24570_v13  ;;  %v24587_v13 = vld [vmem:[%s31093_s6 + $0x40] sm:$0xff]  }
 0x893   : > { %13785 = vmatprep.subr.bf16.mxu1 %v24575_v38  ;;  %v24588_v38 = vld [vmem:[%s31093_s6 + $0xc0] sm:$0xff]  }
 0x896   : > { %13786 = vmatpush1.bf16.msra.mxu1 %v24573_v39  ;;  %v24589_v39 = vld [vmem:[%s31093_s6] sm:$0xff]  }
 0x897   : > { %13787 = vmatprep.subr.bf16.mxu1 %v24578_v43  ;;  %v24590_v43 = vld [vmem:[%s31093_s6 + $0x80] sm:$0xff]  }
 0x89a   : > { %13788 = vmatpush1.bf16.msra.mxu1 %v24576_v45  ;;  %v24591_v45 = vld [vmem:[%s31093_s6 + $0x48] sm:$0xff]  }
 0x89b   : > { %13789 = vmatprep.subr.bf16.mxu1 %v24581_v53  ;;  %v24592_v53 = vld [vmem:[%s31093_s6 + $0xc8] sm:$0xff]  }
 0x89e   : > { %13790 = vmatpush1.bf16.msra.mxu1 %v24579_v48  ;;  %v24593_v48 = vld [vmem:[%s31093_s6 + $0x8] sm:$0xff]  }
 0x89f   : > { %13791 = vmatprep.subr.bf16.mxu1 %v24584_v15  ;;  %v24594_v15 = vld [vmem:[%s31093_s6 + $0x88] sm:$0xff]  }
 0x8a2   : > { %13792 = vmatpush1.bf16.msra.mxu1 %v24582_v50  ;;  %v24595_v50 = vld [vmem:[%s31093_s6 + $0x50] sm:$0xff]  }
 0x8a3   : > { %21917 = vmatprep.subr.bf16.mxu1 %v24587_v13  ;;  %v24619_v13 = vld [vmem:[%s31093_s6 + $0x140] sm:$0xff]  }
 0x8a5   : > { %13794 = vmatmul.mubr.bf16.vlgmr.msra.gmra.mrb[84].mxu1 %v25619_v30 }
 0x8a6   : > { %21918 = vmatpush3.bf16.msra.mxu1 %v24589_v39 }
 0x8a7   : > { %21919 = vmatprep.subr.bf16.mxu1 %v24591_v45 }
 0x8aa   : > { %21920 = vmatpush3.bf16.msra.mxu1 %v24593_v48 }
 0x8ab   : > { %21921 = vmatprep.subr.bf16.mxu1 %v24595_v50 }
 0x8d7   : > { %v12187_v56 = vpop.f32.mrb[68].mxu0 }
 0x8d8   : > { %v12189_v24 = vpop.f32.mrb[69].mxu0 }
 0x8d9   : > { %v12191_v51 = vpop.f32.mrb[70].mxu0 }
 0x8da   : > { %v12192_v21 = vpop.f32.mrb[71].mxu0  ;;  %v24598_v51 = vld [vmem:[%s31093_s6 + $0x90] sm:$0xff]  }
 0x8db   : > { %v24599_v21 = vld [vmem:[%s31093_s6 + $0x58] sm:$0xff]  }
 0x8f7   : > { %v21845_v44 = vpop.f32.mrb[72].mxu0 }
 0x8f8   : > { %v21846_v52 = vpop.f32.mrb[73].mxu0 }
 0x8f9   : > { %v21847_v34 = vadd.f32 %v21846_v52, %v21845_v44  ;;  %v21848_v47 = vpop.f32.mrb[74].mxu0  ;;  %v24600_v44 = vld [vmem:[%s31093_s6 + $0xd8] sm:$0xff]  }
 0x8fa   : > { %v21849_v54 = vpop.f32.mrb[75].mxu0  ;;  %v24601_v52 = vld [vmem:[%s31093_s6 + $0x18] sm:$0xff]   ;;  %v24603_v47 = vld [vmem:[%s31093_s6 + $0x60] sm:$0xff]  }
 0x8fb   : > { %v24604_v54 = vld [vmem:[%s31093_s6 + $0xe0] sm:$0xff]  }
 0x917   : > { %v21867_v55 = vpop.f32.mrb[76].mxu0 }
 0x918   : > { %v21868_v57 = vpop.f32.mrb[77].mxu0 }
 0x919   : > { %v21869_v58 = vadd.f32 %v21868_v57, %v21867_v55  ;;  %v21870_v59 = vpop.f32.mrb[78].mxu0 }
 0x91a   : > { %v21871_v60 = vpop.f32.mrb[79].mxu0 }
 0x91b   : > { %v13877_v4 = vadd.f32 %v21869_v58, %v21847_v34  ;;  %v24602_v34 = vld [vmem:[%s31093_s6 + $0x98] sm:$0xff]  }
 0x937   : > { %v21889_v9 = vpop.f32.mrb[80].mxu0 }
 0x938   : > { %v21890_v61 = vpop.f32.mrb[81].mxu0 }
 0x939   : > { %v21891_v62 = vadd.f32 %v21890_v61, %v21889_v9  ;;  %v21892_v1 = vpop.f32.mrb[82].mxu0 }
 0x93a   : > { %v21893_v30 = vpop.f32.mrb[83].mxu0 }
 0x93b   : > { %v13917_v2 = vadd.f32 %v21891_v62, %v13877_v4 }
 0x957   : > { %v21911_v3 = vpop.f32.mrb[84].mxu0 }
 0x958   : > { %v21912_v5 = vpop.f32.mrb[85].mxu0 }
 0x959   : > { %v21913_v6 = vadd.f32 %v21912_v5, %v21911_v3  ;;  %v21914_v10 = vpop.f32.mrb[86].mxu0 }
 0x95a   : > { %v21915_v11 = vpop.f32.mrb[87].mxu0 }
 0x95b   : > { %v13957_v12 = vadd.f32 %v21913_v6, %v13917_v2 }
 0x95d   : > { %13964 = vst.msk [vmem:[#allocation2 + $0xb8] sm:$0xff] %vm2707_vm11, %v13957_v12 }
 0x964   : > { %v13988_v17 = vld [vmem:[#allocation2 + $0xb8] sm:$0xff] }
 0x965   : > { %v14000_v20 = vpack.c.bf16 %v13988_v17, %v13985_v16 }
 0x967   : > { %14045 = vrot.lane.b32.xlu0 %v14000_v20, %s24823_s13  ;;  %v14196_v20 = vld [vmem:[%s31092_s5] sm:$0xff] }
 0x978   : > { %v13795_v18 = vpop.f32.mrb[84].mxu1 }
 0x979   : > { %v13797_v40 = vpop.f32.mrb[85].mxu1  ;;  %v13998_v36 = vpack.c.bf16 %v13795_v18, %v12187_v56  ;;  %v24596_v56 = vld [vmem:[%s31093_s6 + $0xd0] sm:$0xff]  }
 0x97a   : > { %v13799_v49 = vpop.f32.mrb[86].mxu1  ;;  %v13999_v23 = vpack.c.bf16 %v13797_v40, %v12189_v24  ;;  %v24597_v24 = vld [vmem:[%s31093_s6 + $0x10] sm:$0xff]  }
 0x97b   : > { %v13800_v63 = vpop.f32.mrb[87].mxu1  ;;  %21922 = vmatpush3.bf16.msra.mxu1 %v24597_v24  ;;  %v24605_v49 = vld [vmem:[%s31093_s6 + $0x20] sm:$0xff]  }
 0x97c   : > { %14043 = vrot.lane.b32.xlu1 %v13999_v23, %s24823_s13  ;;  %21923 = vmatprep.subr.bf16.mxu1 %v24599_v21  ;;  %v24607_v63 = vld [vmem:[%s31093_s6 + $0x68] sm:$0xff]  }
 0x97f   : > { %21924 = vmatpush3.bf16.msra.mxu1 %v24601_v52 }
 0x980   : > { %14041 = vrot.lane.b32.xlu1 %v13998_v36, %s24823_s13  ;;  %21925 = vmatprep.subr.bf16.mxu1 %v24603_v47 }
 0x983   : > { %21926 = vmatpush3.bf16.msra.mxu1 %v24605_v49  ;;  %v24643_v49 = vld [vmem:[%s31093_s6 + $0x170] sm:$0xff]  }
 0x984   : > { %21927 = vmatprep.subr.bf16.mxu1 %v24607_v63  ;;  %v24645_v63 = vld [vmem:[%s31093_s6 + $0x130] sm:$0xff]  }
 0x9d9   : > { %v14046_v25 = vpop.permute.xlu0 %14045 }
 0x9ee   : > { %v14044_v26 = vpop.permute.xlu1 %14043 }
 0x9ef   : > { %v14055_v27 = vsel %vm14047_vm12, %v14044_v26, %v14046_v25  ;;  %v24608_v25 = vld [vmem:[%s31093_s6 + $0xe8] sm:$0xff]  }
 0x9f0   : > { %14074 = vmatprep.subr.bf16.mxu0 %v14055_v27  ;;  %v20709_v27 = vld [vmem:[%s31092_s5 + $0x10] sm:$0xff] }
 0x9f2   : > { %v14042_v28 = vpop.permute.xlu1 %14041 }
 0x9f3   : > { %v14054_v29 = vsel %vm14047_vm12, %v14042_v28, %v14044_v26 }
 0x9f4   : > { %14075 = vmatpush1.bf16.msra.mxu0 %v14054_v29  ;;  %v24609_v29 = vld [vmem:[%s31093_s6 + $0x28] sm:$0xff]  }
 0x9f5   : > { %14119 = vmatprep.subr.bf16.mxu0 %v27109_v22  ;;  %21928 = vmatpush3.bf16.msra.mxu1 %v24609_v29  ;;  %v24650_v29 = vld [vmem:[%s31093_s6 + $0x1b8] sm:$0xff]  }
 0x9f7   : > { %20706 = vmatmul.mubr.msk.bf16.vlgmr.msra.gmra.mrb[88].mxu0 %vm14064_vm13, %v24585_v31  ;;  %v24610_v31 = vld [vmem:[%s31093_s6 + $0xa8] sm:$0xff]  }
 0x9f8   : > { %14120 = vmatpush1.bf16.msra.mxu0 %v27093_v8  ;;  %14151 = vmatprep.mubr.bf16.mxu0 %v24822_v7 }
 0x9f9   : > { %14121 = vmatprep.subr.bf16.mxu0 %v28322_v41 }
 0x9fc   : > { %14122 = vmatpush1.bf16.msra.mxu0 %v28306_v33 }
 0x9fd   : > { %14123 = vmatprep.subr.bf16.mxu0 %v29535_v0 }
 0xa00   : > { %14124 = vmatpush1.bf16.msra.mxu0 %v29519_v14 }
 0xa01   : > { %14125 = vmatprep.subr.bf16.mxu0 %v13999_v23  ;;  %v24606_v23 = vld [vmem:[%s31093_s6 + $0xa0] sm:$0xff]  }
 0xa04   : > { %14126 = vmatpush1.bf16.msra.mxu0 %v13998_v36  ;;  %v14197_v36 = vld [vmem:[%s31092_s5 + $0x8] sm:$0xff] }
 0xa05   : > { %21939 = vmatprep.subr.bf16.mxu0 %v24588_v38  ;;  %v24620_v38 = vld [vmem:[%s31093_s6 + $0x1c0] sm:$0xff]  }
 0xa07   : > { %20708 = vmatmul.mubr.msk.bf16.vlgmr.msra.gmra.mrb[88].mxu0 %vm14064_vm13, %v24586_v32  ;;  %v20710_v32 = vld [vmem:[%s31092_s5 + $0x18] sm:$0xff] }
 0xa08   : > { %21940 = vmatpush3.bf16.msra.mxu0 %v24590_v43 }
 0xa09   : > { %21941 = vmatprep.subr.bf16.mxu0 %v24592_v53 }
 0xa0c   : > { %21942 = vmatpush3.bf16.msra.mxu0 %v24594_v15 }
 0xa0d   : > { %21943 = vmatprep.subr.bf16.mxu0 %v24596_v56 }
 0xa10   : > { %21944 = vmatpush3.bf16.msra.mxu0 %v24598_v51 }
 0xa11   : > { %21945 = vmatprep.subr.bf16.mxu0 %v24600_v44 }
 0xa14   : > { %21946 = vmatpush3.bf16.msra.mxu0 %v24602_v34 }
 0xa15   : > { %21947 = vmatprep.subr.bf16.mxu0 %v24604_v54 }
 0xa18   : > { %21948 = vmatpush3.bf16.msra.mxu0 %v24606_v23  ;;  %v24644_v23 = vld [vmem:[%s31093_s6 + $0x1f0] sm:$0xff]  }
 0xa19   : > { %21949 = vmatprep.subr.bf16.mxu0 %v24608_v25  ;;  %v24646_v25 = vld [vmem:[%s31093_s6 + $0x1b0] sm:$0xff]  }
 0xa1c   : > { %21950 = vmatpush3.bf16.msra.mxu0 %v24610_v31  ;;  %v24651_v31 = vld [vmem:[%s31093_s6 + $0x240] sm:$0xff]  }
 0xada   : > { %v30026_v22 = vpop.f32.mrb[88].mxu0 }
 0xadb   : > { %v30028_v8 = vpop.f32.mrb[89].mxu0  ;;  %v14170_v7 = vmul.f32 %v30026_v22, %v30026_v22 }
 0xadc   : > { %v30032_v33 = vpop.f32.mrb[90].mxu0  ;;  %v14162_v41 = vadd.f32 %v30028_v8, %v30026_v22  ;;  %v14171_v14 = vmul.f32 %v30028_v8, %v30028_v8 }
 0xadd   : > { %v30038_v0 = vpop.f32.mrb[91].mxu0  ;;  %v14172_v35 = vmul.f32 %v30032_v33, %v30032_v33 }
 0xade   : > { %14163 = vadd.xlane.f32.xlu0 %v14162_v41  ;;  %v14165_v46 = vadd.f32 %v30038_v0, %v30032_v33  ;;  %v14174_v37 = vadd.f32 %v14171_v14, %v14170_v7  ;;  %v14173_v42 = vmul.f32 %v30038_v0, %v30038_v0  ;;  %v24611_v7 = vld [vmem:[%s31093_s6 + $0x70] sm:$0xff]  }
 0xadf   : > { %v24612_v41 = vld [vmem:[%s31093_s6 + $0xf0] sm:$0xff]   ;;  %21929 = vmatprep.subr.bf16.mxu1 %v24611_v7  ;;  %v24653_v7 = vld [vmem:[%s31093_s6 + $0x200] sm:$0xff]  }
 0xae0   : > { %14166 = vadd.xlane.f32.xlu1 %v14165_v46  ;;  %v14177_v19 = vadd.f32 %v14173_v42, %v14172_v35  ;;  %v24613_v14 = vld [vmem:[%s31093_s6 + $0x30] sm:$0xff]   ;;  %21951 = vmatprep.subr.bf16.mxu0 %v24612_v41  ;;  %v24615_v46 = vld [vmem:[%s31093_s6 + $0x78] sm:$0xff]   ;;  %v24654_v41 = vld [vmem:[%s31093_s6 + $0x280] sm:$0xff]  }
 0xae1   : > { %v24614_v35 = vld [vmem:[%s31093_s6 + $0xb0] sm:$0xff]   ;;  %21930 = vmatpush3.bf16.msra.mxu1 %v24613_v14  ;;  %v24617_v42 = vld [vmem:[%s31093_s6 + $0x38] sm:$0xff]   ;;  %v24655_v14 = vld [vmem:[%s31093_s6 + $0x248] sm:$0xff]  }
 0xae2   : > { %14175 = vadd.xlane.f32.xlu0 %v14174_v37  ;;  %21952 = vmatpush3.bf16.msra.mxu0 %v24614_v35  ;;  %v24616_v37 = vld [vmem:[%s31093_s6 + $0xf8] sm:$0xff]   ;;  %v24656_v35 = vld [vmem:[%s31093_s6 + $0x2c8] sm:$0xff]  }
 0xae3   : > { %21931 = vmatprep.subr.bf16.mxu1 %v24615_v46  ;;  %21953 = vmatprep.subr.bf16.mxu0 %v24616_v37  ;;  %v24657_v46 = vld [vmem:[%s31093_s6 + $0x208] sm:$0xff]  }
 0xae4   : > { %v24658_v37 = vld [vmem:[%s31093_s6 + $0x288] sm:$0xff]  }
 0xae5   : > { %21932 = vmatpush3.bf16.msra.mxu1 %v24617_v42  ;;  %v24659_v42 = vld [vmem:[%s31093_s6 + $0x250] sm:$0xff]  }
 0xae6   : > { %14178 = vadd.xlane.f32.xlu0 %v14177_v19  ;;  %v24618_v19 = vld [vmem:[%s31093_s6 + $0xb8] sm:$0xff]   ;;  %21961 = vmatprep.subr.bf16.mxu1 %v24619_v13  ;;  %v24661_v13 = vld [vmem:[%s31093_s6 + $0x210] sm:$0xff]  }
 0xae7   : > { %21954 = vmatpush3.bf16.msra.mxu0 %v24618_v19  ;;  %v24660_v19 = vld [vmem:[%s31093_s6 + $0x2d0] sm:$0xff]  }
 0xae8   : > { %21983 = vmatprep.subr.bf16.mxu0 %v24620_v38  ;;  %v24662_v38 = vld [vmem:[%s31093_s6 + $0x290] sm:$0xff]  }
 0xb6b   : > { %v14164_v55 = vpop.xlane.xlu0 %14163 }
 0xb6c   : > { %v30100_v57 = vmul.f32 0.00390625, %v14164_v55 }
 0xb6d   : > { %v14167_v58 = vpop.xlane.xlu1 %14166 }
 0xb6e   : > { %v30102_v59 = vmul.f32 0.00390625, %v14167_v58  ;;  %v14192_v60 = vsub.f32 %v30026_v22, %v30100_v57  ;;  %v14193_v4 = vsub.f32 %v30028_v8, %v30100_v57  ;;  %v14182_v61 = vmul.f32 %v30100_v57, %v30100_v57 }
 0xb6f   : > { %v14176_v9 = vpop.xlane.xlu0 %14175 }
 0xb70   : > { %v14180_v62 = vmul.f32 0.00390625, %v14176_v9  ;;  %v14194_v1 = vsub.f32 %v30032_v33, %v30102_v59  ;;  %v14195_v30 = vsub.f32 %v30038_v0, %v30102_v59  ;;  %v14183_v10 = vmul.f32 %v30102_v59, %v30102_v59  ;;  %v24621_v0 = vld [vmem:[%s31093_s6 + $0x100] sm:$0xff]   ;;  %v24625_v9 = vld [vmem:[%s31093_s6 + $0x108] sm:$0xff]  }
 0xb71   : > { %v24622_v59 = vld [vmem:[%s31093_s6 + $0x180] sm:$0xff]  }
 0xb72   : > { %v14184_v2 = vsub.f32 %v14180_v62, %v14182_v61  ;;  %v24626_v61 = vld [vmem:[%s31093_s6 + $0x188] sm:$0xff]   ;;  %v24627_v62 = vld [vmem:[%s31093_s6 + $0x150] sm:$0xff]  }
 0xb73   : > { %v14179_v3 = vpop.xlane.xlu0 %14178 }
 0xb74   : > { %v14186_v5 = vmax.f32 %v14184_v2, 0.0  ;;  %v14181_v6 = vmul.f32 0.00390625, %v14179_v3  ;;  %v24630_v2 = vld [vmem:[%s31093_s6 + $0x190] sm:$0xff]   ;;  %v24631_v3 = vld [vmem:[%s31093_s6 + $0x158] sm:$0xff]  }
 0xb76   : > { %v14188_v11 = vadd.f32 1e-05, %v14186_v5  ;;  %v14185_v12 = vsub.f32 %v14181_v6, %v14183_v10  ;;  %v24632_v5 = vld [vmem:[%s31093_s6 + $0x1d8] sm:$0xff]  }
 0xb77   : > { %v24633_v6 = vld [vmem:[%s31093_s6 + $0x118] sm:$0xff]  }
 0xb78   : > { %24777 = vrsqrt.f32 %v14188_v11  ;;  %v14187_v16 = vmax.f32 %v14185_v12, 0.0  ;;  %v24634_v10 = vld [vmem:[%s31093_s6 + $0x198] sm:$0xff]   ;;  %v24635_v11 = vld [vmem:[%s31093_s6 + $0x160] sm:$0xff]  }
 0xb79   : > { %v24636_v12 = vld [vmem:[%s31093_s6 + $0x1e0] sm:$0xff]  }
 0xb7a   : > { %v14189_v17 = vadd.f32 1e-05, %v14187_v16  ;;  %v24637_v16 = vld [vmem:[%s31093_s6 + $0x120] sm:$0xff]  }
 0xb7c   : > { %24779 = vrsqrt.f32 %v14189_v17  ;;  %v24638_v17 = vld [vmem:[%s31093_s6 + $0x1a0] sm:$0xff]  }
 0xb82   : > { %v24778_v18 = vpop.eup %24777 }
 0xb83   : > { %v14198_v40 = vmul.f32 %v24778_v18, %v14196_v20  ;;  %v24639_v20 = vld [vmem:[%s31093_s6 + $0x168] sm:$0xff]  }
 0xb84   : > { %v24640_v18 = vld [vmem:[%s31093_s6 + $0x1e8] sm:$0xff]  }
 0xb85   : > { %14202 = vperm.xlu1 %22514, %v14198_v40   ;;  %v24641_v40 = vld [vmem:[%s31093_s6 + $0x128] sm:$0xff]  }
 0xb86   : > { %v24780_v26 = vpop.eup %24779 }
 0xb87   : > { %v14199_v28 = vmul.f32 %v24780_v26, %v14197_v36  ;;  %v24642_v36 = vld [vmem:[%s31093_s6 + $0x1a8] sm:$0xff]   ;;  %v24647_v26 = vld [vmem:[%s31093_s6 + $0x178] sm:$0xff]  }
 0xb89   : > { %14219 = vperm.xlu1 %22514, %v20709_v27   ;;  %14207 = vperm.xlu0 %22513, %v14199_v28   ;;  %v24648_v27 = vld [vmem:[%s31093_s6 + $0x1f8] sm:$0xff]  }
 0xb8a   : > { %v24649_v28 = vld [vmem:[%s31093_s6 + $0x138] sm:$0xff]  }
 0xb8d   : > { %14224 = vperm.xlu1 %22514, %v20710_v32   ;;  %v24652_v32 = vld [vmem:[%s31093_s6 + $0x2c0] sm:$0xff]  }
 0xc04   : > { %v14203_v39 = vpop.permute.xlu1 %14202 }
 0xc05   : > { %v14210_v43 = vmul.f32 %v14203_v39, %v14192_v60  ;;  %v14211_v45 = vmul.f32 %v14203_v39, %v14193_v4  ;;  %v24623_v60 = vld [vmem:[%s31093_s6 + $0x148] sm:$0xff]   ;;  %v24663_v39 = vld [vmem:[%s31093_s6 + $0x258] sm:$0xff]  }
 0xc06   : > { %v24624_v4 = vld [vmem:[%s31093_s6 + $0x1c8] sm:$0xff]  }
 0xc08   : > { %v14208_v53 = vpop.permute.xlu0 %14207  ;;  %v14220_v48 = vpop.permute.xlu1 %14219 }
 0xc09   : > { %v14227_v15 = vadd.f32 %v14220_v48, %v14210_v43  ;;  %v14228_v50 = vadd.f32 %v14220_v48, %v14211_v45  ;;  %v14212_v56 = vmul.f32 %v14208_v53, %v14194_v1  ;;  %v14213_v24 = vmul.f32 %v14208_v53, %v14195_v30  ;;  %v24628_v1 = vld [vmem:[%s31093_s6 + $0x1d0] sm:$0xff]   ;;  %v24664_v43 = vld [vmem:[%s31093_s6 + $0x2d8] sm:$0xff]   ;;  %v24667_v48 = vld [vmem:[%s31093_s6 + $0x260] sm:$0xff]  }
 0xc0a   : > { %v24629_v30 = vld [vmem:[%s31093_s6 + $0x110] sm:$0xff]   ;;  %v24665_v45 = vld [vmem:[%s31093_s6 + $0x218] sm:$0xff]  }
 0xc0b   : > { %v14235_v21 = vmul.f32 0.2, %v14227_v15  ;;  %v14236_v22 = vmul.f32 0.2, %v14228_v50  ;;  %vm14231_vm14 = vcmp.gt.f32.partialorder %v14227_v15, 0.0  ;;  %vm14232_vm15 = vcmp.gt.f32.partialorder %v14228_v50, 0.0 }
 0xc0c   : > { %v14225_v51 = vpop.permute.xlu1 %14224  ;;  %v24666_v53 = vld [vmem:[%s31093_s6 + $0x298] sm:$0xff]  }
 0xc0d   : > { %v14229_v44 = vadd.f32 %v14225_v51, %v14212_v56  ;;  %v14230_v52 = vadd.f32 %v14225_v51, %v14213_v24  ;;  %v14239_v47 = vsel %vm14231_vm14, %v14227_v15, %v14235_v21  ;;  %v14240_v54 = vsel %vm14232_vm15, %v14228_v50, %v14236_v22  ;;  %v24668_v15 = vld [vmem:[%s31093_s6 + $0x2e0] sm:$0xff]   ;;  %v24671_v24 = vld [vmem:[%s31093_s6 + $0x268] sm:$0xff]  }
 0xc0e   : > { %v24669_v50 = vld [vmem:[%s31093_s6 + $0x220] sm:$0xff]   ;;  %v24672_v51 = vld [vmem:[%s31093_s6 + $0x2e8] sm:$0xff]  }
 0xc0f   : > { %vm14233_vm0 = vcmp.gt.f32.partialorder %v14229_v44, 0.0  ;;  %vm14234_vm1 = vcmp.gt.f32.partialorder %v14230_v52, 0.0  ;;  %v14237_v8 = vmul.f32 0.2, %v14229_v44  ;;  %v14238_v34 = vmul.f32 0.2, %v14230_v52 }
 0xc10   : > { %v24670_v56 = vld [vmem:[%s31093_s6 + $0x2a0] sm:$0xff]   ;;  %v24673_v21 = vld [vmem:[%s31093_s6 + $0x228] sm:$0xff]  }
 0xc11   : > { %v14241_v55 = vsel %vm14233_vm0, %v14229_v44, %v14237_v8  ;;  %v14242_v33 = vsel %vm14234_vm1, %v14230_v52, %v14238_v34  ;;  %v24674_v22 = vld [vmem:[%s31093_s6 + $0x2a8] sm:$0xff]   ;;  %v24675_v44 = vld [vmem:[%s31093_s6 + $0x270] sm:$0xff]   ;;  %vm17284_vm1 = vcmask 0  }
 0xc12   : > { %v30188_v57 = vpack.c.bf16 %v14241_v55, %v14239_v47  ;;  %v30190_v58 = vpack.c.bf16 %v14242_v33, %v14240_v54  ;;  %v24676_v52 = vld [vmem:[%s31093_s6 + $0x2f0] sm:$0xff]   ;;  %v24679_v47 = vld [vmem:[%s31093_s6 + $0x278] sm:$0xff]  }
 0xc13   : > { %v24677_v8 = vld [vmem:[%s31093_s6 + $0x230] sm:$0xff]   ;;  %v24680_v54 = vld [vmem:[%s31093_s6 + $0x2f8] sm:$0xff]  }
 0xc14   : > { %14405 = vmatprep.mubr.bf16.mxu1 %v30190_v58  ;;  %14578 = vmatprep.mubr.bf16.mxu0 %v30190_v58  ;;  %v24678_v34 = vld [vmem:[%s31093_s6 + $0x2b0] sm:$0xff]   ;;  %v24681_v55 = vld [vmem:[%s31093_s6 + $0x238] sm:$0xff]  }
 0xc15   : > { %14406 = vmatmul.mubr.bf16.vlgmr.msra.gmra.mrb[88].mxu1 %v30188_v57  ;;  %14579 = vmatmul.mubr.bf16.vlgmr.msra.gmra.mrb[92].mxu0 %v30188_v57  ;;  %v24682_v33 = vld [vmem:[%s31093_s6 + $0x2b8] sm:$0xff]  }
 0xc16   : > { %21962 = vmatpush3.bf16.msra.mxu1 %v24621_v0  ;;  %21984 = vmatpush3.bf16.msra.mxu0 %v24622_v59  ;;  %v24683_v0 = vld [vmem:[%s31093_s6 + $0x340] sm:$0xff]  }
 0xc17   : > { %14750 = vmatprep.mubr.bf16.mxu1 %v30190_v58  ;;  %14922 = vmatprep.mubr.bf16.mxu0 %v30190_v58  ;;  %v24684_v59 = vld [vmem:[%s31093_s6 + $0x3c0] sm:$0xff]  }
 0xc18   : > { %21963 = vmatprep.subr.bf16.mxu1 %v24623_v60  ;;  %21985 = vmatprep.subr.bf16.mxu0 %v24624_v4  ;;  %v24685_v60 = vld [vmem:[%s31093_s6 + $0x300] sm:$0xff]  }
 0xc19   : > { %v24686_v4 = vld [vmem:[%s31093_s6 + $0x380] sm:$0xff]  }
 0xc1a   : > { %21964 = vmatpush3.bf16.msra.mxu1 %v24625_v9  ;;  %21986 = vmatpush3.bf16.msra.mxu0 %v24626_v61  ;;  %v24687_v9 = vld [vmem:[%s31093_s6 + $0x348] sm:$0xff]  }
 0xc1b   : > { %21965 = vmatprep.subr.bf16.mxu1 %v24627_v62  ;;  %21987 = vmatprep.subr.bf16.mxu0 %v24628_v1  ;;  %v24688_v61 = vld [vmem:[%s31093_s6 + $0x3c8] sm:$0xff]  }
 0xc1c   : > { %v24689_v62 = vld [vmem:[%s31093_s6 + $0x308] sm:$0xff]  }
 0xc1d   : > { %v24690_v1 = vld [vmem:[%s31093_s6 + $0x388] sm:$0xff]  }
 0xc1e   : > { %21966 = vmatpush3.bf16.msra.mxu1 %v24629_v30  ;;  %21988 = vmatpush3.bf16.msra.mxu0 %v24630_v2  ;;  %v24691_v30 = vld [vmem:[%s31093_s6 + $0x350] sm:$0xff]  }
 0xc1f   : > { %21967 = vmatprep.subr.bf16.mxu1 %v24631_v3  ;;  %21989 = vmatprep.subr.bf16.mxu0 %v24632_v5  ;;  %v24692_v2 = vld [vmem:[%s31093_s6 + $0x3d0] sm:$0xff]  }
 0xc20   : > { %v24693_v3 = vld [vmem:[%s31093_s6 + $0x310] sm:$0xff]  }
 0xc21   : > { %v24694_v5 = vld [vmem:[%s31093_s6 + $0x390] sm:$0xff]  }
 0xc22   : > { %21968 = vmatpush3.bf16.msra.mxu1 %v24633_v6  ;;  %21990 = vmatpush3.bf16.msra.mxu0 %v24634_v10  ;;  %v24696_v6 = vld [vmem:[%s31093_s6 + $0x3d8] sm:$0xff]  }
 0xc23   : > { %21969 = vmatprep.subr.bf16.mxu1 %v24635_v11  ;;  %21991 = vmatprep.subr.bf16.mxu0 %v24636_v12  ;;  %v24697_v10 = vld [vmem:[%s31093_s6 + $0x318] sm:$0xff]   ;;  %v24699_v12 = vld [vmem:[%s31093_s6 + $0x360] sm:$0xff]  }
 0xc24   : > { %v24698_v11 = vld [vmem:[%s31093_s6 + $0x398] sm:$0xff]  }
 0xc26   : > { %21970 = vmatpush3.bf16.msra.mxu1 %v24637_v16  ;;  %21992 = vmatpush3.bf16.msra.mxu0 %v24638_v17  ;;  %v24700_v16 = vld [vmem:[%s31093_s6 + $0x3e0] sm:$0xff]  }
 0xc27   : > { %21971 = vmatprep.subr.bf16.mxu1 %v24639_v20  ;;  %21993 = vmatprep.subr.bf16.mxu0 %v24640_v18  ;;  %v24701_v17 = vld [vmem:[%s31093_s6 + $0x320] sm:$0xff]   ;;  %v24703_v18 = vld [vmem:[%s31093_s6 + $0x368] sm:$0xff]  }
 0xc28   : > { %v24702_v20 = vld [vmem:[%s31093_s6 + $0x3a0] sm:$0xff]  }
 0xc2a   : > { %21972 = vmatpush3.bf16.msra.mxu1 %v24641_v40  ;;  %21994 = vmatpush3.bf16.msra.mxu0 %v24642_v36  ;;  %v24704_v40 = vld [vmem:[%s31093_s6 + $0x3e8] sm:$0xff]  }
 0xc2b   : > { %21973 = vmatprep.subr.bf16.mxu1 %v24643_v49  ;;  %21995 = vmatprep.subr.bf16.mxu0 %v24644_v23  ;;  %v24705_v36 = vld [vmem:[%s31093_s6 + $0x328] sm:$0xff]   ;;  %v24707_v23 = vld [vmem:[%s31093_s6 + $0x370] sm:$0xff]  }
 0xc2c   : > { %v24706_v49 = vld [vmem:[%s31093_s6 + $0x3a8] sm:$0xff]  }
 0xc2e   : > { %21974 = vmatpush3.bf16.msra.mxu1 %v24645_v63  ;;  %21996 = vmatpush3.bf16.msra.mxu0 %v24646_v25  ;;  %v24708_v63 = vld [vmem:[%s31093_s6 + $0x3f0] sm:$0xff]  }
 0xc2f   : > { %21975 = vmatprep.subr.bf16.mxu1 %v24647_v26  ;;  %21997 = vmatprep.subr.bf16.mxu0 %v24648_v27  ;;  %v24709_v25 = vld [vmem:[%s31093_s6 + $0x330] sm:$0xff]   ;;  %v24711_v27 = vld [vmem:[%s31093_s6 + $0x378] sm:$0xff]  }
 0xc30   : > { %v24710_v26 = vld [vmem:[%s31093_s6 + $0x3b0] sm:$0xff]  }
 0xc32   : > { %21976 = vmatpush3.bf16.msra.mxu1 %v24649_v28  ;;  %21998 = vmatpush3.bf16.msra.mxu0 %v24650_v29  ;;  %v24712_v28 = vld [vmem:[%s31093_s6 + $0x3f8] sm:$0xff]  }
 0xc33   : > { %22005 = vmatprep.subr.bf16.mxu1 %v24651_v31  ;;  %22027 = vmatprep.subr.bf16.mxu0 %v24652_v32  ;;  %v24713_v29 = vld [vmem:[%s31093_s6 + $0x338] sm:$0xff]  }
 0xc34   : > { %v24714_v31 = vld [vmem:[%s31093_s6 + $0x3b8] sm:$0xff]  }
 0xc35   : > { %14751 = vmatmul.mubr.bf16.vlgmr.msra.gmra.mrb[92].mxu1 %v30188_v57  ;;  %14923 = vmatmul.mubr.bf16.vlgmr.msra.gmra.mrb[96].mxu0 %v30188_v57 }
 0xc36   : > { %22006 = vmatpush3.bf16.msra.mxu1 %v24653_v7  ;;  %15094 = vmatprep.mubr.bf16.mxu1 %v30190_v58 }
 0xc37   : > { %22028 = vmatpush3.bf16.msra.mxu0 %v24654_v41  ;;  %15266 = vmatprep.mubr.bf16.mxu0 %v30190_v58 }
 0xc38   : > { %22007 = vmatprep.subr.bf16.mxu1 %v24655_v14  ;;  %22029 = vmatprep.subr.bf16.mxu0 %v24656_v35 }
 0xc3a   : > { %22008 = vmatpush3.bf16.msra.mxu1 %v24657_v46 }
 0xc3b   : > { %22030 = vmatpush3.bf16.msra.mxu0 %v24658_v37  ;;  %22009 = vmatprep.subr.bf16.mxu1 %v24659_v42 }
 0xc3c   : > { %22031 = vmatprep.subr.bf16.mxu0 %v24660_v19 }
 0xc3e   : > { %22010 = vmatpush3.bf16.msra.mxu1 %v24661_v13 }
 0xc3f   : > { %22032 = vmatpush3.bf16.msra.mxu0 %v24662_v38  ;;  %22011 = vmatprep.subr.bf16.mxu1 %v24663_v39 }
 0xc40   : > { %22033 = vmatprep.subr.bf16.mxu0 %v24664_v43 }
 0xc42   : > { %22012 = vmatpush3.bf16.msra.mxu1 %v24665_v45 }
 0xc43   : > { %22034 = vmatpush3.bf16.msra.mxu0 %v24666_v53  ;;  %22013 = vmatprep.subr.bf16.mxu1 %v24667_v48 }
 0xc44   : > { %22035 = vmatprep.subr.bf16.mxu0 %v24668_v15 }
 0xc46   : > { %22014 = vmatpush3.bf16.msra.mxu1 %v24669_v50 }
 0xc47   : > { %22036 = vmatpush3.bf16.msra.mxu0 %v24670_v56  ;;  %22015 = vmatprep.subr.bf16.mxu1 %v24671_v24 }
 0xc48   : > { %22037 = vmatprep.subr.bf16.mxu0 %v24672_v51 }
 0xc4a   : > { %22016 = vmatpush3.bf16.msra.mxu1 %v24673_v21 }
 0xc4b   : > { %22038 = vmatpush3.bf16.msra.mxu0 %v24674_v22  ;;  %22017 = vmatprep.subr.bf16.mxu1 %v24675_v44 }
 0xc4c   : > { %22039 = vmatprep.subr.bf16.mxu0 %v24676_v52 }
 0xc4e   : > { %22018 = vmatpush3.bf16.msra.mxu1 %v24677_v8 }
 0xc4f   : > { %22040 = vmatpush3.bf16.msra.mxu0 %v24678_v34  ;;  %22019 = vmatprep.subr.bf16.mxu1 %v24679_v47 }
 0xc50   : > { %22041 = vmatprep.subr.bf16.mxu0 %v24680_v54 }
 0xc52   : > { %22020 = vmatpush3.bf16.msra.mxu1 %v24681_v55 }
 0xc53   : > { %22042 = vmatpush3.bf16.msra.mxu0 %v24682_v33  ;;  %22049 = vmatprep.subr.bf16.mxu1 %v24683_v0 }
 0xc54   : > { %22071 = vmatprep.subr.bf16.mxu0 %v24684_v59 }
 0xc55   : > { %15095 = vmatmul.mubr.bf16.vlgmr.msra.gmra.mrb[96].mxu1 %v30188_v57 }
 0xc56   : > { %15267 = vmatmul.mubr.bf16.vlgmr.msra.gmra.mrb[100].mxu0 %v30188_v57  ;;  %22050 = vmatpush3.bf16.msra.mxu1 %v24685_v60 }
 0xc57   : > { %15438 = vmatprep.mubr.bf16.mxu1 %v30190_v58  ;;  %22072 = vmatpush3.bf16.msra.mxu0 %v24686_v4 }
 0xc58   : > { %15610 = vmatprep.mubr.bf16.mxu0 %v30190_v58  ;;  %22051 = vmatprep.subr.bf16.mxu1 %v24687_v9  ;;  %v24695_v58 = vld [vmem:[%s31093_s6 + $0x358] sm:$0xff]  }
 0xc59   : > { %22073 = vmatprep.subr.bf16.mxu0 %v24688_v61 }
 0xc5a   : > { %22052 = vmatpush3.bf16.msra.mxu1 %v24689_v62 }
 0xc5b   : > { %22074 = vmatpush3.bf16.msra.mxu0 %v24690_v1  ;;  %22053 = vmatprep.subr.bf16.mxu1 %v24691_v30 }
 0xc5c   : > { %22075 = vmatprep.subr.bf16.mxu0 %v24692_v2 }
 0xc5e   : > { %22054 = vmatpush3.bf16.msra.mxu1 %v24693_v3 }
 0xc5f   : > { %22076 = vmatpush3.bf16.msra.mxu0 %v24694_v5  ;;  %22055 = vmatprep.subr.bf16.mxu1 %v24695_v58 }
 0xc60   : > { %22077 = vmatprep.subr.bf16.mxu0 %v24696_v6 }
 0xc62   : > { %22056 = vmatpush3.bf16.msra.mxu1 %v24697_v10 }
 0xc63   : > { %22078 = vmatpush3.bf16.msra.mxu0 %v24698_v11  ;;  %22057 = vmatprep.subr.bf16.mxu1 %v24699_v12 }
 0xc64   : > { %22079 = vmatprep.subr.bf16.mxu0 %v24700_v16 }
 0xc66   : > { %22058 = vmatpush3.bf16.msra.mxu1 %v24701_v17 }
 0xc67   : > { %22080 = vmatpush3.bf16.msra.mxu0 %v24702_v20  ;;  %22059 = vmatprep.subr.bf16.mxu1 %v24703_v18 }
 0xc68   : > { %22081 = vmatprep.subr.bf16.mxu0 %v24704_v40 }
 0xc6a   : > { %22060 = vmatpush3.bf16.msra.mxu1 %v24705_v36 }
 0xc6b   : > { %22082 = vmatpush3.bf16.msra.mxu0 %v24706_v49  ;;  %22061 = vmatprep.subr.bf16.mxu1 %v24707_v23 }
 0xc6c   : > { %22083 = vmatprep.subr.bf16.mxu0 %v24708_v63 }
 0xc6e   : > { %22062 = vmatpush3.bf16.msra.mxu1 %v24709_v25 }
 0xc6f   : > { %22084 = vmatpush3.bf16.msra.mxu0 %v24710_v26  ;;  %22063 = vmatprep.subr.bf16.mxu1 %v24711_v27 }
 0xc70   : > { %22085 = vmatprep.subr.bf16.mxu0 %v24712_v28 }
 0xc72   : > { %22064 = vmatpush3.bf16.msra.mxu1 %v24713_v29 }
 0xc73   : > { %22086 = vmatpush3.bf16.msra.mxu0 %v24714_v31 }
 0xc75   : > { %15439 = vmatmul.mubr.bf16.vlgmr.msra.gmra.mrb[100].mxu1 %v30188_v57 }
 0xc76   : > { %15611 = vmatmul.mubr.bf16.vlgmr.msra.gmra.mrb[104].mxu0 %v30188_v57 }
 0xce8   : > { %v21933_v32 = vpop.f32.mrb[88].mxu1  ;;  %v21955_v7 = vpop.f32.mrb[92].mxu0 }
 0xce9   : > { %v21934_v41 = vpop.f32.mrb[89].mxu1  ;;  %v21956_v14 = vpop.f32.mrb[93].mxu0 }
 0xcea   : > { %v21935_v35 = vadd.f32 %v21934_v41, %v21933_v32  ;;  %v21957_v46 = vadd.f32 %v21956_v14, %v21955_v7  ;;  %v21936_v37 = vpop.f32.mrb[90].mxu1  ;;  %v21958_v42 = vpop.f32.mrb[94].mxu0  ;;  %v24715_v41 = vld [vmem:[%s31094_s7 + $0x10] sm:$0xff]  }
 0xceb   : > { %v21937_v19 = vpop.f32.mrb[91].mxu1  ;;  %v21959_v13 = vpop.f32.mrb[95].mxu0  ;;  %22257 = vmatprep.mubr.bf16.mxu1 %v24715_v41 }
 0xcec   : > { %14415 = vst.msk [vmem:[#allocation3] sm:$0xff] %vm14414_vm2, %v21935_v35  ;;  %14587 = vst.msk [vmem:[#allocation3 + $0x10] sm:$0xff] %vm14414_vm2, %v21957_v46  ;;  %v21938_v38 = vadd.f32 %v21937_v19, %v21936_v37  ;;  %v21960_v39 = vadd.f32 %v21959_v13, %v21958_v42 }
 0xcee   : > { %14416 = vst.msk [vmem:[#allocation3 + $0x8] sm:$0xff] %vm14414_vm2, %v21938_v38  ;;  %14588 = vst.msk [vmem:[#allocation3 + $0x18] sm:$0xff] %vm14414_vm2, %v21960_v39 }
 0xcf3   : > { %v15623_v57 = vld [vmem:[#allocation3 + $0x10] sm:$0xff]  ;;  %v15621_v45 = vld [vmem:[#allocation3] sm:$0xff] }
 0xcf5   : > { %v15624_v43 = vld [vmem:[#allocation3 + $0x18] sm:$0xff]  ;;  %v15622_v53 = vld [vmem:[#allocation3 + $0x8] sm:$0xff] }
 0xcf6   : > { %v30494_v48 = vpack.c.bf16 %v15624_v43, %v15623_v57  ;;  %v30496_v15 = vpack.c.bf16 %v15622_v53, %v15621_v45 }
 0xcf8   : > { %15676 = vrot.lane.b32.xlu1 %v30494_v48, %s24824_s23  ;;  %15674 = vrot.lane.b32.xlu0 %v30496_v15, %s24824_s23 }
 0xd08   : > { %v21977_v50 = vpop.f32.mrb[92].mxu1  ;;  %v21999_v56 = vpop.f32.mrb[96].mxu0 }
 0xd09   : > { %v21978_v24 = vpop.f32.mrb[93].mxu1  ;;  %v22000_v51 = vpop.f32.mrb[97].mxu0 }
 0xd0a   : > { %v21979_v21 = vadd.f32 %v21978_v24, %v21977_v50  ;;  %v22001_v22 = vadd.f32 %v22000_v51, %v21999_v56  ;;  %v21980_v44 = vpop.f32.mrb[94].mxu1  ;;  %v22002_v52 = vpop.f32.mrb[98].mxu0  ;;  %v24716_v56 = vld [vmem:[%s31094_s7 + $0x18] sm:$0xff]   ;;  %v24717_v24 = vld [vmem:[%s31094_s7] sm:$0xff]  }
 0xd0b   : > { %v21981_v8 = vpop.f32.mrb[95].mxu1  ;;  %v22003_v34 = vpop.f32.mrb[99].mxu0 }
 0xd0c   : > { %14759 = vst.msk [vmem:[#allocation3 + $0x20] sm:$0xff] %vm14414_vm2, %v21979_v21  ;;  %14931 = vst.msk [vmem:[#allocation3 + $0x30] sm:$0xff] %vm14414_vm2, %v22001_v22  ;;  %v21982_v47 = vadd.f32 %v21981_v8, %v21980_v44  ;;  %v22004_v54 = vadd.f32 %v22003_v34, %v22002_v52 }
 0xd0e   : > { %14760 = vst.msk [vmem:[#allocation3 + $0x28] sm:$0xff] %vm14414_vm2, %v21982_v47  ;;  %14932 = vst.msk [vmem:[#allocation3 + $0x38] sm:$0xff] %vm14414_vm2, %v22004_v54 }
 0xd13   : > { %v15627_v55 = vld [vmem:[#allocation3 + $0x30] sm:$0xff]  ;;  %v15625_v0 = vld [vmem:[#allocation3 + $0x20] sm:$0xff] }
 0xd15   : > { %v15628_v33 = vld [vmem:[#allocation3 + $0x38] sm:$0xff]  ;;  %v15626_v59 = vld [vmem:[#allocation3 + $0x28] sm:$0xff] }
 0xd16   : > { %v30506_v60 = vpack.c.bf16 %v15628_v33, %v15627_v55  ;;  %v30508_v4 = vpack.c.bf16 %v15626_v59, %v15625_v0 }
 0xd18   : > { %15680 = vrot.lane.b32.xlu1 %v30506_v60, %s24824_s23  ;;  %15678 = vrot.lane.b32.xlu0 %v30508_v4, %s24824_s23 }
 0xd28   : > { %v22021_v9 = vpop.f32.mrb[96].mxu1 }
 0xd29   : > { %v22043_v61 = vpop.f32.mrb[100].mxu0  ;;  %v22022_v62 = vpop.f32.mrb[97].mxu1 }
 0xd2a   : > { %v22023_v1 = vadd.f32 %v22022_v62, %v22021_v9  ;;  %v22044_v30 = vpop.f32.mrb[101].mxu0  ;;  %v22024_v2 = vpop.f32.mrb[98].mxu1  ;;  %v21072_v9 = vld [vmem:[%s31095_s8 + $0x28] sm:$0xff] }
 0xd2b   : > { %v22045_v3 = vadd.f32 %v22044_v30, %v22043_v61  ;;  %v22046_v5 = vpop.f32.mrb[102].mxu0  ;;  %v22025_v58 = vpop.f32.mrb[99].mxu1  ;;  %v21071_v61 = vld [vmem:[%s31095_s8 + $0x20] sm:$0xff] }
 0xd2c   : > { %15103 = vst.msk [vmem:[#allocation3 + $0x40] sm:$0xff] %vm14414_vm2, %v22023_v1  ;;  %v22026_v6 = vadd.f32 %v22025_v58, %v22024_v2  ;;  %v22047_v10 = vpop.f32.mrb[103].mxu0 }
 0xd2d   : > { %15275 = vst.msk [vmem:[#allocation3 + $0x50] sm:$0xff] %vm14414_vm2, %v22045_v3  ;;  %v22048_v11 = vadd.f32 %v22047_v10, %v22046_v5 }
 0xd2e   : > { %15104 = vst.msk [vmem:[#allocation3 + $0x48] sm:$0xff] %vm14414_vm2, %v22026_v6 }
 0xd2f   : > { %15276 = vst.msk [vmem:[#allocation3 + $0x58] sm:$0xff] %vm14414_vm2, %v22048_v11 }
 0xd33   : > { %v15629_v12 = vld [vmem:[#allocation3 + $0x40] sm:$0xff] }
 0xd34   : > { %v15631_v17 = vld [vmem:[#allocation3 + $0x50] sm:$0xff] }
 0xd35   : > { %v15630_v16 = vld [vmem:[#allocation3 + $0x48] sm:$0xff] }
 0xd36   : > { %v15632_v20 = vld [vmem:[#allocation3 + $0x58] sm:$0xff]  ;;  %v30518_v18 = vpack.c.bf16 %v15630_v16, %v15629_v12 }
 0xd37   : > { %v30520_v40 = vpack.c.bf16 %v15632_v20, %v15631_v17 }
 0xd38   : > { %15682 = vrot.lane.b32.xlu0 %v30518_v18, %s24824_s23 }
 0xd39   : > { %15684 = vrot.lane.b32.xlu1 %v30520_v40, %s24824_s23 }
 0xd48   : > { %v22065_v36 = vpop.f32.mrb[100].mxu1 }
 0xd49   : > { %v22087_v49 = vpop.f32.mrb[104].mxu0  ;;  %v22066_v23 = vpop.f32.mrb[101].mxu1 }
 0xd4a   : > { %v22067_v63 = vadd.f32 %v22066_v23, %v22065_v36  ;;  %v22088_v25 = vpop.f32.mrb[105].mxu0  ;;  %v22068_v26 = vpop.f32.mrb[102].mxu1 }
 0xd4b   : > { %v22089_v27 = vadd.f32 %v22088_v25, %v22087_v49  ;;  %v22090_v28 = vpop.f32.mrb[106].mxu0  ;;  %v22069_v29 = vpop.f32.mrb[103].mxu1 }
 0xd4c   : > { %15447 = vst.msk [vmem:[#allocation3 + $0x60] sm:$0xff] %vm14414_vm2, %v22067_v63  ;;  %v22070_v31 = vadd.f32 %v22069_v29, %v22068_v26  ;;  %v22091_v32 = vpop.f32.mrb[107].mxu0 }
 0xd4d   : > { %15619 = vst.msk [vmem:[#allocation3 + $0x70] sm:$0xff] %vm14414_vm2, %v22089_v27  ;;  %v22092_v7 = vadd.f32 %v22091_v32, %v22090_v28 }
 0xd4e   : > { %15448 = vst.msk [vmem:[#allocation3 + $0x68] sm:$0xff] %vm14414_vm2, %v22070_v31 }
 0xd4f   : > { %15620 = vst.msk [vmem:[#allocation3 + $0x78] sm:$0xff] %vm14414_vm2, %v22092_v7 }
 0xd53   : > { %v15633_v14 = vld [vmem:[#allocation3 + $0x60] sm:$0xff] }
 0xd54   : > { %v15635_v46 = vld [vmem:[#allocation3 + $0x70] sm:$0xff] }
 0xd55   : > { %v15634_v35 = vld [vmem:[#allocation3 + $0x68] sm:$0xff] }
 0xd56   : > { %v15636_v37 = vld [vmem:[#allocation3 + $0x78] sm:$0xff]  ;;  %v15643_v42 = vpack.c.bf16 %v15634_v35, %v15633_v14 }
 0xd57   : > { %v15644_v19 = vpack.c.bf16 %v15636_v37, %v15635_v46 }
 0xd58   : > { %15686 = vrot.lane.b32.xlu0 %v15643_v42, %s24824_s23 }
 0xd59   : > { %15688 = vrot.lane.b32.xlu1 %v15644_v19, %s24824_s23 }
 0xd6a   : > { %v15675_v13 = vpop.permute.xlu0 %15674  ;;  %v15677_v38 = vpop.permute.xlu1 %15676 }
 0xd6b   : > { %22241 = vmatprep.subr.bf16.mxu1 %v15675_v13 }
 0xd6c   : > { %22242 = vmatpush3.bf16.msra.mxu1 %v15675_v13 }
 0xd6d   : > { %22243 = vmatprep.subr.bf16.mxu1 %v15677_v38 }
 0xd70   : > { %22244 = vmatpush3.bf16.msra.mxu1 %v15677_v38  ;;  %v15870_v38 = vld [vmem:[%s31095_s8 + $0x10] sm:$0xff] }
 0xd8a   : > { %v15679_v39 = vpop.permute.xlu0 %15678  ;;  %v15681_v57 = vpop.permute.xlu1 %15680 }
 0xd8b   : > { %22245 = vmatprep.subr.bf16.mxu1 %v15679_v39 }
 0xd8c   : > { %22246 = vmatpush3.bf16.msra.mxu1 %v15679_v39  ;;  %v15869_v39 = vld [vmem:[%s31095_s8 + $0x8] sm:$0xff] }
 0xd8d   : > { %22247 = vmatprep.subr.bf16.mxu1 %v15681_v57 }
 0xd90   : > { %22248 = vmatpush3.bf16.msra.mxu1 %v15681_v57 }
 0xdaa   : > { %v15683_v43 = vpop.permute.xlu0 %15682 }
 0xdab   : > { %22249 = vmatprep.subr.bf16.mxu1 %v15683_v43  ;;  %v15685_v45 = vpop.permute.xlu1 %15684 }
 0xdac   : > { %22250 = vmatpush3.bf16.msra.mxu1 %v15683_v43 }
 0xdad   : > { %22251 = vmatprep.subr.bf16.mxu1 %v15685_v45 }
 0xdb0   : > { %22252 = vmatpush3.bf16.msra.mxu1 %v15685_v45 }
 0xdca   : > { %v15687_v53 = vpop.permute.xlu0 %15686 }
 0xdcb   : > { %22253 = vmatprep.subr.bf16.mxu1 %v15687_v53  ;;  %v15689_v50 = vpop.permute.xlu1 %15688 }
 0xdcc   : > { %22254 = vmatpush3.bf16.msra.mxu1 %v15687_v53 }
 0xdcd   : > { %22255 = vmatprep.subr.bf16.mxu1 %v15689_v50 }
 0xdd0   : > { %22256 = vmatpush3.bf16.msra.mxu1 %v15689_v50 }
 0xdd1   : > { %22261 = vmatprep.subr.bf16.mxu1 %v30496_v15 }
 0xdd3   : > { %22258 = vmatmul.mubr.bf16.vlgmr.msra.gmra.mrb[104].mxu1 %v24716_v56  ;;  %v15868_v56 = vld [vmem:[%s31095_s8] sm:$0xff] }
 0xdd4   : > { %22262 = vmatpush3.bf16.msra.mxu1 %v30496_v15  ;;  %22277 = vmatprep.mubr.bf16.mxu1 %v24717_v24 }
 0xdd5   : > { %22263 = vmatprep.subr.bf16.mxu1 %v30494_v48 }
 0xdd8   : > { %22264 = vmatpush3.bf16.msra.mxu1 %v30494_v48  ;;  %v24718_v48 = vld [vmem:[%s31094_s7 + $0x8] sm:$0xff]  }
 0xdd9   : > { %22265 = vmatprep.subr.bf16.mxu1 %v30508_v4 }
 0xddc   : > { %22266 = vmatpush3.bf16.msra.mxu1 %v30508_v4 }
 0xddd   : > { %22267 = vmatprep.subr.bf16.mxu1 %v30506_v60 }
 0xde0   : > { %22268 = vmatpush3.bf16.msra.mxu1 %v30506_v60 }
 0xde1   : > { %22269 = vmatprep.subr.bf16.mxu1 %v30518_v18 }
 0xde4   : > { %22270 = vmatpush3.bf16.msra.mxu1 %v30518_v18 }
 0xde5   : > { %22271 = vmatprep.subr.bf16.mxu1 %v30520_v40 }
 0xde8   : > { %22272 = vmatpush3.bf16.msra.mxu1 %v30520_v40 }
 0xde9   : > { %22273 = vmatprep.subr.bf16.mxu1 %v15643_v42 }
 0xdec   : > { %22274 = vmatpush3.bf16.msra.mxu1 %v15643_v42 }
 0xded   : > { %22275 = vmatprep.subr.bf16.mxu1 %v15644_v19 }
 0xdf0   : > { %22276 = vmatpush3.bf16.msra.mxu1 %v15644_v19 }
 0xdf3   : > { %22278 = vmatmul.mubr.bf16.vlgmr.msra.gmra.mrb[104].mxu1 %v24718_v48  ;;  %v21073_v48 = vld [vmem:[%s31095_s8 + $0x30] sm:$0xff] }
 0xec6   : > { %v30556_v15 = vpop.f32.mrb[104].mxu1 }
 0xec7   : > { %v30558_v51 = vpop.f32.mrb[105].mxu1  ;;  %v15814_v21 = vsel %vm14064_vm13, %v30556_v15, 0.0  ;;  %v15826_v54 = vmul.f32 %v30556_v15, %v30556_v15 }
 0xec8   : > { %15815 = vadd.xlane.f32.xlu0 %v15814_v21  ;;  %v30562_v22 = vpop.f32.mrb[106].mxu1  ;;  %v15824_v8 = vmul.f32 %v30558_v51, %v30558_v51  ;;  %v15808_v34 = vsel %vm14064_vm13, %v30558_v51, 0.0  ;;  %v24719_v21 = vld [vmem:[%s31096_s9] sm:$0xff]  }
 0xec9   : > { %v30564_v44 = vpop.f32.mrb[107].mxu1  ;;  %v15817_v55 = vsel %vm14064_vm13, %v30562_v22, 0.0  ;;  %v15834_v0 = vsel %vm14064_vm13, %v15826_v54, 0.0  ;;  %v15827_v60 = vmul.f32 %v30562_v22, %v30562_v22  ;;  %22281 = vmatprep.subr.bf16.mxu0 %v24719_v21  ;;  %v24721_v54 = vld [vmem:[%s31096_s9 + $0x8] sm:$0xff]  }
 0xeca   : > { %v15811_v52 = vsel %vm14064_vm13, %v30564_v44, 0.0  ;;  %v15828_v47 = vsel %vm14064_vm13, %v15824_v8, 0.0  ;;  %v15825_v33 = vmul.f32 %v30564_v44, %v30564_v44  ;;  %22282 = vmatpush3.bf16.msra.mxu0 %v24719_v21 }
 0xecb   : > { %15812 = vadd.xlane.f32.xlu1 %v15811_v52  ;;  %v15837_v4 = vsel %vm14064_vm13, %v15827_v60, 0.0  ;;  %v24720_v52 = vld [vmem:[%s31096_s9 + $0x60] sm:$0xff]   ;;  %22283 = vmatprep.subr.bf16.mxu0 %v24721_v54  ;;  %v24725_v60 = vld [vmem:[%s31096_s9 + $0x18] sm:$0xff]  }
 0xecc   : > { %15809 = vadd.xlane.f32.xlu0 %v15808_v34  ;;  %v15831_v59 = vsel %vm14064_vm13, %v15825_v33, 0.0  ;;  %v15871_v34 = vld [vmem:[%s31095_s8 + $0x18] sm:$0xff]  ;;  %22317 = vmatprep.subr.bf16.mxu1 %v24720_v52 }
 0xecd   : > { %22318 = vmatpush3.bf16.msra.mxu1 %v24720_v52  ;;  %v21074_v33 = vld [vmem:[%s31095_s8 + $0x38] sm:$0xff] }
 0xece   : > { %22284 = vmatpush3.bf16.msra.mxu0 %v24721_v54 }
 0xecf   : > { %15829 = vadd.xlane.f32.xlu1 %v15828_v47 }
 0xed0   : > { %15818 = vadd.xlane.f32.xlu0 %v15817_v55  ;;  %v24722_v55 = vld [vmem:[%s31096_s9 + $0x68] sm:$0xff]  }
 0xed1   : > { %22319 = vmatprep.subr.bf16.mxu1 %v24722_v55 }
 0xed2   : > { %22320 = vmatpush3.bf16.msra.mxu1 %v24722_v55 }
 0xed3   : > { %15835 = vadd.xlane.f32.xlu1 %v15834_v0  ;;  %v24723_v0 = vld [vmem:[%s31096_s9 + $0x10] sm:$0xff]  }
 0xed4   : > { %15832 = vadd.xlane.f32.xlu0 %v15831_v59  ;;  %v24724_v59 = vld [vmem:[%s31096_s9 + $0x70] sm:$0xff]   ;;  %22285 = vmatprep.subr.bf16.mxu0 %v24723_v0 }
 0xed5   : > { %22321 = vmatprep.subr.bf16.mxu1 %v24724_v59  ;;  %22286 = vmatpush3.bf16.msra.mxu0 %v24723_v0 }
 0xed6   : > { %22322 = vmatpush3.bf16.msra.mxu1 %v24724_v59  ;;  %22287 = vmatprep.subr.bf16.mxu0 %v24725_v60 }
 0xed8   : > { %15838 = vadd.xlane.f32.xlu0 %v15837_v4  ;;  %v24726_v4 = vld [vmem:[%s31096_s9 + $0x78] sm:$0xff]  }
 0xed9   : > { %22323 = vmatprep.subr.bf16.mxu1 %v24726_v4  ;;  %22288 = vmatpush3.bf16.msra.mxu0 %v24725_v60 }
 0xeda   : > { %22324 = vmatpush3.bf16.msra.mxu1 %v24726_v4 }
 0xee4   : > { %15912 = vperm.xlu1 %22514, %v21072_v9   ;;  %v24727_v9 = vld [vmem:[%s31096_s9 + $0x20] sm:$0xff]  }
 0xee5   : > { %22293 = vmatprep.subr.bf16.mxu0 %v24727_v9 }
 0xeee   : > { %15907 = vperm.xlu0 %22513, %v21071_v61   ;;  %v24728_v61 = vld [vmem:[%s31096_s9 + $0xa0] sm:$0xff]  }
 0xeef   : > { %22341 = vmatprep.subr.bf16.mxu1 %v24728_v61 }
 0xf55   : > { %v15816_v62 = vpop.xlane.xlu0 %15815 }
 0xf56   : > { %v30590_v1 = vmul.f32 0.015625, %v15816_v62 }
 0xf58   : > { %v15813_v30 = vpop.xlane.xlu1 %15812  ;;  %v15866_v2 = vsub.f32 %v30556_v15, %v30590_v1  ;;  %v15846_v49 = vmul.f32 %v30590_v1, %v30590_v1 }
 0xf59   : > { %v30594_v3 = vmul.f32 0.015625, %v15813_v30  ;;  %v15810_v5 = vpop.xlane.xlu0 %15809 }
 0xf5a   : > { %v30596_v58 = vmul.f32 0.015625, %v15810_v5 }
 0xf5b   : > { %v15865_v6 = vsub.f32 %v30564_v44, %v30594_v3  ;;  %v15845_v25 = vmul.f32 %v30594_v3, %v30594_v3 }
 0xf5c   : > { %v15844_v10 = vmul.f32 %v30596_v58, %v30596_v58  ;;  %v15830_v11 = vpop.xlane.xlu1 %15829  ;;  %v15864_v12 = vsub.f32 %v30558_v51, %v30596_v58 }
 0xf5d   : > { %v15840_v16 = vmul.f32 0.015625, %v15830_v11  ;;  %v15819_v17 = vpop.xlane.xlu0 %15818 }
 0xf5e   : > { %v30604_v20 = vmul.f32 0.015625, %v15819_v17 }
 0xf5f   : > { %v15848_v18 = vsub.f32 %v15840_v16, %v15844_v10 }
 0xf60   : > { %v15836_v40 = vpop.xlane.xlu1 %15835  ;;  %v15867_v36 = vsub.f32 %v30562_v22, %v30604_v20  ;;  %v15847_v7 = vmul.f32 %v30604_v20, %v30604_v20  ;;  %v24729_v22 = vld [vmem:[%s31096_s9 + $0x28] sm:$0xff]  }
 0xf61   : > { %v15842_v23 = vmul.f32 0.015625, %v15836_v40  ;;  %v15833_v63 = vpop.xlane.xlu0 %15832  ;;  %v15852_v27 = vmax.f32 %v15848_v18, 0.0  ;;  %v24730_v20 = vld [vmem:[%s31096_s9 + $0xa8] sm:$0xff]  }
 0xf62   : > { %v15841_v26 = vmul.f32 0.015625, %v15833_v63 }
 0xf63   : > { %v15850_v28 = vsub.f32 %v15842_v23, %v15846_v49  ;;  %v15856_v35 = vadd.f32 1e-05, %v15852_v27 }
 0xf64   : > { %v15849_v29 = vsub.f32 %v15841_v26, %v15845_v25  ;;  %v15913_v62 = vpop.permute.xlu1 %15912 }
 0xf65   : > { %v15854_v31 = vmax.f32 %v15850_v28, 0.0  ;;  %v15839_v32 = vpop.xlane.xlu0 %15838 }
 0xf66   : > { %v15853_v41 = vmax.f32 %v15849_v29, 0.0  ;;  %v15843_v14 = vmul.f32 0.015625, %v15839_v32  ;;  %v24733_v32 = vld [vmem:[%s31096_s9 + $0x38] sm:$0xff]  }
 0xf67   : > { %v15858_v46 = vadd.f32 1e-05, %v15854_v31  ;;  %v24732_v31 = vld [vmem:[%s31096_s9 + $0xb0] sm:$0xff]  }
 0xf68   : > { %v15857_v37 = vadd.f32 1e-05, %v15853_v41  ;;  %v15851_v42 = vsub.f32 %v15843_v14, %v15847_v7  ;;  %v24734_v7 = vld [vmem:[%s31096_s9 + $0xb8] sm:$0xff]   ;;  %v24735_v41 = vld [vmem:[%s31096_s9 + $0x40] sm:$0xff]  }
 0xf69   : > { %24781 = vrsqrt.f32 %v15858_v46  ;;  %v24736_v14 = vld [vmem:[%s31096_s9 + $0xe0] sm:$0xff]   ;;  %v24738_v46 = vld [vmem:[%s31096_s9 + $0xe8] sm:$0xff]  }
 0xf6a   : > { %24783 = vrsqrt.f32 %v15857_v37  ;;  %v15855_v19 = vmax.f32 %v15851_v42, 0.0  ;;  %v24739_v37 = vld [vmem:[%s31096_s9 + $0x50] sm:$0xff]  }
 0xf6b   : > { %24785 = vrsqrt.f32 %v15856_v35  ;;  %v24737_v35 = vld [vmem:[%s31096_s9 + $0x48] sm:$0xff]   ;;  %v24740_v42 = vld [vmem:[%s31096_s9 + $0xf0] sm:$0xff]  }
 0xf6c   : > { %v15859_v13 = vadd.f32 1e-05, %v15855_v19  ;;  %v24741_v19 = vld [vmem:[%s31096_s9 + $0x58] sm:$0xff]  }
 0xf6d   : > { %v15908_v30 = vpop.permute.xlu0 %15907 }
 0xf6e   : > { %24787 = vrsqrt.f32 %v15859_v13  ;;  %v24742_v13 = vld [vmem:[%s31096_s9 + $0xf8] sm:$0xff]  }
 0xf73   : > { %v24782_v57 = vpop.eup %24781 }
 0xf74   : > { %v24784_v43 = vpop.eup %24783  ;;  %v15874_v45 = vmul.f32 %v24782_v57, %v15870_v38  ;;  %v24743_v38 = vld [vmem:[%s31096_s9 + $0x80] sm:$0xff]   ;;  %v24745_v57 = vld [vmem:[%s31096_s9 + $0x90] sm:$0xff]  }
 0xf75   : > { %v24786_v53 = vpop.eup %24785  ;;  %v15873_v50 = vmul.f32 %v24784_v43, %v15869_v39  ;;  %v24744_v39 = vld [vmem:[%s31096_s9 + $0x88] sm:$0xff]   ;;  %v24746_v43 = vld [vmem:[%s31096_s9 + $0x98] sm:$0xff]  }
 0xf76   : > { %15888 = vperm.xlu1 %22514, %v15874_v45   ;;  %v15872_v24 = vmul.f32 %v24786_v53, %v15868_v56  ;;  %v24747_v45 = vld [vmem:[%s31096_s9 + $0xc0] sm:$0xff]   ;;  %v24748_v53 = vld [vmem:[%s31096_s9 + $0xc8] sm:$0xff]   ;;  %v24750_v56 = vld [vmem:[%s31096_s9 + $0xd8] sm:$0xff]  }
 0xf77   : > { %15883 = vperm.xlu0 %22513, %v15873_v50   ;;  %v24749_v50 = vld [vmem:[%s31096_s9 + $0xd0] sm:$0xff]  }
 0xf78   : > { %v24788_v8 = vpop.eup %24787 }
 0xf79   : > { %v15875_v47 = vmul.f32 %v24788_v8, %v15871_v34 }
 0xf7a   : > { %15878 = vperm.xlu1 %22514, %v15872_v24  }
 0xf7b   : > { %15917 = vperm.xlu0 %22513, %v21073_v48  }
 0xf7e   : > { %15893 = vperm.xlu1 %22514, %v15875_v47  }
 0xf82   : > { %15922 = vperm.xlu1 %22514, %v21074_v33  }
 0xff5   : > { %v15889_v5 = vpop.permute.xlu1 %15888 }
 0xff6   : > { %v15884_v10 = vpop.permute.xlu0 %15883  ;;  %v15898_v49 = vmul.f32 %v15889_v5, %v15866_v2 }
 0xff7   : > { %v15897_v11 = vmul.f32 %v15884_v10, %v15865_v6 }
 0xff9   : > { %v15926_v16 = vadd.f32 %v15913_v62, %v15897_v11  ;;  %v15879_v17 = vpop.permute.xlu1 %15878 }
 0xffa   : > { %v15896_v18 = vmul.f32 %v15879_v17, %v15864_v12  ;;  %v15918_v40 = vpop.permute.xlu0 %15917 }
 0xffb   : > { %v15934_v23 = vmul.f32 0.2, %v15926_v16  ;;  %vm15930_vm3 = vcmp.gt.f32.partialorder %v15926_v16, 0.0  ;;  %v15927_v27 = vadd.f32 %v15918_v40, %v15898_v49 }
 0xffc   : > { %v15925_v63 = vadd.f32 %v15908_v30, %v15896_v18 }
 0xffd   : > { %v15894_v25 = vpop.permute.xlu1 %15893  ;;  %v15938_v44 = vsel %vm15930_vm3, %v15926_v16, %v15934_v23  ;;  %v15935_v12 = vmul.f32 0.2, %v15927_v27  ;;  %vm15931_vm5 = vcmp.gt.f32.partialorder %v15927_v27, 0.0 }
 0xffe   : > { %vm15929_vm4 = vcmp.gt.f32.partialorder %v15925_v63, 0.0  ;;  %v15933_v26 = vmul.f32 0.2, %v15925_v63  ;;  %v15899_v6 = vmul.f32 %v15894_v25, %v15867_v36  ;;  %v24731_v36 = vld [vmem:[%s31096_s9 + $0x30] sm:$0xff]  }
 0xfff   : > { %v15939_v1 = vsel %vm15931_vm5, %v15927_v27, %v15935_v12 }
0x1000   : > { %v15937_v3 = vsel %vm15929_vm4, %v15925_v63, %v15933_v26 }
0x1001   : > { %v30674_v51 = vpack.c.bf16 %v15938_v44, %v15937_v3  ;;  %v15923_v58 = vpop.permute.xlu1 %15922 }
0x1002   : > { %v15928_v28 = vadd.f32 %v15923_v58, %v15899_v6 }
0x1003   : > { %22289 = vmatprep.mubr.msk.bf16.mxu0 %vm14064_vm13, %v30674_v51  ;;  %22325 = vmatprep.mubr.msk.bf16.mxu1 %vm14064_vm13, %v30674_v51 }
0x1004   : > { %vm15932_vm6 = vcmp.gt.f32.partialorder %v15928_v28, 0.0  ;;  %v15936_v15 = vmul.f32 0.2, %v15928_v28 }
0x1006   : > { %v15940_v2 = vsel %vm15932_vm6, %v15928_v28, %v15936_v15 }
0x1007   : > { %v30680_v29 = vpack.c.bf16 %v15940_v2, %v15939_v1 }
0x1009   : > { %22290 = vmatmul.mubr.msk.bf16.vlgmr.msra.gmra.mrb[108].mxu0 %vm14064_vm13, %v30680_v29  ;;  %22326 = vmatmul.mubr.msk.bf16.vlgmr.msra.gmra.mrb[108].mxu1 %vm14064_vm13, %v30680_v29 }
0x100a   : > { %22294 = vmatpush3.bf16.msra.mxu0 %v24727_v9  ;;  %22342 = vmatpush3.bf16.msra.mxu1 %v24728_v61 }
0x100b   : > { %22301 = vmatprep.mubr.msk.bf16.mxu0 %vm14064_vm13, %v30674_v51  ;;  %22349 = vmatprep.mubr.msk.bf16.mxu1 %vm14064_vm13, %v30674_v51 }
0x100c   : > { %22295 = vmatprep.subr.bf16.mxu0 %v24729_v22  ;;  %22343 = vmatprep.subr.bf16.mxu1 %v24730_v20 }
0x100e   : > { %22296 = vmatpush3.bf16.msra.mxu0 %v24729_v22  ;;  %22344 = vmatpush3.bf16.msra.mxu1 %v24730_v20 }
0x100f   : > { %22297 = vmatprep.subr.bf16.mxu0 %v24731_v36  ;;  %22345 = vmatprep.subr.bf16.mxu1 %v24732_v31 }
0x1012   : > { %22298 = vmatpush3.bf16.msra.mxu0 %v24731_v36  ;;  %22346 = vmatpush3.bf16.msra.mxu1 %v24732_v31 }
0x1013   : > { %22299 = vmatprep.subr.bf16.mxu0 %v24733_v32  ;;  %22347 = vmatprep.subr.bf16.mxu1 %v24734_v7 }
0x1016   : > { %22300 = vmatpush3.bf16.msra.mxu0 %v24733_v32  ;;  %22348 = vmatpush3.bf16.msra.mxu1 %v24734_v7 }
0x1017   : > { %22305 = vmatprep.subr.bf16.mxu0 %v24735_v41  ;;  %22365 = vmatprep.subr.bf16.mxu1 %v24736_v14 }
0x1019   : > { %22302 = vmatmul.mubr.msk.bf16.vlgmr.msra.gmra.mrb[112].mxu0 %vm14064_vm13, %v30680_v29  ;;  %22350 = vmatmul.mubr.msk.bf16.vlgmr.msra.gmra.mrb[112].mxu1 %vm14064_vm13, %v30680_v29 }
0x101a   : > { %22306 = vmatpush3.bf16.msra.mxu0 %v24735_v41  ;;  %22313 = vmatprep.mubr.msk.bf16.mxu0 %vm14064_vm13, %v30674_v51 }
0x101b   : > { %22366 = vmatpush3.bf16.msra.mxu1 %v24736_v14  ;;  %22373 = vmatprep.mubr.msk.bf16.mxu1 %vm14064_vm13, %v30674_v51 }
0x101c   : > { %22307 = vmatprep.subr.bf16.mxu0 %v24737_v35  ;;  %22367 = vmatprep.subr.bf16.mxu1 %v24738_v46 }
0x101e   : > { %22308 = vmatpush3.bf16.msra.mxu0 %v24737_v35 }
0x101f   : > { %22368 = vmatpush3.bf16.msra.mxu1 %v24738_v46  ;;  %22309 = vmatprep.subr.bf16.mxu0 %v24739_v37 }
0x1020   : > { %22369 = vmatprep.subr.bf16.mxu1 %v24740_v42 }
0x1022   : > { %22310 = vmatpush3.bf16.msra.mxu0 %v24739_v37 }
0x1023   : > { %22370 = vmatpush3.bf16.msra.mxu1 %v24740_v42  ;;  %22311 = vmatprep.subr.bf16.mxu0 %v24741_v19 }
0x1024   : > { %22371 = vmatprep.subr.bf16.mxu1 %v24742_v13 }
0x1026   : > { %22312 = vmatpush3.bf16.msra.mxu0 %v24741_v19 }
0x1027   : > { %22372 = vmatpush3.bf16.msra.mxu1 %v24742_v13  ;;  %22329 = vmatprep.subr.bf16.mxu0 %v24743_v38 }
0x1029   : > { %22314 = vmatmul.mubr.msk.bf16.vlgmr.msra.gmra.mrb[116].mxu0 %vm14064_vm13, %v30680_v29 }
0x102a   : > { %22374 = vmatmul.mubr.msk.bf16.vlgmr.msra.gmra.mrb[116].mxu1 %vm14064_vm13, %v30680_v29  ;;  %22330 = vmatpush3.bf16.msra.mxu0 %v24743_v38 }
0x102b   : > { %22337 = vmatprep.mubr.msk.bf16.mxu0 %vm14064_vm13, %v30674_v51  ;;  %22331 = vmatprep.subr.bf16.mxu0 %v24744_v39 }
0x102e   : > { %22332 = vmatpush3.bf16.msra.mxu0 %v24744_v39 }
0x102f   : > { %22333 = vmatprep.subr.bf16.mxu0 %v24745_v57 }
0x1032   : > { %22334 = vmatpush3.bf16.msra.mxu0 %v24745_v57 }
0x1033   : > { %22335 = vmatprep.subr.bf16.mxu0 %v24746_v43 }
0x1036   : > { %22336 = vmatpush3.bf16.msra.mxu0 %v24746_v43 }
0x1037   : > { %22353 = vmatprep.subr.bf16.mxu0 %v24747_v45 }
0x1039   : > { %22338 = vmatmul.mubr.msk.bf16.vlgmr.msra.gmra.mrb[120].mxu0 %vm14064_vm13, %v30680_v29 }
0x103a   : > { %22354 = vmatpush3.bf16.msra.mxu0 %v24747_v45  ;;  %22361 = vmatprep.mubr.msk.bf16.mxu0 %vm14064_vm13, %v30674_v51 }
0x103b   : > { %22355 = vmatprep.subr.bf16.mxu0 %v24748_v53 }
0x103e   : > { %22356 = vmatpush3.bf16.msra.mxu0 %v24748_v53 }
0x103f   : > { %22357 = vmatprep.subr.bf16.mxu0 %v24749_v50 }
0x1042   : > { %22358 = vmatpush3.bf16.msra.mxu0 %v24749_v50 }
0x1043   : > { %22359 = vmatprep.subr.bf16.mxu0 %v24750_v56 }
0x1046   : > { %22360 = vmatpush3.bf16.msra.mxu0 %v24750_v56 }
0x1049   : > { %22362 = vmatmul.mubr.msk.bf16.vlgmr.msra.gmra.mrb[124].mxu0 %vm14064_vm13, %v30680_v29 }
0x10dc   : > { %v22291_v24 = vpop.f32.mrb[108].mxu0  ;;  %v22327_v48 = vpop.f32.mrb[108].mxu1 }
0x10dd   : > { %16033 = vst.msk [vmem:[#allocation4 + $0x10] sm:$0xff] %vm16030_vm7, %v22291_v24  ;;  %16291 = vst.msk [vmem:[#allocation4 + $0x70] sm:$0xff] %vm16030_vm7, %v22327_v48  ;;  %v16015_v21 = vpop.f32.mrb[109].mxu0  ;;  %v16274_v52 = vpop.f32.mrb[109].mxu1 }
0x10de   : > { %16031 = vst.msk [vmem:[#allocation4] sm:$0xff] %vm16030_vm7, %v16015_v21  ;;  %16289 = vst.msk [vmem:[#allocation4 + $0x60] sm:$0xff] %vm16030_vm7, %v16274_v52  ;;  %v22292_v8 = vpop.f32.mrb[110].mxu0  ;;  %v22328_v34 = vpop.f32.mrb[110].mxu1 }
0x10df   : > { %16034 = vst.msk [vmem:[#allocation4 + $0x18] sm:$0xff] %vm16030_vm7, %v22292_v8  ;;  %16292 = vst.msk [vmem:[#allocation4 + $0x78] sm:$0xff] %vm16030_vm7, %v22328_v34  ;;  %v16018_v47 = vpop.f32.mrb[111].mxu0  ;;  %v16277_v54 = vpop.f32.mrb[111].mxu1 }
0x10e0   : > { %16032 = vst.msk [vmem:[#allocation4 + $0x8] sm:$0xff] %vm16030_vm7, %v16018_v47  ;;  %16290 = vst.msk [vmem:[#allocation4 + $0x68] sm:$0xff] %vm16030_vm7, %v16277_v54 }
0x10e4   : > { %v16639_v60 = vld [vmem:[#allocation4 + $0x10] sm:$0xff] }
0x10e5   : > { %v16637_v55 = vld [vmem:[#allocation4] sm:$0xff]  ;;  %v16651_v35 = vld [vmem:[#allocation4 + $0x70] sm:$0xff] }
0x10e6   : > { %v16640_v59 = vld [vmem:[#allocation4 + $0x18] sm:$0xff]  ;;  %v16649_v7 = vld [vmem:[#allocation4 + $0x60] sm:$0xff] }
0x10e7   : > { %v16638_v33 = vld [vmem:[#allocation4 + $0x8] sm:$0xff]  ;;  %v30788_v61 = vpack.c.bf16 %v16640_v59, %v16639_v60  ;;  %v16652_v14 = vld [vmem:[#allocation4 + $0x78] sm:$0xff] }
0x10e8   : > { %v30784_v0 = vpack.c.bf16 %v16638_v33, %v16637_v55  ;;  %v16650_v36 = vld [vmem:[#allocation4 + $0x68] sm:$0xff]  ;;  %v16676_v46 = vpack.c.bf16 %v16652_v14, %v16651_v35 }
0x10e9   : > { %v16675_v41 = vpack.c.bf16 %v16650_v36, %v16649_v7  ;;  %v24753_v55 = vld [vmem:[%s31097_s10 + $0x4] ss:$8 sps:$4 sm:$0xff]   ;;  %v24774_v7 = vld [vmem:[%s31097_s10 + $0x70] ss:$8 sps:$4 sm:$0xff]  }
0x10ea   : > { %16758 = vrot.lane.b32.xlu1 %v30784_v0, %s24825_s22  ;;  %v24756_v59 = vld [vmem:[%s31097_s10 + $0x44] ss:$8 sps:$4 sm:$0xff]   ;;  %16943 = vmatprep.mubr.bf16.mxu1 %v24753_v55 }
0x10eb   : > { %16838 = vmatprep.mubr.bf16.mxu0 %v24756_v59  ;;  %v24766_v36 = vld [vmem:[%s31097_s10 + $0x64] ss:$8 sps:$4 sm:$0xff]  }
0x10ec   : > { %v22303_v4 = vpop.f32.mrb[112].mxu0  ;;  %v22351_v9 = vpop.f32.mrb[112].mxu1 }
0x10ed   : > { %16119 = vst.msk [vmem:[#allocation4 + $0x30] sm:$0xff] %vm16030_vm7, %v22303_v4  ;;  %16463 = vst.msk [vmem:[#allocation4 + $0xb0] sm:$0xff] %vm16030_vm7, %v22351_v9  ;;  %v16102_v62 = vpop.f32.mrb[113].mxu0  ;;  %v16446_v30 = vpop.f32.mrb[113].mxu1 }
0x10ee   : > { %16117 = vst.msk [vmem:[#allocation4 + $0x20] sm:$0xff] %vm16030_vm7, %v16102_v62  ;;  %16461 = vst.msk [vmem:[#allocation4 + $0xa0] sm:$0xff] %vm16030_vm7, %v16446_v30  ;;  %v22304_v5 = vpop.f32.mrb[114].mxu0  ;;  %v22352_v10 = vpop.f32.mrb[114].mxu1  ;;  %16760 = vrot.lane.b32.xlu1 %v30788_v61, %s24825_s22 }
0x10ef   : > { %16120 = vst.msk [vmem:[#allocation4 + $0x38] sm:$0xff] %vm16030_vm7, %v22304_v5  ;;  %16464 = vst.msk [vmem:[#allocation4 + $0xb8] sm:$0xff] %vm16030_vm7, %v22352_v10  ;;  %v16105_v11 = vpop.f32.mrb[115].mxu0  ;;  %v16449_v16 = vpop.f32.mrb[115].mxu1  ;;  %v24751_v5 = vld [vmem:[%s31097_s10] ss:$8 sps:$4 sm:$0xff]  }
0x10f0   : > { %16118 = vst.msk [vmem:[#allocation4 + $0x28] sm:$0xff] %vm16030_vm7, %v16105_v11  ;;  %16462 = vst.msk [vmem:[#allocation4 + $0xa8] sm:$0xff] %vm16030_vm7, %v16449_v16  ;;  %v24757_v10 = vld [vmem:[%s31097_s10 + $0x14] ss:$8 sps:$4 sm:$0xff]   ;;  %v24759_v11 = vld [vmem:[%s31097_s10 + $0x10] ss:$8 sps:$4 sm:$0xff]  }
0x10f1   : > { %v24763_v16 = vld [vmem:[%s31097_s10 + $0x24] ss:$8 sps:$4 sm:$0xff]  }
0x10f4   : > { %v16643_v23 = vld [vmem:[#allocation4 + $0x30] sm:$0xff] }
0x10f5   : > { %v16641_v17 = vld [vmem:[#allocation4 + $0x20] sm:$0xff]  ;;  %v16659_v21 = vld [vmem:[#allocation4 + $0xb0] sm:$0xff] }
0x10f6   : > { %v16644_v49 = vld [vmem:[#allocation4 + $0x38] sm:$0xff]  ;;  %v16657_v53 = vld [vmem:[#allocation4 + $0xa0] sm:$0xff] }
0x10f7   : > { %v16642_v18 = vld [vmem:[#allocation4 + $0x28] sm:$0xff]  ;;  %v30804_v25 = vpack.c.bf16 %v16644_v49, %v16643_v23  ;;  %v16660_v48 = vld [vmem:[#allocation4 + $0xb8] sm:$0xff] }
0x10f8   : > { %v30800_v40 = vpack.c.bf16 %v16642_v18, %v16641_v17  ;;  %v16658_v57 = vld [vmem:[#allocation4 + $0xa8] sm:$0xff]  ;;  %v16680_v52 = vpack.c.bf16 %v16660_v48, %v16659_v21  ;;  %v24769_v18 = vld [vmem:[%s31097_s10 + $0x34] ss:$8 sps:$4 sm:$0xff]  }
0x10f9   : > { %v16679_v56 = vpack.c.bf16 %v16658_v57, %v16657_v53  ;;  %v24765_v17 = vld [vmem:[%s31097_s10 + $0x20] ss:$8 sps:$4 sm:$0xff]  }
0x10fa   : > { %16762 = vrot.lane.b32.xlu1 %v30800_v40, %s24825_s22 }
0x10fc   : > { %v22315_v63 = vpop.f32.mrb[116].mxu0 }
0x10fd   : > { %16205 = vst.msk [vmem:[#allocation4 + $0x50] sm:$0xff] %vm16030_vm7, %v22315_v63  ;;  %v22375_v26 = vpop.f32.mrb[116].mxu1  ;;  %v16188_v27 = vpop.f32.mrb[117].mxu0 }
0x10fe   : > { %16635 = vst.msk [vmem:[#allocation4 + $0xf0] sm:$0xff] %vm16030_vm7, %v22375_v26  ;;  %16203 = vst.msk [vmem:[#allocation4 + $0x40] sm:$0xff] %vm16030_vm7, %v16188_v27  ;;  %v16618_v44 = vpop.f32.mrb[117].mxu1  ;;  %v22316_v3 = vpop.f32.mrb[118].mxu0  ;;  %16764 = vrot.lane.b32.xlu1 %v30804_v25, %s24825_s22 }
0x10ff   : > { %16633 = vst.msk [vmem:[#allocation4 + $0xe0] sm:$0xff] %vm16030_vm7, %v16618_v44  ;;  %16206 = vst.msk [vmem:[#allocation4 + $0x58] sm:$0xff] %vm16030_vm7, %v22316_v3  ;;  %v22376_v6 = vpop.f32.mrb[118].mxu1  ;;  %v16191_v51 = vpop.f32.mrb[119].mxu0 }
0x1100   : > { %16636 = vst.msk [vmem:[#allocation4 + $0xf8] sm:$0xff] %vm16030_vm7, %v22376_v6  ;;  %16204 = vst.msk [vmem:[#allocation4 + $0x48] sm:$0xff] %vm16030_vm7, %v16191_v51  ;;  %v16621_v58 = vpop.f32.mrb[119].mxu1 }
0x1101   : > { %16634 = vst.msk [vmem:[#allocation4 + $0xe8] sm:$0xff] %vm16030_vm7, %v16621_v58 }
0x1104   : > { %v16647_v2 = vld [vmem:[#allocation4 + $0x50] sm:$0xff] }
0x1105   : > { %v16645_v12 = vld [vmem:[#allocation4 + $0x40] sm:$0xff]  ;;  %v16667_v62 = vld [vmem:[#allocation4 + $0xf0] sm:$0xff] }
0x1106   : > { %v16648_v1 = vld [vmem:[#allocation4 + $0x58] sm:$0xff]  ;;  %v16665_v4 = vld [vmem:[#allocation4 + $0xe0] sm:$0xff] }
0x1107   : > { %v16646_v28 = vld [vmem:[#allocation4 + $0x48] sm:$0xff]  ;;  %v30820_v22 = vpack.c.bf16 %v16648_v1, %v16647_v2 }
0x1108   : > { %v30816_v15 = vpack.c.bf16 %v16646_v28, %v16645_v12  ;;  %v16666_v60 = vld [vmem:[#allocation4 + $0xe8] sm:$0xff] }
0x1109   : > { %v16683_v9 = vpack.c.bf16 %v16666_v60, %v16665_v4 }
0x110a   : > { %16766 = vrot.lane.b32.xlu1 %v30816_v15, %s24825_s22 }
0x110c   : > { %v22339_v29 = vpop.f32.mrb[120].mxu0 }
0x110d   : > { %16377 = vst.msk [vmem:[#allocation4 + $0x90] sm:$0xff] %vm16030_vm7, %v22339_v29  ;;  %v16360_v20 = vpop.f32.mrb[121].mxu0  ;;  %v24754_v29 = vld [vmem:[%s31097_s10 + $0x40] ss:$8 sps:$4 sm:$0xff]  }
0x110e   : > { %16375 = vst.msk [vmem:[#allocation4 + $0x80] sm:$0xff] %vm16030_vm7, %v16360_v20  ;;  %v22340_v31 = vpop.f32.mrb[122].mxu0  ;;  %16768 = vrot.lane.b32.xlu1 %v30820_v22, %s24825_s22  ;;  %v24762_v20 = vld [vmem:[%s31097_s10 + $0x50] ss:$8 sps:$4 sm:$0xff]  }
0x110f   : > { %16378 = vst.msk [vmem:[#allocation4 + $0x98] sm:$0xff] %vm16030_vm7, %v22340_v31  ;;  %v16363_v32 = vpop.f32.mrb[123].mxu0  ;;  %v24768_v31 = vld [vmem:[%s31097_s10 + $0x60] ss:$8 sps:$4 sm:$0xff]  }
0x1110   : > { %16376 = vst.msk [vmem:[#allocation4 + $0x88] sm:$0xff] %vm16030_vm7, %v16363_v32  ;;  %v24772_v32 = vld [vmem:[%s31097_s10 + $0x74] ss:$8 sps:$4 sm:$0xff]  }
0x1112   : > { %16770 = vrot.lane.b32.xlu1 %v16675_v41, %s24825_s22 }
0x1114   : > { %v16655_v38 = vld [vmem:[#allocation4 + $0x90] sm:$0xff] }
0x1115   : > { %v16653_v37 = vld [vmem:[#allocation4 + $0x80] sm:$0xff] }
0x1116   : > { %16772 = vrot.lane.b32.xlu1 %v16676_v46, %s24825_s22  ;;  %v16656_v19 = vld [vmem:[#allocation4 + $0x98] sm:$0xff] }
0x1117   : > { %v16654_v42 = vld [vmem:[#allocation4 + $0x88] sm:$0xff]  ;;  %v16678_v39 = vpack.c.bf16 %v16656_v19, %v16655_v38 }
0x1118   : > { %v16677_v13 = vpack.c.bf16 %v16654_v42, %v16653_v37 }
0x111a   : > { %16774 = vrot.lane.b32.xlu0 %v16677_v13, %s24825_s22  ;;  %22201 = vmatprep.subr.bf16.mxu1 %v16677_v13 }
0x111b   : > { %22202 = vmatpush3.bf16.msra.mxu1 %v30784_v0 }
0x111c   : > { %v22363_v43 = vpop.f32.mrb[124].mxu0  ;;  %22203 = vmatprep.subr.bf16.mxu1 %v16678_v39 }
0x111d   : > { %16549 = vst.msk [vmem:[#allocation4 + $0xd0] sm:$0xff] %vm16030_vm7, %v22363_v43  ;;  %v16532_v45 = vpop.f32.mrb[125].mxu0 }
0x111e   : > { %16547 = vst.msk [vmem:[#allocation4 + $0xc0] sm:$0xff] %vm16030_vm7, %v16532_v45  ;;  %v22364_v50 = vpop.f32.mrb[126].mxu0  ;;  %16776 = vrot.lane.b32.xlu0 %v16678_v39, %s24825_s22 }
0x111f   : > { %16550 = vst.msk [vmem:[#allocation4 + $0xd8] sm:$0xff] %vm16030_vm7, %v22364_v50  ;;  %v16535_v24 = vpop.f32.mrb[127].mxu0  ;;  %22204 = vmatpush3.bf16.msra.mxu1 %v30788_v61  ;;  %v16668_v61 = vld [vmem:[#allocation4 + $0xf8] sm:$0xff] }
0x1120   : > { %16548 = vst.msk [vmem:[#allocation4 + $0xc8] sm:$0xff] %vm16030_vm7, %v16535_v24  ;;  %22205 = vmatprep.subr.bf16.mxu1 %v16679_v56  ;;  %v16684_v30 = vpack.c.bf16 %v16668_v61, %v16667_v62 }
0x1122   : > { %16778 = vrot.lane.b32.xlu0 %v16679_v56, %s24825_s22 }
0x1123   : > { %22206 = vmatpush3.bf16.msra.mxu1 %v30800_v40  ;;  %v24771_v40 = vld [vmem:[%s31097_s10 + $0x30] ss:$8 sps:$4 sm:$0xff]  }
0x1124   : > { %22207 = vmatprep.subr.bf16.mxu1 %v16680_v52  ;;  %v16663_v33 = vld [vmem:[#allocation4 + $0xd0] sm:$0xff] }
0x1125   : > { %v16661_v8 = vld [vmem:[#allocation4 + $0xc0] sm:$0xff] }
0x1126   : > { %16780 = vrot.lane.b32.xlu0 %v16680_v52, %s24825_s22  ;;  %v16664_v47 = vld [vmem:[#allocation4 + $0xd8] sm:$0xff] }
0x1127   : > { %22208 = vmatpush3.bf16.msra.mxu1 %v30804_v25  ;;  %v16662_v34 = vld [vmem:[#allocation4 + $0xc8] sm:$0xff]  ;;  %v16682_v0 = vpack.c.bf16 %v16664_v47, %v16663_v33 }
0x1128   : > { %v16681_v54 = vpack.c.bf16 %v16662_v34, %v16661_v8 }
0x112a   : > { %16782 = vrot.lane.b32.xlu0 %v16681_v54, %s24825_s22  ;;  %22209 = vmatprep.subr.bf16.mxu1 %v16681_v54 }
0x112b   : > { %22210 = vmatpush3.bf16.msra.mxu1 %v30816_v15 }
0x112c   : > { %22211 = vmatprep.subr.bf16.mxu1 %v16682_v0 }
0x112e   : > { %16784 = vrot.lane.b32.xlu0 %v16682_v0, %s24825_s22 }
0x112f   : > { %22212 = vmatpush3.bf16.msra.mxu1 %v30820_v22  ;;  %v24760_v22 = vld [vmem:[%s31097_s10 + $0x54] ss:$8 sps:$4 sm:$0xff]  }
0x1130   : > { %22213 = vmatprep.subr.bf16.mxu1 %v16683_v9 }
0x1132   : > { %16786 = vrot.lane.b32.xlu0 %v16683_v9, %s24825_s22 }
0x1133   : > { %22214 = vmatpush3.bf16.msra.mxu1 %v16675_v41 }
0x1134   : > { %22215 = vmatprep.subr.bf16.mxu1 %v16684_v30 }
0x1136   : > { %16788 = vrot.lane.b32.xlu0 %v16684_v30, %s24825_s22 }
0x1137   : > { %22216 = vmatpush3.bf16.msra.mxu1 %v16676_v46 }
0x113a   : > { %16944 = vmatmul.mubr.bf16.vlgmr.msra.gmra.mrb[120].mxu1 %v24751_v5 }
0x113b   : > { %16951 = vmatprep.mubr.bf16.mxu1 %v24757_v10 }
0x1142   : > { %16952 = vmatmul.mubr.bf16.gmra.mrb[124].mxu1 %v24759_v11 }
0x1143   : > { %16959 = vmatprep.mubr.bf16.mxu1 %v24763_v16 }
0x114a   : > { %16960 = vmatmul.mubr.bf16.gmra.mrb[128].mxu1 %v24765_v17 }
0x114b   : > { %16967 = vmatprep.mubr.bf16.mxu1 %v24769_v18 }
0x1152   : > { %16968 = vmatmul.mubr.bf16.gmra.mrb[132].mxu1 %v24771_v40 }
0x115c   : > { %v16759_v49 = vpop.permute.xlu1 %16758 }
0x1160   : > { %v16761_v23 = vpop.permute.xlu1 %16760 }
0x116c   : > { %v16763_v25 = vpop.permute.xlu1 %16762 }
0x1170   : > { %v16765_v27 = vpop.permute.xlu1 %16764 }
0x117c   : > { %v16767_v3 = vpop.permute.xlu1 %16766 }
0x1180   : > { %v16769_v58 = vpop.permute.xlu1 %16768 }
0x1184   : > { %v16771_v28 = vpop.permute.xlu1 %16770 }
0x1188   : > { %v16773_v2 = vpop.permute.xlu1 %16772 }
0x118c   : > { %v16775_v63 = vpop.permute.xlu0 %16774 }
0x118d   : > { %22161 = vmatprep.subr.bf16.mxu0 %v16775_v63 }
0x118e   : > { %22162 = vmatpush3.bf16.msra.mxu0 %v16759_v49 }
0x1190   : > { %v16777_v26 = vpop.permute.xlu0 %16776 }
0x1191   : > { %22163 = vmatprep.subr.bf16.mxu0 %v16777_v26 }
0x1192   : > { %22164 = vmatpush3.bf16.msra.mxu0 %v16761_v23 }
0x1194   : > { %v16779_v44 = vpop.permute.xlu0 %16778 }
0x1195   : > { %22165 = vmatprep.subr.bf16.mxu0 %v16779_v44 }
0x1196   : > { %22166 = vmatpush3.bf16.msra.mxu0 %v16763_v25 }
0x1198   : > { %v16781_v6 = vpop.permute.xlu0 %16780 }
0x1199   : > { %22167 = vmatprep.subr.bf16.mxu0 %v16781_v6 }
0x119a   : > { %22168 = vmatpush3.bf16.msra.mxu0 %v16765_v27 }
0x119c   : > { %v16783_v51 = vpop.permute.xlu0 %16782 }
0x119d   : > { %22169 = vmatprep.subr.bf16.mxu0 %v16783_v51 }
0x119e   : > { %22170 = vmatpush3.bf16.msra.mxu0 %v16767_v3 }
0x11a0   : > { %v16785_v12 = vpop.permute.xlu0 %16784 }
0x11a1   : > { %22171 = vmatprep.subr.bf16.mxu0 %v16785_v12 }
0x11a2   : > { %22172 = vmatpush3.bf16.msra.mxu0 %v16769_v58 }
0x11a4   : > { %v16787_v15 = vpop.permute.xlu0 %16786 }
0x11a5   : > { %22173 = vmatprep.subr.bf16.mxu0 %v16787_v15 }
0x11a6   : > { %22174 = vmatpush3.bf16.msra.mxu0 %v16771_v28 }
0x11a8   : > { %v16789_v1 = vpop.permute.xlu0 %16788 }
0x11a9   : > { %22175 = vmatprep.subr.bf16.mxu0 %v16789_v1 }
0x11aa   : > { %22176 = vmatpush3.bf16.msra.mxu0 %v16773_v2 }
0x11ad   : > { %16839 = vmatmul.mubr.bf16.vlgmr.msra.gmra.mrb[128].mxu0 %v24754_v29 }
0x11ae   : > { %16846 = vmatprep.mubr.bf16.mxu0 %v24760_v22 }
0x11b5   : > { %16847 = vmatmul.mubr.bf16.gmra.mrb[132].mxu0 %v24762_v20 }
0x11b6   : > { %16854 = vmatprep.mubr.bf16.mxu0 %v24766_v36 }
0x11bd   : > { %16855 = vmatmul.mubr.bf16.gmra.mrb[136].mxu0 %v24768_v31 }
0x11be   : > { %16862 = vmatprep.mubr.bf16.mxu0 %v24772_v32 }
0x11c5   : > { %16863 = vmatmul.mubr.bf16.gmra.mrb[140].mxu0 %v24774_v7 }
0x120d   : > { %v22217_v41 = vpop.f32.mrb[120].mxu1 }
0x120e   : > { %v22218_v14 = vpop.f32.mrb[121].mxu1 }
0x120f   : > { %v22219_v35 = vadd.f32 %v22218_v14, %v22217_v41  ;;  %v22220_v46 = vpop.f32.mrb[122].mxu1 }
0x1210   : > { %v22221_v37 = vpop.f32.mrb[123].mxu1 }
0x1211   : > { %v22222_v42 = vadd.f32 %v22221_v37, %v22220_v46 }
0x1215   : > { %v22223_v19 = vpop.f32.mrb[124].mxu1 }
0x1216   : > { %v22224_v13 = vpop.f32.mrb[125].mxu1 }
0x1217   : > { %v22225_v38 = vadd.f32 %v22224_v13, %v22223_v19  ;;  %v22226_v39 = vpop.f32.mrb[126].mxu1 }
0x1218   : > { %v22227_v57 = vpop.f32.mrb[127].mxu1 }
0x1219   : > { %v22228_v43 = vadd.f32 %v22227_v57, %v22226_v39 }
0x121d   : > { %v22229_v45 = vpop.f32.mrb[128].mxu1 }
0x121e   : > { %v22230_v53 = vpop.f32.mrb[129].mxu1 }
0x121f   : > { %v22231_v50 = vadd.f32 %v22230_v53, %v22229_v45  ;;  %v22232_v56 = vpop.f32.mrb[130].mxu1 }
0x1220   : > { %v22233_v24 = vpop.f32.mrb[131].mxu1 }
0x1221   : > { %v22234_v48 = vadd.f32 %v22233_v24, %v22232_v56  ;;  %v21203_v24 = vld [vmem:[%s31098_s11 + $0x40] sm:$0xff] }
0x1225   : > { %v22235_v21 = vpop.f32.mrb[132].mxu1 }
0x1226   : > { %v22236_v52 = vpop.f32.mrb[133].mxu1 }
0x1227   : > { %v22237_v8 = vadd.f32 %v22236_v52, %v22235_v21  ;;  %v22238_v34 = vpop.f32.mrb[134].mxu1  ;;  %v21205_v21 = vld [vmem:[%s31098_s11 + $0x50] sm:$0xff]  ;;  %v21206_v52 = vld [vmem:[%s31098_s11 + $0x58] sm:$0xff] }
0x1228   : > { %v22239_v47 = vpop.f32.mrb[135].mxu1 }
0x1229   : > { %v22240_v54 = vadd.f32 %v22239_v47, %v22238_v34 }
0x1280   : > { %v22177_v55 = vpop.f32.mrb[128].mxu0 }
0x1281   : > { %v22178_v33 = vpop.f32.mrb[129].mxu0 }
0x1282   : > { %v22179_v0 = vadd.f32 %v22178_v33, %v22177_v55  ;;  %v22180_v59 = vpop.f32.mrb[130].mxu0 }
0x1283   : > { %v22181_v60 = vpop.f32.mrb[131].mxu0 }
0x1284   : > { %v30896_v4 = vadd.f32 %v22219_v35, %v22179_v0  ;;  %v22182_v9 = vadd.f32 %v22181_v60, %v22180_v59 }
0x1286   : > { %v30898_v61 = vadd.f32 %v22222_v42, %v22182_v9  ;;  %v16976_v62 = vsel %vm2707_vm11, %v30896_v4, 0.0  ;;  %v17008_v30 = vmul.f32 %v30896_v4, %v30896_v4 }
0x1287   : > { %16977 = vadd.xlane.f32.xlu0 %v16976_v62 }
0x1288   : > { %v22183_v5 = vpop.f32.mrb[132].mxu0  ;;  %v16979_v10 = vsel %vm2707_vm11, %v30898_v61, 0.0  ;;  %v17009_v11 = vmul.f32 %v30898_v61, %v30898_v61  ;;  %v17016_v40 = vsel %vm2707_vm11, %v17008_v30, 0.0 }
0x1289   : > { %v22184_v16 = vpop.f32.mrb[133].mxu0  ;;  %16980 = vadd.xlane.f32.xlu1 %v16979_v10 }
0x128a   : > { %v22185_v17 = vadd.f32 %v22184_v16, %v22183_v5  ;;  %v22186_v18 = vpop.f32.mrb[134].mxu0  ;;  %v17019_v25 = vsel %vm2707_vm11, %v17009_v11, 0.0 }
0x128b   : > { %v22187_v49 = vpop.f32.mrb[135].mxu0  ;;  %17017 = vadd.xlane.f32.xlu0 %v17016_v40 }
0x128c   : > { %v30909_v23 = vadd.f32 %v22225_v38, %v22185_v17  ;;  %v22188_v63 = vadd.f32 %v22187_v49, %v22186_v18 }
0x128d   : > { %17020 = vadd.xlane.f32.xlu1 %v17019_v25 }
0x128e   : > { %v30912_v26 = vadd.f32 %v22228_v43, %v22188_v63  ;;  %v16982_v27 = vsel %vm2707_vm11, %v30909_v23, 0.0  ;;  %v17010_v44 = vmul.f32 %v30909_v23, %v30909_v23 }
0x128f   : > { %16983 = vadd.xlane.f32.xlu0 %v16982_v27 }
0x1290   : > { %v22189_v3 = vpop.f32.mrb[136].mxu0  ;;  %v17022_v6 = vsel %vm2707_vm11, %v17010_v44, 0.0  ;;  %v17011_v51 = vmul.f32 %v30912_v26, %v30912_v26  ;;  %v16985_v15 = vsel %vm2707_vm11, %v30912_v26, 0.0 }
0x1291   : > { %v22190_v58 = vpop.f32.mrb[137].mxu0  ;;  %17023 = vadd.xlane.f32.xlu1 %v17022_v6 }
0x1292   : > { %v22191_v12 = vadd.f32 %v22190_v58, %v22189_v3  ;;  %v22192_v28 = vpop.f32.mrb[138].mxu0  ;;  %v17025_v22 = vsel %vm2707_vm11, %v17011_v51, 0.0 }
0x1293   : > { %v22193_v1 = vpop.f32.mrb[139].mxu0  ;;  %16986 = vadd.xlane.f32.xlu0 %v16985_v15 }
0x1294   : > { %v30923_v2 = vadd.f32 %v22231_v50, %v22191_v12  ;;  %v22194_v29 = vadd.f32 %v22193_v1, %v22192_v28 }
0x1295   : > { %17026 = vadd.xlane.f32.xlu1 %v17025_v22 }
0x1296   : > { %v30926_v20 = vadd.f32 %v22234_v48, %v22194_v29  ;;  %v16988_v36 = vsel %vm2707_vm11, %v30923_v2, 0.0  ;;  %v17012_v31 = vmul.f32 %v30923_v2, %v30923_v2  ;;  %v21204_v48 = vld [vmem:[%s31098_s11 + $0x48] sm:$0xff] }
0x1297   : > { %16989 = vadd.xlane.f32.xlu0 %v16988_v36 }
0x1298   : > { %v22195_v32 = vpop.f32.mrb[140].mxu0  ;;  %v17028_v7 = vsel %vm2707_vm11, %v17012_v31, 0.0  ;;  %v17013_v41 = vmul.f32 %v30926_v20, %v30926_v20  ;;  %v16991_v37 = vsel %vm2707_vm11, %v30926_v20, 0.0 }
0x1299   : > { %v22196_v14 = vpop.f32.mrb[141].mxu0  ;;  %17029 = vadd.xlane.f32.xlu1 %v17028_v7 }
0x129a   : > { %v22197_v35 = vadd.f32 %v22196_v14, %v22195_v32  ;;  %v22198_v46 = vpop.f32.mrb[142].mxu0  ;;  %v17031_v38 = vsel %vm2707_vm11, %v17013_v41, 0.0 }
0x129b   : > { %v22199_v42 = vpop.f32.mrb[143].mxu0  ;;  %16992 = vadd.xlane.f32.xlu0 %v16991_v37 }
0x129c   : > { %v30937_v19 = vadd.f32 %v22237_v8, %v22197_v35  ;;  %v22200_v13 = vadd.f32 %v22199_v42, %v22198_v46  ;;  %v17096_v35 = vld [vmem:[%s31098_s11] sm:$0xff] }
0x129d   : > { %17032 = vadd.xlane.f32.xlu1 %v17031_v38 }
0x129e   : > { %v30940_v39 = vadd.f32 %v22240_v54, %v22200_v13  ;;  %v16994_v57 = vsel %vm2707_vm11, %v30937_v19, 0.0  ;;  %v17014_v43 = vmul.f32 %v30937_v19, %v30937_v19 }
0x129f   : > { %16995 = vadd.xlane.f32.xlu0 %v16994_v57  ;;  %v17097_v57 = vld [vmem:[%s31098_s11 + $0x8] sm:$0xff] }
0x12a0   : > { %v17034_v45 = vsel %vm2707_vm11, %v17014_v43, 0.0  ;;  %v16997_v53 = vsel %vm2707_vm11, %v30940_v39, 0.0  ;;  %v17015_v50 = vmul.f32 %v30940_v39, %v30940_v39 }
0x12a1   : > { %17035 = vadd.xlane.f32.xlu1 %v17034_v45 }
0x12a2   : > { %v17037_v56 = vsel %vm2707_vm11, %v17015_v50, 0.0 }
0x12a3   : > { %16998 = vadd.xlane.f32.xlu0 %v16997_v53 }
0x12a7   : > { %17038 = vadd.xlane.f32.xlu0 %v17037_v56 }
0x12b2   : > { %17171 = vperm.xlu1 %22514, %v21203_v24  }
0x12bd   : > { %17176 = vperm.xlu0 %22513, %v21204_v48  }
0x12c1   : > { %17181 = vperm.xlu0 %22513, %v21205_v21  }
0x12c5   : > { %17186 = vperm.xlu0 %22513, %v21206_v52  }
0x1314   : > { %v16978_v8 = vpop.xlane.xlu0 %16977 }
0x1315   : > { %v30964_v34 = vmul.f32 0.0625, %v16978_v8 }
0x1316   : > { %v16981_v47 = vpop.xlane.xlu1 %16980 }
0x1317   : > { %v30966_v54 = vmul.f32 0.0625, %v16981_v47  ;;  %v17048_v33 = vmul.f32 %v30964_v34, %v30964_v34 }
0x1318   : > { %v17018_v55 = vpop.xlane.xlu0 %17017 }
0x1319   : > { %v17040_v0 = vmul.f32 0.0625, %v17018_v55  ;;  %v17049_v60 = vmul.f32 %v30966_v54, %v30966_v54  ;;  %v17098_v55 = vld [vmem:[%s31098_s11 + $0x10] sm:$0xff] }
0x131a   : > { %v17021_v59 = vpop.xlane.xlu1 %17020 }
0x131b   : > { %v17056_v9 = vsub.f32 %v17040_v0, %v17048_v33  ;;  %v17041_v62 = vmul.f32 0.0625, %v17021_v59 }
0x131c   : > { %v16984_v30 = vpop.xlane.xlu0 %16983 }
0x131d   : > { %v17064_v5 = vmax.f32 %v17056_v9, 0.0  ;;  %v17057_v10 = vsub.f32 %v17041_v62, %v17049_v60  ;;  %v30972_v11 = vmul.f32 0.0625, %v16984_v30  ;;  %v21207_v62 = vld [vmem:[%s31098_s11 + $0x60] sm:$0xff] }
0x131e   : > { %v17024_v16 = vpop.xlane.xlu1 %17023 }
0x131f   : > { %v17072_v17 = vadd.f32 1e-05, %v17064_v5  ;;  %v17065_v18 = vmax.f32 %v17057_v10, 0.0  ;;  %v17050_v40 = vmul.f32 %v30972_v11, %v30972_v11  ;;  %v17042_v49 = vmul.f32 0.0625, %v17024_v16  ;;  %v17099_v10 = vld [vmem:[%s31098_s11 + $0x18] sm:$0xff] }
0x1320   : > { %v16987_v63 = vpop.xlane.xlu0 %16986 }
0x1321   : > { %24789 = vrsqrt.f32 %v17072_v17  ;;  %v17073_v25 = vadd.f32 1e-05, %v17065_v18  ;;  %v17058_v27 = vsub.f32 %v17042_v49, %v17050_v40  ;;  %v30976_v44 = vmul.f32 0.0625, %v16987_v63  ;;  %v21208_v63 = vld [vmem:[%s31098_s11 + $0x68] sm:$0xff] }
0x1322   : > { %v17027_v3 = vpop.xlane.xlu1 %17026 }
0x1323   : > { %24791 = vrsqrt.f32 %v17073_v25  ;;  %v17066_v6 = vmax.f32 %v17058_v27, 0.0  ;;  %v17051_v51 = vmul.f32 %v30976_v44, %v30976_v44  ;;  %v17043_v58 = vmul.f32 0.0625, %v17027_v3  ;;  %v17100_v3 = vld [vmem:[%s31098_s11 + $0x20] sm:$0xff] }
0x1324   : > { %v16990_v12 = vpop.xlane.xlu0 %16989 }
0x1325   : > { %v17074_v28 = vadd.f32 1e-05, %v17066_v6  ;;  %v17059_v15 = vsub.f32 %v17043_v58, %v17051_v51  ;;  %v30980_v1 = vmul.f32 0.0625, %v16990_v12  ;;  %v21209_v58 = vld [vmem:[%s31098_s11 + $0x70] sm:$0xff] }
0x1326   : > { %v17030_v29 = vpop.xlane.xlu1 %17029 }
0x1327   : > { %24793 = vrsqrt.f32 %v17074_v28  ;;  %v17067_v22 = vmax.f32 %v17059_v15, 0.0  ;;  %v17052_v36 = vmul.f32 %v30980_v1, %v30980_v1  ;;  %v17044_v31 = vmul.f32 0.0625, %v17030_v29  ;;  %v17101_v15 = vld [vmem:[%s31098_s11 + $0x28] sm:$0xff] }
0x1328   : > { %v16993_v32 = vpop.xlane.xlu0 %16992 }
0x1329   : > { %v17075_v7 = vadd.f32 1e-05, %v17067_v22  ;;  %v17060_v41 = vsub.f32 %v17044_v31, %v17052_v36  ;;  %v30984_v14 = vmul.f32 0.0625, %v16993_v32  ;;  %v17102_v36 = vld [vmem:[%s31098_s11 + $0x30] sm:$0xff] }
0x132a   : > { %v17033_v46 = vpop.xlane.xlu1 %17032 }
0x132b   : > { %v24790_v37 = vpop.eup %24789  ;;  %24795 = vrsqrt.f32 %v17075_v7  ;;  %v17068_v42 = vmax.f32 %v17060_v41, 0.0  ;;  %v17053_v13 = vmul.f32 %v30984_v14, %v30984_v14  ;;  %v17045_v38 = vmul.f32 0.0625, %v17033_v46  ;;  %v17103_v7 = vld [vmem:[%s31098_s11 + $0x38] sm:$0xff] }
0x132c   : > { %v16996_v43 = vpop.xlane.xlu0 %16995  ;;  %v17104_v45 = vmul.f32 %v24790_v37, %v17096_v35  ;;  %v21210_v46 = vld [vmem:[%s31098_s11 + $0x78] sm:$0xff] }
0x132d   : > { %v24792_v53 = vpop.eup %24791  ;;  %v17076_v50 = vadd.f32 1e-05, %v17068_v42  ;;  %v17061_v56 = vsub.f32 %v17045_v38, %v17053_v13  ;;  %v30994_v24 = vmul.f32 0.0625, %v16996_v43 }
0x132e   : > { %v17036_v48 = vpop.xlane.xlu1 %17035  ;;  %17114 = vperm.xlu1 %22514, %v17104_v45   ;;  %v17105_v21 = vmul.f32 %v24792_v53, %v17097_v57  ;;  %v17088_v57 = vsub.f32 %v30896_v4, %v30964_v34  ;;  %v17089_v53 = vsub.f32 %v30898_v61, %v30966_v54  ;;  %v17242_v34 = vld [vmem:[%s31099_s12 + $0x8] sm:$0xff] }
0x132f   : > { %24797 = vrsqrt.f32 %v17076_v50  ;;  %v17069_v52 = vmax.f32 %v17061_v56, 0.0  ;;  %v17054_v8 = vmul.f32 %v30994_v24, %v30994_v24  ;;  %v17046_v47 = vmul.f32 0.0625, %v17036_v48 }
0x1330   : > { %17119 = vperm.xlu0 %22513, %v17105_v21   ;;  %v16999_v33 = vpop.xlane.xlu0 %16998  ;;  %v17241_v21 = vld [vmem:[%s31099_s12] sm:$0xff] }
0x1331   : > { %v24794_v0 = vpop.eup %24793  ;;  %v17077_v59 = vadd.f32 1e-05, %v17069_v52  ;;  %v17062_v60 = vsub.f32 %v17046_v47, %v17054_v8  ;;  %v31001_v9 = vmul.f32 0.0625, %v16999_v33  ;;  %v17090_v47 = vsub.f32 %v30909_v23, %v30972_v11  ;;  %v17243_v23 = vld [vmem:[%s31099_s12 + $0x10] sm:$0xff] }
0x1332   : > { %v17106_v30 = vmul.f32 %v24794_v0, %v17098_v55  ;;  %v17172_v13 = vpop.permute.xlu1 %17171 }
0x1333   : > { %24799 = vrsqrt.f32 %v17077_v59  ;;  %v17070_v5 = vmax.f32 %v17062_v60, 0.0  ;;  %v17055_v40 = vmul.f32 %v31001_v9, %v31001_v9  ;;  %v17091_v60 = vsub.f32 %v30912_v26, %v30976_v44 }
0x1334   : > { %17191 = vperm.xlu0 %22513, %v21207_v62   ;;  %17124 = vperm.xlu1 %22514, %v17106_v30   ;;  %v17039_v16 = vpop.xlane.xlu0 %17038  ;;  %v17092_v26 = vsub.f32 %v30923_v2, %v30980_v1  ;;  %v17245_v1 = vld [vmem:[%s31099_s12 + $0x20] sm:$0xff] }
0x1335   : > { %v24796_v17 = vpop.eup %24795  ;;  %v17078_v18 = vadd.f32 1e-05, %v17070_v5  ;;  %v17047_v49 = vmul.f32 0.0625, %v17039_v16 }
0x1336   : > { %v17107_v25 = vmul.f32 %v24796_v17, %v17099_v10 }
0x1337   : > { %24801 = vrsqrt.f32 %v17078_v18  ;;  %v17063_v27 = vsub.f32 %v17047_v49, %v17055_v40 }
0x1338   : > { %17196 = vperm.xlu0 %22513, %v21208_v63   ;;  %17129 = vperm.xlu1 %22514, %v17107_v25   ;;  %v17244_v25 = vld [vmem:[%s31099_s12 + $0x18] sm:$0xff] }
0x1339   : > { %v24798_v6 = vpop.eup %24797  ;;  %v17071_v51 = vmax.f32 %v17063_v27, 0.0 }
0x133a   : > { %v17108_v12 = vmul.f32 %v24798_v6, %v17100_v3 }
0x133b   : > { %v17079_v28 = vadd.f32 1e-05, %v17071_v51 }
0x133c   : > { %17201 = vperm.xlu0 %22513, %v21209_v58   ;;  %17134 = vperm.xlu1 %22514, %v17108_v12   ;;  %v17177_v37 = vpop.permute.xlu0 %17176 }
0x133d   : > { %v24800_v29 = vpop.eup %24799  ;;  %24803 = vrsqrt.f32 %v17079_v28  ;;  %v17093_v28 = vsub.f32 %v30926_v20, %v30984_v14  ;;  %v17246_v14 = vld [vmem:[%s31099_s12 + $0x28] sm:$0xff] }
0x133e   : > { %v17109_v22 = vmul.f32 %v24800_v29, %v17101_v15 }
0x1340   : > { %17139 = vperm.xlu1 %22514, %v17109_v22   ;;  %v17182_v42 = vpop.permute.xlu0 %17181 }
0x1341   : > { %v24802_v31 = vpop.eup %24801 }
0x1342   : > { %v17110_v32 = vmul.f32 %v24802_v31, %v17102_v36 }
0x1344   : > { %17144 = vperm.xlu1 %22514, %v17110_v32   ;;  %v17187_v38 = vpop.permute.xlu0 %17186 }
0x1347   : > { %v24804_v41 = vpop.eup %24803 }
0x1348   : > { %v17111_v35 = vmul.f32 %v24804_v41, %v17103_v7 }
0x134a   : > { %17149 = vperm.xlu1 %22514, %v17111_v35   ;;  %v17094_v35 = vsub.f32 %v30937_v19, %v30994_v24  ;;  %v17247_v19 = vld [vmem:[%s31099_s12 + $0x30] sm:$0xff] }
0x134e   : > { %17206 = vperm.xlu1 %22514, %v21210_v46  }
0x13ad   : > { %v17115_v43 = vpop.permute.xlu1 %17114 }
0x13ae   : > { %v17152_v45 = vmul.f32 %v17115_v43, %v17088_v57 }
0x13af   : > { %v17120_v50 = vpop.permute.xlu0 %17119 }
0x13b0   : > { %v17209_v56 = vadd.f32 %v17172_v13, %v17152_v45  ;;  %v17153_v48 = vmul.f32 %v17120_v50, %v17089_v53 }
0x13b2   : > { %vm17217_vm8 = vcmp.gt.f32.partialorder %v17209_v56, 0.0  ;;  %v17225_v52 = vmul.f32 0.2, %v17209_v56  ;;  %v17210_v8 = vadd.f32 %v17177_v37, %v17153_v48 }
0x13b3   : > { %v17125_v55 = vpop.permute.xlu1 %17124  ;;  %v17192_v17 = vpop.permute.xlu0 %17191 }
0x13b4   : > { %v17233_v4 = vsel %vm17217_vm8, %v17209_v56, %v17225_v52  ;;  %vm17218_vm9 = vcmp.gt.f32.partialorder %v17210_v8, 0.0  ;;  %v17226_v61 = vmul.f32 0.2, %v17210_v8  ;;  %v17154_v54 = vmul.f32 %v17125_v55, %v17090_v47 }
0x13b5   : > { %v17249_v33 = vmul.f32 %v17241_v21, %v17233_v4  ;;  %v17095_v21 = vsub.f32 %v30940_v39, %v31001_v9 }
0x13b6   : > { %v17234_v0 = vsel %vm17218_vm9, %v17210_v8, %v17226_v61  ;;  %v17211_v59 = vadd.f32 %v17182_v42, %v17154_v54  ;;  %v17248_v54 = vld [vmem:[%s31099_s12 + $0x38] sm:$0xff] }
0x13b7   : > { %v17250_v62 = vmul.f32 %v17242_v34, %v17234_v0  ;;  %v17130_v30 = vpop.permute.xlu1 %17129  ;;  %v17257_v10 = vsel %vm2707_vm11, %v17249_v33, 0.0  ;;  %v17197_v29 = vpop.permute.xlu0 %17196 }
0x13b8   : > { %vm17219_vm10 = vcmp.gt.f32.partialorder %v17211_v59, 0.0  ;;  %v17227_v11 = vmul.f32 0.2, %v17211_v59  ;;  %v17155_v5 = vmul.f32 %v17130_v30, %v17091_v60 }
0x13b9   : > { %v17258_v16 = vsel %vm2707_vm11, %v17250_v62, 0.0 }
0x13ba   : > { %v17259_v18 = vadd.f32 %v17258_v16, %v17257_v10  ;;  %v17235_v40 = vsel %vm17219_vm10, %v17211_v59, %v17227_v11  ;;  %v17212_v49 = vadd.f32 %v17187_v38, %v17155_v5  ;;  %v17282_v16 = vld [vmem:[#allocation5] sm:$0x1] }
0x13bb   : > { %v17251_v44 = vmul.f32 %v17243_v23, %v17235_v40  ;;  %v17135_v63 = vpop.permute.xlu1 %17134  ;;  %v17202_v38 = vpop.permute.xlu0 %17201 }
0x13bc   : > { %vm17220_vm12 = vcmp.gt.f32.partialorder %v17212_v49, 0.0  ;;  %v17228_v27 = vmul.f32 0.2, %v17212_v49  ;;  %v17156_v3 = vmul.f32 %v17135_v63, %v17092_v26 }
0x13bd   : > { %v17260_v6 = vsel %vm2707_vm11, %v17251_v44, 0.0 }
0x13be   : > { %v17261_v51 = vadd.f32 %v17260_v6, %v17259_v18  ;;  %v17236_v58 = vsel %vm17220_vm12, %v17212_v49, %v17228_v27  ;;  %v17213_v12 = vadd.f32 %v17192_v17, %v17156_v3 }
0x13bf   : > { %v17252_v15 = vmul.f32 %v17244_v25, %v17236_v58  ;;  %v17140_v2 = vpop.permute.xlu1 %17139 }
0x13c0   : > { %vm17221_vm13 = vcmp.gt.f32.partialorder %v17213_v12, 0.0  ;;  %v17229_v22 = vmul.f32 0.2, %v17213_v12  ;;  %v17157_v36 = vmul.f32 %v17140_v2, %v17093_v28 }
0x13c1   : > { %v17262_v31 = vsel %vm2707_vm11, %v17252_v15, 0.0 }
0x13c2   : > { %v17263_v32 = vadd.f32 %v17262_v31, %v17261_v51  ;;  %v17237_v7 = vsel %vm17221_vm13, %v17213_v12, %v17229_v22  ;;  %v17214_v41 = vadd.f32 %v17197_v29, %v17157_v36 }
0x13c3   : > { %v17253_v46 = vmul.f32 %v17245_v1, %v17237_v7  ;;  %v17145_v20 = vpop.permute.xlu1 %17144 }
0x13c4   : > { %vm17222_vm14 = vcmp.gt.f32.partialorder %v17214_v41, 0.0  ;;  %v17230_v37 = vmul.f32 0.2, %v17214_v41  ;;  %v17158_v42 = vmul.f32 %v17145_v20, %v17094_v35 }
0x13c5   : > { %v17264_v13 = vsel %vm2707_vm11, %v17253_v46, 0.0 }
0x13c6   : > { %v17238_v57 = vsel %vm17222_vm14, %v17214_v41, %v17230_v37  ;;  %v17215_v43 = vadd.f32 %v17202_v38, %v17158_v42  ;;  %v17265_v45 = vadd.f32 %v17264_v13, %v17263_v32 }
0x13c7   : > { %v17254_v53 = vmul.f32 %v17246_v14, %v17238_v57 }
0x13c8   : > { %vm17223_vm15 = vcmp.gt.f32.partialorder %v17215_v43, 0.0  ;;  %v17231_v24 = vmul.f32 0.2, %v17215_v43 }
0x13c9   : > { %v17150_v50 = vpop.permute.xlu1 %17149  ;;  %v17266_v56 = vsel %vm2707_vm11, %v17254_v53, 0.0 }
0x13ca   : > { %v17239_v48 = vsel %vm17223_vm15, %v17215_v43, %v17231_v24  ;;  %v17267_v52 = vadd.f32 %v17266_v56, %v17265_v45  ;;  %v17159_v47 = vmul.f32 %v17150_v50, %v17095_v21 }
0x13cb   : > { %v17255_v8 = vmul.f32 %v17247_v19, %v17239_v48 }
0x13cd   : > { %v17207_v55 = vpop.permute.xlu1 %17206  ;;  %v17268_v4 = vsel %vm2707_vm11, %v17255_v8, 0.0 }
0x13ce   : > { %v17216_v34 = vadd.f32 %v17207_v55, %v17159_v47  ;;  %v17269_v61 = vadd.f32 %v17268_v4, %v17267_v52 }
0x13d0   : > { %vm17224_vm0 = vcmp.gt.f32.partialorder %v17216_v34, 0.0  ;;  %v17232_v33 = vmul.f32 0.2, %v17216_v34 }
0x13d2   : > { %v17240_v0 = vsel %vm17224_vm0, %v17216_v34, %v17232_v33 }
0x13d3   : > { %v17256_v59 = vmul.f32 %v17248_v54, %v17240_v0 }
0x13d5   : > { %v17270_v60 = vsel %vm2707_vm11, %v17256_v59, 0.0 }
0x13d6   : > { %v17271_v39 = vadd.f32 %v17270_v60, %v17269_v61 }
0x13d8   : > { %17272 = vadd.xlane.f32.xlu0 %v17271_v39 }
0x1465   : > { %v17273_v9 = vpop.xlane.xlu0 %17272 }
0x1466   : > { %v17274_v62 = vrot.slane %v17273_v9, 4 }
0x1468   : > { %v17275_v30 = vadd.f32 %v17274_v62, %v17273_v9 }
0x146a   : > { %v17276_v23 = vrot.slane %v17275_v30, 2 }
0x146c   : > { %v17277_v11 = vadd.f32 %v17276_v23, %v17275_v30 }
0x146e   : > { %v17278_v5 = vrot.slane %v17277_v11, 1 }
0x1470   : > { %v17279_v10 = vadd.f32 %v17278_v5, %v17277_v11 }
0x1472   : > { %22498 = vpush %v17279_v10 }
0x14a3   : > { %s22499_s27 = spop %22498 }
0x14a4   : > { %v17281_v17 = vstv %s22499_s27 }
0x14a5   : > { %v17283_v18 = vadd.f32 %v17282_v16, %v17281_v17 }
0x14a7   : > { %17285 = vst.msk [vmem:[%s465_s30] sm:$0x1] %vm17284_vm1, %v17283_v18 }
0x14a8 PF: > { %s26_s15 = sadd.s32 1, %s24819_s15  }
0x14a9   : > { %p23_p4 = scmp.ge.s32.totalorder %s26_s15, 4  }
0x14ab   :  { %25 = sbr.rel (!%p23_p4) target bundleno = 3 (0x3), region = 135 }

</bundles_post_ra>
